<compile_context>
chip_gen: v7x
topology: tpu7x:2x2x1
jax: 0.10.0
libtpu: 0.0.40
codegen_flags: <defaults>
</compile_context>

<pallas_src>
import math
import jax
import jax.numpy as jnp
from jax import lax
from jax.experimental import pallas as pl
from jax.experimental.pallas import tpu as pltpu


def attack_advreg_kernel(
    x_ref, l_ref,
    # features: posterior_dim -> 1024 -> 512 (ReLU after each)
    fw1, fb1, fw2, fb2,
    # labels: class_dim -> 128 (ReLU)
    lw1, lb1,
    # fused "cat" layer: (512 -> 64 | 128 -> 64) as block-diagonal (512,128)/(128,128)
    mwx, mwl, mb,
    # combine: 128 -> 256 -> 128 -> 64 -> 1 (ReLU after first three)
    cw1, cb1, cw2, cb2, cw3, cb3, cw4_row, cb4,
    out_ref,
):
    f32 = jnp.float32

    def lin_relu(a, w_ref, b_ref):
        # bf16 x bf16 matmul with f32 accumulation, f32 bias add + ReLU, back to bf16.
        z = jnp.dot(a, w_ref[...], preferred_element_type=f32) + b_ref[...]
        return jnp.maximum(z, 0.0).astype(jnp.bfloat16)

    x = x_ref[...]                         # (TM, Dp) bf16
    l = l_ref[...]                         # (TM, Dc) bf16

    # features branch (first two layers)
    hx = lin_relu(x, fw1, fb1)             # (TM, 1024)
    hx = lin_relu(hx, fw2, fb2)            # (TM, 512)

    # labels branch (first layer)
    hl = lin_relu(l, lw1, lb1)             # (TM, 128)

    # Fused final feature/label layers -> cat(out_x, out_l) directly as a (TM, 128)
    # tile. mwx = [fw3 | 0] (512,128), mwl = [0 | lw2] (128,128), mb = [fb3 | lb2].
    hc = jnp.dot(hx, mwx[...], preferred_element_type=f32)
    hc = hc + jnp.dot(hl, mwl[...], preferred_element_type=f32)
    hc = jnp.maximum(hc + mb[...], 0.0).astype(jnp.bfloat16)   # (TM, 128)

    # combine branch: single full-width (128,256) contraction, then the rest.
    h = lin_relu(hc, cw1, cb1)             # (TM, 256)
    h = lin_relu(h, cw2, cb2)              # (TM, 128)
    h = lin_relu(h, cw3, cb3)              # (TM, 64)

    # final 64 -> 1: contract against the weight row so the batch lands on the lane
    # axis -> lane-dense (1, TM) logits, no masked (B,1) stores. (Any rhs transpose
    # this implies runs on the XLU, which has slack here — MXU/VPU dominate.)
    logit = lax.dot_general(
        cw4_row[...], h,                                       # (1,64) , (TM,64)
        dimension_numbers=(((1,), (1,)), ((), ())),
        preferred_element_type=f32,
    ) + cb4[...]                                               # (1, TM)

    # sigmoid: exp + reciprocal both on the EUP (reciprocal approx, ~1e-3 level error)
    prob = pl.reciprocal(1.0 + jnp.exp(-logit), approx=True)
    out_ref[...] = prob.astype(out_ref.dtype)


def _round_up(v, m):
    return ((v + m - 1) // m) * m


def _choose_tiling(batch):
    """Return (tm, num_tiles)."""
    if batch <= 512:
        # One tile, 128-row aligned (MXU rows + bf16 sublane packing on all chips).
        # At this size the call is weight-DMA latency bound, not tile-shape bound.
        tm = max(128, _round_up(batch, 128))
        return tm, 1
    # Large batches: distribute rows ~evenly so padding waste stays <128 rows/tile,
    # cap tm at 1024 (amortizes step overhead, fits v7x 64 MiB VMEM comfortably),
    # keep >= 2 tiles so the "parallel" batch axis can use both v7x TensorCores.
    base_tm = 1024
    num_tiles = max(2, pl.cdiv(batch, base_tm))
    tm = min(base_tm, _round_up(pl.cdiv(batch, num_tiles), 128))
    num_tiles = pl.cdiv(batch, tm)
    return tm, num_tiles


# Cached capability flag: whether this JAX accepts pipeline_mode=pl.Buffered(1)
# for the VMEM-resident weights (single-buffering). Decided on first call.
_SINGLE_BUFFER_WEIGHTS_OK = None


def attack_advreg_forward(x, l, params, *, tm=None):
    """x: (B, posterior_dim), l: (B, class_dim). Returns (B, 1) membership probability."""
    global _SINGLE_BUFFER_WEIGHTS_OK

    B, Dp = x.shape
    Dc = l.shape[1]

    if tm is None:
        tm, num_tiles = _choose_tiling(B)
    else:
        num_tiles = pl.cdiv(B, tm)
    padded_b = num_tiles * tm
    pad = padded_b - B

    xb = jnp.pad(x.astype(jnp.bfloat16), ((0, pad), (0, 0)))
    lb = jnp.pad(l.astype(jnp.bfloat16), ((0, pad), (0, 0)))

    weight_args = tuple(params)
    weight_bytes = sum(int(w.size) * w.dtype.itemsize for w in weight_args)

    # Cost estimate (advisory) for the whole call.
    mm_dims = [(Dp, 1024), (1024, 512), (512, 128),
               (Dc, 128), (128, 128),
               (128, 256), (256, 128), (128, 64), (64, 1)]
    flops = 2 * padded_b * sum(k * n for k, n in mm_dims)
    bytes_accessed = int(weight_bytes + xb.size * 2 + lb.size * 2 + padded_b * 4)
    cost = pl.CostEstimate(flops=int(flops),
                           transcendentals=int(2 * padded_b),
                           bytes_accessed=bytes_accessed)

    def batch_spec(d):
        return pl.BlockSpec((tm, d), lambda i: (i, 0))

    def resident_spec(a, single_buffer):
        # Full-array block, constant index map -> fetched once, VMEM-resident.
        if single_buffer:
            return pl.BlockSpec(a.shape, lambda i: (0, 0),
                                pipeline_mode=pl.Buffered(1))
        return pl.BlockSpec(a.shape, lambda i: (0, 0))

    def run(single_buffer):
        in_specs = ([batch_spec(Dp), batch_spec(Dc)]
                    + [resident_spec(w, single_buffer) for w in weight_args])
        # Lane-dense output: one row of padded_b probabilities in (1, tm) blocks.
        out_spec = pl.BlockSpec((1, tm), lambda i: (0, i))

        weight_buf = 1 if single_buffer else 2
        # f32 accumulators + bf16 copies of per-layer activations for one tile.
        act_bytes = tm * (1024 + 512 + 256 + 2 * 128 + 64) * (4 + 2)
        io_bytes = 2 * (tm * (Dp + Dc) * 2 + tm * 4)   # double-buffered x/l tiles + out row
        vmem_limit = min(48 * 1024 * 1024,
                         max(32 * 1024 * 1024,
                             weight_buf * weight_bytes + act_bytes + io_bytes))

        return pl.pallas_call(
            attack_advreg_kernel,
            out_shape=jax.ShapeDtypeStruct((1, padded_b), jnp.float32),
            grid=(num_tiles,),
            in_specs=in_specs,
            out_specs=out_spec,
            compiler_params=pltpu.CompilerParams(
                dimension_semantics=("parallel",),
                vmem_limit_bytes=int(vmem_limit)),
            cost_estimate=cost,
        )(xb, lb, *weight_args)

    if _SINGLE_BUFFER_WEIGHTS_OK is None:
        try:
            out = run(True)
            _SINGLE_BUFFER_WEIGHTS_OK = True
        except Exception:
            # Older/divergent Pallas without Buffered(1) support on pallas_call specs:
            # fall back to default (double-buffered) resident weights.
            out = run(False)
            _SINGLE_BUFFER_WEIGHTS_OK = False
    else:
        out = run(_SINGLE_BUFFER_WEIGHTS_OK)

    return out.reshape(-1)[:B].reshape(B, 1)


def init_linear(key, fan_in, fan_out):
    """PyTorch nn.Linear default init (uniform +/- 1/sqrt(fan_in)); weight (in,out), bias (1,out)."""
    kw, kb = jax.random.split(key)
    bound = 1.0 / math.sqrt(fan_in)
    w = jax.random.uniform(kw, (fan_in, fan_out), jnp.float32, -bound, bound)
    b = jax.random.uniform(kb, (1, fan_out), jnp.float32, -bound, bound)
    return w, b


def init_params(key, posterior_dim, class_dim):
    keys = jax.random.split(key, 9)
    fw1, fb1 = init_linear(keys[0], posterior_dim, 1024)
    fw2, fb2 = init_linear(keys[1], 1024, 512)
    fw3, fb3 = init_linear(keys[2], 512, 64)
    lw1, lb1 = init_linear(keys[3], class_dim, 128)
    lw2, lb2 = init_linear(keys[4], 128, 64)
    cw1, cb1 = init_linear(keys[5], 128, 256)
    cw2, cb2 = init_linear(keys[6], 256, 128)
    cw3, cb3 = init_linear(keys[7], 128, 64)
    cw4, cb4 = init_linear(keys[8], 64, 1)

    # Fuse the features 512->64 and labels 128->64 layers into one 128-wide layer that
    # directly produces cat(out_x, out_l): block-diagonal zero-padded weights + concatenated
    # bias. Host-side prep only; math is identical to the PyTorch module.
    mwx = jnp.concatenate([fw3, jnp.zeros((512, 64), jnp.float32)], axis=1)   # (512,128)
    mwl = jnp.concatenate([jnp.zeros((128, 64), jnp.float32), lw2], axis=1)   # (128,128)
    mb = jnp.concatenate([fb3, lb2], axis=1)                                   # (1,128)

    cw4_row = cw4.reshape(1, 64)   # (64,1) -> (1,64) for the transposed final contraction

    bf16 = jnp.bfloat16
    return (
        fw1.astype(bf16), fb1, fw2.astype(bf16), fb2,
        lw1.astype(bf16), lb1,
        mwx.astype(bf16), mwl.astype(bf16), mb,
        cw1.astype(bf16), cb1, cw2.astype(bf16), cb2, cw3.astype(bf16), cb3,
        cw4_row.astype(bf16), cb4,            # biases stay f32
    )


def reference_forward(x, l, params):
    """f32 reference using the same (bf16-rounded) weights; matches the PyTorch forward."""
    (fw1, fb1, fw2, fb2,
     lw1, lb1,
     mwx, mwl, mb,
     cw1, cb1, cw2, cb2, cw3, cb3, cw4_row, cb4) = params
    f32 = jnp.float32
    relu = lambda z: jnp.maximum(z, 0.0)
    x = x.astype(f32)
    l = l.astype(f32)
    hx = relu(x @ fw1.astype(f32) + fb1)
    hx = relu(hx @ fw2.astype(f32) + fb2)
    hl = relu(l @ lw1.astype(f32) + lb1)
    # hc == cat(out_x, out_l) by construction of the block-diagonal weights.
    hc = relu(hx @ mwx.astype(f32) + hl @ mwl.astype(f32) + mb)
    h = relu(hc @ cw1.astype(f32) + cb1)
    h = relu(h @ cw2.astype(f32) + cb2)
    h = relu(h @ cw3.astype(f32) + cb3)
    logit = h @ cw4_row.astype(f32).T + cb4
    return jax.nn.sigmoid(logit)


if __name__ == "__main__":
    posterior_dim = 10   # number of posterior entries
    class_dim = 10       # one-hot class label dimension

    key = jax.random.PRNGKey(0)
    kp, kdata = jax.random.split(key)
    params = init_params(kp, posterior_dim, class_dim)

    # batch=12 exercises the single small-tile (128-row) path; batch=600 exercises the
    # multi-tile path (2 tiles of 384 rows) with padding + parallel batch axis.
    for case, batch in enumerate((12, 600)):
        kx, kl = jax.random.split(jax.random.fold_in(kdata, case))
        x = jax.nn.softmax(jax.random.normal(kx, (batch, posterior_dim), jnp.float32), axis=-1)
        labels = jax.random.randint(kl, (batch,), 0, class_dim)
        l = jax.nn.one_hot(labels, class_dim, dtype=jnp.float32)

        out = jax.block_until_ready(attack_advreg_forward(x, l, params))
        ref = reference_forward(x, l, params)

        assert out.shape == (batch, 1), out.shape
        assert bool(jnp.all(jnp.isfinite(out)))
        # bf16 weights/activations + approx EUP reciprocal -> loosened tolerance vs f32 ref
        assert jnp.allclose(out, ref, atol=2e-2, rtol=0.0), (case, out, ref)

    print("KERNEL_OK")
</pallas_src>

<mosaic_0001>
module attributes {stable_mosaic.version = 11 : i64} {
  func.func @attack_advreg_kernel(%arg0: i32, %arg1: memref<128x10xbf16, #tpu.memory_space<vmem>>, %arg2: memref<128x10xbf16, #tpu.memory_space<vmem>>, %arg3: memref<10x1024xbf16, #tpu.memory_space<vmem>>, %arg4: memref<1x1024xf32, #tpu.memory_space<vmem>>, %arg5: memref<1024x512xbf16, #tpu.memory_space<vmem>>, %arg6: memref<1x512xf32, #tpu.memory_space<vmem>>, %arg7: memref<10x128xbf16, #tpu.memory_space<vmem>>, %arg8: memref<1x128xf32, #tpu.memory_space<vmem>>, %arg9: memref<512x128xbf16, #tpu.memory_space<vmem>>, %arg10: memref<128x128xbf16, #tpu.memory_space<vmem>>, %arg11: memref<1x128xf32, #tpu.memory_space<vmem>>, %arg12: memref<128x256xbf16, #tpu.memory_space<vmem>>, %arg13: memref<1x256xf32, #tpu.memory_space<vmem>>, %arg14: memref<256x128xbf16, #tpu.memory_space<vmem>>, %arg15: memref<1x128xf32, #tpu.memory_space<vmem>>, %arg16: memref<128x64xbf16, #tpu.memory_space<vmem>>, %arg17: memref<1x64xf32, #tpu.memory_space<vmem>>, %arg18: memref<1x64xbf16, #tpu.memory_space<vmem>>, %arg19: memref<1x1xf32, #tpu.memory_space<vmem>>, %arg20: memref<1x128xf32, #tpu.memory_space<vmem>>) attributes {dimension_semantics = [#tpu.dimension_semantics<parallel>], iteration_bounds = array<i64: 1>, scalar_prefetch = 0 : i64, scratch_operands = 0 : i64, tpu.core_type = #tpu.core_type<tc>, window_params = [{transform_indices = @transform_0, window_bounds = array<i64: 128, 10>}, {transform_indices = @transform_1, window_bounds = array<i64: 128, 10>}, {pipeline_mode = #tpu.pipeline_mode<synchronous>, transform_indices = @transform_2, window_bounds = array<i64: 10, 1024>}, {pipeline_mode = #tpu.pipeline_mode<synchronous>, transform_indices = @transform_3, window_bounds = array<i64: 1, 1024>}, {pipeline_mode = #tpu.pipeline_mode<synchronous>, transform_indices = @transform_4, window_bounds = array<i64: 1024, 512>}, {pipeline_mode = #tpu.pipeline_mode<synchronous>, transform_indices = @transform_5, window_bounds = array<i64: 1, 512>}, {pipeline_mode = #tpu.pipeline_mode<synchronous>, transform_indices = @transform_6, window_bounds = array<i64: 10, 128>}, {pipeline_mode = #tpu.pipeline_mode<synchronous>, transform_indices = @transform_7, window_bounds = array<i64: 1, 128>}, {pipeline_mode = #tpu.pipeline_mode<synchronous>, transform_indices = @transform_8, window_bounds = array<i64: 512, 128>}, {pipeline_mode = #tpu.pipeline_mode<synchronous>, transform_indices = @transform_9, window_bounds = array<i64: 128, 128>}, {pipeline_mode = #tpu.pipeline_mode<synchronous>, transform_indices = @transform_10, window_bounds = array<i64: 1, 128>}, {pipeline_mode = #tpu.pipeline_mode<synchronous>, transform_indices = @transform_11, window_bounds = array<i64: 128, 256>}, {pipeline_mode = #tpu.pipeline_mode<synchronous>, transform_indices = @transform_12, window_bounds = array<i64: 1, 256>}, {pipeline_mode = #tpu.pipeline_mode<synchronous>, transform_indices = @transform_13, window_bounds = array<i64: 256, 128>}, {pipeline_mode = #tpu.pipeline_mode<synchronous>, transform_indices = @transform_14, window_bounds = array<i64: 1, 128>}, {pipeline_mode = #tpu.pipeline_mode<synchronous>, transform_indices = @transform_15, window_bounds = array<i64: 128, 64>}, {pipeline_mode = #tpu.pipeline_mode<synchronous>, transform_indices = @transform_16, window_bounds = array<i64: 1, 64>}, {pipeline_mode = #tpu.pipeline_mode<synchronous>, transform_indices = @transform_17, window_bounds = array<i64: 1, 64>}, {pipeline_mode = #tpu.pipeline_mode<synchronous>, transform_indices = @transform_18, window_bounds = array<i64: 1, 1>}, {transform_indices = @transform_19, window_bounds = array<i64: 1, 128>}]} {
    %c0 = arith.constant 0 : index
    %c0_0 = arith.constant 0 : index
    %0 = vector.load %arg1[%c0, %c0_0] : memref<128x10xbf16, #tpu.memory_space<vmem>>, vector<128x10xbf16>
    %c0_1 = arith.constant 0 : index
    %c0_2 = arith.constant 0 : index
    %1 = vector.load %arg2[%c0_1, %c0_2] : memref<128x10xbf16, #tpu.memory_space<vmem>>, vector<128x10xbf16>
    %c0_3 = arith.constant 0 : index
    %c0_4 = arith.constant 0 : index
    %2 = vector.load %arg3[%c0_3, %c0_4] : memref<10x1024xbf16, #tpu.memory_space<vmem>>, vector<10x1024xbf16>
    %cst = arith.constant dense<0.000000e+00> : vector<128x1024xf32>
    %3 = tpu.matmul %0, %2, %cst {dimension_numbers = #tpu.dot_dimension_numbers<[1], [0], [0], [1], [0, 0, 1, 1], [], []>} : vector<128x10xbf16>, vector<10x1024xbf16>, vector<128x1024xf32> -> vector<128x1024xf32>
    %c0_5 = arith.constant 0 : index
    %c0_6 = arith.constant 0 : index
    %4 = vector.load %arg4[%c0_5, %c0_6] : memref<1x1024xf32, #tpu.memory_space<vmem>>, vector<1x1024xf32>
    %5 = vector.broadcast %4 : vector<1x1024xf32> to vector<128x1024xf32>
    %6 = arith.addf %3, %5 : vector<128x1024xf32>
    %cst_7 = arith.constant 0.000000e+00 : f32
    %7 = vector.broadcast %cst_7 : f32 to vector<128x1024xf32>
    %8 = arith.maximumf %6, %7 : vector<128x1024xf32>
    %9 = arith.truncf %8 : vector<128x1024xf32> to vector<128x1024xbf16>
    %c0_8 = arith.constant 0 : index
    %c0_9 = arith.constant 0 : index
    %10 = vector.load %arg5[%c0_8, %c0_9] : memref<1024x512xbf16, #tpu.memory_space<vmem>>, vector<1024x512xbf16>
    %cst_10 = arith.constant dense<0.000000e+00> : vector<128x512xf32>
    %11 = tpu.matmul %9, %10, %cst_10 {dimension_numbers = #tpu.dot_dimension_numbers<[1], [0], [0], [1], [0, 0, 1, 1], [], []>} : vector<128x1024xbf16>, vector<1024x512xbf16>, vector<128x512xf32> -> vector<128x512xf32>
    %c0_11 = arith.constant 0 : index
    %c0_12 = arith.constant 0 : index
    %12 = vector.load %arg6[%c0_11, %c0_12] : memref<1x512xf32, #tpu.memory_space<vmem>>, vector<1x512xf32>
    %13 = vector.broadcast %12 : vector<1x512xf32> to vector<128x512xf32>
    %14 = arith.addf %11, %13 : vector<128x512xf32>
    %cst_13 = arith.constant 0.000000e+00 : f32
    %15 = vector.broadcast %cst_13 : f32 to vector<128x512xf32>
    %16 = arith.maximumf %14, %15 : vector<128x512xf32>
    %17 = arith.truncf %16 : vector<128x512xf32> to vector<128x512xbf16>
    %c0_14 = arith.constant 0 : index
    %c0_15 = arith.constant 0 : index
    %18 = vector.load %arg7[%c0_14, %c0_15] : memref<10x128xbf16, #tpu.memory_space<vmem>>, vector<10x128xbf16>
    %cst_16 = arith.constant dense<0.000000e+00> : vector<128x128xf32>
    %19 = tpu.matmul %1, %18, %cst_16 {dimension_numbers = #tpu.dot_dimension_numbers<[1], [0], [0], [1], [0, 0, 1, 1], [], []>} : vector<128x10xbf16>, vector<10x128xbf16>, vector<128x128xf32> -> vector<128x128xf32>
    %c0_17 = arith.constant 0 : index
    %c0_18 = arith.constant 0 : index
    %20 = vector.load %arg8[%c0_17, %c0_18] : memref<1x128xf32, #tpu.memory_space<vmem>>, vector<1x128xf32>
    %21 = vector.broadcast %20 : vector<1x128xf32> to vector<128x128xf32>
    %22 = arith.addf %19, %21 : vector<128x128xf32>
    %cst_19 = arith.constant 0.000000e+00 : f32
    %23 = vector.broadcast %cst_19 : f32 to vector<128x128xf32>
    %24 = arith.maximumf %22, %23 : vector<128x128xf32>
    %25 = arith.truncf %24 : vector<128x128xf32> to vector<128x128xbf16>
    %c0_20 = arith.constant 0 : index
    %c0_21 = arith.constant 0 : index
    %26 = vector.load %arg9[%c0_20, %c0_21] : memref<512x128xbf16, #tpu.memory_space<vmem>>, vector<512x128xbf16>
    %cst_22 = arith.constant dense<0.000000e+00> : vector<128x128xf32>
    %27 = tpu.matmul %17, %26, %cst_22 {dimension_numbers = #tpu.dot_dimension_numbers<[1], [0], [0], [1], [0, 0, 1, 1], [], []>} : vector<128x512xbf16>, vector<512x128xbf16>, vector<128x128xf32> -> vector<128x128xf32>
    %c0_23 = arith.constant 0 : index
    %c0_24 = arith.constant 0 : index
    %28 = vector.load %arg10[%c0_23, %c0_24] : memref<128x128xbf16, #tpu.memory_space<vmem>>, vector<128x128xbf16>
    %cst_25 = arith.constant dense<0.000000e+00> : vector<128x128xf32>
    %29 = tpu.matmul %25, %28, %cst_25 {dimension_numbers = #tpu.dot_dimension_numbers<[1], [0], [0], [1], [0, 0, 1, 1], [], []>} : vector<128x128xbf16>, vector<128x128xbf16>, vector<128x128xf32> -> vector<128x128xf32>
    %30 = arith.addf %27, %29 : vector<128x128xf32>
    %c0_26 = arith.constant 0 : index
    %c0_27 = arith.constant 0 : index
    %31 = vector.load %arg11[%c0_26, %c0_27] : memref<1x128xf32, #tpu.memory_space<vmem>>, vector<1x128xf32>
    %32 = vector.broadcast %31 : vector<1x128xf32> to vector<128x128xf32>
    %33 = arith.addf %30, %32 : vector<128x128xf32>
    %cst_28 = arith.constant 0.000000e+00 : f32
    %34 = vector.broadcast %cst_28 : f32 to vector<128x128xf32>
    %35 = arith.maximumf %33, %34 : vector<128x128xf32>
    %36 = arith.truncf %35 : vector<128x128xf32> to vector<128x128xbf16>
    %c0_29 = arith.constant 0 : index
    %c0_30 = arith.constant 0 : index
    %37 = vector.load %arg12[%c0_29, %c0_30] : memref<128x256xbf16, #tpu.memory_space<vmem>>, vector<128x256xbf16>
    %cst_31 = arith.constant dense<0.000000e+00> : vector<128x256xf32>
    %38 = tpu.matmul %36, %37, %cst_31 {dimension_numbers = #tpu.dot_dimension_numbers<[1], [0], [0], [1], [0, 0, 1, 1], [], []>} : vector<128x128xbf16>, vector<128x256xbf16>, vector<128x256xf32> -> vector<128x256xf32>
    %c0_32 = arith.constant 0 : index
    %c0_33 = arith.constant 0 : index
    %39 = vector.load %arg13[%c0_32, %c0_33] : memref<1x256xf32, #tpu.memory_space<vmem>>, vector<1x256xf32>
    %40 = vector.broadcast %39 : vector<1x256xf32> to vector<128x256xf32>
    %41 = arith.addf %38, %40 : vector<128x256xf32>
    %cst_34 = arith.constant 0.000000e+00 : f32
    %42 = vector.broadcast %cst_34 : f32 to vector<128x256xf32>
    %43 = arith.maximumf %41, %42 : vector<128x256xf32>
    %44 = arith.truncf %43 : vector<128x256xf32> to vector<128x256xbf16>
    %c0_35 = arith.constant 0 : index
    %c0_36 = arith.constant 0 : index
    %45 = vector.load %arg14[%c0_35, %c0_36] : memref<256x128xbf16, #tpu.memory_space<vmem>>, vector<256x128xbf16>
    %cst_37 = arith.constant dense<0.000000e+00> : vector<128x128xf32>
    %46 = tpu.matmul %44, %45, %cst_37 {dimension_numbers = #tpu.dot_dimension_numbers<[1], [0], [0], [1], [0, 0, 1, 1], [], []>} : vector<128x256xbf16>, vector<256x128xbf16>, vector<128x128xf32> -> vector<128x128xf32>
    %c0_38 = arith.constant 0 : index
    %c0_39 = arith.constant 0 : index
    %47 = vector.load %arg15[%c0_38, %c0_39] : memref<1x128xf32, #tpu.memory_space<vmem>>, vector<1x128xf32>
    %48 = vector.broadcast %47 : vector<1x128xf32> to vector<128x128xf32>
    %49 = arith.addf %46, %48 : vector<128x128xf32>
    %cst_40 = arith.constant 0.000000e+00 : f32
    %50 = vector.broadcast %cst_40 : f32 to vector<128x128xf32>
    %51 = arith.maximumf %49, %50 : vector<128x128xf32>
    %52 = arith.truncf %51 : vector<128x128xf32> to vector<128x128xbf16>
    %c0_41 = arith.constant 0 : index
    %c0_42 = arith.constant 0 : index
    %53 = vector.load %arg16[%c0_41, %c0_42] : memref<128x64xbf16, #tpu.memory_space<vmem>>, vector<128x64xbf16>
    %cst_43 = arith.constant dense<0.000000e+00> : vector<128x64xf32>
    %54 = tpu.matmul %52, %53, %cst_43 {dimension_numbers = #tpu.dot_dimension_numbers<[1], [0], [0], [1], [0, 0, 1, 1], [], []>} : vector<128x128xbf16>, vector<128x64xbf16>, vector<128x64xf32> -> vector<128x64xf32>
    %c0_44 = arith.constant 0 : index
    %c0_45 = arith.constant 0 : index
    %55 = vector.load %arg17[%c0_44, %c0_45] : memref<1x64xf32, #tpu.memory_space<vmem>>, vector<1x64xf32>
    %56 = vector.broadcast %55 : vector<1x64xf32> to vector<128x64xf32>
    %57 = arith.addf %54, %56 : vector<128x64xf32>
    %cst_46 = arith.constant 0.000000e+00 : f32
    %58 = vector.broadcast %cst_46 : f32 to vector<128x64xf32>
    %59 = arith.maximumf %57, %58 : vector<128x64xf32>
    %60 = arith.truncf %59 : vector<128x64xf32> to vector<128x64xbf16>
    %c0_47 = arith.constant 0 : index
    %c0_48 = arith.constant 0 : index
    %61 = vector.load %arg18[%c0_47, %c0_48] : memref<1x64xbf16, #tpu.memory_space<vmem>>, vector<1x64xbf16>
    %cst_49 = arith.constant dense<0.000000e+00> : vector<1x128xf32>
    %62 = tpu.matmul %61, %60, %cst_49 {dimension_numbers = #tpu.dot_dimension_numbers<[1], [1], [0], [0], [0, 0, 1, 0], [], []>} : vector<1x64xbf16>, vector<128x64xbf16>, vector<1x128xf32> -> vector<1x128xf32>
    %c0_50 = arith.constant 0 : index
    %c0_51 = arith.constant 0 : index
    %63 = vector.load %arg19[%c0_50, %c0_51] : memref<1x1xf32, #tpu.memory_space<vmem>>, vector<1x1xf32>
    %64 = vector.broadcast %63 : vector<1x1xf32> to vector<1x128xf32>
    %65 = arith.addf %62, %64 : vector<1x128xf32>
    %cst_52 = arith.constant 0.000000e+00 : f32
    %66 = vector.broadcast %cst_52 : f32 to vector<1x128xf32>
    %67 = arith.subf %66, %65 : vector<1x128xf32>
    %68 = math.exp %67 : vector<1x128xf32>
    %cst_53 = arith.constant 1.000000e+00 : f32
    %69 = vector.broadcast %cst_53 : f32 to vector<1x128xf32>
    %70 = arith.addf %69, %68 : vector<1x128xf32>
    %71 = tpu.reciprocal %70 {approx = true} : vector<1x128xf32> -> vector<1x128xf32>
    %c0_54 = arith.constant 0 : index
    %c0_55 = arith.constant 0 : index
    %72 = vector.load %arg20[%c0_54, %c0_55] : memref<1x128xf32, #tpu.memory_space<vmem>>, vector<1x128xf32>
    tpu.vector_store %arg20[%c0_54, %c0_55], %71 {strides = array<i32>} : memref<1x128xf32, #tpu.memory_space<vmem>>, vector<1x128xf32>,
    return
  }
  func.func @transform_0(%arg0: i32) -> (i32, i32) {
    %c0_i32 = arith.constant 0 : i32
    %c0_i32_0 = arith.constant 0 : i32
    return %arg0, %c0_i32 : i32, i32
  }
  func.func @transform_1(%arg0: i32) -> (i32, i32) {
    %c0_i32 = arith.constant 0 : i32
    %c0_i32_0 = arith.constant 0 : i32
    return %arg0, %c0_i32 : i32, i32
  }
  func.func @transform_2(%arg0: i32) -> (i32, i32) {
    %c0_i32 = arith.constant 0 : i32
    %c0_i32_0 = arith.constant 0 : i32
    %c0_i32_1 = arith.constant 0 : i32
    return %c0_i32, %c0_i32_0 : i32, i32
  }
  func.func @transform_3(%arg0: i32) -> (i32, i32) {
    %c0_i32 = arith.constant 0 : i32
    %c0_i32_0 = arith.constant 0 : i32
    %c0_i32_1 = arith.constant 0 : i32
    return %c0_i32, %c0_i32_0 : i32, i32
  }
  func.func @transform_4(%arg0: i32) -> (i32, i32) {
    %c0_i32 = arith.constant 0 : i32
    %c0_i32_0 = arith.constant 0 : i32
    %c0_i32_1 = arith.constant 0 : i32
    return %c0_i32, %c0_i32_0 : i32, i32
  }
  func.func @transform_5(%arg0: i32) -> (i32, i32) {
    %c0_i32 = arith.constant 0 : i32
    %c0_i32_0 = arith.constant 0 : i32
    %c0_i32_1 = arith.constant 0 : i32
    return %c0_i32, %c0_i32_0 : i32, i32
  }
  func.func @transform_6(%arg0: i32) -> (i32, i32) {
    %c0_i32 = arith.constant 0 : i32
    %c0_i32_0 = arith.constant 0 : i32
    %c0_i32_1 = arith.constant 0 : i32
    return %c0_i32, %c0_i32_0 : i32, i32
  }
  func.func @transform_7(%arg0: i32) -> (i32, i32) {
    %c0_i32 = arith.constant 0 : i32
    %c0_i32_0 = arith.constant 0 : i32
    %c0_i32_1 = arith.constant 0 : i32
    return %c0_i32, %c0_i32_0 : i32, i32
  }
  func.func @transform_8(%arg0: i32) -> (i32, i32) {
    %c0_i32 = arith.constant 0 : i32
    %c0_i32_0 = arith.constant 0 : i32
    %c0_i32_1 = arith.constant 0 : i32
    return %c0_i32, %c0_i32_0 : i32, i32
  }
  func.func @transform_9(%arg0: i32) -> (i32, i32) {
    %c0_i32 = arith.constant 0 : i32
    %c0_i32_0 = arith.constant 0 : i32
    %c0_i32_1 = arith.constant 0 : i32
    return %c0_i32, %c0_i32_0 : i32, i32
  }
  func.func @transform_10(%arg0: i32) -> (i32, i32) {
    %c0_i32 = arith.constant 0 : i32
    %c0_i32_0 = arith.constant 0 : i32
    %c0_i32_1 = arith.constant 0 : i32
    return %c0_i32, %c0_i32_0 : i32, i32
  }
  func.func @transform_11(%arg0: i32) -> (i32, i32) {
    %c0_i32 = arith.constant 0 : i32
    %c0_i32_0 = arith.constant 0 : i32
    %c0_i32_1 = arith.constant 0 : i32
    return %c0_i32, %c0_i32_0 : i32, i32
  }
  func.func @transform_12(%arg0: i32) -> (i32, i32) {
    %c0_i32 = arith.constant 0 : i32
    %c0_i32_0 = arith.constant 0 : i32
    %c0_i32_1 = arith.constant 0 : i32
    return %c0_i32, %c0_i32_0 : i32, i32
  }
  func.func @transform_13(%arg0: i32) -> (i32, i32) {
    %c0_i32 = arith.constant 0 : i32
    %c0_i32_0 = arith.constant 0 : i32
    %c0_i32_1 = arith.constant 0 : i32
    return %c0_i32, %c0_i32_0 : i32, i32
  }
  func.func @transform_14(%arg0: i32) -> (i32, i32) {
    %c0_i32 = arith.constant 0 : i32
    %c0_i32_0 = arith.constant 0 : i32
    %c0_i32_1 = arith.constant 0 : i32
    return %c0_i32, %c0_i32_0 : i32, i32
  }
  func.func @transform_15(%arg0: i32) -> (i32, i32) {
    %c0_i32 = arith.constant 0 : i32
    %c0_i32_0 = arith.constant 0 : i32
    %c0_i32_1 = arith.constant 0 : i32
    return %c0_i32, %c0_i32_0 : i32, i32
  }
  func.func @transform_16(%arg0: i32) -> (i32, i32) {
    %c0_i32 = arith.constant 0 : i32
    %c0_i32_0 = arith.constant 0 : i32
    %c0_i32_1 = arith.constant 0 : i32
    return %c0_i32, %c0_i32_0 : i32, i32
  }
  func.func @transform_17(%arg0: i32) -> (i32, i32) {
    %c0_i32 = arith.constant 0 : i32
    %c0_i32_0 = arith.constant 0 : i32
    %c0_i32_1 = arith.constant 0 : i32
    return %c0_i32, %c0_i32_0 : i32, i32
  }
  func.func @transform_18(%arg0: i32) -> (i32, i32) {
    %c0_i32 = arith.constant 0 : i32
    %c0_i32_0 = arith.constant 0 : i32
    %c0_i32_1 = arith.constant 0 : i32
    return %c0_i32, %c0_i32_0 : i32, i32
  }
  func.func @transform_19(%arg0: i32) -> (i32, i32) {
    %c0_i32 = arith.constant 0 : i32
    %c0_i32_0 = arith.constant 0 : i32
    return %c0_i32, %arg0 : i32, i32
  }
}

module attributes {stable_mosaic.version = 11 : i64} {
  func.func @attack_advreg_kernel(%arg0: i32, %arg1: memref<128x10xbf16, #tpu.memory_space<vmem>>, %arg2: memref<128x10xbf16, #tpu.memory_space<vmem>>, %arg3: memref<10x1024xbf16, #tpu.memory_space<vmem>>, %arg4: memref<1x1024xf32, #tpu.memory_space<vmem>>, %arg5: memref<1024x512xbf16, #tpu.memory_space<vmem>>, %arg6: memref<1x512xf32, #tpu.memory_space<vmem>>, %arg7: memref<10x128xbf16, #tpu.memory_space<vmem>>, %arg8: memref<1x128xf32, #tpu.memory_space<vmem>>, %arg9: memref<512x128xbf16, #tpu.memory_space<vmem>>, %arg10: memref<128x128xbf16, #tpu.memory_space<vmem>>, %arg11: memref<1x128xf32, #tpu.memory_space<vmem>>, %arg12: memref<128x256xbf16, #tpu.memory_space<vmem>>, %arg13: memref<1x256xf32, #tpu.memory_space<vmem>>, %arg14: memref<256x128xbf16, #tpu.memory_space<vmem>>, %arg15: memref<1x128xf32, #tpu.memory_space<vmem>>, %arg16: memref<128x64xbf16, #tpu.memory_space<vmem>>, %arg17: memref<1x64xf32, #tpu.memory_space<vmem>>, %arg18: memref<1x64xbf16, #tpu.memory_space<vmem>>, %arg19: memref<1x1xf32, #tpu.memory_space<vmem>>, %arg20: memref<1x128xf32, #tpu.memory_space<vmem>>) attributes {dimension_semantics = [#tpu.dimension_semantics<parallel>], iteration_bounds = array<i64: 1>, scalar_prefetch = 0 : i64, scratch_operands = 0 : i64, tpu.core_type = #tpu.core_type<tc>, window_params = [{transform_indices = @transform_0, window_bounds = array<i64: 128, 10>}, {transform_indices = @transform_1, window_bounds = array<i64: 128, 10>}, {pipeline_mode = #tpu.pipeline_mode<synchronous>, transform_indices = @transform_2, window_bounds = array<i64: 10, 1024>}, {pipeline_mode = #tpu.pipeline_mode<synchronous>, transform_indices = @transform_3, window_bounds = array<i64: 1, 1024>}, {pipeline_mode = #tpu.pipeline_mode<synchronous>, transform_indices = @transform_4, window_bounds = array<i64: 1024, 512>}, {pipeline_mode = #tpu.pipeline_mode<synchronous>, transform_indices = @transform_5, window_bounds = array<i64: 1, 512>}, {pipeline_mode = #tpu.pipeline_mode<synchronous>, transform_indices = @transform_6, window_bounds = array<i64: 10, 128>}, {pipeline_mode = #tpu.pipeline_mode<synchronous>, transform_indices = @transform_7, window_bounds = array<i64: 1, 128>}, {pipeline_mode = #tpu.pipeline_mode<synchronous>, transform_indices = @transform_8, window_bounds = array<i64: 512, 128>}, {pipeline_mode = #tpu.pipeline_mode<synchronous>, transform_indices = @transform_9, window_bounds = array<i64: 128, 128>}, {pipeline_mode = #tpu.pipeline_mode<synchronous>, transform_indices = @transform_10, window_bounds = array<i64: 1, 128>}, {pipeline_mode = #tpu.pipeline_mode<synchronous>, transform_indices = @transform_11, window_bounds = array<i64: 128, 256>}, {pipeline_mode = #tpu.pipeline_mode<synchronous>, transform_indices = @transform_12, window_bounds = array<i64: 1, 256>}, {pipeline_mode = #tpu.pipeline_mode<synchronous>, transform_indices = @transform_13, window_bounds = array<i64: 256, 128>}, {pipeline_mode = #tpu.pipeline_mode<synchronous>, transform_indices = @transform_14, window_bounds = array<i64: 1, 128>}, {pipeline_mode = #tpu.pipeline_mode<synchronous>, transform_indices = @transform_15, window_bounds = array<i64: 128, 64>}, {pipeline_mode = #tpu.pipeline_mode<synchronous>, transform_indices = @transform_16, window_bounds = array<i64: 1, 64>}, {pipeline_mode = #tpu.pipeline_mode<synchronous>, transform_indices = @transform_17, window_bounds = array<i64: 1, 64>}, {pipeline_mode = #tpu.pipeline_mode<synchronous>, transform_indices = @transform_18, window_bounds = array<i64: 1, 1>}, {transform_indices = @transform_19, window_bounds = array<i64: 1, 128>}]} {
    %c0 = arith.constant 0 : index
    %c0_0 = arith.constant 0 : index
    %0 = vector.load %arg1[%c0, %c0_0] : memref<128x10xbf16, #tpu.memory_space<vmem>>, vector<128x10xbf16>
    %c0_1 = arith.constant 0 : index
    %c0_2 = arith.constant 0 : index
    %1 = vector.load %arg2[%c0_1, %c0_2] : memref<128x10xbf16, #tpu.memory_space<vmem>>, vector<128x10xbf16>
    %c0_3 = arith.constant 0 : index
    %c0_4 = arith.constant 0 : index
    %2 = vector.load %arg3[%c0_3, %c0_4] : memref<10x1024xbf16, #tpu.memory_space<vmem>>, vector<10x1024xbf16>
    %cst = arith.constant dense<0.000000e+00> : vector<128x1024xf32>
    %3 = tpu.matmul %0, %2, %cst {dimension_numbers = #tpu.dot_dimension_numbers<[1], [0], [0], [1], [0, 0, 1, 1], [], []>} : vector<128x10xbf16>, vector<10x1024xbf16>, vector<128x1024xf32> -> vector<128x1024xf32>
    %c0_5 = arith.constant 0 : index
    %c0_6 = arith.constant 0 : index
    %4 = vector.load %arg4[%c0_5, %c0_6] : memref<1x1024xf32, #tpu.memory_space<vmem>>, vector<1x1024xf32>
    %5 = vector.broadcast %4 : vector<1x1024xf32> to vector<128x1024xf32>
    %6 = arith.addf %3, %5 : vector<128x1024xf32>
    %cst_7 = arith.constant 0.000000e+00 : f32
    %7 = vector.broadcast %cst_7 : f32 to vector<128x1024xf32>
    %8 = arith.maximumf %6, %7 : vector<128x1024xf32>
    %9 = arith.truncf %8 : vector<128x1024xf32> to vector<128x1024xbf16>
    %c0_8 = arith.constant 0 : index
    %c0_9 = arith.constant 0 : index
    %10 = vector.load %arg5[%c0_8, %c0_9] : memref<1024x512xbf16, #tpu.memory_space<vmem>>, vector<1024x512xbf16>
    %cst_10 = arith.constant dense<0.000000e+00> : vector<128x512xf32>
    %11 = tpu.matmul %9, %10, %cst_10 {dimension_numbers = #tpu.dot_dimension_numbers<[1], [0], [0], [1], [0, 0, 1, 1], [], []>} : vector<128x1024xbf16>, vector<1024x512xbf16>, vector<128x512xf32> -> vector<128x512xf32>
    %c0_11 = arith.constant 0 : index
    %c0_12 = arith.constant 0 : index
    %12 = vector.load %arg6[%c0_11, %c0_12] : memref<1x512xf32, #tpu.memory_space<vmem>>, vector<1x512xf32>
    %13 = vector.broadcast %12 : vector<1x512xf32> to vector<128x512xf32>
    %14 = arith.addf %11, %13 : vector<128x512xf32>
    %cst_13 = arith.constant 0.000000e+00 : f32
    %15 = vector.broadcast %cst_13 : f32 to vector<128x512xf32>
    %16 = arith.maximumf %14, %15 : vector<128x512xf32>
    %17 = arith.truncf %16 : vector<128x512xf32> to vector<128x512xbf16>
    %c0_14 = arith.constant 0 : index
    %c0_15 = arith.constant 0 : index
    %18 = vector.load %arg7[%c0_14, %c0_15] : memref<10x128xbf16, #tpu.memory_space<vmem>>, vector<10x128xbf16>
    %cst_16 = arith.constant dense<0.000000e+00> : vector<128x128xf32>
    %19 = tpu.matmul %1, %18, %cst_16 {dimension_numbers = #tpu.dot_dimension_numbers<[1], [0], [0], [1], [0, 0, 1, 1], [], []>} : vector<128x10xbf16>, vector<10x128xbf16>, vector<128x128xf32> -> vector<128x128xf32>
    %c0_17 = arith.constant 0 : index
    %c0_18 = arith.constant 0 : index
    %20 = vector.load %arg8[%c0_17, %c0_18] : memref<1x128xf32, #tpu.memory_space<vmem>>, vector<1x128xf32>
    %21 = vector.broadcast %20 : vector<1x128xf32> to vector<128x128xf32>
    %22 = arith.addf %19, %21 : vector<128x128xf32>
    %cst_19 = arith.constant 0.000000e+00 : f32
    %23 = vector.broadcast %cst_19 : f32 to vector<128x128xf32>
    %24 = arith.maximumf %22, %23 : vector<128x128xf32>
    %25 = arith.truncf %24 : vector<128x128xf32> to vector<128x128xbf16>
    %c0_20 = arith.constant 0 : index
    %c0_21 = arith.constant 0 : index
    %26 = vector.load %arg9[%c0_20, %c0_21] : memref<512x128xbf16, #tpu.memory_space<vmem>>, vector<512x128xbf16>
    %cst_22 = arith.constant dense<0.000000e+00> : vector<128x128xf32>
    %27 = tpu.matmul %17, %26, %cst_22 {dimension_numbers = #tpu.dot_dimension_numbers<[1], [0], [0], [1], [0, 0, 1, 1], [], []>} : vector<128x512xbf16>, vector<512x128xbf16>, vector<128x128xf32> -> vector<128x128xf32>
    %c0_23 = arith.constant 0 : index
    %c0_24 = arith.constant 0 : index
    %28 = vector.load %arg10[%c0_23, %c0_24] : memref<128x128xbf16, #tpu.memory_space<vmem>>, vector<128x128xbf16>
    %cst_25 = arith.constant dense<0.000000e+00> : vector<128x128xf32>
    %29 = tpu.matmul %25, %28, %cst_25 {dimension_numbers = #tpu.dot_dimension_numbers<[1], [0], [0], [1], [0, 0, 1, 1], [], []>} : vector<128x128xbf16>, vector<128x128xbf16>, vector<128x128xf32> -> vector<128x128xf32>
    %30 = arith.addf %27, %29 : vector<128x128xf32>
    %c0_26 = arith.constant 0 : index
    %c0_27 = arith.constant 0 : index
    %31 = vector.load %arg11[%c0_26, %c0_27] : memref<1x128xf32, #tpu.memory_space<vmem>>, vector<1x128xf32>
    %32 = vector.broadcast %31 : vector<1x128xf32> to vector<128x128xf32>
    %33 = arith.addf %30, %32 : vector<128x128xf32>
    %cst_28 = arith.constant 0.000000e+00 : f32
    %34 = vector.broadcast %cst_28 : f32 to vector<128x128xf32>
    %35 = arith.maximumf %33, %34 : vector<128x128xf32>
    %36 = arith.truncf %35 : vector<128x128xf32> to vector<128x128xbf16>
    %c0_29 = arith.constant 0 : index
    %c0_30 = arith.constant 0 : index
    %37 = vector.load %arg12[%c0_29, %c0_30] : memref<128x256xbf16, #tpu.memory_space<vmem>>, vector<128x256xbf16>
    %cst_31 = arith.constant dense<0.000000e+00> : vector<128x256xf32>
    %38 = tpu.matmul %36, %37, %cst_31 {dimension_numbers = #tpu.dot_dimension_numbers<[1], [0], [0], [1], [0, 0, 1, 1], [], []>} : vector<128x128xbf16>, vector<128x256xbf16>, vector<128x256xf32> -> vector<128x256xf32>
    %c0_32 = arith.constant 0 : index
    %c0_33 = arith.constant 0 : index
    %39 = vector.load %arg13[%c0_32, %c0_33] : memref<1x256xf32, #tpu.memory_space<vmem>>, vector<1x256xf32>
    %40 = vector.broadcast %39 : vector<1x256xf32> to vector<128x256xf32>
    %41 = arith.addf %38, %40 : vector<128x256xf32>
    %cst_34 = arith.constant 0.000000e+00 : f32
    %42 = vector.broadcast %cst_34 : f32 to vector<128x256xf32>
    %43 = arith.maximumf %41, %42 : vector<128x256xf32>
    %44 = arith.truncf %43 : vector<128x256xf32> to vector<128x256xbf16>
    %c0_35 = arith.constant 0 : index
    %c0_36 = arith.constant 0 : index
    %45 = vector.load %arg14[%c0_35, %c0_36] : memref<256x128xbf16, #tpu.memory_space<vmem>>, vector<256x128xbf16>
    %cst_37 = arith.constant dense<0.000000e+00> : vector<128x128xf32>
    %46 = tpu.matmul %44, %45, %cst_37 {dimension_numbers = #tpu.dot_dimension_numbers<[1], [0], [0], [1], [0, 0, 1, 1], [], []>} : vector<128x256xbf16>, vector<256x128xbf16>, vector<128x128xf32> -> vector<128x128xf32>
    %c0_38 = arith.constant 0 : index
    %c0_39 = arith.constant 0 : index
    %47 = vector.load %arg15[%c0_38, %c0_39] : memref<1x128xf32, #tpu.memory_space<vmem>>, vector<1x128xf32>
    %48 = vector.broadcast %47 : vector<1x128xf32> to vector<128x128xf32>
    %49 = arith.addf %46, %48 : vector<128x128xf32>
    %cst_40 = arith.constant 0.000000e+00 : f32
    %50 = vector.broadcast %cst_40 : f32 to vector<128x128xf32>
    %51 = arith.maximumf %49, %50 : vector<128x128xf32>
    %52 = arith.truncf %51 : vector<128x128xf32> to vector<128x128xbf16>
    %c0_41 = arith.constant 0 : index
    %c0_42 = arith.constant 0 : index
    %53 = vector.load %arg16[%c0_41, %c0_42] : memref<128x64xbf16, #tpu.memory_space<vmem>>, vector<128x64xbf16>
    %cst_43 = arith.constant dense<0.000000e+00> : vector<128x64xf32>
    %54 = tpu.matmul %52, %53, %cst_43 {dimension_numbers = #tpu.dot_dimension_numbers<[1], [0], [0], [1], [0, 0, 1, 1], [], []>} : vector<128x128xbf16>, vector<128x64xbf16>, vector<128x64xf32> -> vector<128x64xf32>
    %c0_44 = arith.constant 0 : index
    %c0_45 = arith.constant 0 : index
    %55 = vector.load %arg17[%c0_44, %c0_45] : memref<1x64xf32, #tpu.memory_space<vmem>>, vector<1x64xf32>
    %56 = vector.broadcast %55 : vector<1x64xf32> to vector<128x64xf32>
    %57 = arith.addf %54, %56 : vector<128x64xf32>
    %cst_46 = arith.constant 0.000000e+00 : f32
    %58 = vector.broadcast %cst_46 : f32 to vector<128x64xf32>
    %59 = arith.maximumf %57, %58 : vector<128x64xf32>
    %60 = arith.truncf %59 : vector<128x64xf32> to vector<128x64xbf16>
    %c0_47 = arith.constant 0 : index
    %c0_48 = arith.constant 0 : index
    %61 = vector.load %arg18[%c0_47, %c0_48] : memref<1x64xbf16, #tpu.memory_space<vmem>>, vector<1x64xbf16>
    %cst_49 = arith.constant dense<0.000000e+00> : vector<1x128xf32>
    %62 = tpu.matmul %61, %60, %cst_49 {dimension_numbers = #tpu.dot_dimension_numbers<[1], [1], [0], [0], [0, 0, 1, 0], [], []>} : vector<1x64xbf16>, vector<128x64xbf16>, vector<1x128xf32> -> vector<1x128xf32>
    %c0_50 = arith.constant 0 : index
    %c0_51 = arith.constant 0 : index
    %63 = vector.load %arg19[%c0_50, %c0_51] : memref<1x1xf32, #tpu.memory_space<vmem>>, vector<1x1xf32>
    %64 = vector.broadcast %63 : vector<1x1xf32> to vector<1x128xf32>
    %65 = arith.addf %62, %64 : vector<1x128xf32>
    %cst_52 = arith.constant 0.000000e+00 : f32
    %66 = vector.broadcast %cst_52 : f32 to vector<1x128xf32>
    %67 = arith.subf %66, %65 : vector<1x128xf32>
    %68 = math.exp %67 : vector<1x128xf32>
    %cst_53 = arith.constant 1.000000e+00 : f32
    %69 = vector.broadcast %cst_53 : f32 to vector<1x128xf32>
    %70 = arith.addf %69, %68 : vector<1x128xf32>
    %71 = tpu.reciprocal %70 {approx = true} : vector<1x128xf32> -> vector<1x128xf32>
    %c0_54 = arith.constant 0 : index
    %c0_55 = arith.constant 0 : index
    %72 = vector.load %arg20[%c0_54, %c0_55] : memref<1x128xf32, #tpu.memory_space<vmem>>, vector<1x128xf32>
    tpu.vector_store %arg20[%c0_54, %c0_55], %71 {strides = array<i32>} : memref<1x128xf32, #tpu.memory_space<vmem>>, vector<1x128xf32>,
    return
  }
  func.func @transform_0(%arg0: i32) -> (i32, i32) {
    %c0_i32 = arith.constant 0 : i32
    %c0_i32_0 = arith.constant 0 : i32
    return %arg0, %c0_i32 : i32, i32
  }
  func.func @transform_1(%arg0: i32) -> (i32, i32) {
    %c0_i32 = arith.constant 0 : i32
    %c0_i32_0 = arith.constant 0 : i32
    return %arg0, %c0_i32 : i32, i32
  }
  func.func @transform_2(%arg0: i32) -> (i32, i32) {
    %c0_i32 = arith.constant 0 : i32
    %c0_i32_0 = arith.constant 0 : i32
    %c0_i32_1 = arith.constant 0 : i32
    return %c0_i32, %c0_i32_0 : i32, i32
  }
  func.func @transform_3(%arg0: i32) -> (i32, i32) {
    %c0_i32 = arith.constant 0 : i32
    %c0_i32_0 = arith.constant 0 : i32
    %c0_i32_1 = arith.constant 0 : i32
    return %c0_i32, %c0_i32_0 : i32, i32
  }
  func.func @transform_4(%arg0: i32) -> (i32, i32) {
    %c0_i32 = arith.constant 0 : i32
    %c0_i32_0 = arith.constant 0 : i32
    %c0_i32_1 = arith.constant 0 : i32
    return %c0_i32, %c0_i32_0 : i32, i32
  }
  func.func @transform_5(%arg0: i32) -> (i32, i32) {
    %c0_i32 = arith.constant 0 : i32
    %c0_i32_0 = arith.constant 0 : i32
    %c0_i32_1 = arith.constant 0 : i32
    return %c0_i32, %c0_i32_0 : i32, i32
  }
  func.func @transform_6(%arg0: i32) -> (i32, i32) {
    %c0_i32 = arith.constant 0 : i32
    %c0_i32_0 = arith.constant 0 : i32
    %c0_i32_1 = arith.constant 0 : i32
    return %c0_i32, %c0_i32_0 : i32, i32
  }
  func.func @transform_7(%arg0: i32) -> (i32, i32) {
    %c0_i32 = arith.constant 0 : i32
    %c0_i32_0 = arith.constant 0 : i32
    %c0_i32_1 = arith.constant 0 : i32
    return %c0_i32, %c0_i32_0 : i32, i32
  }
  func.func @transform_8(%arg0: i32) -> (i32, i32) {
    %c0_i32 = arith.constant 0 : i32
    %c0_i32_0 = arith.constant 0 : i32
    %c0_i32_1 = arith.constant 0 : i32
    return %c0_i32, %c0_i32_0 : i32, i32
  }
  func.func @transform_9(%arg0: i32) -> (i32, i32) {
    %c0_i32 = arith.constant 0 : i32
    %c0_i32_0 = arith.constant 0 : i32
    %c0_i32_1 = arith.constant 0 : i32
    return %c0_i32, %c0_i32_0 : i32, i32
  }
  func.func @transform_10(%arg0: i32) -> (i32, i32) {
    %c0_i32 = arith.constant 0 : i32
    %c0_i32_0 = arith.constant 0 : i32
    %c0_i32_1 = arith.constant 0 : i32
    return %c0_i32, %c0_i32_0 : i32, i32
  }
  func.func @transform_11(%arg0: i32) -> (i32, i32) {
    %c0_i32 = arith.constant 0 : i32
    %c0_i32_0 = arith.constant 0 : i32
    %c0_i32_1 = arith.constant 0 : i32
    return %c0_i32, %c0_i32_0 : i32, i32
  }
  func.func @transform_12(%arg0: i32) -> (i32, i32) {
    %c0_i32 = arith.constant 0 : i32
    %c0_i32_0 = arith.constant 0 : i32
    %c0_i32_1 = arith.constant 0 : i32
    return %c0_i32, %c0_i32_0 : i32, i32
  }
  func.func @transform_13(%arg0: i32) -> (i32, i32) {
    %c0_i32 = arith.constant 0 : i32
    %c0_i32_0 = arith.constant 0 : i32
    %c0_i32_1 = arith.constant 0 : i32
    return %c0_i32, %c0_i32_0 : i32, i32
  }
  func.func @transform_14(%arg0: i32) -> (i32, i32) {
    %c0_i32 = arith.constant 0 : i32
    %c0_i32_0 = arith.constant 0 : i32
    %c0_i32_1 = arith.constant 0 : i32
    return %c0_i32, %c0_i32_0 : i32, i32
  }
  func.func @transform_15(%arg0: i32) -> (i32, i32) {
    %c0_i32 = arith.constant 0 : i32
    %c0_i32_0 = arith.constant 0 : i32
    %c0_i32_1 = arith.constant 0 : i32
    return %c0_i32, %c0_i32_0 : i32, i32
  }
  func.func @transform_16(%arg0: i32) -> (i32, i32) {
    %c0_i32 = arith.constant 0 : i32
    %c0_i32_0 = arith.constant 0 : i32
    %c0_i32_1 = arith.constant 0 : i32
    return %c0_i32, %c0_i32_0 : i32, i32
  }
  func.func @transform_17(%arg0: i32) -> (i32, i32) {
    %c0_i32 = arith.constant 0 : i32
    %c0_i32_0 = arith.constant 0 : i32
    %c0_i32_1 = arith.constant 0 : i32
    return %c0_i32, %c0_i32_0 : i32, i32
  }
  func.func @transform_18(%arg0: i32) -> (i32, i32) {
    %c0_i32 = arith.constant 0 : i32
    %c0_i32_0 = arith.constant 0 : i32
    %c0_i32_1 = arith.constant 0 : i32
    return %c0_i32, %c0_i32_0 : i32, i32
  }
  func.func @transform_19(%arg0: i32) -> (i32, i32) {
    %c0_i32 = arith.constant 0 : i32
    %c0_i32_0 = arith.constant 0 : i32
    return %c0_i32, %arg0 : i32, i32
  }
}

</mosaic_0001>

<bundles_post_ra>
// kernel: tpu_custom_call.1
= control target key start
LH: loop header
LB: loop body
LE: loop exit
PB: predicated region body
PF: predicated region fallthrough
CT: control target
= control target key end

     0   :  { %s8356_s0 = inlined_call_operand.vmem [shape: bf16[128,10], index: 0, kind: input, shape index: {}]   ;;  %s8357_s1 = inlined_call_operand.vmem [shape: bf16[128,10], index: 1, kind: input, shape index: {}]   ;;  %s8358_s2 = inlined_call_operand.hbm [shape: bf16[10,1024], index: 2, kind: input, shape index: {}]   ;;  %s8359_s3 = inlined_call_operand.hbm [shape: f32[1,1024], index: 3, kind: input, shape index: {}]   ;;  %s8360_s4 = inlined_call_operand.hbm [shape: bf16[1024,512], index: 4, kind: input, shape index: {}]   ;;  %s8361_s5 = inlined_call_operand.hbm [shape: f32[1,512], index: 5, kind: input, shape index: {}]   ;;  %s8362_s6 = inlined_call_operand.hbm [shape: bf16[10,128], index: 6, kind: input, shape index: {}]   ;;  %s8363_s7 = inlined_call_operand.vmem [shape: f32[1,128], index: 7, kind: input, shape index: {}]   ;;  %s8364_s8 = inlined_call_operand.vmem [shape: bf16[512,128], index: 8, kind: input, shape index: {}]   ;;  %s8365_s9 = inlined_call_operand.hbm [shape: bf16[128,128], index: 9, kind: input, shape index: {}]   ;;  %s8366_s10 = inlined_call_operand.hbm [shape: f32[1,128], index: 10, kind: input, shape index: {}]   ;;  %s8367_s11 = inlined_call_operand.hbm [shape: bf16[128,256], index: 11, kind: input, shape index: {}]   ;;  %s8368_s12 = inlined_call_operand.hbm [shape: f32[1,256], index: 12, kind: input, shape index: {}]   ;;  %s8369_s13 = inlined_call_operand.hbm [shape: bf16[256,128], index: 13, kind: input, shape index: {}]   ;;  %s8370_s14 = inlined_call_operand.vmem [shape: f32[1,128], index: 14, kind: input, shape index: {}]   ;;  %s8371_s15 = inlined_call_operand.vmem [shape: bf16[128,64], index: 15, kind: input, shape index: {}]   ;;  %s8372_s16 = inlined_call_operand.vmem [shape: f32[1,64], index: 16, kind: input, shape index: {}]   ;;  %s8373_s17 = inlined_call_operand.vmem [shape: bf16[1,64], index: 17, kind: input, shape index: {}]   ;;  %s8374_s18 = inlined_call_operand.<no memory space> [shape: f32[1,1], index: 18, kind: input, shape index: {}]   ;;  %s8375_s19 = inlined_call_operand.hbm [shape: f32[1,128], index: 19, kind: output, shape index: {}]  }
   0x1   :  { %8380 = sst [smem:[#allocation28_spill]] %s8356_s0  ;;  %v24_v0 = vstv %s8374_s18 }
   0x2   :  { %8381 = sst [smem:[#allocation29_spill]] %s8357_s1  ;;  %25 = vst [vmem:[#allocation2] sm:$0x1] %v24_v0 }
   0x3   :  { %8382 = sst [smem:[#allocation30_spill]] %s8358_s2 }
   0x4   :  { %8383 = sst [smem:[#allocation31_spill]] %s8359_s3 }
   0x5   :  { %26 = vsyncpa [#allocation4], 0 }
   0x6   :  { %27 = vsyncpa [#allocation7], 0 }
   0x7   :  { %28 = vsyncpa [#allocation10], 0 }
   0x8   :  { %29 = vsyncpa [#allocation13], 0 }
   0x9   :  { %30 = vsyncpa [#allocation16], 0 }
   0xa   :  { %31 = vsyncpa [#allocation19], 0 }
   0xb   :  { %32 = vsyncpa [#allocation5], 0  ;;  %s7067_s20 = smov [#allocation6]   ;;  %s7068_s1 = smov [#allocation9]  }
   0xc   :  { %s55_s21 = sshll.u32 %s7067_s20, 4  ;;  %s77_s22 = sshll.u32 %s7068_s1, 4  ;;  %s56_s21 = int_to_ptr.vmem [resolvable:$true] %s55_s21  ;;  %s78_s22 = int_to_ptr.vmem [resolvable:$true] %s77_s22 }
   0xd   :  { %s8384_s24 = sld [smem:[#allocation31_spill]] }
  0x13   :  { %s6811_s25 = scalar_lea.hbm %s8384_s24, 128 }
  0x14   :  { %p6812_p0 = scmp.ne.s32.totalorder %s8384_s24, %s6811_s25  ;;  %p6815_p1 = scmp.lt.u32.totalorder %s6811_s25, %s8384_s24 }
  0x16   :  { %p6817_p2 = pnand %p6815_p1, %p6812_p0 }
  0x18   :  { %6820 = shalt.err (!%p6817_p2)
}
  0x19   :  { %s6821_s28 = scalar_lea.vmem %s56_s21, 128  ;;  %p6826_p4 = scmp.lt.s32.totalorder %s56_s21, %s56_s21 }
  0x1a   :  { %p6822_p3 = scmp.ne.s32.totalorder %s56_s21, %s6821_s28  ;;  %p6827_p5 = scmp.lt.s32.totalorder %s6821_s28, %s6821_s28 }
  0x1c   :  { %p6828_p6 = por %p6827_p5, %p6826_p4 }
  0x1e   :  { %p6829_p7 = pnand %p6828_p6, %p6822_p3 }
  0x20   :  { %6832 = shalt.err (!%p6829_p7)
}
  0x21   :  { %58 = dma.hbm_to_vmem [thread:$0]  %s8384_s24, 128, %s56_s21, [#allocation7]  }
  0x22   :  { %s6833_s1 = scalar_lea.hbm %s8361_s5, 64 }
  0x23   :  { %p6834_p8 = scmp.ne.s32.totalorder %s8361_s5, %s6833_s1  ;;  %p6837_p9 = scmp.lt.u32.totalorder %s6833_s1, %s8361_s5 }
  0x25   :  { %p6839_p10 = pnand %p6837_p9, %p6834_p8 }
  0x27   :  { %6842 = shalt.err (!%p6839_p10)
}
  0x28   :  { %s6843_s18 = scalar_lea.vmem %s78_s22, 64  ;;  %p6848_p12 = scmp.lt.s32.totalorder %s78_s22, %s78_s22 }
  0x29   :  { %p6844_p11 = scmp.ne.s32.totalorder %s78_s22, %s6843_s18  ;;  %p6849_p13 = scmp.lt.s32.totalorder %s6843_s18, %s6843_s18 }
  0x2b   :  { %p6850_p0 = por %p6849_p13, %p6848_p12 }
  0x2d   :  { %p6851_p1 = pnand %p6850_p0, %p6844_p11 }
  0x2f   :  { %6854 = shalt.err (!%p6851_p1)
}
  0x30   :  { %80 = dma.hbm_to_vmem [thread:$0]  %s8361_s5, 64, %s78_s22, [#allocation10]  }
  0x31   :  { %s7069_s26 = smov [#allocation12]   ;;  %s7070_s28 = smov [#allocation15]  }
  0x32   :  { %s102_s27 = sshll.u32 %s7069_s26, 4  ;;  %s124_s29 = sshll.u32 %s7070_s28, 4  ;;  %s103_s27 = int_to_ptr.vmem [resolvable:$true] %s102_s27  ;;  %s7216_s29 = int_to_ptr.vmem [resolvable:$true] %s124_s29 }
  0x33   :  { %s6855_s20 = scalar_lea.hbm %s8365_s9, 1024 }
  0x34   :  { %p6856_p2 = scmp.ne.s32.totalorder %s8365_s9, %s6855_s20  ;;  %p6859_p3 = scmp.lt.u32.totalorder %s6855_s20, %s8365_s9 }
  0x36   :  { %p6861_p4 = pnand %p6859_p3, %p6856_p2 }
  0x38   :  { %6864 = shalt.err (!%p6861_p4)
}
  0x39   :  { %s6865_s5 = scalar_lea.vmem %s103_s27, 1024  ;;  %p6870_p6 = scmp.lt.s32.totalorder %s103_s27, %s103_s27 }
  0x3a   :  { %p6866_p5 = scmp.ne.s32.totalorder %s103_s27, %s6865_s5  ;;  %p6871_p7 = scmp.lt.s32.totalorder %s6865_s5, %s6865_s5 }
  0x3c   :  { %p6872_p8 = por %p6871_p7, %p6870_p6 }
  0x3e   :  { %p6873_p9 = pnand %p6872_p8, %p6866_p5 }
  0x40   :  { %6876 = shalt.err (!%p6873_p9)
}
  0x41   :  { %s7071_s22 = smov 64   ;;  %s7072_s3 = smov 4  }
  0x42   :  { %108 = dma.hbm_to_vmem [thread:$0]  %s8365_s9, 1024, %s103_s27, [#allocation13], %s7071_s22, %s7071_s22, %s7072_s3  }
  0x43   :  { %s6877_s28 = scalar_lea.hbm %s8367_s11, 2048 }
  0x44   :  { %p6878_p10 = scmp.ne.s32.totalorder %s8367_s11, %s6877_s28  ;;  %p6881_p11 = scmp.lt.u32.totalorder %s6877_s28, %s8367_s11 }
  0x46   :  { %p6883_p12 = pnand %p6881_p11, %p6878_p10 }
  0x48   :  { %6886 = shalt.err (!%p6883_p12)
}
  0x49   :  { %s6887_s2 = scalar_lea.vmem %s7216_s29, 2048  ;;  %p6892_p0 = scmp.lt.s32.totalorder %s7216_s29, %s7216_s29 }
  0x4a   :  { %p6888_p13 = scmp.ne.s32.totalorder %s7216_s29, %s6887_s2  ;;  %p6893_p1 = scmp.lt.s32.totalorder %s6887_s2, %s6887_s2 }
  0x4c   :  { %p6894_p2 = por %p6893_p1, %p6892_p0 }
  0x4e   :  { %p6895_p3 = pnand %p6894_p2, %p6888_p13 }
  0x50   :  { %6898 = shalt.err (!%p6895_p3)
}
  0x51   :  { %s7073_s9 = smov 128   ;;  %s7074_s27 = smov 8  }
  0x52   :  { %130 = dma.hbm_to_vmem [thread:$0]  %s8367_s11, 2048, %s7216_s29, [#allocation16], %s7073_s9, %s7073_s9, %s7074_s27  }
  0x53   :  { %s7075_s5 = smov [#allocation3]   ;;  %s8385_s26 = sld [smem:[#allocation30_spill]] }
  0x54   :  { %s42_s18 = sshll.u32 %s7075_s5, 4  ;;  %s43_s18 = int_to_ptr.vmem [resolvable:$true] %s42_s18 }
  0x59   :  { %s6899_s28 = scalar_lea.hbm %s8385_s26, 1024 }
  0x5a   :  { %p6900_p4 = scmp.ne.s32.totalorder %s8385_s26, %s6899_s28  ;;  %p6903_p5 = scmp.lt.u32.totalorder %s6899_s28, %s8385_s26 }
  0x5c   :  { %p6905_p6 = pnand %p6903_p5, %p6900_p4 }
  0x5e   :  { %6908 = shalt.err (!%p6905_p6)
}
  0x5f   :  { %s6909_s2 = scalar_lea.vmem %s43_s18, 1024  ;;  %p6914_p8 = scmp.lt.s32.totalorder %s43_s18, %s43_s18 }
  0x60   :  { %p6910_p7 = scmp.ne.s32.totalorder %s43_s18, %s6909_s2  ;;  %p6915_p9 = scmp.lt.s32.totalorder %s6909_s2, %s6909_s2 }
  0x62   :  { %p6916_p10 = por %p6915_p9, %p6914_p8 }
  0x64   :  { %p6917_p11 = pnand %p6916_p10, %p6910_p7 }
  0x66   :  { %6920 = shalt.err (!%p6917_p11)
}
  0x67   :  { %s7076_s11 = smov 512   ;;  %s7077_s29 = smov 32  }
  0x68   :  { %48 = dma.hbm_to_vmem [thread:$0]  %s8385_s26, 1024, %s43_s18, [#allocation4], %s7076_s11, %s7076_s11, %s7077_s29  }
  0x69   :  { %s7078_s23 = smov [#allocation8]   ;;  %s6921_s24 = scalar_lea.hbm %s8360_s4, 32768 }
  0x6a   :  { %s64_s25 = sshll.u32 %s7078_s23, 4  ;;  %p6922_p12 = scmp.ne.s32.totalorder %s8360_s4, %s6921_s24  ;;  %s65_s25 = int_to_ptr.vmem [resolvable:$true] %s64_s25 }
  0x6b   :  { %p6925_p13 = scmp.lt.u32.totalorder %s6921_s24, %s8360_s4 }
  0x6d   :  { %p6927_p0 = pnand %p6925_p13, %p6922_p12 }
  0x6f   :  { %6930 = shalt.err (!%p6927_p0)
}
  0x70   :  { %s6931_s1 = scalar_lea.vmem %s65_s25, 32768  ;;  %p6936_p2 = scmp.lt.s32.totalorder %s65_s25, %s65_s25 }
  0x71   :  { %p6932_p1 = scmp.ne.s32.totalorder %s65_s25, %s6931_s1  ;;  %p6937_p3 = scmp.lt.s32.totalorder %s6931_s1, %s6931_s1 }
  0x73   :  { %p6938_p4 = por %p6937_p3, %p6936_p2 }
  0x75   :  { %p6939_p5 = pnand %p6938_p4, %p6932_p1 }
  0x77   :  { %6942 = shalt.err (!%p6939_p5)
}
  0x78   :  { %s7079_s18 = smov 256   ;;  %s7080_s26 = smov 16  }
  0x79   :  { %70 = dma.hbm_to_vmem [thread:$0]  %s8360_s4, 32768, %s65_s25, [#allocation7], %s7079_s18, %s7079_s18, %s7080_s26  }
  0x7a   :  { %s7081_s29 = smov [#allocation11]   ;;  %s7082_s27 = smov [#allocation14]  }
  0x7b   :  { %s86_s9 = sshll.u32 %s7081_s29, 4  ;;  %s115_s23 = sshll.u32 %s7082_s27, 4  ;;  %s87_s9 = int_to_ptr.vmem [resolvable:$true] %s86_s9  ;;  %s116_s23 = int_to_ptr.vmem [resolvable:$true] %s115_s23 }
  0x7c   :  { %s6943_s24 = scalar_lea.hbm %s8362_s6, 128 }
  0x7d   :  { %p6944_p6 = scmp.ne.s32.totalorder %s8362_s6, %s6943_s24  ;;  %p6947_p7 = scmp.lt.u32.totalorder %s6943_s24, %s8362_s6 }
  0x7f   :  { %p6949_p8 = pnand %p6947_p7, %p6944_p6 }
  0x81   :  { %6952 = shalt.err (!%p6949_p8)
}
  0x82   :  { %s6953_s4 = scalar_lea.vmem %s87_s9, 128  ;;  %p6958_p10 = scmp.lt.s32.totalorder %s87_s9, %s87_s9 }
  0x83   :  { %p6954_p9 = scmp.ne.s32.totalorder %s87_s9, %s6953_s4  ;;  %p6959_p11 = scmp.lt.s32.totalorder %s6953_s4, %s6953_s4 }
  0x85   :  { %p6960_p12 = por %p6959_p11, %p6958_p10 }
  0x87   :  { %p6961_p13 = pnand %p6960_p12, %p6954_p9 }
  0x89   :  { %6964 = shalt.err (!%p6961_p13)
}
  0x8a   :  { %92 = dma.hbm_to_vmem [thread:$0]  %s8362_s6, 128, %s87_s9, [#allocation10], %s7071_s22, %s7071_s22, %s7072_s3  }
  0x8b   :  { %s6965_s2 = scalar_lea.hbm %s8366_s10, 16 }
  0x8c   :  { %p6966_p0 = scmp.ne.s32.totalorder %s8366_s10, %s6965_s2  ;;  %p6969_p1 = scmp.lt.u32.totalorder %s6965_s2, %s8366_s10 }
  0x8e   :  { %p6971_p2 = pnand %p6969_p1, %p6966_p0 }
  0x90   :  { %6974 = shalt.err (!%p6971_p2)
}
  0x91   :  { %s6975_s21 = scalar_lea.vmem %s116_s23, 16  ;;  %s6979_s24 = scalar_lea.vmem %s116_s23, 32 }
  0x92   :  { %p6976_p3 = scmp.ne.s32.totalorder %s116_s23, %s6975_s21  ;;  %p6980_p4 = scmp.lt.s32.totalorder %s116_s23, %s116_s23 }
  0x93   :  { %p6981_p5 = scmp.lt.s32.totalorder %s6979_s24, %s6975_s21 }
  0x95   :  { %p6982_p6 = por %p6981_p5, %p6980_p4 }
  0x97   :  { %p6983_p7 = pnand %p6982_p6, %p6976_p3 }
  0x99   :  { %6986 = shalt.err (!%p6983_p7)
}
  0x9a   :  { %118 = dma.hbm_to_vmem [thread:$0]  %s8366_s10, 16, %s116_s23, [#allocation13]  }
  0x9b   :  { %s7083_s28 = smov [#allocation17]   ;;  %s7084_s30 = smov [#allocation18]  }
  0x9c   :  { %s137_s0 = sshll.u32 %s7083_s28, 4  ;;  %s146_s20 = sshll.u32 %s7084_s30, 4  ;;  %s138_s0 = int_to_ptr.vmem [resolvable:$true] %s137_s0  ;;  %s7301_s20 = int_to_ptr.vmem [resolvable:$true] %s146_s20 }
  0x9d   :  { %s6987_s1 = scalar_lea.hbm %s8368_s12, 32 }
  0x9e   :  { %p6988_p8 = scmp.ne.s32.totalorder %s8368_s12, %s6987_s1  ;;  %p6991_p9 = scmp.lt.u32.totalorder %s6987_s1, %s8368_s12 }
  0xa0   :  { %p6993_p10 = pnand %p6991_p9, %p6988_p8 }
  0xa2   :  { %6996 = shalt.err (!%p6993_p10)
}
  0xa3   :  { %s6997_s10 = scalar_lea.vmem %s138_s0, 32  ;;  %p7002_p12 = scmp.lt.s32.totalorder %s138_s0, %s138_s0 }
  0xa4   :  { %p6998_p11 = scmp.ne.s32.totalorder %s138_s0, %s6997_s10  ;;  %p7003_p13 = scmp.lt.s32.totalorder %s6997_s10, %s6997_s10 }
  0xa6   :  { %p7004_p0 = por %p7003_p13, %p7002_p12 }
  0xa8   :  { %p7005_p1 = pnand %p7004_p0, %p6998_p11 }
  0xaa   :  { %7008 = shalt.err (!%p7005_p1)
}
  0xab   :  { %140 = dma.hbm_to_vmem [thread:$0]  %s8368_s12, 32, %s138_s0, [#allocation16]  }
  0xac   :  { %s7009_s21 = scalar_lea.hbm %s8369_s13, 2048 }
  0xad   :  { %p7010_p2 = scmp.ne.s32.totalorder %s8369_s13, %s7009_s21  ;;  %p7013_p3 = scmp.lt.u32.totalorder %s7009_s21, %s8369_s13 }
  0xaf   :  { %p7015_p4 = pnand %p7013_p3, %p7010_p2 }
  0xb1   :  { %7018 = shalt.err (!%p7015_p4)
}
  0xb2   :  { %s7019_s30 = scalar_lea.vmem %s7301_s20, 2048  ;;  %p7024_p6 = scmp.lt.s32.totalorder %s7301_s20, %s7301_s20 }
  0xb3   :  { %p7020_p5 = scmp.ne.s32.totalorder %s7301_s20, %s7019_s30  ;;  %p7025_p7 = scmp.lt.s32.totalorder %s7019_s30, %s7019_s30 }
  0xb5   :  { %p7026_p8 = por %p7025_p7, %p7024_p6 }
  0xb7   :  { %p7027_p9 = pnand %p7026_p8, %p7020_p5 }
  0xb9   :  { %7030 = shalt.err (!%p7027_p9)
}
  0xba   :  { %152 = dma.hbm_to_vmem [thread:$0]  %s8369_s13, 2048, %s7301_s20, [#allocation19], %s7071_s22, %s7071_s22, %s7072_s3  }
  0xbb   :  { %7053 = dma.done.wait [#allocation4], 1024  }
  0xbc   :  { %7054 = vsyncadd [#allocation4], 4294966272 }
  0xbd   :  { %7055 = dma.done.wait [#allocation7], 32896  }
  0xbe   :  { %7056 = vsyncadd [#allocation7], 4294934400 }
  0xbf   :  { %7057 = dma.done.wait [#allocation10], 192  }
  0xc0   :  { %7058 = vsyncadd [#allocation10], 4294967104 }
  0xc1   :  { %7059 = dma.done.wait [#allocation13], 1040  }
  0xc2   :  { %7060 = vsyncadd [#allocation13], 4294966256 }
  0xc3   :  { %7061 = dma.done.wait [#allocation16], 2080  }
  0xc4   :  { %7062 = vsyncadd [#allocation16], 4294965216 }
  0xc5   :  { %7063 = dma.done.wait [#allocation19], 2048  }
  0xc6   :  { %7064 = vsyncadd [#allocation19], 4294965248  ;;  %v7085_v1 = vmov 0   ;;  %v226_v2 = vld [vmem:[#allocation3] sm:$0xff]  ;;  %vm373_vm0 = vcmask 1044480   ;;  %s8386_s3 = sld [smem:[#allocation28_spill]] }
  0xc7   :  { %430 = vmatprep.mubr.bf16.mxu0 %v7085_v1  ;;  %500 = vmatprep.mubr.bf16.mxu1 %v7085_v1  ;;  %v230_v3 = vld [vmem:[#allocation3 + $0x20] sm:$0x11]  ;;  %vm348_vm1 = vcmask 80896   ;;  %v227_v9 = vld [vmem:[#allocation3 + $0x8] sm:$0xff]  ;;  %v228_v11 = vld [vmem:[#allocation3 + $0x10] sm:$0xff]  ;;  %s8387_s30 = sld [smem:[#allocation29_spill]] }
  0xc8   :  { %6317 = vset.pattern.permute.xlu0 %v7085_v1  ;;  %v5291_v4 = vcombine.high %v226_v2, %v230_v3  ;;  %v5290_v5 = vcombine.low %v226_v2, %v230_v3  ;;  %v231_v10 = vld [vmem:[#allocation3 + $0x28] sm:$0x11]  ;;  %v232_v12 = vld [vmem:[#allocation3 + $0x30] sm:$0x11]  ;;  %v229_v17 = vld [vmem:[#allocation3 + $0x18] sm:$0xff]  ;;  %vm7087_vm2 = vmmov 0  }
  0xc9   :  { %v5293_v13 = vcombine.high %v227_v9, %v231_v10  ;;  %v5292_v14 = vcombine.low %v227_v9, %v231_v10  ;;  %v5295_v15 = vcombine.high %v228_v11, %v232_v12  ;;  %v5294_v16 = vcombine.low %v228_v11, %v232_v12  ;;  %v233_v18 = vld [vmem:[#allocation3 + $0x38] sm:$0x11]  ;;  %v6331_v26 = vld [vmem:[#allocation8 + $0xc] ss:$16 sps:$4 sm:$0xff]   ;;  %v6329_v42 = vld [vmem:[#allocation8 + $0x8] ss:$16 sps:$4 sm:$0xff]  }
  0xca   :  { %5298 = vmatprep.subr.msk.bf16.mxu0 %vm373_vm0, %v5291_v4  ;;  %v375_v6 = vsel %vm373_vm0, %v5290_v5, 0  ;;  %6036 = vmatprep.subr.msk.bf16.mxu1 %vm373_vm0, %v5291_v4  ;;  %v5297_v20 = vcombine.high %v229_v17, %v233_v18  ;;  %v6328_v21 = vld [vmem:[#allocation8 + $0x4] ss:$16 sps:$4 sm:$0xff]   ;;  %v5296_v24 = vcombine.low %v229_v17, %v233_v18  ;;  %v6326_v32 = vld [vmem:[#allocation8] ss:$16 sps:$4 sm:$0xff]   ;;  %vm5188_vm3 = vcmask 523264  }
  0xcb   :  { %399 = vmatpush1.bf16.msra.mxu0 %v375_v6  ;;  %6037 = vmatpush1.bf16.msra.mxu1 %v375_v6  ;;  %v381_v22 = vsel %vm373_vm0, %v5292_v14, 0  ;;  %v387_v23 = vsel %vm373_vm0, %v5294_v16, 0  ;;  %v6334_v33 = vld [vmem:[#allocation8 + $0x24] ss:$16 sps:$4 sm:$0xff]   ;;  %v6332_v34 = vld [vmem:[#allocation8 + $0x20] ss:$16 sps:$4 sm:$0xff]  }
  0xcc   :  { %v7343_v7 = vld [vmem:[%s8386_s3] sm:$0xff]   ;;  %v7352_v8 = vld [vmem:[%s8386_s3 + $0x38] sm:$0xff]   ;;  %v7359_v19 = vld [vmem:[%s8386_s3 + $0x8] sm:$0xff]   ;;  %5307 = vmatprep.subr.msk.bf16.mxu1 %vm373_vm0, %v5293_v13  ;;  %5316 = vmatprep.subr.msk.bf16.mxu0 %vm373_vm0, %v5295_v15  ;;  %v393_v25 = vsel %vm373_vm0, %v5296_v24, 0  ;;  %s7088_s28 = smov [#allocation20]  }
  0xcd   :  { %v7376_v27 = vld [vmem:[%s8386_s3 + $0x10] sm:$0xff]   ;;  %v7387_v28 = vld [vmem:[%s8386_s3 + $0x18] sm:$0xff]   ;;  %v7398_v29 = vld [vmem:[%s8386_s3 + $0x20] sm:$0xff]   ;;  %s5268_s12 = sshll.u32 %s7088_s28, 4  ;;  %s5269_s12 = int_to_ptr.vmem [resolvable:$true] %s5268_s12 }
  0xce   :  { %5299 = vmatmul.mubr.msk.bf16.vlgmr.msra.gmra.mrb[0].mxu0 %vm348_vm1, %v7343_v7  ;;  %5306 = vmatmul.mubr.msk.bf16.vlgmr.msra.gmra.mrb[0].mxu1 %vm348_vm1, %v7352_v8  ;;  %v7409_v30 = vld [vmem:[%s8386_s3 + $0x28] sm:$0xff]   ;;  %v7418_v31 = vld [vmem:[%s8386_s3 + $0x30] sm:$0xff]   ;;  %p7036_p11 = scmp.lt.s32.totalorder %s5269_s12, %s5269_s12 }
  0xcf   :  { %440 = vmatprep.mubr.bf16.mxu0 %v7085_v1  ;;  %543 = vmatprep.mubr.bf16.mxu1 %v7085_v1  ;;  %v6340_v35 = vld [vmem:[#allocation8 + $0x44] ss:$16 sps:$4 sm:$0xff]   ;;  %v6338_v36 = vld [vmem:[#allocation8 + $0x40] ss:$16 sps:$4 sm:$0xff]   ;;  %v6337_v43 = vld [vmem:[#allocation8 + $0x2c] ss:$16 sps:$4 sm:$0xff]  }
  0xd0   :  { %512 = vmatpush1.bf16.msra.mxu1 %v381_v22  ;;  %625 = vmatpush1.bf16.msra.mxu0 %v387_v23  ;;  %v6346_v37 = vld [vmem:[#allocation8 + $0x64] ss:$16 sps:$4 sm:$0xff]   ;;  %v6344_v38 = vld [vmem:[#allocation8 + $0x60] ss:$16 sps:$4 sm:$0xff]   ;;  %v6335_v46 = vld [vmem:[#allocation8 + $0x28] ss:$16 sps:$4 sm:$0xff]  }
  0xd1   :  { %5325 = vmatprep.subr.msk.bf16.mxu1 %vm373_vm0, %v5297_v20  ;;  %2600 = vmatprep.subr.bf16.mxu0 %v6328_v21  ;;  %v6352_v39 = vld [vmem:[#allocation8 + $0x84] ss:$16 sps:$4 sm:$0xff]   ;;  %v6350_v40 = vld [vmem:[#allocation8 + $0x80] ss:$16 sps:$4 sm:$0xff]   ;;  %v6343_v47 = vld [vmem:[#allocation8 + $0x4c] ss:$16 sps:$4 sm:$0xff]  }
  0xd2   :  { %v6358_v41 = vld [vmem:[#allocation8 + $0xa4] ss:$16 sps:$4 sm:$0xff]   ;;  %v6356_v44 = vld [vmem:[#allocation8 + $0xa0] ss:$16 sps:$4 sm:$0xff]   ;;  %v6341_v50 = vld [vmem:[#allocation8 + $0x48] ss:$16 sps:$4 sm:$0xff]  }
  0xd3   :  { %v6364_v45 = vld [vmem:[#allocation8 + $0xc4] ss:$16 sps:$4 sm:$0xff]   ;;  %v6362_v48 = vld [vmem:[#allocation8 + $0xc0] ss:$16 sps:$4 sm:$0xff]   ;;  %v6349_v51 = vld [vmem:[#allocation8 + $0x6c] ss:$16 sps:$4 sm:$0xff]  }
  0xd4   :  { %v6370_v49 = vld [vmem:[#allocation8 + $0xe4] ss:$16 sps:$4 sm:$0xff]   ;;  %v6368_v52 = vld [vmem:[#allocation8 + $0xe0] ss:$16 sps:$4 sm:$0xff]   ;;  %v6347_v54 = vld [vmem:[#allocation8 + $0x68] ss:$16 sps:$4 sm:$0xff]  }
  0xd5   :  { %v6376_v53 = vld [vmem:[#allocation8 + $0x104] ss:$16 sps:$4 sm:$0xff]   ;;  %v6355_v55 = vld [vmem:[#allocation8 + $0x8c] ss:$16 sps:$4 sm:$0xff]   ;;  %v6374_v56 = vld [vmem:[#allocation8 + $0x100] ss:$16 sps:$4 sm:$0xff]  }
  0xd6   :  { %5300 = vmatmul.mubr.msk.bf16.gmra.mrb[4].mxu0 %vm348_vm1, %v7359_v19  ;;  %5308 = vmatmul.mubr.msk.bf16.vlgmr.msra.gmra.mrb[4].mxu1 %vm348_vm1, %v7343_v7  ;;  %v6382_v57 = vld [vmem:[#allocation8 + $0x124] ss:$16 sps:$4 sm:$0xff]   ;;  %v6353_v58 = vld [vmem:[#allocation8 + $0x88] ss:$16 sps:$4 sm:$0xff]   ;;  %v6361_v59 = vld [vmem:[#allocation8 + $0xac] ss:$16 sps:$4 sm:$0xff]  }
  0xd7   :  { %450 = vmatprep.mubr.bf16.mxu0 %v7085_v1  ;;  %553 = vmatprep.mubr.bf16.mxu1 %v7085_v1  ;;  %v6380_v60 = vld [vmem:[#allocation8 + $0x120] ss:$16 sps:$4 sm:$0xff]   ;;  %v6388_v61 = vld [vmem:[#allocation8 + $0x144] ss:$16 sps:$4 sm:$0xff]   ;;  %v6359_v62 = vld [vmem:[#allocation8 + $0xa8] ss:$16 sps:$4 sm:$0xff]  }
  0xd8   :  { %738 = vmatpush1.bf16.msra.mxu1 %v393_v25  ;;  %v6367_v63 = vld [vmem:[#allocation8 + $0xcc] ss:$16 sps:$4 sm:$0xff]   ;;  %v6386_v0 = vld [vmem:[#allocation8 + $0x140] ss:$16 sps:$4 sm:$0xff]   ;;  %v6394_v2 = vld [vmem:[#allocation8 + $0x164] ss:$16 sps:$4 sm:$0xff]  }
  0xd9   :  { %3052 = vmatprep.subr.bf16.mxu1 %v6331_v26  ;;  %v6365_v3 = vld [vmem:[#allocation8 + $0xc8] ss:$16 sps:$4 sm:$0xff]   ;;  %v6373_v4 = vld [vmem:[#allocation8 + $0xec] ss:$16 sps:$4 sm:$0xff]   ;;  %v6392_v5 = vld [vmem:[#allocation8 + $0x160] ss:$16 sps:$4 sm:$0xff]  }
  0xda   :  { %v6400_v6 = vld [vmem:[#allocation8 + $0x184] ss:$16 sps:$4 sm:$0xff]   ;;  %v6379_v9 = vld [vmem:[#allocation8 + $0x10c] ss:$16 sps:$4 sm:$0xff]   ;;  %v6398_v10 = vld [vmem:[#allocation8 + $0x180] ss:$16 sps:$4 sm:$0xff]  }
  0xdb   :  { %v6406_v11 = vld [vmem:[#allocation8 + $0x1a4] ss:$16 sps:$4 sm:$0xff]   ;;  %v6377_v12 = vld [vmem:[#allocation8 + $0x108] ss:$16 sps:$4 sm:$0xff]   ;;  %v6385_v13 = vld [vmem:[#allocation8 + $0x12c] ss:$16 sps:$4 sm:$0xff]  }
  0xdc   :  { %v6404_v14 = vld [vmem:[#allocation8 + $0x1a0] ss:$16 sps:$4 sm:$0xff]   ;;  %v6412_v15 = vld [vmem:[#allocation8 + $0x1c4] ss:$16 sps:$4 sm:$0xff]   ;;  %v6383_v16 = vld [vmem:[#allocation8 + $0x128] ss:$16 sps:$4 sm:$0xff]  }
  0xdd   :  { %v6391_v17 = vld [vmem:[#allocation8 + $0x14c] ss:$16 sps:$4 sm:$0xff]   ;;  %v6410_v18 = vld [vmem:[#allocation8 + $0x1c0] ss:$16 sps:$4 sm:$0xff]   ;;  %v6389_v20 = vld [vmem:[#allocation8 + $0x148] ss:$16 sps:$4 sm:$0xff]  }
  0xde   :  { %5301 = vmatmul.mubr.msk.bf16.gmra.mrb[8].mxu0 %vm348_vm1, %v7376_v27  ;;  %5309 = vmatmul.mubr.msk.bf16.gmra.mrb[8].mxu1 %vm348_vm1, %v7359_v19  ;;  %v6397_v21 = vld [vmem:[#allocation8 + $0x16c] ss:$16 sps:$4 sm:$0xff]   ;;  %v6416_v22 = vld [vmem:[#allocation8 + $0x1e0] ss:$16 sps:$4 sm:$0xff]   ;;  %v6424_v23 = vld [vmem:[#allocation8 + $0x204] ss:$16 sps:$4 sm:$0xff]  }
  0xdf   :  { %460 = vmatprep.mubr.bf16.mxu0 %v7085_v1  ;;  %563 = vmatprep.mubr.bf16.mxu1 %v7085_v1  ;;  %v6395_v24 = vld [vmem:[#allocation8 + $0x168] ss:$16 sps:$4 sm:$0xff]   ;;  %v6403_v25 = vld [vmem:[#allocation8 + $0x18c] ss:$16 sps:$4 sm:$0xff]  }
  0xe0   :  { %v6401_v26 = vld [vmem:[#allocation8 + $0x188] ss:$16 sps:$4 sm:$0xff]  }
  0xe6   :  { %5302 = vmatmul.mubr.msk.bf16.gmra.mrb[12].mxu0 %vm348_vm1, %v7387_v28  ;;  %5310 = vmatmul.mubr.msk.bf16.gmra.mrb[12].mxu1 %vm348_vm1, %v7376_v27 }
  0xe7   :  { %470 = vmatprep.mubr.bf16.mxu0 %v7085_v1  ;;  %573 = vmatprep.mubr.bf16.mxu1 %v7085_v1 }
  0xee   :  { %5303 = vmatmul.mubr.msk.bf16.gmra.mrb[16].mxu0 %vm348_vm1, %v7398_v29  ;;  %5311 = vmatmul.mubr.msk.bf16.gmra.mrb[16].mxu1 %vm348_vm1, %v7387_v28 }
  0xef   :  { %480 = vmatprep.mubr.bf16.mxu0 %v7085_v1  ;;  %583 = vmatprep.mubr.bf16.mxu1 %v7085_v1 }
  0xf6   :  { %5304 = vmatmul.mubr.msk.bf16.gmra.mrb[20].mxu0 %vm348_vm1, %v7409_v30  ;;  %5312 = vmatmul.mubr.msk.bf16.gmra.mrb[20].mxu1 %vm348_vm1, %v7398_v29 }
  0xf7   :  { %490 = vmatprep.mubr.bf16.mxu0 %v7085_v1  ;;  %593 = vmatprep.mubr.bf16.mxu1 %v7085_v1 }
  0xfe   :  { %5305 = vmatmul.mubr.msk.bf16.gmra.mrb[24].mxu0 %vm348_vm1, %v7418_v31  ;;  %5313 = vmatmul.mubr.msk.bf16.gmra.mrb[24].mxu1 %vm348_vm1, %v7409_v30 }
  0xff   :  { %656 = vmatprep.mubr.bf16.mxu0 %v7085_v1  ;;  %603 = vmatprep.mubr.bf16.mxu1 %v7085_v1 }
 0x106   :  { %5317 = vmatmul.mubr.msk.bf16.vlgmr.msra.gmra.mrb[28].mxu0 %vm348_vm1, %v7343_v7  ;;  %5314 = vmatmul.mubr.msk.bf16.gmra.mrb[28].mxu1 %vm348_vm1, %v7418_v31 }
 0x107   :  { %666 = vmatprep.mubr.bf16.mxu0 %v7085_v1  ;;  %2601 = vmatpush1.bf16.msra.mxu0 %v6326_v32  ;;  %v6421_v32 = vld [vmem:[#allocation8 + $0x1ec] ss:$16 sps:$4 sm:$0xff]  }
 0x108   :  { %2602 = vmatprep.subr.bf16.mxu0 %v6334_v33  ;;  %613 = vmatprep.mubr.bf16.mxu1 %v7085_v1  ;;  %v6419_v33 = vld [vmem:[#allocation8 + $0x1e8] ss:$16 sps:$4 sm:$0xff]  }
 0x10b   :  { %2603 = vmatpush1.bf16.msra.mxu0 %v6332_v34  ;;  %v6427_v34 = vld [vmem:[#allocation8 + $0x20c] ss:$16 sps:$4 sm:$0xff]  }
 0x10c   :  { %2604 = vmatprep.subr.bf16.mxu0 %v6340_v35 }
 0x10e   :  { %5318 = vmatmul.mubr.msk.bf16.gmra.mrb[32].mxu0 %vm348_vm1, %v7359_v19  ;;  %5315 = vmatmul.mubr.msk.bf16.gmra.mrb[32].mxu1 %vm348_vm1, %v7352_v8 }
 0x10f   :  { %676 = vmatprep.mubr.bf16.mxu0 %v7085_v1  ;;  %2605 = vmatpush1.bf16.msra.mxu0 %v6338_v36 }
 0x110   :  { %2606 = vmatprep.subr.bf16.mxu0 %v6346_v37  ;;  %769 = vmatprep.mubr.bf16.mxu1 %v7085_v1  ;;  %v7486_v37 = vld [vmem:[#allocation6] sm:$0xff] }
 0x113   :  { %2607 = vmatpush1.bf16.msra.mxu0 %v6344_v38 }
 0x114   :  { %2608 = vmatprep.subr.bf16.mxu0 %v6352_v39 }
 0x116   :  { %5319 = vmatmul.mubr.msk.bf16.gmra.mrb[36].mxu0 %vm348_vm1, %v7376_v27  ;;  %5326 = vmatmul.mubr.msk.bf16.vlgmr.msra.gmra.mrb[36].mxu1 %vm348_vm1, %v7343_v7  ;;  %v6371_v7 = vld [vmem:[#allocation8 + $0xe8] ss:$16 sps:$4 sm:$0xff]  }
 0x117   :  { %686 = vmatprep.mubr.bf16.mxu0 %v7085_v1  ;;  %2609 = vmatpush1.bf16.msra.mxu0 %v6350_v40 }
 0x118   :  { %2610 = vmatprep.subr.bf16.mxu0 %v6358_v41  ;;  %3053 = vmatpush1.bf16.msra.mxu1 %v6329_v42 }
 0x119   :  { %779 = vmatprep.mubr.bf16.mxu1 %v7085_v1  ;;  %3054 = vmatprep.subr.bf16.mxu1 %v6337_v43 }
 0x11b   :  { %2611 = vmatpush1.bf16.msra.mxu0 %v6356_v44 }
 0x11c   :  { %2612 = vmatprep.subr.bf16.mxu0 %v6364_v45  ;;  %3055 = vmatpush1.bf16.msra.mxu1 %v6335_v46 }
 0x11d   :  { %3056 = vmatprep.subr.bf16.mxu1 %v6343_v47 }
 0x11e   :  { %5320 = vmatmul.mubr.msk.bf16.gmra.mrb[40].mxu0 %vm348_vm1, %v7387_v28  ;;  %5327 = vmatmul.mubr.msk.bf16.gmra.mrb[40].mxu1 %vm348_vm1, %v7359_v19  ;;  %v6418_v19 = vld [vmem:[#allocation8 + $0x1e4] ss:$16 sps:$4 sm:$0xff]  }
 0x11f   :  { %696 = vmatprep.mubr.bf16.mxu0 %v7085_v1  ;;  %2613 = vmatpush1.bf16.msra.mxu0 %v6362_v48 }
 0x120   :  { %2614 = vmatprep.subr.bf16.mxu0 %v6370_v49  ;;  %3057 = vmatpush1.bf16.msra.mxu1 %v6341_v50 }
 0x121   :  { %789 = vmatprep.mubr.bf16.mxu1 %v7085_v1  ;;  %3058 = vmatprep.subr.bf16.mxu1 %v6349_v51 }
 0x123   :  { %2615 = vmatpush1.bf16.msra.mxu0 %v6368_v52 }
 0x124   :  { %2616 = vmatprep.subr.bf16.mxu0 %v6376_v53  ;;  %3059 = vmatpush1.bf16.msra.mxu1 %v6347_v54 }
 0x125   :  { %3060 = vmatprep.subr.bf16.mxu1 %v6355_v55 }
 0x126   :  { %5321 = vmatmul.mubr.msk.bf16.gmra.mrb[44].mxu0 %vm348_vm1, %v7398_v29  ;;  %5328 = vmatmul.mubr.msk.bf16.gmra.mrb[44].mxu1 %vm348_vm1, %v7376_v27  ;;  %v6409_v27 = vld [vmem:[#allocation8 + $0x1ac] ss:$16 sps:$4 sm:$0xff]  }
 0x127   :  { %706 = vmatprep.mubr.bf16.mxu0 %v7085_v1  ;;  %2617 = vmatpush1.bf16.msra.mxu0 %v6374_v56 }
 0x128   :  { %2618 = vmatprep.subr.bf16.mxu0 %v6382_v57  ;;  %3061 = vmatpush1.bf16.msra.mxu1 %v6353_v58 }
 0x129   :  { %799 = vmatprep.mubr.bf16.mxu1 %v7085_v1  ;;  %3062 = vmatprep.subr.bf16.mxu1 %v6361_v59 }
 0x12b   :  { %2619 = vmatpush1.bf16.msra.mxu0 %v6380_v60 }
 0x12c   :  { %2620 = vmatprep.subr.bf16.mxu0 %v6388_v61  ;;  %3063 = vmatpush1.bf16.msra.mxu1 %v6359_v62 }
 0x12d   :  { %3064 = vmatprep.subr.bf16.mxu1 %v6367_v63 }
 0x12e   :  { %5322 = vmatmul.mubr.msk.bf16.gmra.mrb[48].mxu0 %vm348_vm1, %v7409_v30  ;;  %5329 = vmatmul.mubr.msk.bf16.gmra.mrb[48].mxu1 %vm348_vm1, %v7387_v28  ;;  %v6407_v28 = vld [vmem:[#allocation8 + $0x1a8] ss:$16 sps:$4 sm:$0xff]  }
 0x12f   :  { %716 = vmatprep.mubr.bf16.mxu0 %v7085_v1  ;;  %2621 = vmatpush1.bf16.msra.mxu0 %v6386_v0 }
 0x130   :  { %2622 = vmatprep.subr.bf16.mxu0 %v6394_v2  ;;  %3065 = vmatpush1.bf16.msra.mxu1 %v6365_v3 }
 0x131   :  { %809 = vmatprep.mubr.bf16.mxu1 %v7085_v1  ;;  %3066 = vmatprep.subr.bf16.mxu1 %v6373_v4  ;;  %v6422_v4 = vld [vmem:[#allocation8 + $0x200] ss:$16 sps:$4 sm:$0xff]  }
 0x133   :  { %2623 = vmatpush1.bf16.msra.mxu0 %v6392_v5  ;;  %v6425_v5 = vld [vmem:[#allocation8 + $0x208] ss:$16 sps:$4 sm:$0xff]  }
 0x134   :  { %2624 = vmatprep.subr.bf16.mxu0 %v6400_v6  ;;  %3067 = vmatpush1.bf16.msra.mxu1 %v6371_v7 }
 0x135   :  { %3068 = vmatprep.subr.bf16.mxu1 %v6379_v9 }
 0x136   :  { %5323 = vmatmul.mubr.msk.bf16.gmra.mrb[52].mxu0 %vm348_vm1, %v7418_v31  ;;  %5330 = vmatmul.mubr.msk.bf16.gmra.mrb[52].mxu1 %vm348_vm1, %v7398_v29  ;;  %v6415_v29 = vld [vmem:[#allocation8 + $0x1cc] ss:$16 sps:$4 sm:$0xff]  }
 0x137   :  { %726 = vmatprep.mubr.bf16.mxu0 %v7085_v1  ;;  %2625 = vmatpush1.bf16.msra.mxu0 %v6398_v10 }
 0x138   :  { %2626 = vmatprep.subr.bf16.mxu0 %v6406_v11  ;;  %3069 = vmatpush1.bf16.msra.mxu1 %v6377_v12  ;;  %v6430_v11 = vld [vmem:[#allocation8 + $0x224] ss:$16 sps:$4 sm:$0xff]   ;;  %v6433_v12 = vld [vmem:[#allocation8 + $0x22c] ss:$16 sps:$4 sm:$0xff]  }
 0x139   :  { %819 = vmatprep.mubr.bf16.mxu1 %v7085_v1  ;;  %3070 = vmatprep.subr.bf16.mxu1 %v6385_v13 }
 0x13b   :  { %2627 = vmatpush1.bf16.msra.mxu0 %v6404_v14 }
 0x13c   :  { %2628 = vmatprep.subr.bf16.mxu0 %v6412_v15  ;;  %3071 = vmatpush1.bf16.msra.mxu1 %v6383_v16 }
 0x13d   :  { %3072 = vmatprep.subr.bf16.mxu1 %v6391_v17 }
 0x13e   :  { %5324 = vmatmul.mubr.msk.bf16.gmra.mrb[56].mxu0 %vm348_vm1, %v7352_v8  ;;  %5331 = vmatmul.mubr.msk.bf16.gmra.mrb[56].mxu1 %vm348_vm1, %v7409_v30  ;;  %v6413_v30 = vld [vmem:[#allocation8 + $0x1c8] ss:$16 sps:$4 sm:$0xff]  }
 0x13f   :  { %2629 = vmatpush1.bf16.msra.mxu0 %v6410_v18  ;;  %829 = vmatprep.mubr.bf16.mxu1 %v7085_v1 }
 0x140   :  { %2630 = vmatprep.subr.bf16.mxu0 %v6418_v19  ;;  %3073 = vmatpush1.bf16.msra.mxu1 %v6389_v20  ;;  %v6428_v20 = vld [vmem:[#allocation8 + $0x220] ss:$16 sps:$4 sm:$0xff]  }
 0x141   :  { %3074 = vmatprep.subr.bf16.mxu1 %v6397_v21 }
 0x143   :  { %2631 = vmatpush1.bf16.msra.mxu0 %v6416_v22 }
 0x144   :  { %2713 = vmatprep.subr.bf16.mxu0 %v6424_v23  ;;  %3075 = vmatpush1.bf16.msra.mxu1 %v6395_v24  ;;  %v6431_v24 = vld [vmem:[#allocation8 + $0x228] ss:$16 sps:$4 sm:$0xff]  }
 0x145   :  { %3076 = vmatprep.subr.bf16.mxu1 %v6403_v25  ;;  %v6436_v25 = vld [vmem:[#allocation8 + $0x244] ss:$16 sps:$4 sm:$0xff]  }
 0x146   :  { %5332 = vmatmul.mubr.msk.bf16.gmra.mrb[60].mxu1 %vm348_vm1, %v7418_v31  ;;  %v236_v31 = vlaneseq }
 0x147   :  { %839 = vmatprep.mubr.bf16.mxu1 %v7085_v1 }
 0x148   :  { %3077 = vmatpush1.bf16.msra.mxu1 %v6401_v26  ;;  %v7481_v35 = vshrl.u32 %v236_v31, 7 }
 0x149   :  { %3078 = vmatprep.subr.bf16.mxu1 %v6409_v27 }
 0x14a   :  { %v7484_v36 = vsub.s32 0, %v7481_v35  ;;  %v7489_v38 = vsub.s32 1, %v7481_v35  ;;  %v246_v51 = vsub.s32 2, %v7481_v35  ;;  %v250_v56 = vsub.s32 3, %v7481_v35 }
 0x14c   :  { %3079 = vmatpush1.bf16.msra.mxu1 %v6407_v28  ;;  %v7497_v39 = vrot.slane %v7486_v37, %v7489_v38  ;;  %v7512_v7 = vrot.slane %v7486_v37, %v246_v51  ;;  %v7518_v14 = vrot.slane %v7486_v37, %v250_v56 }
 0x14d   :  { %3080 = vmatprep.subr.bf16.mxu1 %v6415_v29 }
 0x14e   :  { %5333 = vmatmul.mubr.msk.bf16.gmra.mrb[64].mxu1 %vm348_vm1, %v7352_v8  ;;  %v7493_v8 = vrot.slane %v7486_v37, %v7484_v36 }
 0x150   :  { %3081 = vmatpush1.bf16.msra.mxu1 %v6413_v30  ;;  %v6439_v30 = vld [vmem:[#allocation8 + $0x24c] ss:$16 sps:$4 sm:$0xff]  }
 0x151   :  { %3082 = vmatprep.subr.bf16.mxu1 %v6421_v32 }
 0x154   :  { %3083 = vmatpush1.bf16.msra.mxu1 %v6419_v33 }
 0x155   :  { %3165 = vmatprep.subr.bf16.mxu1 %v6427_v34 }
 0x1a1   :  { %v432_v40 = vpop.f32.mrb[0].mxu0  ;;  %v502_v47 = vpop.f32.mrb[0].mxu1 }
 0x1a2   :  { %v433_v41 = vadd.f32 %v432_v40, %v7493_v8  ;;  %v434_v42 = vpop.f32.mrb[1].mxu0  ;;  %v503_v49 = vadd.f32 %v502_v47, %v7493_v8  ;;  %v504_v50 = vpop.f32.mrb[1].mxu1 }
 0x1a3   :  { %v435_v43 = vadd.f32 %v434_v42, %v7497_v39  ;;  %v436_v44 = vpop.f32.mrb[2].mxu0  ;;  %v505_v54 = vadd.f32 %v504_v50, %v7497_v39  ;;  %v506_v55 = vpop.f32.mrb[2].mxu1 }
 0x1a4   :  { %v437_v45 = vadd.f32 %v436_v44, %v7493_v8  ;;  %v438_v46 = vpop.f32.mrb[3].mxu0  ;;  %v850_v52 = vmax.f32 %v433_v41, 0.0  ;;  %v962_v59 = vmax.f32 %v503_v49, 0.0  ;;  %v507_v60 = vadd.f32 %v506_v55, %v7493_v8  ;;  %v508_v61 = vpop.f32.mrb[3].mxu1  ;;  %v6437_v49 = vld [vmem:[#allocation8 + $0x248] ss:$16 sps:$4 sm:$0xff]  }
 0x1a5   :  { %v439_v48 = vadd.f32 %v438_v46, %v7497_v39  ;;  %v851_v57 = vmax.f32 %v435_v43, 0.0  ;;  %v963_v63 = vmax.f32 %v505_v54, 0.0  ;;  %v509_v0 = vadd.f32 %v508_v61, %v7497_v39  ;;  %v6442_v54 = vld [vmem:[#allocation8 + $0x264] ss:$16 sps:$4 sm:$0xff]   ;;  %v6445_v55 = vld [vmem:[#allocation8 + $0x26c] ss:$16 sps:$4 sm:$0xff]  }
 0x1a6   :  { %v858_v53 = vmax.f32 %v437_v45, 0.0  ;;  %v970_v6 = vmax.f32 %v507_v60, 0.0 }
 0x1a7   :  { %v859_v58 = vmax.f32 %v439_v48, 0.0  ;;  %v971_v13 = vmax.f32 %v509_v0, 0.0  ;;  %v6434_v48 = vld [vmem:[#allocation8 + $0x240] ss:$16 sps:$4 sm:$0xff]  }
 0x1a8   :  { %v978_v62 = vpack.c.bf16 %v858_v53, %v850_v52  ;;  %v7521_v17 = vpack.c.bf16 %v970_v6, %v962_v59 }
 0x1a9   :  { %v979_v2 = vpack.c.bf16 %v859_v58, %v851_v57  ;;  %v442_v3 = vpop.f32.mrb[4].mxu0  ;;  %v7524_v21 = vpack.c.bf16 %v971_v13, %v963_v63  ;;  %v545_v22 = vpop.f32.mrb[4].mxu1  ;;  %v6440_v63 = vld [vmem:[#allocation8 + $0x260] ss:$16 sps:$4 sm:$0xff]  }
 0x1aa   :  { %v443_v9 = vadd.f32 %v442_v3, %v7493_v8  ;;  %v444_v10 = vpop.f32.mrb[5].mxu0  ;;  %v546_v26 = vadd.f32 %v545_v22, %v7512_v7  ;;  %v547_v27 = vpop.f32.mrb[5].mxu1 }
 0x1ab   :  { %v445_v15 = vadd.f32 %v444_v10, %v7497_v39  ;;  %v446_v16 = vpop.f32.mrb[6].mxu0  ;;  %2632 = vmatprep.mubr.bf16.mxu0 %v979_v2  ;;  %3084 = vmatprep.mubr.bf16.mxu1 %v979_v2  ;;  %v548_v32 = vadd.f32 %v547_v27, %v7518_v14  ;;  %v549_v33 = vpop.f32.mrb[6].mxu1 }
 0x1ac   :  { %v447_v18 = vadd.f32 %v446_v16, %v7493_v8  ;;  %v448_v19 = vpop.f32.mrb[7].mxu0  ;;  %2633 = vmatmul.mubr.bf16.vlgmr.msra.gmra.mrb[60].mxu0 %v978_v62  ;;  %3085 = vmatmul.mubr.bf16.vlgmr.msra.gmra.mrb[68].mxu1 %v978_v62  ;;  %v866_v28 = vmax.f32 %v443_v9, 0.0  ;;  %v852_v40 = vmax.f32 %v546_v26, 0.0  ;;  %v550_v41 = vadd.f32 %v549_v33, %v7512_v7  ;;  %v551_v42 = vpop.f32.mrb[7].mxu1 }
 0x1ad   :  { %v449_v23 = vadd.f32 %v448_v19, %v7497_v39  ;;  %2714 = vmatpush1.bf16.msra.mxu0 %v6422_v4  ;;  %3166 = vmatpush1.bf16.msra.mxu1 %v6425_v5  ;;  %v867_v34 = vmax.f32 %v445_v15, 0.0  ;;  %v853_v44 = vmax.f32 %v548_v32, 0.0  ;;  %v552_v45 = vadd.f32 %v551_v42, %v7518_v14  ;;  %v6443_v4 = vld [vmem:[#allocation8 + $0x268] ss:$16 sps:$4 sm:$0xff]   ;;  %v6448_v5 = vld [vmem:[#allocation8 + $0x284] ss:$16 sps:$4 sm:$0xff]  }
 0x1ae   :  { %v874_v29 = vmax.f32 %v447_v18, 0.0  ;;  %2715 = vmatprep.subr.bf16.mxu0 %v6430_v11  ;;  %3167 = vmatprep.subr.bf16.mxu1 %v6433_v12  ;;  %v860_v50 = vmax.f32 %v550_v41, 0.0  ;;  %v6451_v12 = vld [vmem:[#allocation8 + $0x28c] ss:$16 sps:$4 sm:$0xff]  }
 0x1af   :  { %v875_v31 = vmax.f32 %v449_v23, 0.0  ;;  %v861_v57 = vmax.f32 %v552_v45, 0.0 }
 0x1b0   :  { %v986_v43 = vpack.c.bf16 %v874_v29, %v866_v28  ;;  %v7533_v60 = vpack.c.bf16 %v860_v50, %v852_v40  ;;  %v6446_v28 = vld [vmem:[#allocation8 + $0x280] ss:$16 sps:$4 sm:$0xff]   ;;  %v6449_v29 = vld [vmem:[#allocation8 + $0x288] ss:$16 sps:$4 sm:$0xff]  }
 0x1b1   :  { %v987_v46 = vpack.c.bf16 %v875_v31, %v867_v34  ;;  %v452_v47 = vpop.f32.mrb[8].mxu0  ;;  %2716 = vmatpush1.bf16.msra.mxu0 %v6428_v20  ;;  %3168 = vmatpush1.bf16.msra.mxu1 %v6431_v24  ;;  %v7536_v0 = vpack.c.bf16 %v861_v57, %v853_v44  ;;  %v555_v2 = vpop.f32.mrb[8].mxu1  ;;  %v6454_v34 = vld [vmem:[#allocation8 + $0x2a4] ss:$16 sps:$4 sm:$0xff]   ;;  %v6457_v31 = vld [vmem:[#allocation8 + $0x2ac] ss:$16 sps:$4 sm:$0xff]  }
 0x1b2   :  { %v453_v52 = vadd.f32 %v452_v47, %v7493_v8  ;;  %v454_v53 = vpop.f32.mrb[9].mxu0  ;;  %2717 = vmatprep.subr.bf16.mxu0 %v6436_v25  ;;  %3169 = vmatprep.subr.bf16.mxu1 %v6439_v30  ;;  %v556_v6 = vadd.f32 %v555_v2, %v7512_v7  ;;  %v557_v9 = vpop.f32.mrb[9].mxu1  ;;  %v6455_v50 = vld [vmem:[#allocation8 + $0x2a8] ss:$16 sps:$4 sm:$0xff]  }
 0x1b3   :  { %v455_v58 = vadd.f32 %v454_v53, %v7497_v39  ;;  %v456_v59 = vpop.f32.mrb[10].mxu0  ;;  %2642 = vmatprep.mubr.bf16.mxu0 %v987_v46  ;;  %3094 = vmatprep.mubr.bf16.mxu1 %v987_v46  ;;  %v558_v13 = vadd.f32 %v557_v9, %v7518_v14  ;;  %v559_v15 = vpop.f32.mrb[10].mxu1  ;;  %v6452_v46 = vld [vmem:[#allocation8 + $0x2a0] ss:$16 sps:$4 sm:$0xff]  }
 0x1b4   :  { %v457_v61 = vadd.f32 %v456_v59, %v7493_v8  ;;  %v458_v62 = vpop.f32.mrb[11].mxu0  ;;  %2643 = vmatmul.mubr.bf16.gmra.mrb[64].mxu0 %v986_v43  ;;  %3095 = vmatmul.mubr.bf16.gmra.mrb[72].mxu1 %v986_v43  ;;  %v882_v10 = vmax.f32 %v453_v52, 0.0  ;;  %v868_v19 = vmax.f32 %v556_v6, 0.0  ;;  %v560_v20 = vadd.f32 %v559_v15, %v7512_v7  ;;  %v561_v22 = vpop.f32.mrb[11].mxu1  ;;  %v6460_v52 = vld [vmem:[#allocation8 + $0x2c4] ss:$16 sps:$4 sm:$0xff]  }
 0x1b5   :  { %v459_v3 = vadd.f32 %v458_v62, %v7497_v39  ;;  %2718 = vmatpush1.bf16.msra.mxu0 %v6434_v48  ;;  %3170 = vmatpush1.bf16.msra.mxu1 %v6437_v49  ;;  %v883_v16 = vmax.f32 %v455_v58, 0.0  ;;  %v869_v24 = vmax.f32 %v558_v13, 0.0  ;;  %v562_v25 = vadd.f32 %v561_v22, %v7518_v14  ;;  %v6463_v58 = vld [vmem:[#allocation8 + $0x2cc] ss:$16 sps:$4 sm:$0xff]   ;;  %v6461_v13 = vld [vmem:[#allocation8 + $0x2c8] ss:$16 sps:$4 sm:$0xff]  }
 0x1b6   :  { %v890_v11 = vmax.f32 %v457_v61, 0.0  ;;  %2719 = vmatprep.subr.bf16.mxu0 %v6442_v54  ;;  %3171 = vmatprep.subr.bf16.mxu1 %v6445_v55  ;;  %v876_v30 = vmax.f32 %v560_v20, 0.0  ;;  %v6469_v20 = vld [vmem:[#allocation8 + $0x2ec] ss:$16 sps:$4 sm:$0xff]  }
 0x1b7   :  { %v891_v18 = vmax.f32 %v459_v3, 0.0  ;;  %v877_v40 = vmax.f32 %v562_v25, 0.0 }
 0x1b8   :  { %v994_v23 = vpack.c.bf16 %v890_v11, %v882_v10  ;;  %v7545_v43 = vpack.c.bf16 %v876_v30, %v868_v19  ;;  %v6466_v19 = vld [vmem:[#allocation8 + $0x2e4] ss:$16 sps:$4 sm:$0xff]  }
 0x1b9   :  { %v995_v26 = vpack.c.bf16 %v891_v18, %v883_v16  ;;  %v462_v27 = vpop.f32.mrb[12].mxu0  ;;  %2720 = vmatpush1.bf16.msra.mxu0 %v6440_v63  ;;  %3172 = vmatpush1.bf16.msra.mxu1 %v6443_v4  ;;  %v7548_v47 = vpack.c.bf16 %v877_v40, %v869_v24  ;;  %v565_v48 = vpop.f32.mrb[12].mxu1 }
 0x1ba   :  { %v463_v32 = vadd.f32 %v462_v27, %v7493_v8  ;;  %v464_v33 = vpop.f32.mrb[13].mxu0  ;;  %2721 = vmatprep.subr.bf16.mxu0 %v6448_v5  ;;  %3173 = vmatprep.subr.bf16.mxu1 %v6451_v12  ;;  %v566_v53 = vadd.f32 %v565_v48, %v7512_v7  ;;  %v567_v54 = vpop.f32.mrb[13].mxu1  ;;  %v6458_v12 = vld [vmem:[#allocation8 + $0x2c0] ss:$16 sps:$4 sm:$0xff]  }
 0x1bb   :  { %v465_v41 = vadd.f32 %v464_v33, %v7497_v39  ;;  %v466_v42 = vpop.f32.mrb[14].mxu0  ;;  %2652 = vmatprep.mubr.bf16.mxu0 %v995_v26  ;;  %3104 = vmatprep.mubr.bf16.mxu1 %v995_v26  ;;  %v568_v59 = vadd.f32 %v567_v54, %v7518_v14  ;;  %v569_v61 = vpop.f32.mrb[14].mxu1  ;;  %v6467_v33 = vld [vmem:[#allocation8 + $0x2e8] ss:$16 sps:$4 sm:$0xff]  }
 0x1bc   :  { %v467_v44 = vadd.f32 %v466_v42, %v7493_v8  ;;  %v468_v45 = vpop.f32.mrb[15].mxu0  ;;  %2653 = vmatmul.mubr.bf16.gmra.mrb[68].mxu0 %v994_v23  ;;  %3105 = vmatmul.mubr.bf16.gmra.mrb[76].mxu1 %v994_v23  ;;  %v898_v55 = vmax.f32 %v463_v32, 0.0  ;;  %v884_v2 = vmax.f32 %v566_v53, 0.0  ;;  %v570_v3 = vadd.f32 %v569_v61, %v7512_v7  ;;  %v571_v4 = vpop.f32.mrb[15].mxu1  ;;  %v6470_v61 = vld [vmem:[#allocation8 + $0x300] ss:$16 sps:$4 sm:$0xff]  }
 0x1bd   :  { %v469_v49 = vadd.f32 %v468_v45, %v7497_v39  ;;  %2722 = vmatpush1.bf16.msra.mxu0 %v6446_v28  ;;  %3174 = vmatpush1.bf16.msra.mxu1 %v6449_v29  ;;  %v899_v62 = vmax.f32 %v465_v41, 0.0  ;;  %v885_v6 = vmax.f32 %v568_v59, 0.0  ;;  %v572_v9 = vadd.f32 %v571_v4, %v7518_v14  ;;  %v6464_v28 = vld [vmem:[#allocation8 + $0x2e0] ss:$16 sps:$4 sm:$0xff]   ;;  %v6478_v4 = vld [vmem:[#allocation8 + $0x324] ss:$16 sps:$4 sm:$0xff]  }
 0x1be   :  { %v906_v57 = vmax.f32 %v467_v44, 0.0  ;;  %2723 = vmatprep.subr.bf16.mxu0 %v6454_v34  ;;  %3175 = vmatprep.subr.bf16.mxu1 %v6457_v31  ;;  %v892_v15 = vmax.f32 %v570_v3, 0.0  ;;  %v6472_v34 = vld [vmem:[#allocation8 + $0x304] ss:$16 sps:$4 sm:$0xff]   ;;  %v6475_v44 = vld [vmem:[#allocation8 + $0x30c] ss:$16 sps:$4 sm:$0xff]  }
 0x1bf   :  { %v907_v63 = vmax.f32 %v469_v49, 0.0  ;;  %v893_v22 = vmax.f32 %v572_v9, 0.0 }
 0x1c0   :  { %v1002_v5 = vpack.c.bf16 %v906_v57, %v898_v55  ;;  %v7557_v25 = vpack.c.bf16 %v892_v15, %v884_v2  ;;  %v6476_v15 = vld [vmem:[#allocation8 + $0x320] ss:$16 sps:$4 sm:$0xff]  }
 0x1c1   :  { %v1003_v10 = vpack.c.bf16 %v907_v63, %v899_v62  ;;  %v472_v11 = vpop.f32.mrb[16].mxu0  ;;  %2724 = vmatpush1.bf16.msra.mxu0 %v6452_v46  ;;  %3176 = vmatpush1.bf16.msra.mxu1 %v6455_v50  ;;  %v7560_v29 = vpack.c.bf16 %v893_v22, %v885_v6  ;;  %v575_v30 = vpop.f32.mrb[16].mxu1  ;;  %v6473_v62 = vld [vmem:[#allocation8 + $0x308] ss:$16 sps:$4 sm:$0xff]   ;;  %v6484_v22 = vld [vmem:[#allocation8 + $0x344] ss:$16 sps:$4 sm:$0xff]  }
 0x1c2   :  { %v473_v16 = vadd.f32 %v472_v11, %v7493_v8  ;;  %v474_v18 = vpop.f32.mrb[17].mxu0  ;;  %2725 = vmatprep.subr.bf16.mxu0 %v6460_v52  ;;  %3177 = vmatprep.subr.bf16.mxu1 %v6463_v58  ;;  %v576_v31 = vadd.f32 %v575_v30, %v7512_v7  ;;  %v577_v40 = vpop.f32.mrb[17].mxu1 }
 0x1c3   :  { %v475_v23 = vadd.f32 %v474_v18, %v7497_v39  ;;  %v476_v24 = vpop.f32.mrb[18].mxu0  ;;  %2662 = vmatprep.mubr.bf16.mxu0 %v1003_v10  ;;  %3114 = vmatprep.mubr.bf16.mxu1 %v1003_v10  ;;  %v578_v45 = vadd.f32 %v577_v40, %v7518_v14  ;;  %v579_v46 = vpop.f32.mrb[18].mxu1 }
 0x1c4   :  { %v477_v26 = vadd.f32 %v476_v24, %v7493_v8  ;;  %v478_v27 = vpop.f32.mrb[19].mxu0  ;;  %2663 = vmatmul.mubr.bf16.gmra.mrb[72].mxu0 %v1002_v5  ;;  %3115 = vmatmul.mubr.bf16.gmra.mrb[80].mxu1 %v1002_v5  ;;  %v914_v41 = vmax.f32 %v473_v16, 0.0  ;;  %v900_v50 = vmax.f32 %v576_v31, 0.0  ;;  %v580_v52 = vadd.f32 %v579_v46, %v7512_v7  ;;  %v581_v53 = vpop.f32.mrb[19].mxu1  ;;  %v6481_v5 = vld [vmem:[#allocation8 + $0x32c] ss:$16 sps:$4 sm:$0xff]  }
 0x1c5   :  { %v479_v32 = vadd.f32 %v478_v27, %v7497_v39  ;;  %2726 = vmatpush1.bf16.msra.mxu0 %v6458_v12  ;;  %3178 = vmatpush1.bf16.msra.mxu1 %v6461_v13  ;;  %v915_v48 = vmax.f32 %v475_v23, 0.0  ;;  %v901_v55 = vmax.f32 %v578_v45, 0.0  ;;  %v582_v57 = vadd.f32 %v581_v53, %v7518_v14  ;;  %v6485_v45 = vld [vmem:[#allocation8 + $0x348] ss:$16 sps:$4 sm:$0xff]  }
 0x1c6   :  { %v922_v42 = vmax.f32 %v477_v26, 0.0  ;;  %2727 = vmatprep.subr.bf16.mxu0 %v6466_v19  ;;  %3179 = vmatprep.subr.bf16.mxu1 %v6469_v20  ;;  %v908_v63 = vmax.f32 %v580_v52, 0.0  ;;  %v6479_v20 = vld [vmem:[#allocation8 + $0x328] ss:$16 sps:$4 sm:$0xff]   ;;  %v6490_v52 = vld [vmem:[#allocation8 + $0x364] ss:$16 sps:$4 sm:$0xff]  }
 0x1c7   :  { %v923_v49 = vmax.f32 %v479_v32, 0.0  ;;  %v909_v6 = vmax.f32 %v582_v57, 0.0 }
 0x1c8   :  { %v1010_v54 = vpack.c.bf16 %v922_v42, %v914_v41  ;;  %v7569_v11 = vpack.c.bf16 %v908_v63, %v900_v50 }
 0x1c9   :  { %v1011_v58 = vpack.c.bf16 %v923_v49, %v915_v48  ;;  %v482_v59 = vpop.f32.mrb[20].mxu0  ;;  %2728 = vmatpush1.bf16.msra.mxu0 %v6464_v28  ;;  %3180 = vmatpush1.bf16.msra.mxu1 %v6467_v33  ;;  %v7572_v16 = vpack.c.bf16 %v909_v6, %v901_v55  ;;  %v585_v18 = vpop.f32.mrb[20].mxu1  ;;  %v6487_v28 = vld [vmem:[#allocation8 + $0x34c] ss:$16 sps:$4 sm:$0xff]  }
 0x1ca   :  { %v483_v2 = vadd.f32 %v482_v59, %v7493_v8  ;;  %v484_v3 = vpop.f32.mrb[21].mxu0  ;;  %2729 = vmatprep.subr.bf16.mxu0 %v6472_v34  ;;  %3181 = vmatprep.subr.bf16.mxu1 %v6475_v44  ;;  %v586_v23 = vadd.f32 %v585_v18, %v7512_v7  ;;  %v587_v24 = vpop.f32.mrb[21].mxu1  ;;  %v6482_v44 = vld [vmem:[#allocation8 + $0x340] ss:$16 sps:$4 sm:$0xff]  }
 0x1cb   :  { %v485_v9 = vadd.f32 %v484_v3, %v7497_v39  ;;  %v486_v10 = vpop.f32.mrb[22].mxu0  ;;  %2672 = vmatprep.mubr.bf16.mxu0 %v1011_v58  ;;  %3124 = vmatprep.mubr.bf16.mxu1 %v1011_v58  ;;  %v588_v30 = vadd.f32 %v587_v24, %v7518_v14  ;;  %v589_v32 = vpop.f32.mrb[22].mxu1  ;;  %v6493_v58 = vld [vmem:[#allocation8 + $0x36c] ss:$16 sps:$4 sm:$0xff]  }
 0x1cc   :  { %v487_v12 = vadd.f32 %v486_v10, %v7493_v8  ;;  %v488_v13 = vpop.f32.mrb[23].mxu0  ;;  %2673 = vmatmul.mubr.bf16.gmra.mrb[76].mxu0 %v1010_v54  ;;  %3125 = vmatmul.mubr.bf16.gmra.mrb[84].mxu1 %v1010_v54  ;;  %v930_v26 = vmax.f32 %v483_v2, 0.0  ;;  %v916_v31 = vmax.f32 %v586_v23, 0.0  ;;  %v590_v40 = vadd.f32 %v589_v32, %v7512_v7  ;;  %v591_v41 = vpop.f32.mrb[23].mxu1 }
 0x1cd   :  { %v489_v19 = vadd.f32 %v488_v13, %v7497_v39  ;;  %2730 = vmatpush1.bf16.msra.mxu0 %v6470_v61  ;;  %3182 = vmatpush1.bf16.msra.mxu1 %v6473_v62  ;;  %v931_v33 = vmax.f32 %v485_v9, 0.0  ;;  %v917_v46 = vmax.f32 %v588_v30, 0.0  ;;  %v592_v48 = vadd.f32 %v591_v41, %v7518_v14  ;;  %v6496_v13 = vld [vmem:[#allocation8 + $0x384] ss:$16 sps:$4 sm:$0xff]   ;;  %v6494_v41 = vld [vmem:[#allocation8 + $0x380] ss:$16 sps:$4 sm:$0xff]  }
 0x1ce   :  { %v938_v27 = vmax.f32 %v487_v12, 0.0  ;;  %2731 = vmatprep.subr.bf16.mxu0 %v6478_v4  ;;  %3183 = vmatprep.subr.bf16.mxu1 %v6481_v5  ;;  %v924_v53 = vmax.f32 %v590_v40, 0.0  ;;  %v254_v54 = vsub.s32 4, %v7481_v35  ;;  %v258_v61 = vsub.s32 5, %v7481_v35  ;;  %v6488_v5 = vld [vmem:[#allocation8 + $0x360] ss:$16 sps:$4 sm:$0xff]  }
 0x1cf   :  { %v939_v34 = vmax.f32 %v489_v19, 0.0  ;;  %v925_v59 = vmax.f32 %v592_v48, 0.0  ;;  %v6491_v12 = vld [vmem:[#allocation8 + $0x368] ss:$16 sps:$4 sm:$0xff]  }
 0x1d0   :  { %v1018_v42 = vpack.c.bf16 %v938_v27, %v930_v26  ;;  %v7583_v2 = vpack.c.bf16 %v924_v53, %v916_v31  ;;  %v7591_v19 = vrot.slane %v7486_v37, %v254_v54 }
 0x1d1   :  { %v1019_v49 = vpack.c.bf16 %v939_v34, %v931_v33  ;;  %v492_v50 = vpop.f32.mrb[24].mxu0  ;;  %2732 = vmatpush1.bf16.msra.mxu0 %v6476_v15  ;;  %3184 = vmatpush1.bf16.msra.mxu1 %v6479_v20  ;;  %v7586_v6 = vpack.c.bf16 %v925_v59, %v917_v46  ;;  %v595_v9 = vpop.f32.mrb[24].mxu1  ;;  %v6502_v46 = vld [vmem:[#allocation8 + $0x3a4] ss:$16 sps:$4 sm:$0xff]  }
 0x1d2   :  { %v493_v55 = vadd.f32 %v492_v50, %v7493_v8  ;;  %v494_v57 = vpop.f32.mrb[25].mxu0  ;;  %2733 = vmatprep.subr.bf16.mxu0 %v6484_v22  ;;  %3185 = vmatprep.subr.bf16.mxu1 %v6487_v28  ;;  %v596_v15 = vadd.f32 %v595_v9, %v7512_v7  ;;  %v597_v18 = vpop.f32.mrb[25].mxu1  ;;  %v6499_v22 = vld [vmem:[#allocation8 + $0x38c] ss:$16 sps:$4 sm:$0xff]  }
 0x1d3   :  { %v495_v62 = vadd.f32 %v494_v57, %v7497_v39  ;;  %v496_v63 = vpop.f32.mrb[26].mxu0  ;;  %2682 = vmatprep.mubr.bf16.mxu0 %v1019_v49  ;;  %3134 = vmatprep.mubr.bf16.mxu1 %v1019_v49  ;;  %v598_v23 = vadd.f32 %v597_v18, %v7518_v14  ;;  %v599_v24 = vpop.f32.mrb[26].mxu1 }
 0x1d4   :  { %v497_v3 = vadd.f32 %v496_v63, %v7493_v8  ;;  %v498_v4 = vpop.f32.mrb[27].mxu0  ;;  %2683 = vmatmul.mubr.bf16.gmra.mrb[80].mxu0 %v1018_v42  ;;  %3135 = vmatmul.mubr.bf16.gmra.mrb[88].mxu1 %v1018_v42  ;;  %v946_v8 = vmax.f32 %v493_v55, 0.0  ;;  %v932_v28 = vmax.f32 %v596_v15, 0.0  ;;  %v600_v30 = vadd.f32 %v599_v24, %v7512_v7  ;;  %v601_v32 = vpop.f32.mrb[27].mxu1  ;;  %v6497_v42 = vld [vmem:[#allocation8 + $0x388] ss:$16 sps:$4 sm:$0xff]  }
 0x1d5   :  { %v499_v10 = vadd.f32 %v498_v4, %v7497_v39  ;;  %2734 = vmatpush1.bf16.msra.mxu0 %v6482_v44  ;;  %3186 = vmatpush1.bf16.msra.mxu1 %v6485_v45  ;;  %v7595_v39 = vrot.slane %v7486_v37, %v258_v61  ;;  %v947_v26 = vmax.f32 %v495_v62, 0.0  ;;  %v933_v34 = vmax.f32 %v598_v23, 0.0  ;;  %v6500_v63 = vld [vmem:[#allocation8 + $0x3a0] ss:$16 sps:$4 sm:$0xff]  }
 0x1d6   :  { %v954_v20 = vmax.f32 %v497_v3, 0.0  ;;  %2735 = vmatprep.subr.bf16.mxu0 %v6490_v52  ;;  %3187 = vmatprep.subr.bf16.mxu1 %v6493_v58  ;;  %v602_v31 = vadd.f32 %v601_v32, %v7518_v14  ;;  %v940_v44 = vmax.f32 %v600_v30, 0.0  ;;  %v6505_v52 = vld [vmem:[#allocation8 + $0x3ac] ss:$16 sps:$4 sm:$0xff]   ;;  %v6503_v3 = vld [vmem:[#allocation8 + $0x3a8] ss:$16 sps:$4 sm:$0xff]  }
 0x1d7   :  { %v955_v27 = vmax.f32 %v499_v10, 0.0  ;;  %v6506_v30 = vld [vmem:[#allocation8 + $0x3c0] ss:$16 sps:$4 sm:$0xff]   ;;  %v6509_v32 = vld [vmem:[#allocation8 + $0x3c8] ss:$16 sps:$4 sm:$0xff]  }
 0x1d8   :  { %v1026_v33 = vpack.c.bf16 %v954_v20, %v946_v8  ;;  %v941_v48 = vmax.f32 %v602_v31, 0.0  ;;  %v7600_v53 = vpack.c.bf16 %v940_v44, %v932_v28  ;;  %v6512_v44 = vld [vmem:[#allocation8 + $0x3e0] ss:$16 sps:$4 sm:$0xff]  }
 0x1d9   :  { %v1027_v40 = vpack.c.bf16 %v955_v27, %v947_v26  ;;  %2736 = vmatpush1.bf16.msra.mxu0 %v6488_v5  ;;  %3188 = vmatpush1.bf16.msra.mxu1 %v6491_v12  ;;  %v658_v45 = vpop.f32.mrb[28].mxu0  ;;  %v605_v58 = vpop.f32.mrb[28].mxu1  ;;  %v6508_v12 = vld [vmem:[#allocation8 + $0x3c4] ss:$16 sps:$4 sm:$0xff]  }
 0x1da   :  { %2737 = vmatprep.subr.bf16.mxu0 %v6496_v13  ;;  %3189 = vmatprep.subr.bf16.mxu1 %v6499_v22  ;;  %v659_v49 = vadd.f32 %v658_v45, %v7591_v19  ;;  %v660_v50 = vpop.f32.mrb[29].mxu0  ;;  %v7603_v57 = vpack.c.bf16 %v941_v48, %v933_v34  ;;  %v606_v4 = vadd.f32 %v605_v58, %v7512_v7  ;;  %v607_v5 = vpop.f32.mrb[29].mxu1  ;;  %v6511_v13 = vld [vmem:[#allocation8 + $0x3cc] ss:$16 sps:$4 sm:$0xff]  }
 0x1db   :  { %2692 = vmatprep.mubr.bf16.mxu0 %v1027_v40  ;;  %3144 = vmatprep.mubr.bf16.mxu1 %v1027_v40  ;;  %v661_v54 = vadd.f32 %v660_v50, %v7595_v39  ;;  %v662_v55 = vpop.f32.mrb[30].mxu0  ;;  %v608_v15 = vadd.f32 %v607_v5, %v7518_v14  ;;  %v609_v18 = vpop.f32.mrb[30].mxu1  ;;  %v6517_v45 = vld [vmem:[#allocation8 + $0x3ec] ss:$16 sps:$4 sm:$0xff]   ;;  %v6515_v50 = vld [vmem:[#allocation8 + $0x3e8] ss:$16 sps:$4 sm:$0xff]  }
 0x1dc   :  { %2693 = vmatmul.mubr.bf16.gmra.mrb[84].mxu0 %v1026_v33  ;;  %3145 = vmatmul.mubr.bf16.gmra.mrb[92].mxu1 %v1026_v33  ;;  %v854_v59 = vmax.f32 %v659_v49, 0.0  ;;  %v663_v61 = vadd.f32 %v662_v55, %v7591_v19  ;;  %v664_v62 = vpop.f32.mrb[31].mxu0  ;;  %v948_v20 = vmax.f32 %v606_v4, 0.0  ;;  %v610_v22 = vadd.f32 %v609_v18, %v7512_v7  ;;  %v611_v23 = vpop.f32.mrb[31].mxu1 }
 0x1dd   :  { %2738 = vmatpush1.bf16.msra.mxu0 %v6494_v41  ;;  %3190 = vmatpush1.bf16.msra.mxu1 %v6497_v42  ;;  %v855_v9 = vmax.f32 %v661_v54, 0.0  ;;  %v665_v10 = vadd.f32 %v664_v62, %v7595_v39  ;;  %v949_v26 = vmax.f32 %v608_v15, 0.0  ;;  %v612_v27 = vadd.f32 %v611_v23, %v7518_v14 }
 0x1de   :  { %2702 = vmatprep.mubr.bf16.mxu0 %v7524_v21  ;;  %2739 = vmatprep.subr.bf16.mxu0 %v6502_v46  ;;  %v862_v8 = vmax.f32 %v663_v61, 0.0  ;;  %v956_v33 = vmax.f32 %v610_v22, 0.0  ;;  %v6520_v61 = vld [vmem:[#allocation8 + $0x404] ss:$16 sps:$4 sm:$0xff]   ;;  %v262_v5 = vsub.s32 6, %v7481_v35 }
 0x1df   :  { %3154 = vmatprep.mubr.bf16.mxu1 %v7524_v21  ;;  %3191 = vmatprep.subr.bf16.mxu1 %v6505_v52  ;;  %v863_v24 = vmax.f32 %v665_v10, 0.0  ;;  %v6514_v21 = vld [vmem:[#allocation8 + $0x3e4] ss:$16 sps:$4 sm:$0xff]   ;;  %v957_v40 = vmax.f32 %v612_v27, 0.0  ;;  %v6521_v27 = vld [vmem:[#allocation8 + $0x408] ss:$16 sps:$4 sm:$0xff]  }
 0x1e0   :  { %v7613_v28 = vpack.c.bf16 %v862_v8, %v854_v59  ;;  %v7618_v46 = vpack.c.bf16 %v956_v33, %v948_v20 }
 0x1e1   :  { %2740 = vmatpush1.bf16.msra.mxu0 %v6500_v63  ;;  %3192 = vmatpush1.bf16.msra.mxu1 %v6503_v3  ;;  %v7615_v34 = vpack.c.bf16 %v863_v24, %v855_v9  ;;  %v668_v31 = vpop.f32.mrb[32].mxu0  ;;  %v7623_v52 = vpack.c.bf16 %v957_v40, %v949_v26  ;;  %v615_v54 = vpop.f32.mrb[32].mxu1  ;;  %v6518_v26 = vld [vmem:[#allocation8 + $0x400] ss:$16 sps:$4 sm:$0xff]  }
 0x1e2   :  { %2741 = vmatprep.subr.bf16.mxu0 %v6508_v12  ;;  %3193 = vmatprep.subr.bf16.mxu1 %v6511_v13  ;;  %v669_v41 = vadd.f32 %v668_v31, %v7591_v19  ;;  %v670_v42 = vpop.f32.mrb[33].mxu0  ;;  %v616_v62 = vadd.f32 %v615_v54, %v7512_v7  ;;  %v617_v63 = vpop.f32.mrb[33].mxu1  ;;  %v266_v13 = vsub.s32 7, %v7481_v35 }
 0x1e3   :  { %v671_v48 = vadd.f32 %v670_v42, %v7595_v39  ;;  %v672_v49 = vpop.f32.mrb[34].mxu0  ;;  %v618_v9 = vadd.f32 %v617_v63, %v7518_v14  ;;  %v619_v10 = vpop.f32.mrb[34].mxu1 }
 0x1e4   :  { %2703 = vmatmul.mubr.bf16.gmra.mrb[88].mxu0 %v7521_v17  ;;  %3155 = vmatmul.mubr.bf16.gmra.mrb[96].mxu1 %v7521_v17  ;;  %v870_v55 = vmax.f32 %v669_v41, 0.0  ;;  %v673_v58 = vadd.f32 %v672_v49, %v7591_v19  ;;  %v674_v59 = vpop.f32.mrb[35].mxu0  ;;  %v6523_v17 = vld [vmem:[#allocation8 + $0x40c] ss:$16 sps:$4 sm:$0xff]   ;;  %v964_v15 = vmax.f32 %v616_v62, 0.0  ;;  %v620_v18 = vadd.f32 %v619_v10, %v7512_v7  ;;  %v621_v8 = vpop.f32.mrb[35].mxu1 }
 0x1e5   :  { %2742 = vmatpush1.bf16.msra.mxu0 %v6506_v30  ;;  %3194 = vmatpush1.bf16.msra.mxu1 %v6509_v32  ;;  %v871_v3 = vmax.f32 %v671_v48, 0.0  ;;  %v675_v4 = vadd.f32 %v674_v59, %v7595_v39  ;;  %v965_v22 = vmax.f32 %v618_v9, 0.0  ;;  %v622_v23 = vadd.f32 %v621_v8, %v7518_v14  ;;  %v6526_v7 = vld [vmem:[#allocation8 + $0x424] ss:$16 sps:$4 sm:$0xff]   ;;  %v6529_v41 = vld [vmem:[#allocation8 + $0x42c] ss:$16 sps:$4 sm:$0xff]  }
 0x1e6   :  { %2743 = vmatprep.subr.bf16.mxu0 %v6514_v21  ;;  %2745 = vmatprep.mubr.bf16.mxu0 %v7536_v0  ;;  %v878_v12 = vmax.f32 %v673_v58, 0.0  ;;  %v972_v30 = vmax.f32 %v620_v18, 0.0  ;;  %v7644_v40 = vrot.slane %v7486_v37, %v266_v13  ;;  %v6527_v58 = vld [vmem:[#allocation8 + $0x428] ss:$16 sps:$4 sm:$0xff]  }
 0x1e7   :  { %3195 = vmatprep.subr.bf16.mxu1 %v6517_v45  ;;  %3197 = vmatprep.mubr.bf16.mxu1 %v7536_v0  ;;  %v879_v20 = vmax.f32 %v675_v4, 0.0  ;;  %v7640_v0 = vrot.slane %v7486_v37, %v262_v5  ;;  %v973_v31 = vmax.f32 %v622_v23, 0.0  ;;  %v6524_v37 = vld [vmem:[#allocation8 + $0x420] ss:$16 sps:$4 sm:$0xff]  }
 0x1e8   :  { %v7635_v24 = vpack.c.bf16 %v878_v12, %v870_v55  ;;  %v7646_v42 = vpack.c.bf16 %v972_v30, %v964_v15 }
 0x1e9   :  { %2744 = vmatpush1.bf16.msra.mxu0 %v6512_v44  ;;  %3196 = vmatpush1.bf16.msra.mxu1 %v6515_v50  ;;  %v7637_v32 = vpack.c.bf16 %v879_v20, %v871_v3  ;;  %v678_v33 = vpop.f32.mrb[36].mxu0  ;;  %v7651_v48 = vpack.c.bf16 %v973_v31, %v965_v22  ;;  %v771_v55 = vpop.f32.mrb[36].mxu1  ;;  %v6535_v3 = vld [vmem:[#allocation8 + $0x44c] ss:$16 sps:$4 sm:$0xff]   ;;  %v6530_v20 = vld [vmem:[#allocation8 + $0x440] ss:$16 sps:$4 sm:$0xff]  }
 0x1ea   :  { %2826 = vmatprep.subr.bf16.mxu0 %v6520_v61  ;;  %3278 = vmatprep.subr.bf16.mxu1 %v6523_v17  ;;  %v679_v21 = vadd.f32 %v678_v33, %v7591_v19  ;;  %v680_v14 = vpop.f32.mrb[37].mxu0  ;;  %v772_v62 = vadd.f32 %v771_v55, %v7640_v0  ;;  %v773_v63 = vpop.f32.mrb[37].mxu1  ;;  %v6533_v22 = vld [vmem:[#allocation8 + $0x448] ss:$16 sps:$4 sm:$0xff]   ;;  %v6541_v31 = vld [vmem:[#allocation8 + $0x46c] ss:$16 sps:$4 sm:$0xff]  }
 0x1eb   :  { %v681_v44 = vadd.f32 %v680_v14, %v7595_v39  ;;  %v682_v45 = vpop.f32.mrb[38].mxu0  ;;  %v774_v5 = vadd.f32 %v773_v63, %v7644_v40  ;;  %v775_v17 = vpop.f32.mrb[38].mxu1  ;;  %v6536_v55 = vld [vmem:[#allocation8 + $0x460] ss:$16 sps:$4 sm:$0xff]   ;;  %v6547_v63 = vld [vmem:[#allocation8 + $0x48c] ss:$16 sps:$4 sm:$0xff]  }
 0x1ec   :  { %2746 = vmatmul.mubr.bf16.vlgmr.msra.gmra.mrb[60].mxu0 %v7533_v60  ;;  %3198 = vmatmul.mubr.bf16.vlgmr.msra.gmra.mrb[68].mxu1 %v7533_v60  ;;  %v886_v49 = vmax.f32 %v679_v21, 0.0  ;;  %v683_v50 = vadd.f32 %v682_v45, %v7591_v19  ;;  %v684_v54 = vpop.f32.mrb[39].mxu0  ;;  %v6532_v60 = vld [vmem:[#allocation8 + $0x444] ss:$16 sps:$4 sm:$0xff]   ;;  %v856_v10 = vmax.f32 %v772_v62, 0.0  ;;  %v776_v12 = vadd.f32 %v775_v17, %v7640_v0  ;;  %v777_v13 = vpop.f32.mrb[39].mxu1 }
 0x1ed   :  { %2827 = vmatpush1.bf16.msra.mxu0 %v6518_v26  ;;  %3279 = vmatpush1.bf16.msra.mxu1 %v6521_v27  ;;  %v887_v59 = vmax.f32 %v681_v44, 0.0  ;;  %v685_v61 = vadd.f32 %v684_v54, %v7595_v39  ;;  %v857_v18 = vmax.f32 %v774_v5, 0.0  ;;  %v778_v8 = vadd.f32 %v777_v13, %v7644_v40 }
 0x1ee   :  { %2755 = vmatprep.mubr.bf16.mxu0 %v7548_v47  ;;  %2828 = vmatprep.subr.bf16.mxu0 %v6526_v7  ;;  %v894_v4 = vmax.f32 %v683_v50, 0.0  ;;  %v864_v27 = vmax.f32 %v776_v12, 0.0 }
 0x1ef   :  { %3207 = vmatprep.mubr.bf16.mxu1 %v7548_v47  ;;  %3280 = vmatprep.subr.bf16.mxu1 %v6529_v41  ;;  %v895_v9 = vmax.f32 %v685_v61, 0.0  ;;  %v6538_v47 = vld [vmem:[#allocation8 + $0x464] ss:$16 sps:$4 sm:$0xff]   ;;  %v865_v7 = vmax.f32 %v778_v8, 0.0  ;;  %v6542_v8 = vld [vmem:[#allocation8 + $0x480] ss:$16 sps:$4 sm:$0xff]  }
 0x1f0   :  { %v7660_v15 = vpack.c.bf16 %v894_v4, %v886_v49  ;;  %v7667_v41 = vpack.c.bf16 %v864_v27, %v856_v10 }
 0x1f1   :  { %2829 = vmatpush1.bf16.msra.mxu0 %v6524_v37  ;;  %3281 = vmatpush1.bf16.msra.mxu1 %v6527_v58  ;;  %v7663_v23 = vpack.c.bf16 %v895_v9, %v887_v59  ;;  %v688_v26 = vpop.f32.mrb[40].mxu0  ;;  %v7672_v50 = vpack.c.bf16 %v865_v7, %v857_v18  ;;  %v781_v54 = vpop.f32.mrb[40].mxu1  ;;  %v6539_v37 = vld [vmem:[#allocation8 + $0x468] ss:$16 sps:$4 sm:$0xff]   ;;  %v6553_v7 = vld [vmem:[#allocation8 + $0x4ac] ss:$16 sps:$4 sm:$0xff]  }
 0x1f2   :  { %2830 = vmatprep.subr.bf16.mxu0 %v6532_v60  ;;  %3282 = vmatprep.subr.bf16.mxu1 %v6535_v3  ;;  %v689_v30 = vadd.f32 %v688_v26, %v7591_v19  ;;  %v690_v33 = vpop.f32.mrb[41].mxu0  ;;  %v782_v61 = vadd.f32 %v781_v54, %v7640_v0  ;;  %v783_v62 = vpop.f32.mrb[41].mxu1 }
 0x1f3   :  { %v691_v21 = vadd.f32 %v690_v33, %v7595_v39  ;;  %v692_v14 = vpop.f32.mrb[42].mxu0  ;;  %v784_v3 = vadd.f32 %v783_v62, %v7644_v40  ;;  %v785_v4 = vpop.f32.mrb[42].mxu1 }
 0x1f4   :  { %2756 = vmatmul.mubr.bf16.gmra.mrb[64].mxu0 %v7545_v43  ;;  %3208 = vmatmul.mubr.bf16.gmra.mrb[72].mxu1 %v7545_v43  ;;  %v902_v44 = vmax.f32 %v689_v30, 0.0  ;;  %v693_v45 = vadd.f32 %v692_v14, %v7591_v19  ;;  %v694_v49 = vpop.f32.mrb[43].mxu0  ;;  %v6544_v43 = vld [vmem:[#allocation8 + $0x484] ss:$16 sps:$4 sm:$0xff]   ;;  %v872_v17 = vmax.f32 %v782_v61, 0.0  ;;  %v786_v9 = vadd.f32 %v785_v4, %v7640_v0  ;;  %v787_v10 = vpop.f32.mrb[43].mxu1 }
 0x1f5   :  { %2831 = vmatpush1.bf16.msra.mxu0 %v6530_v20  ;;  %3283 = vmatpush1.bf16.msra.mxu1 %v6533_v22  ;;  %v903_v58 = vmax.f32 %v691_v21, 0.0  ;;  %v695_v59 = vadd.f32 %v694_v49, %v7595_v39  ;;  %v873_v13 = vmax.f32 %v784_v3, 0.0  ;;  %v788_v18 = vadd.f32 %v787_v10, %v7644_v40  ;;  %v6545_v20 = vld [vmem:[#allocation8 + $0x488] ss:$16 sps:$4 sm:$0xff]  }
 0x1f6   :  { %2765 = vmatprep.mubr.bf16.mxu0 %v7560_v29  ;;  %2832 = vmatprep.subr.bf16.mxu0 %v6538_v47  ;;  %v910_v60 = vmax.f32 %v693_v45, 0.0  ;;  %v880_v27 = vmax.f32 %v786_v9, 0.0 }
 0x1f7   :  { %3217 = vmatprep.mubr.bf16.mxu1 %v7560_v29  ;;  %3284 = vmatprep.subr.bf16.mxu1 %v6541_v31  ;;  %v911_v5 = vmax.f32 %v695_v59, 0.0  ;;  %v6550_v29 = vld [vmem:[#allocation8 + $0x4a4] ss:$16 sps:$4 sm:$0xff]   ;;  %v881_v33 = vmax.f32 %v788_v18, 0.0 }
 0x1f8   :  { %v7680_v12 = vpack.c.bf16 %v910_v60, %v902_v44  ;;  %v7687_v14 = vpack.c.bf16 %v880_v27, %v872_v17 }
 0x1f9   :  { %2833 = vmatpush1.bf16.msra.mxu0 %v6536_v55  ;;  %3285 = vmatpush1.bf16.msra.mxu1 %v6539_v37  ;;  %v7683_v22 = vpack.c.bf16 %v911_v5, %v903_v58  ;;  %v698_v26 = vpop.f32.mrb[44].mxu0  ;;  %v7692_v54 = vpack.c.bf16 %v881_v33, %v873_v13  ;;  %v791_v55 = vpop.f32.mrb[44].mxu1  ;;  %v6548_v37 = vld [vmem:[#allocation8 + $0x4a0] ss:$16 sps:$4 sm:$0xff]   ;;  %v6551_v58 = vld [vmem:[#allocation8 + $0x4a8] ss:$16 sps:$4 sm:$0xff]  }
 0x1fa   :  { %2834 = vmatprep.subr.bf16.mxu0 %v6544_v43  ;;  %3286 = vmatprep.subr.bf16.mxu1 %v6547_v63  ;;  %v699_v47 = vadd.f32 %v698_v26, %v7591_v19  ;;  %v700_v30 = vpop.f32.mrb[45].mxu0  ;;  %v792_v62 = vadd.f32 %v791_v55, %v7640_v0  ;;  %v793_v43 = vpop.f32.mrb[45].mxu1  ;;  %v6559_v63 = vld [vmem:[#allocation8 + $0x4cc] ss:$16 sps:$4 sm:$0xff]   ;;  %v6557_v26 = vld [vmem:[#allocation8 + $0x4c8] ss:$16 sps:$4 sm:$0xff]  }
 0x1fb   :  { %v701_v31 = vadd.f32 %v700_v30, %v7595_v39  ;;  %v702_v21 = vpop.f32.mrb[46].mxu0  ;;  %v794_v3 = vadd.f32 %v793_v43, %v7644_v40  ;;  %v795_v4 = vpop.f32.mrb[46].mxu1 }
 0x1fc   :  { %2766 = vmatmul.mubr.bf16.gmra.mrb[68].mxu0 %v7557_v25  ;;  %3218 = vmatmul.mubr.bf16.gmra.mrb[76].mxu1 %v7557_v25  ;;  %v918_v44 = vmax.f32 %v699_v47, 0.0  ;;  %v703_v45 = vadd.f32 %v702_v21, %v7591_v19  ;;  %v704_v49 = vpop.f32.mrb[47].mxu0  ;;  %v6556_v25 = vld [vmem:[#allocation8 + $0x4c4] ss:$16 sps:$4 sm:$0xff]   ;;  %v888_v17 = vmax.f32 %v792_v62, 0.0  ;;  %v796_v9 = vadd.f32 %v795_v4, %v7640_v0  ;;  %v797_v10 = vpop.f32.mrb[47].mxu1 }
 0x1fd   :  { %2835 = vmatpush1.bf16.msra.mxu0 %v6542_v8  ;;  %3287 = vmatpush1.bf16.msra.mxu1 %v6545_v20  ;;  %v919_v59 = vmax.f32 %v701_v31, 0.0  ;;  %v705_v61 = vadd.f32 %v704_v49, %v7595_v39  ;;  %v889_v18 = vmax.f32 %v794_v3, 0.0  ;;  %v798_v8 = vadd.f32 %v797_v10, %v7644_v40  ;;  %v6554_v20 = vld [vmem:[#allocation8 + $0x4c0] ss:$16 sps:$4 sm:$0xff]   ;;  %v6565_v31 = vld [vmem:[#allocation8 + $0x4ec] ss:$16 sps:$4 sm:$0xff]  }
 0x1fe   :  { %2775 = vmatprep.mubr.bf16.mxu0 %v7572_v16  ;;  %2836 = vmatprep.subr.bf16.mxu0 %v6550_v29  ;;  %v926_v60 = vmax.f32 %v703_v45, 0.0  ;;  %v896_v47 = vmax.f32 %v796_v9, 0.0  ;;  %v6563_v62 = vld [vmem:[#allocation8 + $0x4e8] ss:$16 sps:$4 sm:$0xff]   ;;  %v6571_v3 = vld [vmem:[#allocation8 + $0x50c] ss:$16 sps:$4 sm:$0xff]  }
 0x1ff   :  { %3227 = vmatprep.mubr.bf16.mxu1 %v7572_v16  ;;  %3288 = vmatprep.subr.bf16.mxu1 %v6553_v7  ;;  %v927_v5 = vmax.f32 %v705_v61, 0.0  ;;  %v6562_v16 = vld [vmem:[#allocation8 + $0x4e4] ss:$16 sps:$4 sm:$0xff]   ;;  %v897_v7 = vmax.f32 %v798_v8, 0.0  ;;  %v6560_v61 = vld [vmem:[#allocation8 + $0x4e0] ss:$16 sps:$4 sm:$0xff]  }
 0x200   :  { %v7700_v13 = vpack.c.bf16 %v926_v60, %v918_v44  ;;  %v7707_v45 = vpack.c.bf16 %v896_v47, %v888_v17  ;;  %v6566_v47 = vld [vmem:[#allocation8 + $0x500] ss:$16 sps:$4 sm:$0xff]  }
 0x201   :  { %2837 = vmatpush1.bf16.msra.mxu0 %v6548_v37  ;;  %3289 = vmatpush1.bf16.msra.mxu1 %v6551_v58  ;;  %v7703_v27 = vpack.c.bf16 %v927_v5, %v919_v59  ;;  %v708_v29 = vpop.f32.mrb[48].mxu0  ;;  %v7712_v58 = vpack.c.bf16 %v897_v7, %v889_v18  ;;  %v801_v59 = vpop.f32.mrb[48].mxu1 }
 0x202   :  { %2838 = vmatprep.subr.bf16.mxu0 %v6556_v25  ;;  %3290 = vmatprep.subr.bf16.mxu1 %v6559_v63  ;;  %v709_v30 = vadd.f32 %v708_v29, %v7591_v19  ;;  %v710_v33 = vpop.f32.mrb[49].mxu0  ;;  %v802_v63 = vadd.f32 %v801_v59, %v7640_v0  ;;  %v803_v60 = vpop.f32.mrb[49].mxu1 }
 0x203   :  { %v711_v21 = vadd.f32 %v710_v33, %v7595_v39  ;;  %v712_v44 = vpop.f32.mrb[50].mxu0  ;;  %v804_v5 = vadd.f32 %v803_v60, %v7644_v40  ;;  %v805_v17 = vpop.f32.mrb[50].mxu1  ;;  %v6572_v60 = vld [vmem:[#allocation8 + $0x520] ss:$16 sps:$4 sm:$0xff]  }
 0x204   :  { %2776 = vmatmul.mubr.bf16.gmra.mrb[72].mxu0 %v7569_v11  ;;  %3228 = vmatmul.mubr.bf16.gmra.mrb[80].mxu1 %v7569_v11  ;;  %v934_v49 = vmax.f32 %v709_v30, 0.0  ;;  %v713_v55 = vadd.f32 %v712_v44, %v7591_v19  ;;  %v714_v37 = vpop.f32.mrb[51].mxu0  ;;  %v6568_v11 = vld [vmem:[#allocation8 + $0x504] ss:$16 sps:$4 sm:$0xff]   ;;  %v904_v10 = vmax.f32 %v802_v63, 0.0  ;;  %v806_v18 = vadd.f32 %v805_v17, %v7640_v0  ;;  %v807_v8 = vpop.f32.mrb[51].mxu1 }
 0x205   :  { %2839 = vmatpush1.bf16.msra.mxu0 %v6554_v20  ;;  %3291 = vmatpush1.bf16.msra.mxu1 %v6557_v26  ;;  %v935_v43 = vmax.f32 %v711_v21, 0.0  ;;  %v715_v25 = vadd.f32 %v714_v37, %v7595_v39  ;;  %v905_v26 = vmax.f32 %v804_v5, 0.0  ;;  %v808_v29 = vadd.f32 %v807_v8, %v7644_v40 }
 0x206   :  { %2785 = vmatprep.mubr.bf16.mxu0 %v7586_v6  ;;  %2840 = vmatprep.subr.bf16.mxu0 %v6562_v16  ;;  %v942_v4 = vmax.f32 %v713_v55, 0.0  ;;  %v6569_v16 = vld [vmem:[#allocation8 + $0x508] ss:$16 sps:$4 sm:$0xff]   ;;  %v912_v7 = vmax.f32 %v806_v18, 0.0 }
 0x207   :  { %3237 = vmatprep.mubr.bf16.mxu1 %v7586_v6  ;;  %3292 = vmatprep.subr.bf16.mxu1 %v6565_v31  ;;  %v943_v9 = vmax.f32 %v715_v25, 0.0  ;;  %v6574_v6 = vld [vmem:[#allocation8 + $0x524] ss:$16 sps:$4 sm:$0xff]   ;;  %v913_v44 = vmax.f32 %v808_v29, 0.0 }
 0x208   :  { %v7720_v20 = vpack.c.bf16 %v942_v4, %v934_v49  ;;  %v6577_v49 = vld [vmem:[#allocation8 + $0x52c] ss:$16 sps:$4 sm:$0xff]   ;;  %v7727_v59 = vpack.c.bf16 %v912_v7, %v904_v10 }
 0x209   :  { %2841 = vmatpush1.bf16.msra.mxu0 %v6560_v61  ;;  %3293 = vmatpush1.bf16.msra.mxu1 %v6563_v62  ;;  %v7723_v30 = vpack.c.bf16 %v943_v9, %v935_v43  ;;  %v718_v33 = vpop.f32.mrb[52].mxu0  ;;  %v7732_v25 = vpack.c.bf16 %v913_v44, %v905_v26  ;;  %v811_v63 = vpop.f32.mrb[52].mxu1  ;;  %v6583_v9 = vld [vmem:[#allocation8 + $0x54c] ss:$16 sps:$4 sm:$0xff]  }
 0x20a   :  { %2842 = vmatprep.subr.bf16.mxu0 %v6568_v11  ;;  %3294 = vmatprep.subr.bf16.mxu1 %v6571_v3  ;;  %v719_v31 = vadd.f32 %v718_v33, %v7591_v19  ;;  %v720_v21 = vpop.f32.mrb[53].mxu0  ;;  %v6575_v11 = vld [vmem:[#allocation8 + $0x528] ss:$16 sps:$4 sm:$0xff]   ;;  %v812_v5 = vadd.f32 %v811_v63, %v7640_v0  ;;  %v813_v17 = vpop.f32.mrb[53].mxu1 }
 0x20b   :  { %v721_v55 = vadd.f32 %v720_v21, %v7595_v39  ;;  %v722_v37 = vpop.f32.mrb[54].mxu0  ;;  %v814_v18 = vadd.f32 %v813_v17, %v7644_v40  ;;  %v815_v8 = vpop.f32.mrb[54].mxu1  ;;  %v6581_v21 = vld [vmem:[#allocation8 + $0x548] ss:$16 sps:$4 sm:$0xff]  }
 0x20c   :  { %2786 = vmatmul.mubr.bf16.gmra.mrb[76].mxu0 %v7583_v2  ;;  %3238 = vmatmul.mubr.bf16.gmra.mrb[84].mxu1 %v7583_v2  ;;  %v950_v61 = vmax.f32 %v719_v31, 0.0  ;;  %v723_v62 = vadd.f32 %v722_v37, %v7591_v19  ;;  %v724_v43 = vpop.f32.mrb[55].mxu0  ;;  %v6580_v2 = vld [vmem:[#allocation8 + $0x544] ss:$16 sps:$4 sm:$0xff]   ;;  %v920_v29 = vmax.f32 %v812_v5, 0.0 }
 0x20d   :  { %2843 = vmatpush1.bf16.msra.mxu0 %v6566_v47  ;;  %3295 = vmatpush1.bf16.msra.mxu1 %v6569_v16  ;;  %v951_v3 = vmax.f32 %v721_v55, 0.0  ;;  %v725_v4 = vadd.f32 %v724_v43, %v7595_v39  ;;  %v816_v47 = vadd.f32 %v815_v8, %v7640_v0  ;;  %v817_v16 = vpop.f32.mrb[55].mxu1  ;;  %v921_v7 = vmax.f32 %v814_v18, 0.0 }
 0x20e   :  { %2795 = vmatprep.mubr.bf16.mxu0 %v7603_v57  ;;  %2844 = vmatprep.subr.bf16.mxu0 %v6574_v6  ;;  %v958_v10 = vmax.f32 %v723_v62, 0.0  ;;  %v818_v31 = vadd.f32 %v817_v16, %v7644_v40  ;;  %v6578_v6 = vld [vmem:[#allocation8 + $0x540] ss:$16 sps:$4 sm:$0xff]  }
 0x20f   :  { %3247 = vmatprep.mubr.bf16.mxu1 %v7603_v57  ;;  %3296 = vmatprep.subr.bf16.mxu1 %v6577_v49  ;;  %v959_v26 = vmax.f32 %v725_v4, 0.0  ;;  %v928_v37 = vmax.f32 %v816_v47, 0.0  ;;  %v6586_v57 = vld [vmem:[#allocation8 + $0x564] ss:$16 sps:$4 sm:$0xff]   ;;  %v6595_v47 = vld [vmem:[#allocation8 + $0x58c] ss:$16 sps:$4 sm:$0xff]  }
 0x210   :  { %v7740_v33 = vpack.c.bf16 %v958_v10, %v950_v61  ;;  %v929_v43 = vmax.f32 %v818_v31, 0.0  ;;  %v6589_v61 = vld [vmem:[#allocation8 + $0x56c] ss:$16 sps:$4 sm:$0xff]   ;;  %v6587_v10 = vld [vmem:[#allocation8 + $0x568] ss:$16 sps:$4 sm:$0xff]  }
 0x211   :  { %2845 = vmatpush1.bf16.msra.mxu0 %v6572_v60  ;;  %3297 = vmatpush1.bf16.msra.mxu1 %v6575_v11  ;;  %v7743_v44 = vpack.c.bf16 %v959_v26, %v951_v3  ;;  %v728_v55 = vpop.f32.mrb[56].mxu0  ;;  %v7747_v5 = vpack.c.bf16 %v928_v37, %v920_v29 }
 0x212   :  { %2846 = vmatprep.subr.bf16.mxu0 %v6580_v2  ;;  %3298 = vmatprep.subr.bf16.mxu1 %v6583_v9  ;;  %v729_v49 = vadd.f32 %v728_v55, %v7591_v19  ;;  %v730_v62 = vpop.f32.mrb[57].mxu0  ;;  %v7752_v17 = vpack.c.bf16 %v929_v43, %v921_v7  ;;  %v821_v2 = vpop.f32.mrb[56].mxu1  ;;  %v6584_v9 = vld [vmem:[#allocation8 + $0x560] ss:$16 sps:$4 sm:$0xff]  }
 0x213   :  { %v731_v63 = vadd.f32 %v730_v62, %v7595_v39  ;;  %v732_v4 = vpop.f32.mrb[58].mxu0  ;;  %v822_v26 = vadd.f32 %v821_v2, %v7640_v0  ;;  %v823_v29 = vpop.f32.mrb[57].mxu1  ;;  %v6593_v62 = vld [vmem:[#allocation8 + $0x588] ss:$16 sps:$4 sm:$0xff]   ;;  %v6596_v2 = vld [vmem:[#allocation8 + $0x5a0] ss:$16 sps:$4 sm:$0xff]  }
 0x214   :  { %2796 = vmatmul.mubr.bf16.gmra.mrb[80].mxu0 %v7600_v53  ;;  %3248 = vmatmul.mubr.bf16.gmra.mrb[88].mxu1 %v7600_v53  ;;  %v966_v60 = vmax.f32 %v729_v49, 0.0  ;;  %v733_v11 = vadd.f32 %v732_v4, %v7591_v19  ;;  %v734_v3 = vpop.f32.mrb[59].mxu0  ;;  %v6592_v53 = vld [vmem:[#allocation8 + $0x584] ss:$16 sps:$4 sm:$0xff]   ;;  %v824_v16 = vadd.f32 %v823_v29, %v7644_v40  ;;  %v825_v7 = vpop.f32.mrb[58].mxu1 }
 0x215   :  { %2847 = vmatpush1.bf16.msra.mxu0 %v6578_v6  ;;  %3299 = vmatpush1.bf16.msra.mxu1 %v6581_v21  ;;  %v967_v18 = vmax.f32 %v731_v63, 0.0  ;;  %v735_v8 = vadd.f32 %v734_v3, %v7595_v39  ;;  %v936_v6 = vmax.f32 %v822_v26, 0.0  ;;  %v826_v21 = vadd.f32 %v825_v7, %v7640_v0  ;;  %v827_v39 = vpop.f32.mrb[59].mxu1  ;;  %v6601_v4 = vld [vmem:[#allocation8 + $0x5ac] ss:$16 sps:$4 sm:$0xff]  }
 0x216   :  { %2805 = vmatprep.mubr.bf16.mxu0 %v7623_v52  ;;  %2848 = vmatprep.subr.bf16.mxu0 %v6586_v57  ;;  %v974_v19 = vmax.f32 %v733_v11, 0.0  ;;  %v937_v37 = vmax.f32 %v824_v16, 0.0  ;;  %v828_v49 = vadd.f32 %v827_v39, %v7644_v40  ;;  %v6590_v57 = vld [vmem:[#allocation8 + $0x580] ss:$16 sps:$4 sm:$0xff]   ;;  %v6607_v26 = vld [vmem:[#allocation8 + $0x5cc] ss:$16 sps:$4 sm:$0xff]  }
 0x217   :  { %3257 = vmatprep.mubr.bf16.mxu1 %v7623_v52  ;;  %3300 = vmatprep.subr.bf16.mxu1 %v6589_v61  ;;  %v975_v31 = vmax.f32 %v735_v8, 0.0  ;;  %v944_v63 = vmax.f32 %v826_v21, 0.0  ;;  %v6598_v52 = vld [vmem:[#allocation8 + $0x5a4] ss:$16 sps:$4 sm:$0xff]  }
 0x218   :  { %v7760_v55 = vpack.c.bf16 %v974_v19, %v966_v60  ;;  %v945_v61 = vmax.f32 %v828_v49, 0.0  ;;  %v6604_v8 = vld [vmem:[#allocation8 + $0x5c4] ss:$16 sps:$4 sm:$0xff]   ;;  %v6613_v49 = vld [vmem:[#allocation8 + $0x5ec] ss:$16 sps:$4 sm:$0xff]  }
 0x219   :  { %2849 = vmatpush1.bf16.msra.mxu0 %v6584_v9  ;;  %3301 = vmatpush1.bf16.msra.mxu1 %v6587_v10  ;;  %v7763_v43 = vpack.c.bf16 %v975_v31, %v967_v18  ;;  %v7765_v11 = vpack.c.bf16 %v944_v63, %v936_v6  ;;  %v831_v3 = vpop.f32.mrb[60].mxu1  ;;  %v6599_v9 = vld [vmem:[#allocation8 + $0x5a8] ss:$16 sps:$4 sm:$0xff]   ;;  %v6602_v31 = vld [vmem:[#allocation8 + $0x5c0] ss:$16 sps:$4 sm:$0xff]  }
 0x21a   :  { %2850 = vmatprep.subr.bf16.mxu0 %v6592_v53  ;;  %3302 = vmatprep.subr.bf16.mxu1 %v6595_v47  ;;  %v7769_v60 = vpack.c.bf16 %v945_v61, %v937_v37  ;;  %v832_v10 = vadd.f32 %v831_v3, %v7640_v0  ;;  %v833_v18 = vpop.f32.mrb[61].mxu1  ;;  %v6605_v6 = vld [vmem:[#allocation8 + $0x5c8] ss:$16 sps:$4 sm:$0xff]   ;;  %v6610_v39 = vld [vmem:[#allocation8 + $0x5e4] ss:$16 sps:$4 sm:$0xff]  }
 0x21b   :  { %v834_v29 = vadd.f32 %v833_v18, %v7644_v40  ;;  %v835_v53 = vpop.f32.mrb[62].mxu1  ;;  %v6608_v63 = vld [vmem:[#allocation8 + $0x5e0] ss:$16 sps:$4 sm:$0xff]   ;;  %v6616_v3 = vld [vmem:[#allocation8 + $0x604] ss:$16 sps:$4 sm:$0xff]  }
 0x21c   :  { %2806 = vmatmul.mubr.bf16.gmra.mrb[84].mxu0 %v7618_v46  ;;  %3258 = vmatmul.mubr.bf16.gmra.mrb[92].mxu1 %v7618_v46  ;;  %v952_v46 = vmax.f32 %v832_v10, 0.0  ;;  %v836_v47 = vadd.f32 %v835_v53, %v7640_v0  ;;  %v837_v19 = vpop.f32.mrb[63].mxu1  ;;  %v6614_v53 = vld [vmem:[#allocation8 + $0x600] ss:$16 sps:$4 sm:$0xff]  }
 0x21d   :  { %2851 = vmatpush1.bf16.msra.mxu0 %v6590_v57  ;;  %3303 = vmatpush1.bf16.msra.mxu1 %v6593_v62  ;;  %v953_v16 = vmax.f32 %v834_v29, 0.0  ;;  %v838_v7 = vadd.f32 %v837_v19, %v7644_v40  ;;  %v6622_v19 = vld [vmem:[#allocation8 + $0x624] ss:$16 sps:$4 sm:$0xff]  }
 0x21e   :  { %2815 = vmatprep.mubr.bf16.mxu0 %v7651_v48  ;;  %2852 = vmatprep.subr.bf16.mxu0 %v6598_v52  ;;  %v960_v21 = vmax.f32 %v836_v47, 0.0  ;;  %v6611_v52 = vld [vmem:[#allocation8 + $0x5e8] ss:$16 sps:$4 sm:$0xff]  }
 0x21f   :  { %3267 = vmatprep.mubr.bf16.mxu1 %v7651_v48  ;;  %3304 = vmatprep.subr.bf16.mxu1 %v6601_v4  ;;  %v961_v37 = vmax.f32 %v838_v7, 0.0  ;;  %v6625_v7 = vld [vmem:[#allocation8 + $0x62c] ss:$16 sps:$4 sm:$0xff]  }
 0x220   :  { %v7777_v57 = vpack.c.bf16 %v960_v21, %v952_v46  ;;  %v6617_v46 = vld [vmem:[#allocation8 + $0x608] ss:$16 sps:$4 sm:$0xff]   ;;  %v6631_v21 = vld [vmem:[#allocation8 + $0x64c] ss:$16 sps:$4 sm:$0xff]  }
 0x221   :  { %2853 = vmatpush1.bf16.msra.mxu0 %v6596_v2  ;;  %3305 = vmatpush1.bf16.msra.mxu1 %v6599_v9  ;;  %v7781_v48 = vpack.c.bf16 %v961_v37, %v953_v16  ;;  %v841_v62 = vpop.f32.mrb[64].mxu1  ;;  %v6619_v2 = vld [vmem:[#allocation8 + $0x60c] ss:$16 sps:$4 sm:$0xff]   ;;  %v6629_v37 = vld [vmem:[#allocation8 + $0x648] ss:$16 sps:$4 sm:$0xff]  }
 0x222   :  { %2854 = vmatprep.subr.bf16.mxu0 %v6604_v8  ;;  %3306 = vmatprep.subr.bf16.mxu1 %v6607_v26  ;;  %v842_v61 = vadd.f32 %v841_v62, %v7640_v0  ;;  %v843_v4 = vpop.f32.mrb[65].mxu1  ;;  %v6632_v62 = vld [vmem:[#allocation8 + $0x660] ss:$16 sps:$4 sm:$0xff]  }
 0x223   :  { %v844_v9 = vadd.f32 %v843_v4, %v7644_v40  ;;  %v845_v10 = vpop.f32.mrb[66].mxu1  ;;  %v6641_v4 = vld [vmem:[#allocation8 + $0x688] ss:$16 sps:$4 sm:$0xff]  }
 0x224   :  { %2816 = vmatmul.mubr.bf16.gmra.mrb[88].mxu0 %v7646_v42  ;;  %3268 = vmatmul.mubr.bf16.gmra.mrb[96].mxu1 %v7646_v42  ;;  %v968_v42 = vmax.f32 %v842_v61, 0.0  ;;  %v846_v18 = vadd.f32 %v845_v10, %v7640_v0  ;;  %v847_v8 = vpop.f32.mrb[67].mxu1  ;;  %v6620_v0 = vld [vmem:[#allocation8 + $0x620] ss:$16 sps:$4 sm:$0xff]   ;;  %v6655_v10 = vld [vmem:[#allocation8 + $0x6cc] ss:$16 sps:$4 sm:$0xff]  }
 0x225   :  { %2855 = vmatpush1.bf16.msra.mxu0 %v6602_v31  ;;  %3307 = vmatpush1.bf16.msra.mxu1 %v6605_v6  ;;  %v969_v26 = vmax.f32 %v844_v9, 0.0  ;;  %v848_v29 = vadd.f32 %v847_v8, %v7644_v40  ;;  %v6623_v40 = vld [vmem:[#allocation8 + $0x628] ss:$16 sps:$4 sm:$0xff]   ;;  %v6628_v6 = vld [vmem:[#allocation8 + $0x644] ss:$16 sps:$4 sm:$0xff]  }
 0x226   :  { %2856 = vmatprep.subr.bf16.mxu0 %v6610_v39  ;;  %2858 = vmatprep.mubr.bf16.mxu0 %v7615_v34  ;;  %v976_v47 = vmax.f32 %v846_v18, 0.0  ;;  %v6626_v39 = vld [vmem:[#allocation8 + $0x640] ss:$16 sps:$4 sm:$0xff]   ;;  %v6647_v9 = vld [vmem:[#allocation8 + $0x6a8] ss:$16 sps:$4 sm:$0xff]  }
 0x227   :  { %3308 = vmatprep.subr.bf16.mxu1 %v6613_v49  ;;  %3310 = vmatprep.mubr.bf16.mxu1 %v7615_v34  ;;  %v977_v16 = vmax.f32 %v848_v29, 0.0  ;;  %v6637_v49 = vld [vmem:[#allocation8 + $0x66c] ss:$16 sps:$4 sm:$0xff]   ;;  %v6638_v61 = vld [vmem:[#allocation8 + $0x680] ss:$16 sps:$4 sm:$0xff]  }
 0x228   :  { %v7789_v31 = vpack.c.bf16 %v976_v47, %v968_v42  ;;  %v6650_v42 = vld [vmem:[#allocation8 + $0x6c0] ss:$16 sps:$4 sm:$0xff]   ;;  %v6653_v18 = vld [vmem:[#allocation8 + $0x6c8] ss:$16 sps:$4 sm:$0xff]   ;;  %v6658_v8 = vld [vmem:[#allocation8 + $0x6e4] ss:$16 sps:$4 sm:$0xff]  }
 0x229   :  { %2857 = vmatpush1.bf16.msra.mxu0 %v6608_v63  ;;  %3309 = vmatpush1.bf16.msra.mxu1 %v6611_v52  ;;  %v7793_v34 = vpack.c.bf16 %v977_v16, %v969_v26  ;;  %v6635_v63 = vld [vmem:[#allocation8 + $0x668] ss:$16 sps:$4 sm:$0xff]   ;;  %v6643_v52 = vld [vmem:[#allocation8 + $0x68c] ss:$16 sps:$4 sm:$0xff]   ;;  %v6656_v26 = vld [vmem:[#allocation8 + $0x6e0] ss:$16 sps:$4 sm:$0xff]  }
 0x22a   :  { %2939 = vmatprep.subr.bf16.mxu0 %v6616_v3  ;;  %3391 = vmatprep.subr.bf16.mxu1 %v6619_v2  ;;  %v6646_v3 = vld [vmem:[#allocation8 + $0x6a4] ss:$16 sps:$4 sm:$0xff]   ;;  %v6644_v2 = vld [vmem:[#allocation8 + $0x6a0] ss:$16 sps:$4 sm:$0xff]   ;;  %v6659_v29 = vld [vmem:[#allocation8 + $0x6e8] ss:$16 sps:$4 sm:$0xff]  }
 0x22b   :  { %v6665_v47 = vld [vmem:[#allocation8 + $0x708] ss:$16 sps:$4 sm:$0xff]   ;;  %v6668_v16 = vld [vmem:[#allocation8 + $0x720] ss:$16 sps:$4 sm:$0xff]  }
 0x22c   :  { %2859 = vmatmul.mubr.bf16.vlgmr.msra.gmra.mrb[60].mxu0 %v7613_v28  ;;  %3311 = vmatmul.mubr.bf16.vlgmr.msra.gmra.mrb[68].mxu1 %v7613_v28  ;;  %v6634_v28 = vld [vmem:[#allocation8 + $0x664] ss:$16 sps:$4 sm:$0xff]  }
 0x22d   :  { %2940 = vmatpush1.bf16.msra.mxu0 %v6614_v53  ;;  %3392 = vmatpush1.bf16.msra.mxu1 %v6617_v46  ;;  %v6667_v53 = vld [vmem:[#allocation8 + $0x70c] ss:$16 sps:$4 sm:$0xff]   ;;  %v6662_v46 = vld [vmem:[#allocation8 + $0x700] ss:$16 sps:$4 sm:$0xff]  }
 0x22e   :  { %2868 = vmatprep.mubr.bf16.mxu0 %v7637_v32  ;;  %2941 = vmatprep.subr.bf16.mxu0 %v6622_v19  ;;  %v6670_v19 = vld [vmem:[#allocation8 + $0x724] ss:$16 sps:$4 sm:$0xff]  }
 0x22f   :  { %3320 = vmatprep.mubr.bf16.mxu1 %v7637_v32  ;;  %3393 = vmatprep.subr.bf16.mxu1 %v6625_v7  ;;  %v6640_v32 = vld [vmem:[#allocation8 + $0x684] ss:$16 sps:$4 sm:$0xff]   ;;  %v6671_v7 = vld [vmem:[#allocation8 + $0x728] ss:$16 sps:$4 sm:$0xff]  }
 0x231   :  { %2942 = vmatpush1.bf16.msra.mxu0 %v6620_v0  ;;  %3394 = vmatpush1.bf16.msra.mxu1 %v6623_v40  ;;  %v6679_v0 = vld [vmem:[#allocation8 + $0x74c] ss:$16 sps:$4 sm:$0xff]   ;;  %v6674_v40 = vld [vmem:[#allocation8 + $0x740] ss:$16 sps:$4 sm:$0xff]  }
 0x232   :  { %2943 = vmatprep.subr.bf16.mxu0 %v6628_v6  ;;  %3395 = vmatprep.subr.bf16.mxu1 %v6631_v21  ;;  %v6677_v6 = vld [vmem:[#allocation8 + $0x748] ss:$16 sps:$4 sm:$0xff]   ;;  %v6682_v21 = vld [vmem:[#allocation8 + $0x764] ss:$16 sps:$4 sm:$0xff]  }
 0x234   :  { %2869 = vmatmul.mubr.bf16.gmra.mrb[64].mxu0 %v7635_v24  ;;  %3321 = vmatmul.mubr.bf16.gmra.mrb[72].mxu1 %v7635_v24  ;;  %v6649_v24 = vld [vmem:[#allocation8 + $0x6ac] ss:$16 sps:$4 sm:$0xff]  }
 0x235   :  { %2944 = vmatpush1.bf16.msra.mxu0 %v6626_v39  ;;  %3396 = vmatpush1.bf16.msra.mxu1 %v6629_v37  ;;  %v6680_v39 = vld [vmem:[#allocation8 + $0x760] ss:$16 sps:$4 sm:$0xff]   ;;  %v6683_v37 = vld [vmem:[#allocation8 + $0x768] ss:$16 sps:$4 sm:$0xff]  }
 0x236   :  { %2878 = vmatprep.mubr.bf16.mxu0 %v7663_v23  ;;  %2945 = vmatprep.subr.bf16.mxu0 %v6634_v28  ;;  %v6691_v28 = vld [vmem:[#allocation8 + $0x78c] ss:$16 sps:$4 sm:$0xff]  }
 0x237   :  { %3330 = vmatprep.mubr.bf16.mxu1 %v7663_v23  ;;  %3397 = vmatprep.subr.bf16.mxu1 %v6637_v49  ;;  %v6652_v23 = vld [vmem:[#allocation8 + $0x6c4] ss:$16 sps:$4 sm:$0xff]   ;;  %v6686_v49 = vld [vmem:[#allocation8 + $0x780] ss:$16 sps:$4 sm:$0xff]  }
 0x239   :  { %2946 = vmatpush1.bf16.msra.mxu0 %v6632_v62  ;;  %3398 = vmatpush1.bf16.msra.mxu1 %v6635_v63  ;;  %v6689_v62 = vld [vmem:[#allocation8 + $0x788] ss:$16 sps:$4 sm:$0xff]   ;;  %v6694_v63 = vld [vmem:[#allocation8 + $0x7a4] ss:$16 sps:$4 sm:$0xff]  }
 0x23a   :  { %2947 = vmatprep.subr.bf16.mxu0 %v6640_v32  ;;  %3399 = vmatprep.subr.bf16.mxu1 %v6643_v52  ;;  %v6692_v32 = vld [vmem:[#allocation8 + $0x7a0] ss:$16 sps:$4 sm:$0xff]   ;;  %v6695_v52 = vld [vmem:[#allocation8 + $0x7a8] ss:$16 sps:$4 sm:$0xff]  }
 0x23c   :  { %2879 = vmatmul.mubr.bf16.gmra.mrb[68].mxu0 %v7660_v15  ;;  %3331 = vmatmul.mubr.bf16.gmra.mrb[76].mxu1 %v7660_v15  ;;  %v6661_v15 = vld [vmem:[#allocation8 + $0x6ec] ss:$16 sps:$4 sm:$0xff]  }
 0x23d   :  { %2948 = vmatpush1.bf16.msra.mxu0 %v6638_v61  ;;  %3400 = vmatpush1.bf16.msra.mxu1 %v6641_v4  ;;  %v6703_v61 = vld [vmem:[#allocation8 + $0x7cc] ss:$16 sps:$4 sm:$0xff]   ;;  %v6698_v4 = vld [vmem:[#allocation8 + $0x7c0] ss:$16 sps:$4 sm:$0xff]  }
 0x23e   :  { %2888 = vmatprep.mubr.bf16.mxu0 %v7683_v22  ;;  %2949 = vmatprep.subr.bf16.mxu0 %v6646_v3  ;;  %v6701_v3 = vld [vmem:[#allocation8 + $0x7c8] ss:$16 sps:$4 sm:$0xff]  }
 0x23f   :  { %3340 = vmatprep.mubr.bf16.mxu1 %v7683_v22  ;;  %3401 = vmatprep.subr.bf16.mxu1 %v6649_v24  ;;  %v6664_v22 = vld [vmem:[#allocation8 + $0x704] ss:$16 sps:$4 sm:$0xff]  }
 0x240   :  { %v6706_v24 = vld [vmem:[#allocation8 + $0x7e4] ss:$16 sps:$4 sm:$0xff]  }
 0x241   :  { %2950 = vmatpush1.bf16.msra.mxu0 %v6644_v2  ;;  %3402 = vmatpush1.bf16.msra.mxu1 %v6647_v9  ;;  %v6704_v2 = vld [vmem:[#allocation8 + $0x7e0] ss:$16 sps:$4 sm:$0xff]   ;;  %v6707_v9 = vld [vmem:[#allocation8 + $0x7e8] ss:$16 sps:$4 sm:$0xff]  }
 0x242   :  { %2951 = vmatprep.subr.bf16.mxu0 %v6652_v23  ;;  %3403 = vmatprep.subr.bf16.mxu1 %v6655_v10  ;;  %v6729_v10 = vld [vmem:[%s8364_s8 + $0x68] sm:$0xff]  }
 0x244   :  { %2889 = vmatmul.mubr.bf16.gmra.mrb[72].mxu0 %v7680_v12  ;;  %3341 = vmatmul.mubr.bf16.gmra.mrb[80].mxu1 %v7680_v12  ;;  %v6673_v12 = vld [vmem:[#allocation8 + $0x72c] ss:$16 sps:$4 sm:$0xff]  }
 0x245   :  { %2952 = vmatpush1.bf16.msra.mxu0 %v6650_v42  ;;  %3404 = vmatpush1.bf16.msra.mxu1 %v6653_v18  ;;  %v6730_v42 = vld [vmem:[%s8364_s8 + $0x28] sm:$0xff]   ;;  %v6718_v18 = vld [vmem:[%s8387_s30 + $0x38] sm:$0xff]  }
 0x246   :  { %2898 = vmatprep.mubr.bf16.mxu0 %v7703_v27  ;;  %2953 = vmatprep.subr.bf16.mxu0 %v6658_v8  ;;  %v6731_v8 = vld [vmem:[%s8364_s8 + $0x70] sm:$0xff]  }
 0x247   :  { %3350 = vmatprep.mubr.bf16.mxu1 %v7703_v27  ;;  %3405 = vmatprep.subr.bf16.mxu1 %v6661_v15  ;;  %v6676_v27 = vld [vmem:[#allocation8 + $0x744] ss:$16 sps:$4 sm:$0xff]  }
 0x248   :  { %v6732_v15 = vld [vmem:[%s8364_s8 + $0x30] sm:$0xff]  }
 0x249   :  { %2954 = vmatpush1.bf16.msra.mxu0 %v6656_v26  ;;  %3406 = vmatpush1.bf16.msra.mxu1 %v6659_v29  ;;  %v6733_v26 = vld [vmem:[%s8364_s8 + $0x78] sm:$0xff]  }
 0x24a   :  { %2955 = vmatprep.subr.bf16.mxu0 %v6664_v22  ;;  %3407 = vmatprep.subr.bf16.mxu1 %v6667_v53  ;;  %v6734_v29 = vld [vmem:[%s8364_s8 + $0x38] sm:$0xff]  }
 0x24b   :  { %v6735_v22 = vld [vmem:[#allocation12] sm:$0xff]   ;;  %v6736_v53 = vld [vmem:[#allocation12 + $0x8] sm:$0xff]  }
 0x24c   :  { %2899 = vmatmul.mubr.bf16.gmra.mrb[76].mxu0 %v7700_v13  ;;  %3351 = vmatmul.mubr.bf16.gmra.mrb[84].mxu1 %v7700_v13  ;;  %v6685_v13 = vld [vmem:[#allocation8 + $0x76c] ss:$16 sps:$4 sm:$0xff]  }
 0x24d   :  { %2956 = vmatpush1.bf16.msra.mxu0 %v6662_v46  ;;  %3408 = vmatpush1.bf16.msra.mxu1 %v6665_v47  ;;  %v6737_v46 = vld [vmem:[#allocation12 + $0x10] sm:$0xff]   ;;  %v6738_v47 = vld [vmem:[#allocation12 + $0x18] sm:$0xff]  }
 0x24e   :  { %2908 = vmatprep.mubr.bf16.mxu0 %v7723_v30  ;;  %2957 = vmatprep.subr.bf16.mxu0 %v6670_v19  ;;  %v6739_v19 = vld [vmem:[#allocation12 + $0x20] sm:$0xff]  }
 0x24f   :  { %3360 = vmatprep.mubr.bf16.mxu1 %v7723_v30  ;;  %3409 = vmatprep.subr.bf16.mxu1 %v6673_v12  ;;  %v6688_v30 = vld [vmem:[#allocation8 + $0x784] ss:$16 sps:$4 sm:$0xff]  }
 0x250   :  { %v6740_v12 = vld [vmem:[#allocation12 + $0x28] sm:$0xff]  }
 0x251   :  { %2958 = vmatpush1.bf16.msra.mxu0 %v6668_v16  ;;  %3410 = vmatpush1.bf16.msra.mxu1 %v6671_v7  ;;  %v6741_v16 = vld [vmem:[#allocation12 + $0x30] sm:$0xff]   ;;  %v6742_v7 = vld [vmem:[#allocation12 + $0x38] sm:$0xff]  }
 0x252   :  { %2959 = vmatprep.subr.bf16.mxu0 %v6676_v27  ;;  %3411 = vmatprep.subr.bf16.mxu1 %v6679_v0  ;;  %v6743_v27 = vld [vmem:[%s8364_s8 + $0xc0] sm:$0xff]   ;;  %v1298_v0 = vld [vmem:[#allocation9] sm:$0xf] }
 0x254   :  { %2909 = vmatmul.mubr.bf16.gmra.mrb[80].mxu0 %v7720_v20  ;;  %3361 = vmatmul.mubr.bf16.gmra.mrb[88].mxu1 %v7720_v20  ;;  %v6697_v20 = vld [vmem:[#allocation8 + $0x7ac] ss:$16 sps:$4 sm:$0xff]  }
 0x255   :  { %2960 = vmatpush1.bf16.msra.mxu0 %v6674_v40  ;;  %3412 = vmatpush1.bf16.msra.mxu1 %v6677_v6  ;;  %v7941_v40 = vrot.slane %v1298_v0, %v7484_v36  ;;  %v7945_v6 = vrot.slane %v1298_v0, %v246_v51 }
 0x256   :  { %2918 = vmatprep.mubr.bf16.mxu0 %v7743_v44  ;;  %2961 = vmatprep.subr.bf16.mxu0 %v6682_v21  ;;  %v7948_v21 = vrot.slane %v1298_v0, %v7489_v38 }
 0x257   :  { %3370 = vmatprep.mubr.bf16.mxu1 %v7743_v44  ;;  %3413 = vmatprep.subr.bf16.mxu1 %v6685_v13  ;;  %v6700_v44 = vld [vmem:[#allocation8 + $0x7c4] ss:$16 sps:$4 sm:$0xff]   ;;  %v7952_v13 = vrot.slane %v1298_v0, %v250_v56 }
 0x259   :  { %2962 = vmatpush1.bf16.msra.mxu0 %v6680_v39  ;;  %3414 = vmatpush1.bf16.msra.mxu1 %v6683_v37 }
 0x25a   :  { %2963 = vmatprep.subr.bf16.mxu0 %v6688_v30  ;;  %3415 = vmatprep.subr.bf16.mxu1 %v6691_v28 }
 0x25c   :  { %2919 = vmatmul.mubr.bf16.gmra.mrb[84].mxu0 %v7740_v33  ;;  %3371 = vmatmul.mubr.bf16.gmra.mrb[92].mxu1 %v7740_v33  ;;  %v6709_v33 = vld [vmem:[#allocation8 + $0x7ec] ss:$16 sps:$4 sm:$0xff]  }
 0x25d   :  { %2964 = vmatpush1.bf16.msra.mxu0 %v6686_v49  ;;  %3416 = vmatpush1.bf16.msra.mxu1 %v6689_v62 }
 0x25e   :  { %2928 = vmatprep.mubr.bf16.mxu0 %v7763_v43  ;;  %2965 = vmatprep.subr.bf16.mxu0 %v6694_v63 }
 0x25f   :  { %3380 = vmatprep.mubr.bf16.mxu1 %v7763_v43  ;;  %3417 = vmatprep.subr.bf16.mxu1 %v6697_v20  ;;  %v6710_v43 = vld [vmem:[#allocation11] sm:$0x1f]  }
 0x260   :  { %v3679_v23 = vsel %vm373_vm0, %v6710_v43, 0 }
 0x261   :  { %2966 = vmatpush1.bf16.msra.mxu0 %v6692_v32  ;;  %3418 = vmatpush1.bf16.msra.mxu1 %v6695_v52 }
 0x262   :  { %2967 = vmatprep.subr.bf16.mxu0 %v6700_v44  ;;  %3419 = vmatprep.subr.bf16.mxu1 %v6703_v61 }
 0x264   :  { %2929 = vmatmul.mubr.bf16.gmra.mrb[88].mxu0 %v7760_v55  ;;  %3381 = vmatmul.mubr.bf16.gmra.mrb[96].mxu1 %v7760_v55  ;;  %v6719_v55 = vld [vmem:[%s8364_s8 + $0x40] sm:$0xff]  }
 0x265   :  { %2968 = vmatpush1.bf16.msra.mxu0 %v6698_v4  ;;  %3420 = vmatpush1.bf16.msra.mxu1 %v6701_v3 }
 0x266   :  { %2969 = vmatprep.subr.bf16.mxu0 %v6706_v24  ;;  %2971 = vmatprep.mubr.bf16.mxu0 %v7672_v50 }
 0x267   :  { %3421 = vmatprep.subr.bf16.mxu1 %v6709_v33  ;;  %3423 = vmatprep.mubr.bf16.mxu1 %v7672_v50  ;;  %v6712_v50 = vld [vmem:[%s8387_s30 + $0x8] sm:$0xff]  }
 0x269   :  { %2970 = vmatpush1.bf16.msra.mxu0 %v6704_v2  ;;  %3422 = vmatpush1.bf16.msra.mxu1 %v6707_v9 }
 0x26a   :  { %6294 = vmatprep.subr.msk.bf16.mxu0 %vm373_vm0, %v6710_v43  ;;  %5952 = vmatprep.subr.bf16.mxu1 %v6735_v22 }
 0x26c   :  { %2972 = vmatmul.mubr.bf16.vlgmr.msra.gmra.mrb[60].mxu0 %v7667_v41  ;;  %3424 = vmatmul.mubr.bf16.vlgmr.msra.gmra.mrb[68].mxu1 %v7667_v41  ;;  %v6711_v41 = vld [vmem:[%s8387_s30] sm:$0xff]  }
 0x26d   :  { %5935 = vmatpush3.bf16.msra.mxu0 %v3679_v23  ;;  %2981 = vmatprep.mubr.bf16.mxu0 %v7692_v54 }
 0x26e   :  { %3433 = vmatprep.mubr.bf16.mxu1 %v7692_v54  ;;  %5717 = vmatprep.subr.bf16.mxu0 %v6719_v55  ;;  %v6720_v54 = vld [vmem:[%s8364_s8] sm:$0xff]  }
 0x26f   :  { %5953 = vmatpush3.bf16.msra.mxu1 %v6735_v22 }
 0x270   :  { %5954 = vmatprep.subr.bf16.mxu1 %v6736_v53 }
 0x273   :  { %5955 = vmatpush3.bf16.msra.mxu1 %v6736_v53 }
 0x274   :  { %2982 = vmatmul.mubr.bf16.gmra.mrb[64].mxu0 %v7687_v14  ;;  %3434 = vmatmul.mubr.bf16.gmra.mrb[72].mxu1 %v7687_v14  ;;  %v6713_v14 = vld [vmem:[%s8387_s30 + $0x10] sm:$0xff]  }
 0x275   :  { %2991 = vmatprep.mubr.bf16.mxu0 %v7712_v58  ;;  %3443 = vmatprep.mubr.bf16.mxu1 %v7712_v58  ;;  %v6722_v58 = vld [vmem:[%s8364_s8 + $0x8] sm:$0xff]  }
 0x276   :  { %5956 = vmatprep.subr.bf16.mxu1 %v6737_v46 }
 0x277   :  { %5957 = vmatpush3.bf16.msra.mxu1 %v6737_v46 }
 0x278   :  { %5958 = vmatprep.subr.bf16.mxu1 %v6738_v47 }
 0x27b   :  { %5959 = vmatpush3.bf16.msra.mxu1 %v6738_v47 }
 0x27c   :  { %2992 = vmatmul.mubr.bf16.gmra.mrb[68].mxu0 %v7707_v45  ;;  %3444 = vmatmul.mubr.bf16.gmra.mrb[76].mxu1 %v7707_v45  ;;  %v6721_v45 = vld [vmem:[%s8364_s8 + $0x48] sm:$0xff]  }
 0x27d   :  { %3001 = vmatprep.mubr.bf16.mxu0 %v7732_v25  ;;  %3453 = vmatprep.mubr.bf16.mxu1 %v7732_v25  ;;  %v6714_v25 = vld [vmem:[%s8387_s30 + $0x18] sm:$0xff]  }
 0x27e   :  { %5960 = vmatprep.subr.bf16.mxu1 %v6739_v19 }
 0x27f   :  { %5961 = vmatpush3.bf16.msra.mxu1 %v6739_v19 }
 0x280   :  { %5962 = vmatprep.subr.bf16.mxu1 %v6740_v12 }
 0x283   :  { %5963 = vmatpush3.bf16.msra.mxu1 %v6740_v12 }
 0x284   :  { %3002 = vmatmul.mubr.bf16.gmra.mrb[72].mxu0 %v7727_v59  ;;  %3454 = vmatmul.mubr.bf16.gmra.mrb[80].mxu1 %v7727_v59  ;;  %v6723_v59 = vld [vmem:[%s8364_s8 + $0x50] sm:$0xff]  }
 0x285   :  { %3011 = vmatprep.mubr.bf16.mxu0 %v7752_v17  ;;  %3463 = vmatprep.mubr.bf16.mxu1 %v7752_v17  ;;  %v6724_v17 = vld [vmem:[%s8364_s8 + $0x10] sm:$0xff]  }
 0x286   :  { %5964 = vmatprep.subr.bf16.mxu1 %v6741_v16 }
 0x287   :  { %5965 = vmatpush3.bf16.msra.mxu1 %v6741_v16 }
 0x288   :  { %5966 = vmatprep.subr.bf16.mxu1 %v6742_v7 }
 0x28b   :  { %5967 = vmatpush3.bf16.msra.mxu1 %v6742_v7 }
 0x28c   :  { %3012 = vmatmul.mubr.bf16.gmra.mrb[76].mxu0 %v7747_v5  ;;  %3464 = vmatmul.mubr.bf16.gmra.mrb[84].mxu1 %v7747_v5  ;;  %v6715_v5 = vld [vmem:[%s8387_s30 + $0x20] sm:$0xff]  }
 0x28d   :  { %3021 = vmatprep.mubr.bf16.mxu0 %v7769_v60  ;;  %3473 = vmatprep.mubr.bf16.mxu1 %v7769_v60  ;;  %v6726_v60 = vld [vmem:[%s8364_s8 + $0x18] sm:$0xff]  }
 0x28e   :  { %5781 = vmatprep.subr.bf16.mxu1 %v6743_v27 }
 0x294   :  { %3022 = vmatmul.mubr.bf16.gmra.mrb[80].mxu0 %v7765_v11  ;;  %3474 = vmatmul.mubr.bf16.gmra.mrb[88].mxu1 %v7765_v11  ;;  %v6725_v11 = vld [vmem:[%s8364_s8 + $0x58] sm:$0xff]  }
 0x295   :  { %3031 = vmatprep.mubr.bf16.mxu0 %v7781_v48  ;;  %3483 = vmatprep.mubr.bf16.mxu1 %v7781_v48  ;;  %v6716_v48 = vld [vmem:[%s8387_s30 + $0x28] sm:$0xff]  }
 0x29c   :  { %3032 = vmatmul.mubr.bf16.gmra.mrb[84].mxu0 %v7777_v57  ;;  %3484 = vmatmul.mubr.bf16.gmra.mrb[92].mxu1 %v7777_v57  ;;  %v6727_v57 = vld [vmem:[%s8364_s8 + $0x60] sm:$0xff]  }
 0x29d   :  { %3041 = vmatprep.mubr.bf16.mxu0 %v7793_v34  ;;  %3493 = vmatprep.mubr.bf16.mxu1 %v7793_v34  ;;  %v6728_v34 = vld [vmem:[%s8364_s8 + $0x20] sm:$0xff]  }
 0x2a4   :  { %3042 = vmatmul.mubr.bf16.gmra.mrb[88].mxu0 %v7789_v31  ;;  %3494 = vmatmul.mubr.bf16.gmra.mrb[96].mxu1 %v7789_v31  ;;  %v6717_v31 = vld [vmem:[%s8387_s30 + $0x30] sm:$0xff]  }
 0x2a5   :  { %5936 = vmatprep.mubr.msk.bf16.mxu0 %vm348_vm1, %v6711_v41 }
 0x2ac   :  { %5937 = vmatmul.mubr.msk.bf16.vlgmr.msra.gmra.mrb[92].mxu0 %vm348_vm1, %v6712_v50 }
 0x2ad   :  { %5940 = vmatprep.mubr.msk.bf16.mxu0 %vm348_vm1, %v6713_v14  ;;  %5718 = vmatpush3.bf16.msra.mxu0 %v6720_v54 }
 0x2ae   :  { %5719 = vmatprep.subr.bf16.mxu0 %v6721_v45 }
 0x2b1   :  { %5720 = vmatpush3.bf16.msra.mxu0 %v6722_v58 }
 0x2b2   :  { %5721 = vmatprep.subr.bf16.mxu0 %v6723_v59 }
 0x2b4   :  { %5941 = vmatmul.mubr.msk.bf16.gmra.mrb[96].mxu0 %vm348_vm1, %v6714_v25 }
 0x2b5   :  { %5944 = vmatprep.mubr.msk.bf16.mxu0 %vm348_vm1, %v6715_v5  ;;  %5722 = vmatpush3.bf16.msra.mxu0 %v6724_v17 }
 0x2b6   :  { %5723 = vmatprep.subr.bf16.mxu0 %v6725_v11 }
 0x2b9   :  { %5724 = vmatpush3.bf16.msra.mxu0 %v6726_v60 }
 0x2ba   :  { %5725 = vmatprep.subr.bf16.mxu0 %v6727_v57 }
 0x2bc   :  { %5945 = vmatmul.mubr.msk.bf16.gmra.mrb[100].mxu0 %vm348_vm1, %v6716_v48 }
 0x2bd   :  { %5948 = vmatprep.mubr.msk.bf16.mxu0 %vm348_vm1, %v6717_v31  ;;  %5726 = vmatpush3.bf16.msra.mxu0 %v6728_v34 }
 0x2be   :  { %5727 = vmatprep.subr.bf16.mxu0 %v6729_v10 }
 0x2c1   :  { %5728 = vmatpush3.bf16.msra.mxu0 %v6730_v42 }
 0x2c2   :  { %5729 = vmatprep.subr.bf16.mxu0 %v6731_v8 }
 0x2c4   :  { %5949 = vmatmul.mubr.msk.bf16.gmra.mrb[104].mxu0 %vm348_vm1, %v6718_v18 }
 0x2c5   :  { %5730 = vmatpush3.bf16.msra.mxu0 %v6732_v15 }
 0x2c6   :  { %5731 = vmatprep.subr.bf16.mxu0 %v6733_v26 }
 0x2c9   :  { %5732 = vmatpush3.bf16.msra.mxu0 %v6734_v29 }
 0x33f   :  { %v2973_v39 = vpop.f32.mrb[60].mxu0  ;;  %v3425_v37 = vpop.f32.mrb[68].mxu1 }
 0x340   :  { %v6038_v30 = vadd.f32 %v2973_v39, %v7941_v40  ;;  %v6070_v28 = vadd.f32 %v3425_v37, %v7945_v6  ;;  %v2975_v49 = vpop.f32.mrb[61].mxu0  ;;  %v3427_v62 = vpop.f32.mrb[69].mxu1 }
 0x341   :  { %v6039_v63 = vadd.f32 %v2975_v49, %v7948_v21  ;;  %v6071_v51 = vadd.f32 %v3427_v62, %v7952_v13  ;;  %v2977_v20 = vpop.f32.mrb[62].mxu0  ;;  %v3429_v32 = vpop.f32.mrb[70].mxu1 }
 0x342   :  { %v6040_v52 = vadd.f32 %v2977_v20, %v7941_v40  ;;  %v6072_v35 = vadd.f32 %v3429_v32, %v7945_v6  ;;  %v2979_v56 = vpop.f32.mrb[63].mxu0  ;;  %v3431_v44 = vpop.f32.mrb[71].mxu1  ;;  %v3504_v3 = vmax.f32 %v6038_v30, 0.0  ;;  %v3506_v24 = vmax.f32 %v6070_v28, 0.0 }
 0x343   :  { %v6041_v61 = vadd.f32 %v2979_v56, %v7948_v21  ;;  %v6073_v4 = vadd.f32 %v3431_v44, %v7952_v13  ;;  %v3505_v9 = vmax.f32 %v6039_v63, 0.0  ;;  %v3507_v43 = vmax.f32 %v6071_v51, 0.0 }
 0x344   :  { %v3508_v33 = vmax.f32 %v6040_v52, 0.0  ;;  %v3510_v2 = vmax.f32 %v6072_v35, 0.0 }
 0x345   :  { %v3509_v23 = vmax.f32 %v6041_v61, 0.0  ;;  %v3511_v55 = vmax.f32 %v6073_v4, 0.0 }
 0x346   :  { %v3568_v41 = vpack.c.bf16 %v3508_v33, %v3504_v3  ;;  %v7962_v50 = vpack.c.bf16 %v3510_v2, %v3506_v24 }
 0x347   :  { %v3569_v14 = vpack.c.bf16 %v3509_v23, %v3505_v9  ;;  %v7964_v54 = vpack.c.bf16 %v3511_v55, %v3507_v43  ;;  %v2983_v45 = vpop.f32.mrb[64].mxu0  ;;  %v3435_v58 = vpop.f32.mrb[72].mxu1 }
 0x348   :  { %v6042_v59 = vadd.f32 %v2983_v45, %v7941_v40  ;;  %v6074_v25 = vadd.f32 %v3435_v58, %v7945_v6  ;;  %v2985_v5 = vpop.f32.mrb[65].mxu0  ;;  %v3437_v17 = vpop.f32.mrb[73].mxu1 }
 0x349   :  { %v6043_v11 = vadd.f32 %v2985_v5, %v7948_v21  ;;  %v6075_v60 = vadd.f32 %v3437_v17, %v7952_v13  ;;  %v2987_v57 = vpop.f32.mrb[66].mxu0  ;;  %v3439_v48 = vpop.f32.mrb[74].mxu1  ;;  %4251 = vmatprep.mubr.bf16.mxu0 %v3569_v14 }
 0x34a   :  { %v6044_v31 = vadd.f32 %v2987_v57, %v7941_v40  ;;  %v6076_v34 = vadd.f32 %v3439_v48, %v7945_v6  ;;  %v2989_v10 = vpop.f32.mrb[67].mxu0  ;;  %v3441_v42 = vpop.f32.mrb[75].mxu1  ;;  %4252 = vmatmul.mubr.bf16.vlgmr.msra.gmra.mrb[108].mxu0 %v3568_v41  ;;  %v3512_v15 = vmax.f32 %v6042_v59, 0.0  ;;  %v3514_v26 = vmax.f32 %v6074_v25, 0.0 }
 0x34b   :  { %v6045_v18 = vadd.f32 %v2989_v10, %v7948_v21  ;;  %v6077_v8 = vadd.f32 %v3441_v42, %v7952_v13  ;;  %v3513_v53 = vmax.f32 %v6043_v11, 0.0  ;;  %v3515_v46 = vmax.f32 %v6075_v60, 0.0 }
 0x34c   :  { %v3516_v29 = vmax.f32 %v6044_v31, 0.0  ;;  %v3518_v22 = vmax.f32 %v6076_v34, 0.0 }
 0x34d   :  { %v3517_v47 = vmax.f32 %v6045_v18, 0.0  ;;  %v3519_v19 = vmax.f32 %v6077_v8, 0.0 }
 0x34e   :  { %v3572_v12 = vpack.c.bf16 %v3516_v29, %v3512_v15  ;;  %v7974_v16 = vpack.c.bf16 %v3518_v22, %v3514_v26 }
 0x34f   :  { %v3573_v7 = vpack.c.bf16 %v3517_v47, %v3513_v53  ;;  %v7976_v27 = vpack.c.bf16 %v3519_v19, %v3515_v46  ;;  %v2993_v0 = vpop.f32.mrb[68].mxu0  ;;  %v3445_v39 = vpop.f32.mrb[76].mxu1 }
 0x350   :  { %v6046_v37 = vadd.f32 %v2993_v0, %v7941_v40  ;;  %v6078_v30 = vadd.f32 %v3445_v39, %v7945_v6  ;;  %v2995_v28 = vpop.f32.mrb[69].mxu0  ;;  %v3447_v49 = vpop.f32.mrb[77].mxu1 }
 0x351   :  { %v6047_v62 = vadd.f32 %v2995_v28, %v7948_v21  ;;  %v6079_v63 = vadd.f32 %v3447_v49, %v7952_v13  ;;  %v2997_v51 = vpop.f32.mrb[70].mxu0  ;;  %v3449_v20 = vpop.f32.mrb[78].mxu1  ;;  %4259 = vmatprep.mubr.bf16.mxu0 %v3573_v7 }
 0x352   :  { %v6048_v32 = vadd.f32 %v2997_v51, %v7941_v40  ;;  %v6080_v52 = vadd.f32 %v3449_v20, %v7945_v6  ;;  %v2999_v35 = vpop.f32.mrb[71].mxu0  ;;  %v3451_v56 = vpop.f32.mrb[79].mxu1  ;;  %4260 = vmatmul.mubr.bf16.gmra.mrb[112].mxu0 %v3572_v12  ;;  %v3520_v4 = vmax.f32 %v6046_v37, 0.0  ;;  %v3522_v3 = vmax.f32 %v6078_v30, 0.0 }
 0x353   :  { %v6049_v44 = vadd.f32 %v2999_v35, %v7948_v21  ;;  %v6081_v61 = vadd.f32 %v3451_v56, %v7952_v13  ;;  %v3521_v2 = vmax.f32 %v6047_v62, 0.0  ;;  %v3523_v9 = vmax.f32 %v6079_v63, 0.0 }
 0x354   :  { %v3524_v24 = vmax.f32 %v6048_v32, 0.0  ;;  %v3526_v33 = vmax.f32 %v6080_v52, 0.0 }
 0x355   :  { %v3525_v43 = vmax.f32 %v6049_v44, 0.0  ;;  %v3527_v23 = vmax.f32 %v6081_v61, 0.0 }
 0x356   :  { %v3576_v55 = vpack.c.bf16 %v3524_v24, %v3520_v4  ;;  %v7986_v41 = vpack.c.bf16 %v3526_v33, %v3522_v3 }
 0x357   :  { %v3577_v14 = vpack.c.bf16 %v3525_v43, %v3521_v2  ;;  %v7988_v45 = vpack.c.bf16 %v3527_v23, %v3523_v9  ;;  %v3003_v58 = vpop.f32.mrb[72].mxu0  ;;  %v3455_v59 = vpop.f32.mrb[80].mxu1 }
 0x358   :  { %v6050_v25 = vadd.f32 %v3003_v58, %v7941_v40  ;;  %v6082_v5 = vadd.f32 %v3455_v59, %v7945_v6  ;;  %v3005_v17 = vpop.f32.mrb[73].mxu0  ;;  %v3457_v11 = vpop.f32.mrb[81].mxu1 }
 0x359   :  { %v6051_v60 = vadd.f32 %v3005_v17, %v7948_v21  ;;  %v6083_v57 = vadd.f32 %v3457_v11, %v7952_v13  ;;  %v3007_v48 = vpop.f32.mrb[74].mxu0  ;;  %v3459_v31 = vpop.f32.mrb[82].mxu1  ;;  %4267 = vmatprep.mubr.bf16.mxu0 %v3577_v14 }
 0x35a   :  { %v6052_v34 = vadd.f32 %v3007_v48, %v7941_v40  ;;  %v6084_v10 = vadd.f32 %v3459_v31, %v7945_v6  ;;  %v3009_v42 = vpop.f32.mrb[75].mxu0  ;;  %v3461_v18 = vpop.f32.mrb[83].mxu1  ;;  %4268 = vmatmul.mubr.bf16.gmra.mrb[116].mxu0 %v3576_v55  ;;  %v3528_v26 = vmax.f32 %v6050_v25, 0.0  ;;  %v3530_v29 = vmax.f32 %v6082_v5, 0.0 }
 0x35b   :  { %v6053_v8 = vadd.f32 %v3009_v42, %v7948_v21  ;;  %v6085_v15 = vadd.f32 %v3461_v18, %v7952_v13  ;;  %v3529_v46 = vmax.f32 %v6051_v60, 0.0  ;;  %v3531_v47 = vmax.f32 %v6083_v57, 0.0 }
 0x35c   :  { %v3532_v22 = vmax.f32 %v6052_v34, 0.0  ;;  %v3534_v53 = vmax.f32 %v6084_v10, 0.0 }
 0x35d   :  { %v3533_v19 = vmax.f32 %v6053_v8, 0.0  ;;  %v3535_v12 = vmax.f32 %v6085_v15, 0.0 }
 0x35e   :  { %v3580_v7 = vpack.c.bf16 %v3532_v22, %v3528_v26  ;;  %v7998_v0 = vpack.c.bf16 %v3534_v53, %v3530_v29 }
 0x35f   :  { %v3581_v39 = vpack.c.bf16 %v3533_v19, %v3529_v46  ;;  %v8000_v37 = vpack.c.bf16 %v3535_v12, %v3531_v47  ;;  %v3013_v30 = vpop.f32.mrb[76].mxu0  ;;  %v3465_v28 = vpop.f32.mrb[84].mxu1 }
 0x360   :  { %v6054_v49 = vadd.f32 %v3013_v30, %v7941_v40  ;;  %v6086_v62 = vadd.f32 %v3465_v28, %v7945_v6  ;;  %v3015_v63 = vpop.f32.mrb[77].mxu0  ;;  %v3467_v51 = vpop.f32.mrb[85].mxu1 }
 0x361   :  { %v6055_v20 = vadd.f32 %v3015_v63, %v7948_v21  ;;  %v6087_v32 = vadd.f32 %v3467_v51, %v7952_v13  ;;  %v3017_v52 = vpop.f32.mrb[78].mxu0  ;;  %v3469_v35 = vpop.f32.mrb[86].mxu1  ;;  %4275 = vmatprep.mubr.bf16.mxu0 %v3581_v39 }
 0x362   :  { %v6056_v56 = vadd.f32 %v3017_v52, %v7941_v40  ;;  %v6088_v44 = vadd.f32 %v3469_v35, %v7945_v6  ;;  %v3019_v61 = vpop.f32.mrb[79].mxu0  ;;  %v3471_v4 = vpop.f32.mrb[87].mxu1  ;;  %4276 = vmatmul.mubr.bf16.gmra.mrb[120].mxu0 %v3580_v7  ;;  %v3536_v33 = vmax.f32 %v6054_v49, 0.0  ;;  %v3538_v2 = vmax.f32 %v6086_v62, 0.0 }
 0x363   :  { %v6057_v3 = vadd.f32 %v3019_v61, %v7948_v21  ;;  %v6089_v24 = vadd.f32 %v3471_v4, %v7952_v13  ;;  %v3537_v23 = vmax.f32 %v6055_v20, 0.0  ;;  %v3539_v55 = vmax.f32 %v6087_v32, 0.0 }
 0x364   :  { %v3540_v9 = vmax.f32 %v6056_v56, 0.0  ;;  %v3542_v43 = vmax.f32 %v6088_v44, 0.0 }
 0x365   :  { %v3541_v14 = vmax.f32 %v6057_v3, 0.0  ;;  %v3543_v58 = vmax.f32 %v6089_v24, 0.0 }
 0x366   :  { %v3584_v59 = vpack.c.bf16 %v3540_v9, %v3536_v33  ;;  %v8010_v25 = vpack.c.bf16 %v3542_v43, %v3538_v2 }
 0x367   :  { %v3585_v5 = vpack.c.bf16 %v3541_v14, %v3537_v23  ;;  %v8012_v17 = vpack.c.bf16 %v3543_v58, %v3539_v55  ;;  %v3023_v11 = vpop.f32.mrb[80].mxu0  ;;  %v3475_v60 = vpop.f32.mrb[88].mxu1 }
 0x368   :  { %v6058_v57 = vadd.f32 %v3023_v11, %v7941_v40  ;;  %v6090_v48 = vadd.f32 %v3475_v60, %v7945_v6  ;;  %v3025_v31 = vpop.f32.mrb[81].mxu0  ;;  %v3477_v34 = vpop.f32.mrb[89].mxu1 }
 0x369   :  { %v6059_v10 = vadd.f32 %v3025_v31, %v7948_v21  ;;  %v6091_v42 = vadd.f32 %v3477_v34, %v7952_v13  ;;  %v3027_v18 = vpop.f32.mrb[82].mxu0  ;;  %v3479_v8 = vpop.f32.mrb[90].mxu1  ;;  %4283 = vmatprep.mubr.bf16.mxu0 %v3585_v5 }
 0x36a   :  { %v6060_v15 = vadd.f32 %v3027_v18, %v7941_v40  ;;  %v6092_v26 = vadd.f32 %v3479_v8, %v7945_v6  ;;  %v3029_v29 = vpop.f32.mrb[83].mxu0  ;;  %v3481_v22 = vpop.f32.mrb[91].mxu1  ;;  %4284 = vmatmul.mubr.bf16.gmra.mrb[124].mxu0 %v3584_v59  ;;  %v3544_v47 = vmax.f32 %v6058_v57, 0.0  ;;  %v3546_v19 = vmax.f32 %v6090_v48, 0.0 }
 0x36b   :  { %v6061_v53 = vadd.f32 %v3029_v29, %v7948_v21  ;;  %v6093_v46 = vadd.f32 %v3481_v22, %v7952_v13  ;;  %v3545_v39 = vmax.f32 %v6059_v10, 0.0  ;;  %v3547_v30 = vmax.f32 %v6091_v42, 0.0 }
 0x36c   :  { %v3548_v12 = vmax.f32 %v6060_v15, 0.0  ;;  %v3550_v7 = vmax.f32 %v6092_v26, 0.0 }
 0x36d   :  { %v3549_v28 = vmax.f32 %v6061_v53, 0.0  ;;  %v3551_v49 = vmax.f32 %v6093_v46, 0.0 }
 0x36e   :  { %v3588_v62 = vpack.c.bf16 %v3548_v12, %v3544_v47  ;;  %v8022_v63 = vpack.c.bf16 %v3550_v7, %v3546_v19 }
 0x36f   :  { %v3589_v51 = vpack.c.bf16 %v3549_v28, %v3545_v39  ;;  %v8024_v20 = vpack.c.bf16 %v3551_v49, %v3547_v30  ;;  %v3033_v32 = vpop.f32.mrb[84].mxu0  ;;  %v3485_v52 = vpop.f32.mrb[92].mxu1 }
 0x370   :  { %v6062_v35 = vadd.f32 %v3033_v32, %v7941_v40  ;;  %v6094_v56 = vadd.f32 %v3485_v52, %v7945_v6  ;;  %v3035_v44 = vpop.f32.mrb[85].mxu0  ;;  %v3487_v61 = vpop.f32.mrb[93].mxu1 }
 0x371   :  { %v6063_v4 = vadd.f32 %v3035_v44, %v7948_v21  ;;  %v6095_v3 = vadd.f32 %v3487_v61, %v7952_v13  ;;  %v3037_v24 = vpop.f32.mrb[86].mxu0  ;;  %v3489_v33 = vpop.f32.mrb[94].mxu1  ;;  %4291 = vmatprep.mubr.bf16.mxu0 %v3589_v51 }
 0x372   :  { %v6064_v2 = vadd.f32 %v3037_v24, %v7941_v40  ;;  %v6096_v9 = vadd.f32 %v3489_v33, %v7945_v6  ;;  %v3039_v43 = vpop.f32.mrb[87].mxu0  ;;  %v3491_v23 = vpop.f32.mrb[95].mxu1  ;;  %4292 = vmatmul.mubr.bf16.gmra.mrb[128].mxu0 %v3588_v62  ;;  %v3552_v58 = vmax.f32 %v6062_v35, 0.0  ;;  %v3554_v59 = vmax.f32 %v6094_v56, 0.0 }
 0x373   :  { %v6065_v55 = vadd.f32 %v3039_v43, %v7948_v21  ;;  %v6097_v14 = vadd.f32 %v3491_v23, %v7952_v13  ;;  %v3553_v60 = vmax.f32 %v6063_v4, 0.0  ;;  %v3555_v57 = vmax.f32 %v6095_v3, 0.0 }
 0x374   :  { %v3556_v5 = vmax.f32 %v6064_v2, 0.0  ;;  %v3558_v11 = vmax.f32 %v6096_v9, 0.0 }
 0x375   :  { %v3557_v48 = vmax.f32 %v6065_v55, 0.0  ;;  %v3559_v31 = vmax.f32 %v6097_v14, 0.0 }
 0x376   :  { %v3592_v34 = vpack.c.bf16 %v3556_v5, %v3552_v58  ;;  %v8034_v10 = vpack.c.bf16 %v3558_v11, %v3554_v59 }
 0x377   :  { %v3593_v42 = vpack.c.bf16 %v3557_v48, %v3553_v60  ;;  %v8036_v18 = vpack.c.bf16 %v3559_v31, %v3555_v57  ;;  %v3043_v8 = vpop.f32.mrb[88].mxu0  ;;  %v3495_v15 = vpop.f32.mrb[96].mxu1  ;;  %v6744_v31 = vld [vmem:[%s8364_s8 + $0x80] sm:$0xff]  }
 0x378   :  { %v6066_v26 = vadd.f32 %v3043_v8, %v7941_v40  ;;  %v6098_v29 = vadd.f32 %v3495_v15, %v7945_v6  ;;  %v3045_v22 = vpop.f32.mrb[89].mxu0  ;;  %v3497_v53 = vpop.f32.mrb[97].mxu1  ;;  %v6745_v8 = vld [vmem:[%s8364_s8 + $0xc8] sm:$0xff]  }
 0x379   :  { %v6067_v46 = vadd.f32 %v3045_v22, %v7948_v21  ;;  %v6099_v47 = vadd.f32 %v3497_v53, %v7952_v13  ;;  %v3047_v19 = vpop.f32.mrb[90].mxu0  ;;  %v3499_v12 = vpop.f32.mrb[98].mxu1  ;;  %4299 = vmatprep.mubr.bf16.mxu0 %v3593_v42 }
 0x37a   :  { %v6068_v7 = vadd.f32 %v3047_v19, %v7941_v40  ;;  %v6100_v39 = vadd.f32 %v3499_v12, %v7945_v6  ;;  %v3049_v30 = vpop.f32.mrb[91].mxu0  ;;  %v3501_v28 = vpop.f32.mrb[99].mxu1  ;;  %4300 = vmatmul.mubr.bf16.gmra.mrb[132].mxu0 %v3592_v34  ;;  %v3560_v51 = vmax.f32 %v6066_v26, 0.0  ;;  %v3562_v32 = vmax.f32 %v6098_v29, 0.0  ;;  %v8049_v40 = vld [vmem:[%s8363_s7] ss:$0 sm:$0xff] }
 0x37b   :  { %v6069_v49 = vadd.f32 %v3049_v30, %v7948_v21  ;;  %v6101_v62 = vadd.f32 %v3501_v28, %v7952_v13  ;;  %v3561_v56 = vmax.f32 %v6067_v46, 0.0  ;;  %v3563_v44 = vmax.f32 %v6099_v47, 0.0  ;;  %v6746_v46 = vld [vmem:[%s8364_s8 + $0x88] sm:$0xff]   ;;  %v6747_v12 = vld [vmem:[%s8364_s8 + $0xd0] sm:$0xff]   ;;  %s7035_s7 = scalar_lea.vmem %s5269_s12, 32 }
 0x37c   :  { %v3564_v52 = vmax.f32 %v6068_v7, 0.0  ;;  %v3566_v35 = vmax.f32 %v6100_v39, 0.0 }
 0x37d   :  { %v3565_v61 = vmax.f32 %v6069_v49, 0.0  ;;  %v3567_v4 = vmax.f32 %v6101_v62, 0.0  ;;  %v6748_v62 = vld [vmem:[%s8364_s8 + $0x90] sm:$0xff]  }
 0x37e   :  { %v3596_v6 = vpack.c.bf16 %v3564_v52, %v3560_v51  ;;  %v8051_v3 = vpack.c.bf16 %v3566_v35, %v3562_v32  ;;  %v6749_v52 = vld [vmem:[%s8364_s8 + $0xd8] sm:$0xff]  }
 0x37f   :  { %v3597_v24 = vpack.c.bf16 %v3565_v61, %v3561_v56  ;;  %v8053_v21 = vpack.c.bf16 %v3567_v4, %v3563_v44  ;;  %v5938_v13 = vpop.f32.mrb[92].mxu0 }
 0x380   :  { %v3724_v33 = vadd.f32 %v5938_v13, %v8049_v40  ;;  %v3715_v2 = vpop.f32.mrb[93].mxu0 }
 0x381   :  { %v3716_v9 = vadd.f32 %v8049_v40, %v3715_v2  ;;  %v5939_v43 = vpop.f32.mrb[94].mxu0  ;;  %4307 = vmatprep.mubr.bf16.mxu0 %v3597_v24 }
 0x382   :  { %v3727_v23 = vadd.f32 %v5939_v43, %v8049_v40  ;;  %v3718_v55 = vpop.f32.mrb[95].mxu0  ;;  %4308 = vmatmul.mubr.bf16.gmra.mrb[136].mxu0 %v3596_v6  ;;  %v3780_v58 = vmax.f32 %v3724_v33, 0.0  ;;  %v6750_v6 = vld [vmem:[%s8364_s8 + $0x98] sm:$0xff]   ;;  %v6751_v33 = vld [vmem:[%s8364_s8 + $0xe0] sm:$0xff]  }
 0x383   :  { %v3719_v14 = vadd.f32 %v8049_v40, %v3718_v55  ;;  %4600 = vmatprep.mubr.bf16.mxu0 %v7085_v1  ;;  %v3778_v5 = vmax.f32 %v3716_v9, 0.0 }
 0x384   :  { %v3781_v59 = vmax.f32 %v3727_v23, 0.0 }
 0x385   :  { %v3779_v11 = vmax.f32 %v3719_v14, 0.0  ;;  %v6752_v14 = vld [vmem:[%s8364_s8 + $0xa0] sm:$0xff]  }
 0x386   :  { %v3795_v60 = vpack.c.bf16 %v3781_v59, %v3780_v58 }
 0x387   :  { %v3794_v57 = vpack.c.bf16 %v3779_v11, %v3778_v5  ;;  %v5942_v48 = vpop.f32.mrb[96].mxu0  ;;  %v6753_v5 = vld [vmem:[%s8364_s8 + $0xe8] sm:$0xff]  }
 0x388   :  { %v3740_v34 = vadd.f32 %v5942_v48, %v8049_v40  ;;  %v3731_v42 = vpop.f32.mrb[97].mxu0 }
 0x389   :  { %v3732_v15 = vadd.f32 %v8049_v40, %v3731_v42  ;;  %v5943_v26 = vpop.f32.mrb[98].mxu0  ;;  %5968 = vmatprep.mubr.bf16.mxu1 %v3794_v57 }
 0x38a   :  { %v3743_v29 = vadd.f32 %v5943_v26, %v8049_v40  ;;  %v3734_v22 = vpop.f32.mrb[99].mxu0  ;;  %5969 = vmatmul.mubr.bf16.vlgmr.msra.gmra.mrb[100].mxu1 %v3795_v60  ;;  %v3784_v47 = vmax.f32 %v3740_v34, 0.0  ;;  %v6754_v34 = vld [vmem:[%s8364_s8 + $0xa8] sm:$0xff]  }
 0x38b   :  { %v3735_v53 = vadd.f32 %v8049_v40, %v3734_v22  ;;  %5782 = vmatpush3.bf16.msra.mxu1 %v6744_v31  ;;  %v3782_v7 = vmax.f32 %v3732_v15, 0.0  ;;  %v6755_v15 = vld [vmem:[%s8364_s8 + $0xf0] sm:$0xff]  }
 0x38c   :  { %v3785_v19 = vmax.f32 %v3743_v29, 0.0  ;;  %5783 = vmatprep.subr.bf16.mxu1 %v6745_v8 }
 0x38d   :  { %v3783_v39 = vmax.f32 %v3735_v53, 0.0 }
 0x38e   :  { %v3797_v30 = vpack.c.bf16 %v3785_v19, %v3784_v47  ;;  %v6758_v47 = vld [vmem:[%s8364_s8 + $0xb8] sm:$0xff]  }
 0x38f   :  { %v3796_v28 = vpack.c.bf16 %v3783_v39, %v3782_v7  ;;  %v5946_v49 = vpop.f32.mrb[100].mxu0  ;;  %5784 = vmatpush3.bf16.msra.mxu1 %v6746_v46  ;;  %v6757_v46 = vld [vmem:[%s8364_s8 + $0xf8] sm:$0xff]  }
 0x390   :  { %v3756_v51 = vadd.f32 %v5946_v49, %v8049_v40  ;;  %v3747_v32 = vpop.f32.mrb[101].mxu0  ;;  %5785 = vmatprep.subr.bf16.mxu1 %v6747_v12  ;;  %v6761_v19 = vld [vmem:[#allocation15 + $0x4] ss:$8 sps:$4 sm:$0xff]  }
 0x391   :  { %v3748_v35 = vadd.f32 %v8049_v40, %v3747_v32  ;;  %v5947_v56 = vpop.f32.mrb[102].mxu0  ;;  %5972 = vmatprep.mubr.bf16.mxu1 %v3796_v28  ;;  %4568 = vmatprep.subr.bf16.mxu0 %v6761_v19 }
 0x392   :  { %v3759_v44 = vadd.f32 %v5947_v56, %v8049_v40  ;;  %v3750_v61 = vpop.f32.mrb[103].mxu0  ;;  %5973 = vmatmul.mubr.bf16.gmra.mrb[104].mxu1 %v3797_v30  ;;  %v3788_v24 = vmax.f32 %v3756_v51, 0.0 }
 0x393   :  { %v3751_v4 = vadd.f32 %v8049_v40, %v3750_v61  ;;  %5786 = vmatpush3.bf16.msra.mxu1 %v6748_v62  ;;  %v3786_v2 = vmax.f32 %v3748_v35, 0.0 }
 0x394   :  { %v3789_v13 = vmax.f32 %v3759_v44, 0.0  ;;  %5787 = vmatprep.subr.bf16.mxu1 %v6749_v52 }
 0x395   :  { %v3787_v9 = vmax.f32 %v3751_v4, 0.0 }
 0x396   :  { %v3799_v43 = vpack.c.bf16 %v3789_v13, %v3788_v24 }
 0x397   :  { %v3798_v23 = vpack.c.bf16 %v3787_v9, %v3786_v2  ;;  %v5950_v55 = vpop.f32.mrb[104].mxu0  ;;  %5788 = vmatpush3.bf16.msra.mxu1 %v6750_v6 }
 0x398   :  { %v3772_v58 = vadd.f32 %v5950_v55, %v8049_v40  ;;  %v3763_v59 = vpop.f32.mrb[105].mxu0  ;;  %5789 = vmatprep.subr.bf16.mxu1 %v6751_v33 }
 0x399   :  { %v3764_v11 = vadd.f32 %v8049_v40, %v3763_v59  ;;  %v5951_v60 = vpop.f32.mrb[106].mxu0  ;;  %5976 = vmatprep.mubr.bf16.mxu1 %v3798_v23 }
 0x39a   :  { %v3775_v57 = vadd.f32 %v5951_v60, %v8049_v40  ;;  %v3766_v48 = vpop.f32.mrb[107].mxu0  ;;  %5977 = vmatmul.mubr.bf16.gmra.mrb[108].mxu1 %v3799_v43  ;;  %v3792_v42 = vmax.f32 %v3772_v58, 0.0  ;;  %v6783_v60 = vld [vmem:[#allocation18 + $0x40] sm:$0xff]  }
 0x39b   :  { %v3767_v31 = vadd.f32 %v8049_v40, %v3766_v48  ;;  %5790 = vmatpush3.bf16.msra.mxu1 %v6752_v14  ;;  %v3790_v26 = vmax.f32 %v3764_v11, 0.0  ;;  %v6756_v40 = vld [vmem:[%s8364_s8 + $0xb0] sm:$0xff]   ;;  %v6785_v48 = vld [vmem:[#allocation18 + $0x48] sm:$0xff]  }
 0x39c   :  { %v3793_v8 = vmax.f32 %v3775_v57, 0.0  ;;  %5791 = vmatprep.subr.bf16.mxu1 %v6753_v5  ;;  %v6784_v57 = vld [vmem:[#allocation18] sm:$0xff]  }
 0x39d   :  { %v3791_v29 = vmax.f32 %v3767_v31, 0.0 }
 0x39e   :  { %v3801_v22 = vpack.c.bf16 %v3793_v8, %v3792_v42  ;;  %v6786_v42 = vld [vmem:[#allocation18 + $0x8] sm:$0xff]  }
 0x39f   :  { %v3800_v53 = vpack.c.bf16 %v3791_v29, %v3790_v26  ;;  %5792 = vmatpush3.bf16.msra.mxu1 %v6754_v34  ;;  %v6787_v26 = vld [vmem:[#allocation18 + $0x50] sm:$0xff]  }
 0x3a0   :  { %5793 = vmatprep.subr.bf16.mxu1 %v6755_v15 }
 0x3a1   :  { %5980 = vmatprep.mubr.bf16.mxu1 %v3800_v53  ;;  %v6788_v53 = vld [vmem:[#allocation18 + $0x10] sm:$0xff]  }
 0x3a2   :  { %5981 = vmatmul.mubr.bf16.gmra.mrb[112].mxu1 %v3801_v22 }
 0x3a3   :  { %5794 = vmatpush3.bf16.msra.mxu1 %v6756_v40  ;;  %4348 = vmatprep.mubr.bf16.mxu1 %v7964_v54  ;;  %v6759_v54 = vld [vmem:[#allocation15] ss:$8 sps:$4 sm:$0xff]  }
 0x3a4   :  { %5795 = vmatprep.subr.bf16.mxu1 %v6757_v46  ;;  %4569 = vmatpush1.bf16.msra.mxu0 %v6759_v54  ;;  %v6789_v40 = vld [vmem:[#allocation18 + $0x58] sm:$0xff]  }
 0x3a5   :  { %v6790_v54 = vld [vmem:[#allocation18 + $0x18] sm:$0xff]  }
 0x3a7   :  { %5796 = vmatpush3.bf16.msra.mxu1 %v6758_v47 }
 0x3a8   :  { %5845 = vmatprep.subr.bf16.mxu1 %v6783_v60 }
 0x3aa   :  { %4349 = vmatmul.mubr.bf16.vlgmr.msra.gmra.mrb[116].mxu1 %v7962_v50  ;;  %v6762_v50 = vld [vmem:[#allocation15 + $0x10] ss:$8 sps:$4 sm:$0xff]  }
 0x3ab   :  { %4356 = vmatprep.mubr.bf16.mxu1 %v7976_v27  ;;  %v6765_v27 = vld [vmem:[#allocation15 + $0x20] ss:$8 sps:$4 sm:$0xff]   ;;  %5846 = vmatpush3.bf16.msra.mxu1 %v6784_v57 }
 0x3ac   :  { %5847 = vmatprep.subr.bf16.mxu1 %v6785_v48 }
 0x3af   :  { %5848 = vmatpush3.bf16.msra.mxu1 %v6786_v42 }
 0x3b0   :  { %5849 = vmatprep.subr.bf16.mxu1 %v6787_v26  ;;  %v8183_v26 = vld [vmem:[#allocation14] ss:$0 sm:$0xff] }
 0x3b2   :  { %4357 = vmatmul.mubr.bf16.gmra.mrb[120].mxu1 %v7974_v16  ;;  %v6764_v16 = vld [vmem:[#allocation15 + $0x14] ss:$8 sps:$4 sm:$0xff]  }
 0x3b3   :  { %4364 = vmatprep.mubr.bf16.mxu1 %v7988_v45  ;;  %4570 = vmatprep.subr.bf16.mxu0 %v6764_v16  ;;  %v6768_v45 = vld [vmem:[#allocation15 + $0x30] ss:$8 sps:$4 sm:$0xff]   ;;  %v6791_v16 = vld [vmem:[#allocation18 + $0x60] sm:$0xff]  }
 0x3b4   :  { %4571 = vmatpush1.bf16.msra.mxu0 %v6762_v50  ;;  %5850 = vmatpush3.bf16.msra.mxu1 %v6788_v53 }
 0x3b5   :  { %5851 = vmatprep.subr.bf16.mxu1 %v6789_v40 }
 0x3b8   :  { %5852 = vmatpush3.bf16.msra.mxu1 %v6790_v54 }
 0x3b9   :  { %5853 = vmatprep.subr.bf16.mxu1 %v6791_v16 }
 0x3ba   :  { %4365 = vmatmul.mubr.bf16.gmra.mrb[124].mxu1 %v7986_v41  ;;  %v6767_v41 = vld [vmem:[#allocation15 + $0x24] ss:$8 sps:$4 sm:$0xff]  }
 0x3bb   :  { %4372 = vmatprep.mubr.bf16.mxu1 %v8000_v37  ;;  %4572 = vmatprep.subr.bf16.mxu0 %v6767_v41  ;;  %v6771_v37 = vld [vmem:[#allocation15 + $0x40] ss:$8 sps:$4 sm:$0xff]  }
 0x3bc   :  { %4573 = vmatpush1.bf16.msra.mxu0 %v6765_v27 }
 0x3c2   :  { %4373 = vmatmul.mubr.bf16.gmra.mrb[128].mxu1 %v7998_v0  ;;  %v6770_v0 = vld [vmem:[#allocation15 + $0x34] ss:$8 sps:$4 sm:$0xff]  }
 0x3c3   :  { %4380 = vmatprep.mubr.bf16.mxu1 %v8012_v17  ;;  %4574 = vmatprep.subr.bf16.mxu0 %v6770_v0  ;;  %v6774_v17 = vld [vmem:[#allocation15 + $0x50] ss:$8 sps:$4 sm:$0xff]  }
 0x3c4   :  { %4575 = vmatpush1.bf16.msra.mxu0 %v6768_v45  ;;  %v6792_v45 = vld [vmem:[#allocation18 + $0x20] sm:$0xff]   ;;  %v6793_v0 = vld [vmem:[#allocation18 + $0x68] sm:$0xff]  }
 0x3c5   :  { %5854 = vmatpush3.bf16.msra.mxu1 %v6792_v45 }
 0x3c6   :  { %5855 = vmatprep.subr.bf16.mxu1 %v6793_v0 }
 0x3ca   :  { %4381 = vmatmul.mubr.bf16.gmra.mrb[132].mxu1 %v8010_v25  ;;  %v6773_v25 = vld [vmem:[#allocation15 + $0x44] ss:$8 sps:$4 sm:$0xff]  }
 0x3cb   :  { %4388 = vmatprep.mubr.bf16.mxu1 %v8024_v20  ;;  %4576 = vmatprep.subr.bf16.mxu0 %v6773_v25  ;;  %v6777_v20 = vld [vmem:[#allocation15 + $0x60] ss:$8 sps:$4 sm:$0xff]  }
 0x3cc   :  { %4577 = vmatpush1.bf16.msra.mxu0 %v6771_v37 }
 0x3d2   :  { %4389 = vmatmul.mubr.bf16.gmra.mrb[136].mxu1 %v8022_v63  ;;  %v6776_v63 = vld [vmem:[#allocation15 + $0x54] ss:$8 sps:$4 sm:$0xff]  }
 0x3d3   :  { %4396 = vmatprep.mubr.bf16.mxu1 %v8036_v18  ;;  %4578 = vmatprep.subr.bf16.mxu0 %v6776_v63  ;;  %v6782_v18 = vld [vmem:[#allocation15 + $0x74] ss:$8 sps:$4 sm:$0xff]  }
 0x3d4   :  { %4579 = vmatpush1.bf16.msra.mxu0 %v6774_v17  ;;  %v6794_v17 = vld [vmem:[#allocation18 + $0x28] sm:$0xff]  }
 0x3d5   :  { %5856 = vmatpush3.bf16.msra.mxu1 %v6794_v17 }
 0x3da   :  { %4397 = vmatmul.mubr.bf16.gmra.mrb[140].mxu1 %v8034_v10  ;;  %v6779_v10 = vld [vmem:[#allocation15 + $0x64] ss:$8 sps:$4 sm:$0xff]  }
 0x3db   :  { %4404 = vmatprep.mubr.bf16.mxu1 %v8053_v21  ;;  %4580 = vmatprep.subr.bf16.mxu0 %v6779_v10  ;;  %v6780_v21 = vld [vmem:[#allocation15 + $0x70] ss:$8 sps:$4 sm:$0xff]  }
 0x3dc   :  { %4581 = vmatpush1.bf16.msra.mxu0 %v6777_v20  ;;  %v6795_v10 = vld [vmem:[#allocation18 + $0x70] sm:$0xff]  }
 0x3dd   :  { %4582 = vmatprep.subr.bf16.mxu0 %v6782_v18  ;;  %5857 = vmatprep.subr.bf16.mxu1 %v6795_v10 }
 0x3e0   :  { %4583 = vmatpush1.bf16.msra.mxu0 %v6780_v21 }
 0x3e2   :  { %4405 = vmatmul.mubr.bf16.gmra.mrb[144].mxu1 %v8051_v3 }
 0x41d   :  { %v5733_v12 = vpop.f32.mrb[108].mxu0 }
 0x41e   :  { %v5734_v3 = vpop.f32.mrb[109].mxu0 }
 0x41f   :  { %v8133_v7 = vadd.f32 %v5734_v3, %v5733_v12  ;;  %v5736_v39 = vpop.f32.mrb[110].mxu0  ;;  %v6796_v12 = vld [vmem:[#allocation18 + $0x30] sm:$0xff]  }
 0x420   :  { %v5737_v30 = vpop.f32.mrb[111].mxu0  ;;  %5858 = vmatpush3.bf16.msra.mxu1 %v6796_v12 }
 0x421   :  { %v8135_v28 = vadd.f32 %v5737_v30, %v5736_v39 }
 0x425   :  { %v5739_v49 = vpop.f32.mrb[112].mxu0 }
 0x426   :  { %v5740_v62 = vpop.f32.mrb[113].mxu0 }
 0x427   :  { %v8137_v51 = vadd.f32 %v5740_v62, %v5739_v49  ;;  %v5742_v32 = vpop.f32.mrb[114].mxu0 }
 0x428   :  { %v5743_v52 = vpop.f32.mrb[115].mxu0 }
 0x429   :  { %v8139_v35 = vadd.f32 %v5743_v52, %v5742_v32 }
 0x42d   :  { %v5745_v56 = vpop.f32.mrb[116].mxu0 }
 0x42e   :  { %v5746_v44 = vpop.f32.mrb[117].mxu0 }
 0x42f   :  { %v8141_v61 = vadd.f32 %v5746_v44, %v5745_v56  ;;  %v5748_v4 = vpop.f32.mrb[118].mxu0 }
 0x430   :  { %v5749_v6 = vpop.f32.mrb[119].mxu0 }
 0x431   :  { %v8143_v24 = vadd.f32 %v5749_v6, %v5748_v4 }
 0x435   :  { %v5751_v13 = vpop.f32.mrb[120].mxu0 }
 0x436   :  { %v5752_v33 = vpop.f32.mrb[121].mxu0 }
 0x437   :  { %v8145_v2 = vadd.f32 %v5752_v33, %v5751_v13  ;;  %v5754_v9 = vpop.f32.mrb[122].mxu0 }
 0x438   :  { %v5755_v43 = vpop.f32.mrb[123].mxu0 }
 0x439   :  { %v8147_v23 = vadd.f32 %v5755_v43, %v5754_v9 }
 0x43d   :  { %v5757_v55 = vpop.f32.mrb[124].mxu0 }
 0x43e   :  { %v5758_v14 = vpop.f32.mrb[125].mxu0 }
 0x43f   :  { %v8149_v58 = vadd.f32 %v5758_v14, %v5757_v55  ;;  %v5760_v59 = vpop.f32.mrb[126].mxu0 }
 0x440   :  { %v5761_v5 = vpop.f32.mrb[127].mxu0 }
 0x441   :  { %v8151_v11 = vadd.f32 %v5761_v5, %v5760_v59 }
 0x445   :  { %v5763_v31 = vpop.f32.mrb[128].mxu0 }
 0x446   :  { %v5764_v34 = vpop.f32.mrb[129].mxu0 }
 0x447   :  { %v5765_v8 = vadd.f32 %v5764_v34, %v5763_v31  ;;  %v5766_v15 = vpop.f32.mrb[130].mxu0 }
 0x448   :  { %v5767_v29 = vpop.f32.mrb[131].mxu0 }
 0x449   :  { %v5768_v22 = vadd.f32 %v5767_v29, %v5766_v15 }
 0x44d   :  { %v5769_v46 = vpop.f32.mrb[132].mxu0 }
 0x44e   :  { %v5770_v47 = vpop.f32.mrb[133].mxu0 }
 0x44f   :  { %v5771_v19 = vadd.f32 %v5770_v47, %v5769_v46  ;;  %v5772_v50 = vpop.f32.mrb[134].mxu0 }
 0x450   :  { %v5773_v27 = vpop.f32.mrb[135].mxu0 }
 0x451   :  { %v5774_v41 = vadd.f32 %v5773_v27, %v5772_v50 }
 0x455   :  { %v5775_v37 = vpop.f32.mrb[136].mxu0 }
 0x456   :  { %v5776_v25 = vpop.f32.mrb[137].mxu0 }
 0x457   :  { %v5777_v63 = vadd.f32 %v5776_v25, %v5775_v37  ;;  %v5778_v20 = vpop.f32.mrb[138].mxu0 }
 0x458   :  { %v5779_v18 = vpop.f32.mrb[139].mxu0 }
 0x459   :  { %v5780_v21 = vadd.f32 %v5779_v18, %v5778_v20 }
 0x45d   :  { %v5970_v3 = vpop.f32.mrb[100].mxu1 }
 0x45e   :  { %v4262_v39 = vadd.f32 %v5970_v3, %v8137_v51  ;;  %v3964_v30 = vpop.f32.mrb[101].mxu1 }
 0x45f   :  { %v4254_v49 = vadd.f32 %v8133_v7, %v3964_v30  ;;  %v5971_v62 = vpop.f32.mrb[102].mxu1 }
 0x460   :  { %v4265_v32 = vadd.f32 %v5971_v62, %v8139_v35  ;;  %v3967_v52 = vpop.f32.mrb[103].mxu1 }
 0x461   :  { %v4257_v56 = vadd.f32 %v8135_v28, %v3967_v52 }
 0x465   :  { %v5974_v44 = vpop.f32.mrb[104].mxu1 }
 0x466   :  { %v8158_v4 = vadd.f32 %v5974_v44, %v8145_v2  ;;  %v3980_v6 = vpop.f32.mrb[105].mxu1 }
 0x467   :  { %v4270_v13 = vadd.f32 %v8141_v61, %v3980_v6  ;;  %v5975_v33 = vpop.f32.mrb[106].mxu1 }
 0x468   :  { %v8162_v51 = vadd.f32 %v5975_v33, %v8147_v23  ;;  %v3983_v9 = vpop.f32.mrb[107].mxu1 }
 0x469   :  { %v4273_v7 = vadd.f32 %v8143_v24, %v3983_v9 }
 0x46d   :  { %v5978_v43 = vpop.f32.mrb[108].mxu1 }
 0x46e   :  { %v8165_v55 = vadd.f32 %v5978_v43, %v5765_v8  ;;  %v3996_v35 = vpop.f32.mrb[109].mxu1 }
 0x46f   :  { %v8168_v28 = vadd.f32 %v8149_v58, %v3996_v35  ;;  %v5979_v14 = vpop.f32.mrb[110].mxu1 }
 0x470   :  { %v8170_v2 = vadd.f32 %v5979_v14, %v5768_v22  ;;  %v3999_v59 = vpop.f32.mrb[111].mxu1 }
 0x471   :  { %v8173_v61 = vadd.f32 %v8151_v11, %v3999_v59 }
 0x475   :  { %v5982_v5 = vpop.f32.mrb[112].mxu1 }
 0x476   :  { %v8175_v23 = vadd.f32 %v5982_v5, %v5777_v63  ;;  %v4012_v60 = vpop.f32.mrb[113].mxu1 }
 0x477   :  { %v8177_v57 = vadd.f32 %v5771_v19, %v4012_v60  ;;  %v5983_v24 = vpop.f32.mrb[114].mxu1 }
 0x478   :  { %v8179_v48 = vadd.f32 %v5983_v24, %v5780_v21  ;;  %v4015_v31 = vpop.f32.mrb[115].mxu1 }
 0x479   :  { %v8181_v34 = vadd.f32 %v5774_v41, %v4015_v31 }
 0x47d   :  { %v5797_v58 = vpop.f32.mrb[116].mxu1 }
 0x47e   :  { %v5798_v42 = vpop.f32.mrb[117].mxu1 }
 0x47f   :  { %v5799_v8 = vadd.f32 %v5798_v42, %v5797_v58  ;;  %v5800_v15 = vpop.f32.mrb[118].mxu1 }
 0x480   :  { %v5801_v11 = vpop.f32.mrb[119].mxu1 }
 0x481   :  { %v4351_v29 = vadd.f32 %v5799_v8, %v4254_v49  ;;  %v5802_v22 = vadd.f32 %v5801_v11, %v5800_v15 }
 0x483   :  { %v4420_v53 = vadd.f32 %v8183_v26, %v4351_v29  ;;  %v4354_v40 = vadd.f32 %v5802_v22, %v4257_v56 }
 0x485   :  { %v4421_v46 = vadd.f32 %v8183_v26, %v4354_v40  ;;  %v5803_v47 = vpop.f32.mrb[120].mxu1  ;;  %v4436_v19 = vmax.f32 %v4420_v53, 0.0 }
 0x486   :  { %v5804_v54 = vpop.f32.mrb[121].mxu1 }
 0x487   :  { %v4437_v50 = vmax.f32 %v4421_v46, 0.0  ;;  %v5805_v16 = vadd.f32 %v5804_v54, %v5803_v47  ;;  %v5806_v27 = vpop.f32.mrb[122].mxu1 }
 0x488   :  { %v5807_v41 = vpop.f32.mrb[123].mxu1 }
 0x489   :  { %v4452_v45 = vpack.c.bf16 %v4437_v50, %v4436_v19  ;;  %v4359_v0 = vadd.f32 %v5805_v16, %v4262_v39  ;;  %v5808_v37 = vadd.f32 %v5807_v41, %v5806_v27 }
 0x48b   :  { %v4422_v25 = vadd.f32 %v8183_v26, %v4359_v0  ;;  %v4362_v17 = vadd.f32 %v5808_v37, %v4265_v32  ;;  %4601 = vmatmul.mubr.bf16.vlgmr.msra.gmra.mrb[140].mxu0 %v4452_v45 }
 0x48c   :  { %4610 = vmatprep.mubr.bf16.mxu0 %v7085_v1 }
 0x48d   :  { %v4423_v63 = vadd.f32 %v8183_v26, %v4362_v17  ;;  %v5809_v20 = vpop.f32.mrb[124].mxu1  ;;  %v4438_v18 = vmax.f32 %v4422_v25, 0.0 }
 0x48e   :  { %v5810_v10 = vpop.f32.mrb[125].mxu1 }
 0x48f   :  { %v4439_v21 = vmax.f32 %v4423_v63, 0.0  ;;  %v5811_v12 = vadd.f32 %v5810_v10, %v5809_v20  ;;  %v5812_v3 = vpop.f32.mrb[126].mxu1 }
 0x490   :  { %v5813_v30 = vpop.f32.mrb[127].mxu1 }
 0x491   :  { %v4367_v49 = vadd.f32 %v5811_v12, %v4270_v13  ;;  %v5814_v62 = vadd.f32 %v5813_v30, %v5812_v3  ;;  %v4453_v52 = vpack.c.bf16 %v4439_v21, %v4438_v18 }
 0x493   :  { %v4424_v39 = vadd.f32 %v8183_v26, %v4367_v49  ;;  %v4370_v56 = vadd.f32 %v5814_v62, %v4273_v7  ;;  %4611 = vmatmul.mubr.bf16.gmra.mrb[144].mxu0 %v4453_v52 }
 0x494   :  { %4620 = vmatprep.mubr.bf16.mxu0 %v7085_v1 }
 0x495   :  { %v4425_v32 = vadd.f32 %v8183_v26, %v4370_v56  ;;  %v5815_v44 = vpop.f32.mrb[128].mxu1  ;;  %v4440_v33 = vmax.f32 %v4424_v39, 0.0 }
 0x496   :  { %v5816_v6 = vpop.f32.mrb[129].mxu1 }
 0x497   :  { %v4441_v9 = vmax.f32 %v4425_v32, 0.0  ;;  %v5817_v43 = vadd.f32 %v5816_v6, %v5815_v44  ;;  %v5818_v35 = vpop.f32.mrb[130].mxu1 }
 0x498   :  { %v5819_v14 = vpop.f32.mrb[131].mxu1 }
 0x499   :  { %v4375_v59 = vadd.f32 %v5817_v43, %v8158_v4  ;;  %v5820_v13 = vadd.f32 %v5819_v14, %v5818_v35  ;;  %v4454_v5 = vpack.c.bf16 %v4441_v9, %v4440_v33 }
 0x49b   :  { %v4426_v60 = vadd.f32 %v8183_v26, %v4375_v59  ;;  %v4378_v7 = vadd.f32 %v5820_v13, %v8162_v51  ;;  %4621 = vmatmul.mubr.bf16.gmra.mrb[148].mxu0 %v4454_v5 }
 0x49c   :  { %4630 = vmatprep.mubr.bf16.mxu0 %v7085_v1 }
 0x49d   :  { %v4427_v24 = vadd.f32 %v8183_v26, %v4378_v7  ;;  %v5821_v31 = vpop.f32.mrb[132].mxu1  ;;  %v4442_v42 = vmax.f32 %v4426_v60, 0.0  ;;  %v6797_v60 = vld [vmem:[#allocation18 + $0x78] sm:$0xff]  }
 0x49e   :  { %v5822_v58 = vpop.f32.mrb[133].mxu1  ;;  %v6798_v7 = vld [vmem:[#allocation18 + $0x38] sm:$0xff]   ;;  %5859 = vmatprep.subr.bf16.mxu1 %v6797_v60 }
 0x49f   :  { %v4443_v8 = vmax.f32 %v4427_v24, 0.0  ;;  %v5823_v15 = vadd.f32 %v5822_v58, %v5821_v31  ;;  %v5824_v11 = vpop.f32.mrb[134].mxu1  ;;  %5860 = vmatpush3.bf16.msra.mxu1 %v6798_v7  ;;  %v6803_v24 = vld [vmem:[%s8371_s15 + $0x20] sm:$0xff]   ;;  %v6804_v31 = vld [vmem:[%s8371_s15 + $0x28] sm:$0xff]   ;;  %v4476_v58 = vld [vmem:[#allocation17] sm:$0x3] }
 0x4a0   :  { %v5825_v29 = vpop.f32.mrb[135].mxu1 }
 0x4a1   :  { %v4383_v4 = vadd.f32 %v5823_v15, %v8168_v28  ;;  %v5826_v22 = vadd.f32 %v5825_v29, %v5824_v11  ;;  %v4455_v53 = vpack.c.bf16 %v4443_v8, %v4442_v42  ;;  %v8237_v42 = vrot.slane %v4476_v58, %v7484_v36 }
 0x4a2   :  { %v8240_v8 = vrot.slane %v4476_v58, %v7489_v38 }
 0x4a3   :  { %v4428_v40 = vadd.f32 %v8183_v26, %v4383_v4  ;;  %v4386_v51 = vadd.f32 %v5826_v22, %v8173_v61  ;;  %4631 = vmatmul.mubr.bf16.gmra.mrb[152].mxu0 %v4455_v53 }
 0x4a4   :  { %4640 = vmatprep.mubr.bf16.mxu0 %v7085_v1 }
 0x4a5   :  { %v4429_v46 = vadd.f32 %v8183_v26, %v4386_v51  ;;  %v5827_v47 = vpop.f32.mrb[136].mxu1  ;;  %v4444_v19 = vmax.f32 %v4428_v40, 0.0 }
 0x4a6   :  { %v5828_v54 = vpop.f32.mrb[137].mxu1 }
 0x4a7   :  { %v4445_v50 = vmax.f32 %v4429_v46, 0.0  ;;  %v5829_v16 = vadd.f32 %v5828_v54, %v5827_v47  ;;  %v5830_v27 = vpop.f32.mrb[138].mxu1 }
 0x4a8   :  { %v5831_v41 = vpop.f32.mrb[139].mxu1 }
 0x4a9   :  { %v4391_v28 = vadd.f32 %v5829_v16, %v8165_v55  ;;  %v5832_v45 = vadd.f32 %v5831_v41, %v5830_v27  ;;  %v4456_v0 = vpack.c.bf16 %v4445_v50, %v4444_v19 }
 0x4ab   :  { %v4430_v37 = vadd.f32 %v8183_v26, %v4391_v28  ;;  %v4394_v61 = vadd.f32 %v5832_v45, %v8170_v2  ;;  %4641 = vmatmul.mubr.bf16.gmra.mrb[156].mxu0 %v4456_v0 }
 0x4ac   :  { %4650 = vmatprep.mubr.bf16.mxu0 %v7085_v1 }
 0x4ad   :  { %v4431_v25 = vadd.f32 %v8183_v26, %v4394_v61  ;;  %v5833_v17 = vpop.f32.mrb[140].mxu1  ;;  %v4446_v20 = vmax.f32 %v4430_v37, 0.0 }
 0x4ae   :  { %v5834_v63 = vpop.f32.mrb[141].mxu1 }
 0x4af   :  { %v4447_v10 = vmax.f32 %v4431_v25, 0.0  ;;  %v5835_v18 = vadd.f32 %v5834_v63, %v5833_v17  ;;  %v5836_v21 = vpop.f32.mrb[142].mxu1 }
 0x4b0   :  { %v5837_v12 = vpop.f32.mrb[143].mxu1 }
 0x4b1   :  { %v4399_v55 = vadd.f32 %v5835_v18, %v8177_v57  ;;  %v5838_v3 = vadd.f32 %v5837_v12, %v5836_v21  ;;  %v4457_v30 = vpack.c.bf16 %v4447_v10, %v4446_v20 }
 0x4b3   :  { %v4432_v49 = vadd.f32 %v8183_v26, %v4399_v55  ;;  %v4402_v2 = vadd.f32 %v5838_v3, %v8181_v34  ;;  %4651 = vmatmul.mubr.bf16.gmra.mrb[160].mxu0 %v4457_v30 }
 0x4b4   :  { %4660 = vmatprep.mubr.bf16.mxu0 %v7085_v1 }
 0x4b5   :  { %v4433_v62 = vadd.f32 %v8183_v26, %v4402_v2  ;;  %v5839_v52 = vpop.f32.mrb[144].mxu1  ;;  %v4448_v56 = vmax.f32 %v4432_v49, 0.0 }
 0x4b6   :  { %v5840_v39 = vpop.f32.mrb[145].mxu1 }
 0x4b7   :  { %v4449_v32 = vmax.f32 %v4433_v62, 0.0  ;;  %v5841_v44 = vadd.f32 %v5840_v39, %v5839_v52  ;;  %v5842_v6 = vpop.f32.mrb[146].mxu1 }
 0x4b8   :  { %v5843_v33 = vpop.f32.mrb[147].mxu1 }
 0x4b9   :  { %v4407_v57 = vadd.f32 %v5841_v44, %v8175_v23  ;;  %v5844_v9 = vadd.f32 %v5843_v33, %v5842_v6  ;;  %v4458_v43 = vpack.c.bf16 %v4449_v32, %v4448_v56  ;;  %v6799_v23 = vld [vmem:[%s8371_s15] sm:$0xff]  }
 0x4ba   :  { %5984 = vmatprep.subr.bf16.mxu0 %v6799_v23 }
 0x4bb   :  { %v4434_v35 = vadd.f32 %v8183_v26, %v4407_v57  ;;  %v4410_v34 = vadd.f32 %v5844_v9, %v8179_v48  ;;  %4661 = vmatmul.mubr.bf16.gmra.mrb[164].mxu0 %v4458_v43  ;;  %v6800_v48 = vld [vmem:[%s8371_s15 + $0x8] sm:$0xff]  }
 0x4bc   :  { %4670 = vmatprep.mubr.bf16.mxu0 %v7085_v1  ;;  %5985 = vmatpush3.bf16.msra.mxu0 %v6799_v23  ;;  %v6801_v1 = vld [vmem:[%s8371_s15 + $0x10] sm:$0xff]  }
 0x4bd   :  { %v4435_v14 = vadd.f32 %v8183_v26, %v4410_v34  ;;  %v4450_v59 = vmax.f32 %v4434_v35, 0.0  ;;  %5986 = vmatprep.subr.bf16.mxu0 %v6800_v48  ;;  %v6802_v26 = vld [vmem:[%s8371_s15 + $0x18] sm:$0xff]  }
 0x4bf   :  { %v4451_v13 = vmax.f32 %v4435_v14, 0.0 }
 0x4c0   :  { %5987 = vmatpush3.bf16.msra.mxu0 %v6800_v48 }
 0x4c1   :  { %v4459_v5 = vpack.c.bf16 %v4451_v13, %v4450_v59  ;;  %5988 = vmatprep.subr.bf16.mxu0 %v6801_v1 }
 0x4c3   :  { %4671 = vmatmul.mubr.bf16.gmra.mrb[168].mxu0 %v4459_v5 }
 0x4c4   :  { %5989 = vmatpush3.bf16.msra.mxu0 %v6801_v1 }
 0x4c5   :  { %5990 = vmatprep.subr.bf16.mxu0 %v6802_v26 }
 0x4c8   :  { %5991 = vmatpush3.bf16.msra.mxu0 %v6802_v26 }
 0x4c9   :  { %5992 = vmatprep.subr.bf16.mxu0 %v6803_v24 }
 0x4cc   :  { %5993 = vmatpush3.bf16.msra.mxu0 %v6803_v24 }
 0x4cd   :  { %5994 = vmatprep.subr.bf16.mxu0 %v6804_v31 }
 0x4d0   :  { %5995 = vmatpush3.bf16.msra.mxu0 %v6804_v31 }
 0x55e   :  { %v4602_v15 = vpop.f32.mrb[140].mxu0 }
 0x55f   :  { %v4603_v11 = vadd.f32 %v4602_v15, %v8237_v42  ;;  %v4604_v29 = vpop.f32.mrb[141].mxu0 }
 0x560   :  { %v4605_v4 = vadd.f32 %v4604_v29, %v8240_v8  ;;  %v4606_v22 = vpop.f32.mrb[142].mxu0 }
 0x561   :  { %v4607_v53 = vadd.f32 %v4606_v22, %v8237_v42  ;;  %v4608_v40 = vpop.f32.mrb[143].mxu0  ;;  %v4681_v46 = vmax.f32 %v4603_v11, 0.0 }
 0x562   :  { %v4609_v51 = vadd.f32 %v4608_v40, %v8240_v8  ;;  %v4682_v54 = vmax.f32 %v4605_v4, 0.0 }
 0x563   :  { %v4683_v47 = vmax.f32 %v4607_v53, 0.0 }
 0x564   :  { %v4684_v19 = vmax.f32 %v4609_v51, 0.0 }
 0x565   :  { %v4713_v50 = vpack.c.bf16 %v4683_v47, %v4681_v46 }
 0x566   :  { %v4714_v16 = vpack.c.bf16 %v4684_v19, %v4682_v54  ;;  %v4612_v38 = vpop.f32.mrb[144].mxu0 }
 0x567   :  { %v4613_v27 = vadd.f32 %v4612_v38, %v8237_v42  ;;  %v4614_v41 = vpop.f32.mrb[145].mxu0 }
 0x568   :  { %v4615_v28 = vadd.f32 %v4614_v41, %v8240_v8  ;;  %v4616_v45 = vpop.f32.mrb[146].mxu0  ;;  %4896 = vmatprep.mubr.bf16.mxu1 %v4714_v16 }
 0x569   :  { %v4617_v0 = vadd.f32 %v4616_v45, %v8237_v42  ;;  %v4618_v37 = vpop.f32.mrb[147].mxu0  ;;  %4897 = vmatmul.mubr.bf16.vlgmr.msra.gmra.mrb[148].mxu1 %v4713_v50  ;;  %v4685_v25 = vmax.f32 %v4613_v27, 0.0 }
 0x56a   :  { %v4619_v61 = vadd.f32 %v4618_v37, %v8240_v8  ;;  %v4686_v63 = vmax.f32 %v4615_v28, 0.0 }
 0x56b   :  { %v4687_v17 = vmax.f32 %v4617_v0, 0.0 }
 0x56c   :  { %v4688_v20 = vmax.f32 %v4619_v61, 0.0 }
 0x56d   :  { %v4715_v10 = vpack.c.bf16 %v4687_v17, %v4685_v25 }
 0x56e   :  { %v4716_v18 = vpack.c.bf16 %v4688_v20, %v4686_v63  ;;  %v4622_v21 = vpop.f32.mrb[148].mxu0 }
 0x56f   :  { %v4623_v12 = vadd.f32 %v4622_v21, %v8237_v42  ;;  %v4624_v55 = vpop.f32.mrb[149].mxu0 }
 0x570   :  { %v4625_v3 = vadd.f32 %v4624_v55, %v8240_v8  ;;  %v4626_v30 = vpop.f32.mrb[150].mxu0  ;;  %4904 = vmatprep.mubr.bf16.mxu1 %v4716_v18 }
 0x571   :  { %v4627_v49 = vadd.f32 %v4626_v30, %v8237_v42  ;;  %v4628_v2 = vpop.f32.mrb[151].mxu0  ;;  %4905 = vmatmul.mubr.bf16.gmra.mrb[152].mxu1 %v4715_v10  ;;  %v4689_v52 = vmax.f32 %v4623_v12, 0.0 }
 0x572   :  { %v4629_v62 = vadd.f32 %v4628_v2, %v8240_v8  ;;  %v4690_v56 = vmax.f32 %v4625_v3, 0.0 }
 0x573   :  { %v4691_v39 = vmax.f32 %v4627_v49, 0.0 }
 0x574   :  { %v4692_v32 = vmax.f32 %v4629_v62, 0.0 }
 0x575   :  { %v4717_v44 = vpack.c.bf16 %v4691_v39, %v4689_v52 }
 0x576   :  { %v4718_v6 = vpack.c.bf16 %v4692_v32, %v4690_v56  ;;  %v4632_v33 = vpop.f32.mrb[152].mxu0 }
 0x577   :  { %v4633_v57 = vadd.f32 %v4632_v33, %v8237_v42  ;;  %v4634_v9 = vpop.f32.mrb[153].mxu0 }
 0x578   :  { %v4635_v43 = vadd.f32 %v4634_v9, %v8240_v8  ;;  %v4636_v35 = vpop.f32.mrb[154].mxu0  ;;  %4912 = vmatprep.mubr.bf16.mxu1 %v4718_v6 }
 0x579   :  { %v4637_v34 = vadd.f32 %v4636_v35, %v8237_v42  ;;  %v4638_v14 = vpop.f32.mrb[155].mxu0  ;;  %4913 = vmatmul.mubr.bf16.gmra.mrb[156].mxu1 %v4717_v44  ;;  %v4693_v13 = vmax.f32 %v4633_v57, 0.0 }
 0x57a   :  { %v4639_v59 = vadd.f32 %v4638_v14, %v8240_v8  ;;  %v4694_v60 = vmax.f32 %v4635_v43, 0.0 }
 0x57b   :  { %v4695_v5 = vmax.f32 %v4637_v34, 0.0 }
 0x57c   :  { %v4696_v7 = vmax.f32 %v4639_v59, 0.0 }
 0x57d   :  { %v4719_v23 = vpack.c.bf16 %v4695_v5, %v4693_v13  ;;  %v6805_v5 = vld [vmem:[%s8371_s15 + $0x30] sm:$0xff]  }
 0x57e   :  { %v4720_v48 = vpack.c.bf16 %v4696_v7, %v4694_v60  ;;  %v4642_v1 = vpop.f32.mrb[156].mxu0  ;;  %5996 = vmatprep.subr.bf16.mxu0 %v6805_v5  ;;  %v8283_v60 = vld [vmem:[%s8370_s14] ss:$0 sm:$0xff] }
 0x57f   :  { %v4643_v26 = vadd.f32 %v4642_v1, %v8237_v42  ;;  %v4644_v24 = vpop.f32.mrb[157].mxu0  ;;  %5997 = vmatpush3.bf16.msra.mxu0 %v6805_v5 }
 0x580   :  { %v4645_v31 = vadd.f32 %v4644_v24, %v8240_v8  ;;  %v4646_v58 = vpop.f32.mrb[158].mxu0  ;;  %4920 = vmatprep.mubr.bf16.mxu1 %v4720_v48 }
 0x581   :  { %v4647_v15 = vadd.f32 %v4646_v58, %v8237_v42  ;;  %v4648_v11 = vpop.f32.mrb[159].mxu0  ;;  %4921 = vmatmul.mubr.bf16.gmra.mrb[160].mxu1 %v4719_v23  ;;  %v4697_v4 = vmax.f32 %v4643_v26, 0.0 }
 0x582   :  { %v4649_v29 = vadd.f32 %v4648_v11, %v8240_v8  ;;  %v4698_v53 = vmax.f32 %v4645_v31, 0.0 }
 0x583   :  { %v4699_v22 = vmax.f32 %v4647_v15, 0.0 }
 0x584   :  { %v4700_v40 = vmax.f32 %v4649_v29, 0.0 }
 0x585   :  { %v4721_v51 = vpack.c.bf16 %v4699_v22, %v4697_v4 }
 0x586   :  { %v4722_v46 = vpack.c.bf16 %v4700_v40, %v4698_v53  ;;  %v4652_v47 = vpop.f32.mrb[160].mxu0 }
 0x587   :  { %v4653_v54 = vadd.f32 %v4652_v47, %v8237_v42  ;;  %v4654_v19 = vpop.f32.mrb[161].mxu0 }
 0x588   :  { %v4655_v50 = vadd.f32 %v4654_v19, %v8240_v8  ;;  %v4656_v16 = vpop.f32.mrb[162].mxu0  ;;  %4928 = vmatprep.mubr.bf16.mxu1 %v4722_v46 }
 0x589   :  { %v4657_v38 = vadd.f32 %v4656_v16, %v8237_v42  ;;  %v4658_v27 = vpop.f32.mrb[163].mxu0  ;;  %4929 = vmatmul.mubr.bf16.gmra.mrb[164].mxu1 %v4721_v51  ;;  %v4701_v28 = vmax.f32 %v4653_v54, 0.0 }
 0x58a   :  { %v4659_v41 = vadd.f32 %v4658_v27, %v8240_v8  ;;  %v4702_v0 = vmax.f32 %v4655_v50, 0.0 }
 0x58b   :  { %v4703_v45 = vmax.f32 %v4657_v38, 0.0 }
 0x58c   :  { %v4704_v37 = vmax.f32 %v4659_v41, 0.0 }
 0x58d   :  { %v4723_v61 = vpack.c.bf16 %v4703_v45, %v4701_v28 }
 0x58e   :  { %v4724_v25 = vpack.c.bf16 %v4704_v37, %v4702_v0  ;;  %v4662_v17 = vpop.f32.mrb[164].mxu0 }
 0x58f   :  { %v4663_v63 = vadd.f32 %v4662_v17, %v8237_v42  ;;  %v4664_v20 = vpop.f32.mrb[165].mxu0 }
 0x590   :  { %v4665_v10 = vadd.f32 %v4664_v20, %v8240_v8  ;;  %v4666_v18 = vpop.f32.mrb[166].mxu0  ;;  %4936 = vmatprep.mubr.bf16.mxu1 %v4724_v25 }
 0x591   :  { %v4667_v21 = vadd.f32 %v4666_v18, %v8237_v42  ;;  %v4668_v12 = vpop.f32.mrb[167].mxu0  ;;  %4937 = vmatmul.mubr.bf16.gmra.mrb[168].mxu1 %v4723_v61  ;;  %v4705_v3 = vmax.f32 %v4663_v63, 0.0 }
 0x592   :  { %v4669_v55 = vadd.f32 %v4668_v12, %v8240_v8  ;;  %v4706_v49 = vmax.f32 %v4665_v10, 0.0 }
 0x593   :  { %v4707_v30 = vmax.f32 %v4667_v21, 0.0 }
 0x594   :  { %v4708_v2 = vmax.f32 %v4669_v55, 0.0 }
 0x595   :  { %v4725_v62 = vpack.c.bf16 %v4707_v30, %v4705_v3 }
 0x596   :  { %v4726_v52 = vpack.c.bf16 %v4708_v2, %v4706_v49  ;;  %v4672_v39 = vpop.f32.mrb[168].mxu0 }
 0x597   :  { %v4673_v56 = vadd.f32 %v4672_v39, %v8237_v42  ;;  %v4674_v32 = vpop.f32.mrb[169].mxu0 }
 0x598   :  { %v4675_v44 = vadd.f32 %v4674_v32, %v8240_v8  ;;  %v4676_v6 = vpop.f32.mrb[170].mxu0  ;;  %4944 = vmatprep.mubr.bf16.mxu1 %v4726_v52 }
 0x599   :  { %v4677_v33 = vadd.f32 %v4676_v6, %v8237_v42  ;;  %v4678_v57 = vpop.f32.mrb[171].mxu0  ;;  %4945 = vmatmul.mubr.bf16.gmra.mrb[172].mxu1 %v4725_v62  ;;  %v4709_v43 = vmax.f32 %v4673_v56, 0.0  ;;  %v6806_v42 = vld [vmem:[%s8371_s15 + $0x38] sm:$0xff]  }
 0x59a   :  { %v4679_v9 = vadd.f32 %v4678_v57, %v8240_v8  ;;  %v4710_v34 = vmax.f32 %v4675_v44, 0.0  ;;  %5998 = vmatprep.subr.bf16.mxu0 %v6806_v42 }
 0x59b   :  { %v4711_v35 = vmax.f32 %v4677_v33, 0.0  ;;  %5999 = vmatpush3.bf16.msra.mxu0 %v6806_v42 }
 0x59c   :  { %v4712_v14 = vmax.f32 %v4679_v9, 0.0 }
 0x59d   :  { %v4727_v59 = vpack.c.bf16 %v4711_v35, %v4709_v43 }
 0x59e   :  { %v4728_v13 = vpack.c.bf16 %v4712_v14, %v4710_v34 }
 0x5a0   :  { %4952 = vmatprep.mubr.bf16.mxu1 %v4728_v13 }
 0x5a1   :  { %4953 = vmatmul.mubr.bf16.gmra.mrb[176].mxu1 %v4727_v59 }
 0x63c   :  { %v5861_v8 = vpop.f32.mrb[148].mxu1 }
 0x63d   :  { %v5862_v7 = vpop.f32.mrb[149].mxu1 }
 0x63e   :  { %v5863_v23 = vadd.f32 %v5862_v7, %v5861_v8  ;;  %v5864_v48 = vpop.f32.mrb[150].mxu1 }
 0x63f   :  { %v5865_v1 = vpop.f32.mrb[151].mxu1 }
 0x640   :  { %v4899_v26 = vadd.f32 %v5863_v23, %v8283_v60  ;;  %v5866_v24 = vadd.f32 %v5865_v1, %v5864_v48 }
 0x642   :  { %v4902_v31 = vadd.f32 %v5866_v24, %v8283_v60  ;;  %v4961_v58 = vmax.f32 %v4899_v26, 0.0 }
 0x644   :  { %v4962_v15 = vmax.f32 %v4902_v31, 0.0  ;;  %v5867_v11 = vpop.f32.mrb[152].mxu1 }
 0x645   :  { %v5868_v29 = vpop.f32.mrb[153].mxu1 }
 0x646   :  { %v5869_v4 = vadd.f32 %v5868_v29, %v5867_v11  ;;  %v5870_v22 = vpop.f32.mrb[154].mxu1  ;;  %v4977_v53 = vpack.c.bf16 %v4962_v15, %v4961_v58 }
 0x647   :  { %v5871_v40 = vpop.f32.mrb[155].mxu1 }
 0x648   :  { %v4907_v51 = vadd.f32 %v5869_v4, %v8283_v60  ;;  %v5872_v46 = vadd.f32 %v5871_v40, %v5870_v22  ;;  %6000 = vmatprep.mubr.bf16.mxu0 %v4977_v53 }
 0x64a   :  { %v4910_v47 = vadd.f32 %v5872_v46, %v8283_v60  ;;  %v4963_v54 = vmax.f32 %v4907_v51, 0.0 }
 0x64c   :  { %v4964_v19 = vmax.f32 %v4910_v47, 0.0  ;;  %v5873_v50 = vpop.f32.mrb[156].mxu1 }
 0x64d   :  { %v5874_v16 = vpop.f32.mrb[157].mxu1 }
 0x64e   :  { %v4978_v38 = vpack.c.bf16 %v4964_v19, %v4963_v54  ;;  %v5875_v27 = vadd.f32 %v5874_v16, %v5873_v50  ;;  %v5876_v41 = vpop.f32.mrb[158].mxu1 }
 0x64f   :  { %v5877_v28 = vpop.f32.mrb[159].mxu1 }
 0x650   :  { %v4915_v45 = vadd.f32 %v5875_v27, %v8283_v60  ;;  %v5878_v0 = vadd.f32 %v5877_v28, %v5876_v41  ;;  %6001 = vmatmul.mubr.bf16.vlgmr.msra.gmra.mrb[172].mxu0 %v4978_v38  ;;  %v7086_v28 = vmov 0.0  }
 0x651   :  { %6016 = vmatprep.subr.bf16.mxu1 %v7086_v28  ;;  %6032 = vmatprep.mubr.msk.bf16.mxu1 %vm7087_vm2, %v7086_v28 }
 0x652   :  { %v4918_v37 = vadd.f32 %v5878_v0, %v8283_v60  ;;  %v4965_v61 = vmax.f32 %v4915_v45, 0.0  ;;  %v5178_v45 = vld [vmem:[#allocation2] sm:$0x1] }
 0x653   :  { %5181 = vperm.xlu0 %6317, %v5178_v45   ;;  %v8306_v0 = vld [vmem:[%s8372_s16] ss:$0 sm:$0xff] }
 0x654   :  { %v4966_v25 = vmax.f32 %v4918_v37, 0.0  ;;  %v5879_v17 = vpop.f32.mrb[160].mxu1 }
 0x655   :  { %v5880_v63 = vpop.f32.mrb[161].mxu1 }
 0x656   :  { %v5881_v20 = vadd.f32 %v5880_v63, %v5879_v17  ;;  %v5882_v10 = vpop.f32.mrb[162].mxu1  ;;  %v4979_v18 = vpack.c.bf16 %v4966_v25, %v4965_v61 }
 0x657   :  { %v5883_v21 = vpop.f32.mrb[163].mxu1 }
 0x658   :  { %v4923_v12 = vadd.f32 %v5881_v20, %v8283_v60  ;;  %v5884_v55 = vadd.f32 %v5883_v21, %v5882_v10  ;;  %6004 = vmatprep.mubr.bf16.mxu0 %v4979_v18 }
 0x65a   :  { %v4926_v3 = vadd.f32 %v5884_v55, %v8283_v60  ;;  %v4967_v30 = vmax.f32 %v4923_v12, 0.0 }
 0x65c   :  { %v4968_v49 = vmax.f32 %v4926_v3, 0.0  ;;  %v5885_v2 = vpop.f32.mrb[164].mxu1 }
 0x65d   :  { %v5886_v62 = vpop.f32.mrb[165].mxu1 }
 0x65e   :  { %v5887_v52 = vadd.f32 %v5886_v62, %v5885_v2  ;;  %v5888_v39 = vpop.f32.mrb[166].mxu1  ;;  %v4980_v56 = vpack.c.bf16 %v4968_v49, %v4967_v30 }
 0x65f   :  { %v5889_v32 = vpop.f32.mrb[167].mxu1 }
 0x660   :  { %v4931_v44 = vadd.f32 %v5887_v52, %v8283_v60  ;;  %v5890_v6 = vadd.f32 %v5889_v32, %v5888_v39  ;;  %6005 = vmatmul.mubr.bf16.gmra.mrb[176].mxu0 %v4980_v56 }
 0x662   :  { %v4934_v33 = vadd.f32 %v5890_v6, %v8283_v60  ;;  %v4969_v57 = vmax.f32 %v4931_v44, 0.0 }
 0x664   :  { %v4970_v9 = vmax.f32 %v4934_v33, 0.0  ;;  %v5891_v43 = vpop.f32.mrb[168].mxu1 }
 0x665   :  { %v5892_v35 = vpop.f32.mrb[169].mxu1 }
 0x666   :  { %v5893_v34 = vadd.f32 %v5892_v35, %v5891_v43  ;;  %v5894_v14 = vpop.f32.mrb[170].mxu1  ;;  %v4981_v59 = vpack.c.bf16 %v4970_v9, %v4969_v57 }
 0x667   :  { %v5895_v13 = vpop.f32.mrb[171].mxu1 }
 0x668   :  { %v4939_v5 = vadd.f32 %v5893_v34, %v8283_v60  ;;  %v5896_v42 = vadd.f32 %v5895_v13, %v5894_v14  ;;  %6008 = vmatprep.mubr.bf16.mxu0 %v4981_v59 }
 0x66a   :  { %v4942_v8 = vadd.f32 %v5896_v42, %v8283_v60  ;;  %v4971_v7 = vmax.f32 %v4939_v5, 0.0 }
 0x66c   :  { %v4972_v23 = vmax.f32 %v4942_v8, 0.0  ;;  %v5897_v48 = vpop.f32.mrb[172].mxu1 }
 0x66d   :  { %v5898_v1 = vpop.f32.mrb[173].mxu1 }
 0x66e   :  { %v5899_v26 = vadd.f32 %v5898_v1, %v5897_v48  ;;  %v5900_v24 = vpop.f32.mrb[174].mxu1  ;;  %v4982_v31 = vpack.c.bf16 %v4972_v23, %v4971_v7 }
 0x66f   :  { %v5901_v58 = vpop.f32.mrb[175].mxu1 }
 0x670   :  { %v4947_v15 = vadd.f32 %v5899_v26, %v8283_v60  ;;  %v5902_v11 = vadd.f32 %v5901_v58, %v5900_v24  ;;  %6009 = vmatmul.mubr.bf16.gmra.mrb[180].mxu0 %v4982_v31 }
 0x672   :  { %v4950_v29 = vadd.f32 %v5902_v11, %v8283_v60  ;;  %v4973_v4 = vmax.f32 %v4947_v15, 0.0 }
 0x674   :  { %v4974_v22 = vmax.f32 %v4950_v29, 0.0  ;;  %v5903_v53 = vpop.f32.mrb[176].mxu1 }
 0x675   :  { %v5904_v40 = vpop.f32.mrb[177].mxu1 }
 0x676   :  { %v5905_v51 = vadd.f32 %v5904_v40, %v5903_v53  ;;  %v5906_v46 = vpop.f32.mrb[178].mxu1  ;;  %v4983_v47 = vpack.c.bf16 %v4974_v22, %v4973_v4 }
 0x677   :  { %v5907_v54 = vpop.f32.mrb[179].mxu1 }
 0x678   :  { %v4955_v19 = vadd.f32 %v5905_v51, %v8283_v60  ;;  %v5908_v50 = vadd.f32 %v5907_v54, %v5906_v46  ;;  %6012 = vmatprep.mubr.bf16.mxu0 %v4983_v47 }
 0x67a   :  { %v4958_v16 = vadd.f32 %v5908_v50, %v8283_v60  ;;  %v4975_v38 = vmax.f32 %v4955_v19, 0.0 }
 0x67c   :  { %v4976_v27 = vmax.f32 %v4958_v16, 0.0 }
 0x67e   :  { %v4984_v41 = vpack.c.bf16 %v4976_v27, %v4975_v38 }
 0x680   :  { %6013 = vmatmul.mubr.bf16.gmra.mrb[184].mxu0 %v4984_v41 }
 0x723   :  { %v6002_v37 = vpop.f32.mrb[172].mxu0 }
 0x724   :  { %v5099_v60 = vadd.f32 %v6002_v37, %v8306_v0  ;;  %v5090_v61 = vpop.f32.mrb[173].mxu0 }
 0x725   :  { %v5091_v25 = vadd.f32 %v8306_v0, %v5090_v61  ;;  %v6003_v17 = vpop.f32.mrb[174].mxu0 }
 0x726   :  { %v5102_v63 = vadd.f32 %v6003_v17, %v8306_v0  ;;  %v5093_v20 = vpop.f32.mrb[175].mxu0  ;;  %v5155_v18 = vmax.f32 %v5099_v60, 0.0 }
 0x727   :  { %v5094_v10 = vadd.f32 %v8306_v0, %v5093_v20  ;;  %v5153_v12 = vmax.f32 %v5091_v25, 0.0  ;;  %v5182_v25 = vpop.permute.xlu0 %5181 }
 0x728   :  { %v5156_v21 = vmax.f32 %v5102_v63, 0.0  ;;  %v5187_v17 = vrot.slane %v5182_v25, %v7484_v36 }
 0x729   :  { %v5154_v55 = vmax.f32 %v5094_v10, 0.0 }
 0x72a   :  { %v5170_v3 = vpack.c.bf16 %v5156_v21, %v5155_v18 }
 0x72b   :  { %v5169_v30 = vpack.c.bf16 %v5154_v55, %v5153_v12 }
 0x72c   :  { %v5196_v32 = vsel %vm5188_vm3, %v5170_v3, 0 }
 0x72d   :  { %v5193_v49 = vsel %vm5188_vm3, %v5169_v30, 0 }
 0x72e   :  { %6017 = vmatpush3.bf16.xpose.msra.mxu1 %v5193_v49 }
 0x72f   :  { %6018 = vmatprep.subr.bf16.mxu1 %v7086_v28 }
 0x733   :  { %v6006_v2 = vpop.f32.mrb[176].mxu0 }
 0x734   :  { %v5115_v62 = vadd.f32 %v6006_v2, %v8306_v0  ;;  %v5106_v52 = vpop.f32.mrb[177].mxu0 }
 0x735   :  { %v5107_v39 = vadd.f32 %v8306_v0, %v5106_v52  ;;  %v6007_v56 = vpop.f32.mrb[178].mxu0 }
 0x736   :  { %v5118_v44 = vadd.f32 %v6007_v56, %v8306_v0  ;;  %v5109_v6 = vpop.f32.mrb[179].mxu0  ;;  %6019 = vmatpush3.bf16.xpose.msra.mxu1 %v5196_v32  ;;  %v5159_v57 = vmax.f32 %v5115_v62, 0.0 }
 0x737   :  { %v5110_v33 = vadd.f32 %v8306_v0, %v5109_v6  ;;  %6020 = vmatprep.subr.bf16.mxu1 %v7086_v28  ;;  %v5157_v43 = vmax.f32 %v5107_v39, 0.0 }
 0x738   :  { %v5160_v9 = vmax.f32 %v5118_v44, 0.0 }
 0x739   :  { %v5158_v35 = vmax.f32 %v5110_v33, 0.0 }
 0x73a   :  { %v5172_v34 = vpack.c.bf16 %v5160_v9, %v5159_v57 }
 0x73b   :  { %v5171_v14 = vpack.c.bf16 %v5158_v35, %v5157_v43 }
 0x73c   :  { %v5202_v23 = vsel %vm5188_vm3, %v5172_v34, 0 }
 0x73d   :  { %v5199_v59 = vsel %vm5188_vm3, %v5171_v14, 0 }
 0x73e   :  { %6021 = vmatpush3.bf16.xpose.msra.mxu1 %v5199_v59 }
 0x73f   :  { %6022 = vmatprep.subr.bf16.mxu1 %v7086_v28 }
 0x743   :  { %v6010_v13 = vpop.f32.mrb[180].mxu0 }
 0x744   :  { %v5131_v5 = vadd.f32 %v6010_v13, %v8306_v0  ;;  %v5122_v42 = vpop.f32.mrb[181].mxu0 }
 0x745   :  { %v5123_v8 = vadd.f32 %v8306_v0, %v5122_v42  ;;  %v6011_v7 = vpop.f32.mrb[182].mxu0 }
 0x746   :  { %v5134_v48 = vadd.f32 %v6011_v7, %v8306_v0  ;;  %v5125_v1 = vpop.f32.mrb[183].mxu0  ;;  %6023 = vmatpush3.bf16.xpose.msra.mxu1 %v5202_v23  ;;  %v5163_v24 = vmax.f32 %v5131_v5, 0.0 }
 0x747   :  { %v5126_v26 = vadd.f32 %v8306_v0, %v5125_v1  ;;  %6024 = vmatprep.subr.bf16.mxu1 %v7086_v28  ;;  %v5161_v58 = vmax.f32 %v5123_v8, 0.0 }
 0x748   :  { %v5164_v31 = vmax.f32 %v5134_v48, 0.0 }
 0x749   :  { %v5162_v15 = vmax.f32 %v5126_v26, 0.0 }
 0x74a   :  { %v5174_v11 = vpack.c.bf16 %v5164_v31, %v5163_v24 }
 0x74b   :  { %v5173_v29 = vpack.c.bf16 %v5162_v15, %v5161_v58 }
 0x74c   :  { %v5208_v47 = vsel %vm5188_vm3, %v5174_v11, 0 }
 0x74d   :  { %v5205_v4 = vsel %vm5188_vm3, %v5173_v29, 0 }
 0x74e   :  { %6025 = vmatpush3.bf16.xpose.msra.mxu1 %v5205_v4 }
 0x74f   :  { %6026 = vmatprep.subr.bf16.mxu1 %v7086_v28 }
 0x753   :  { %v6014_v22 = vpop.f32.mrb[184].mxu0 }
 0x754   :  { %v5147_v53 = vadd.f32 %v6014_v22, %v8306_v0  ;;  %v5138_v40 = vpop.f32.mrb[185].mxu0 }
 0x755   :  { %v5139_v51 = vadd.f32 %v8306_v0, %v5138_v40  ;;  %v6015_v46 = vpop.f32.mrb[186].mxu0 }
 0x756   :  { %v5150_v54 = vadd.f32 %v6015_v46, %v8306_v0  ;;  %v5141_v19 = vpop.f32.mrb[187].mxu0  ;;  %6027 = vmatpush3.bf16.xpose.msra.mxu1 %v5208_v47  ;;  %v5167_v16 = vmax.f32 %v5147_v53, 0.0 }
 0x757   :  { %v5142_v50 = vadd.f32 %v8306_v0, %v5141_v19  ;;  %6028 = vmatprep.subr.bf16.mxu1 %v7086_v28  ;;  %v5165_v27 = vmax.f32 %v5139_v51, 0.0  ;;  %v5177_v0 = vld [vmem:[%s8373_s17] sm:$0x1]  ;;  %s7031_s17 = scalar_lea.vmem %s5269_s12, 16 }
 0x758   :  { %v5168_v38 = vmax.f32 %v5150_v54, 0.0  ;;  %p7032_p10 = scmp.ne.s32.totalorder %s5269_s12, %s7031_s17  ;;  %p7037_p12 = scmp.lt.s32.totalorder %s7035_s7, %s7031_s17 }
 0x759   :  { %v5166_v41 = vmax.f32 %v5142_v50, 0.0 }
 0x75a   :  { %v5176_v45 = vpack.c.bf16 %v5168_v38, %v5167_v16  ;;  %p7038_p13 = por %p7037_p12, %p7036_p11 }
 0x75b   :  { %v5175_v37 = vpack.c.bf16 %v5166_v41, %v5165_v27 }
 0x75c   :  { %v5214_v61 = vsel %vm5188_vm3, %v5176_v45, 0  ;;  %p7039_p0 = pnand %p7038_p13, %p7032_p10 }
 0x75d   :  { %v5211_v60 = vsel %vm5188_vm3, %v5175_v37, 0 }
 0x75e   :  { %6029 = vmatpush3.bf16.xpose.msra.mxu1 %v5211_v60 }
 0x75f   :  { %6030 = vmatprep.subr.bf16.mxu1 %v7086_v28 }
 0x766   :  { %6031 = vmatpush3.bf16.xpose.msra.mxu1 %v5214_v61 }
 0x76d   :  { %6033 = vmatmul.mubr.msk.bf16.vlgmr.msra.gmra.mrb[180].mxu1 %vm5188_vm3, %v5177_v0 }
 0x840   :  { %v5250_v63 = vpop.f32.mrb[180].mxu1 }
 0x841   :  { %v5251_v20 = vadd.f32 %v5250_v63, %v5187_v17  ;;  %v6034_v10 = vpop.f32.mrb[181].mxu1 }
 0x842   :  { %v5253_v18 = vpop.f32.mrb[182].mxu1 }
 0x843   :  { %v5256_v21 = vsub.f32 0.0, %v5251_v20  ;;  %v6035_v12 = vpop.f32.mrb[183].mxu1 }
 0x845   :  { %v5257_v55 = vmul.f32 1.442695, %v5256_v21 }
 0x847   :  { %6807 = vpow2.f32 %v5257_v55 }
 0x851   :  { %v6808_v28 = vpop.eup %6807 }
 0x852   :  { %v5259_v3 = vadd.f32 1.0, %v6808_v28 }
 0x854   :  { %6809 = vrcp.f32 %v5259_v3 }
 0x85e   :  { %v6810_v30 = vpop.eup %6809 }
 0x85f   :  { %5261 = vst [vmem:[#allocation20] sm:$0x1] %v6810_v30 }
 0x860   :  { %7042 = shalt.err (!%p7039_p0)
}
 0x861   :  { %s7043_s22 = scalar_lea.hbm %s8375_s19, 16 }
 0x862   :  { %p7044_p1 = scmp.ne.s32.totalorder %s8375_s19, %s7043_s22  ;;  %p7047_p2 = scmp.lt.u32.totalorder %s7043_s22, %s8375_s19 }
 0x864   :  { %p7049_p3 = pnand %p7047_p2, %p7044_p1 }
 0x866   :  { %7052 = shalt.err (!%p7049_p3)
}
 0x867   :  { %5271 = dma.vmem_to_hbm [thread:$0]  %s5269_s12, 16, %s8375_s19, [#allocation5]  }
 0x868   :  { %7065 = dma.done.wait [#allocation5], 16  }
 0x869   :  { %7066 = vsyncadd [#allocation5], 4294967280 }
 0x86a   :  { %5275 = vsyncpa [#allocation4], 1 }
 0x86b   :  { %5276 = vsyncpa [#allocation7], 1 }
 0x86c   :  { %5277 = vsyncpa [#allocation10], 1 }
 0x86d   :  { %5278 = vsyncpa [#allocation13], 1 }
 0x86e   :  { %5279 = vsyncpa [#allocation16], 1 }
 0x86f   :  { %5280 = vsyncpa [#allocation19], 1 }
 0x870   :  { %5281 = vsyncpa [#allocation5], 1 }

// kernel: tpu_custom_call.1
= control target key start
LH: loop header
LB: loop body
LE: loop exit
PB: predicated region body
PF: predicated region fallthrough
CT: control target
= control target key end

     0   :  { %s8356_s0 = inlined_call_operand.vmem [shape: bf16[128,10], index: 0, kind: input, shape index: {}]   ;;  %s8357_s1 = inlined_call_operand.vmem [shape: bf16[128,10], index: 1, kind: input, shape index: {}]   ;;  %s8358_s2 = inlined_call_operand.hbm [shape: bf16[10,1024], index: 2, kind: input, shape index: {}]   ;;  %s8359_s3 = inlined_call_operand.hbm [shape: f32[1,1024], index: 3, kind: input, shape index: {}]   ;;  %s8360_s4 = inlined_call_operand.hbm [shape: bf16[1024,512], index: 4, kind: input, shape index: {}]   ;;  %s8361_s5 = inlined_call_operand.hbm [shape: f32[1,512], index: 5, kind: input, shape index: {}]   ;;  %s8362_s6 = inlined_call_operand.hbm [shape: bf16[10,128], index: 6, kind: input, shape index: {}]   ;;  %s8363_s7 = inlined_call_operand.vmem [shape: f32[1,128], index: 7, kind: input, shape index: {}]   ;;  %s8364_s8 = inlined_call_operand.vmem [shape: bf16[512,128], index: 8, kind: input, shape index: {}]   ;;  %s8365_s9 = inlined_call_operand.hbm [shape: bf16[128,128], index: 9, kind: input, shape index: {}]   ;;  %s8366_s10 = inlined_call_operand.hbm [shape: f32[1,128], index: 10, kind: input, shape index: {}]   ;;  %s8367_s11 = inlined_call_operand.hbm [shape: bf16[128,256], index: 11, kind: input, shape index: {}]   ;;  %s8368_s12 = inlined_call_operand.hbm [shape: f32[1,256], index: 12, kind: input, shape index: {}]   ;;  %s8369_s13 = inlined_call_operand.hbm [shape: bf16[256,128], index: 13, kind: input, shape index: {}]   ;;  %s8370_s14 = inlined_call_operand.vmem [shape: f32[1,128], index: 14, kind: input, shape index: {}]   ;;  %s8371_s15 = inlined_call_operand.vmem [shape: bf16[128,64], index: 15, kind: input, shape index: {}]   ;;  %s8372_s16 = inlined_call_operand.vmem [shape: f32[1,64], index: 16, kind: input, shape index: {}]   ;;  %s8373_s17 = inlined_call_operand.vmem [shape: bf16[1,64], index: 17, kind: input, shape index: {}]   ;;  %s8374_s18 = inlined_call_operand.<no memory space> [shape: f32[1,1], index: 18, kind: input, shape index: {}]   ;;  %s8375_s19 = inlined_call_operand.hbm [shape: f32[1,128], index: 19, kind: output, shape index: {}]  }
   0x1   :  { %8380 = sst [smem:[#allocation28_spill]] %s8356_s0  ;;  %v24_v0 = vstv %s8374_s18 }
   0x2   :  { %8381 = sst [smem:[#allocation29_spill]] %s8357_s1  ;;  %25 = vst [vmem:[#allocation2] sm:$0x1] %v24_v0 }
   0x3   :  { %8382 = sst [smem:[#allocation30_spill]] %s8358_s2 }
   0x4   :  { %8383 = sst [smem:[#allocation31_spill]] %s8359_s3 }
   0x5   :  { %26 = vsyncpa [#allocation4], 0 }
   0x6   :  { %27 = vsyncpa [#allocation7], 0 }
   0x7   :  { %28 = vsyncpa [#allocation10], 0 }
   0x8   :  { %29 = vsyncpa [#allocation13], 0 }
   0x9   :  { %30 = vsyncpa [#allocation16], 0 }
   0xa   :  { %31 = vsyncpa [#allocation19], 0 }
   0xb   :  { %32 = vsyncpa [#allocation5], 0  ;;  %s7067_s20 = smov [#allocation6]   ;;  %s7068_s1 = smov [#allocation9]  }
   0xc   :  { %s55_s21 = sshll.u32 %s7067_s20, 4  ;;  %s77_s22 = sshll.u32 %s7068_s1, 4  ;;  %s56_s21 = int_to_ptr.vmem [resolvable:$true] %s55_s21  ;;  %s78_s22 = int_to_ptr.vmem [resolvable:$true] %s77_s22 }
   0xd   :  { %s8384_s24 = sld [smem:[#allocation31_spill]] }
  0x13   :  { %s6811_s25 = scalar_lea.hbm %s8384_s24, 128 }
  0x14   :  { %p6812_p0 = scmp.ne.s32.totalorder %s8384_s24, %s6811_s25  ;;  %p6815_p1 = scmp.lt.u32.totalorder %s6811_s25, %s8384_s24 }
  0x16   :  { %p6817_p2 = pnand %p6815_p1, %p6812_p0 }
  0x18   :  { %6820 = shalt.err (!%p6817_p2)
}
  0x19   :  { %s6821_s28 = scalar_lea.vmem %s56_s21, 128  ;;  %p6826_p4 = scmp.lt.s32.totalorder %s56_s21, %s56_s21 }
  0x1a   :  { %p6822_p3 = scmp.ne.s32.totalorder %s56_s21, %s6821_s28  ;;  %p6827_p5 = scmp.lt.s32.totalorder %s6821_s28, %s6821_s28 }
  0x1c   :  { %p6828_p6 = por %p6827_p5, %p6826_p4 }
  0x1e   :  { %p6829_p7 = pnand %p6828_p6, %p6822_p3 }
  0x20   :  { %6832 = shalt.err (!%p6829_p7)
}
  0x21   :  { %58 = dma.hbm_to_vmem [thread:$0]  %s8384_s24, 128, %s56_s21, [#allocation7]  }
  0x22   :  { %s6833_s1 = scalar_lea.hbm %s8361_s5, 64 }
  0x23   :  { %p6834_p8 = scmp.ne.s32.totalorder %s8361_s5, %s6833_s1  ;;  %p6837_p9 = scmp.lt.u32.totalorder %s6833_s1, %s8361_s5 }
  0x25   :  { %p6839_p10 = pnand %p6837_p9, %p6834_p8 }
  0x27   :  { %6842 = shalt.err (!%p6839_p10)
}
  0x28   :  { %s6843_s18 = scalar_lea.vmem %s78_s22, 64  ;;  %p6848_p12 = scmp.lt.s32.totalorder %s78_s22, %s78_s22 }
  0x29   :  { %p6844_p11 = scmp.ne.s32.totalorder %s78_s22, %s6843_s18  ;;  %p6849_p13 = scmp.lt.s32.totalorder %s6843_s18, %s6843_s18 }
  0x2b   :  { %p6850_p0 = por %p6849_p13, %p6848_p12 }
  0x2d   :  { %p6851_p1 = pnand %p6850_p0, %p6844_p11 }
  0x2f   :  { %6854 = shalt.err (!%p6851_p1)
}
  0x30   :  { %80 = dma.hbm_to_vmem [thread:$0]  %s8361_s5, 64, %s78_s22, [#allocation10]  }
  0x31   :  { %s7069_s26 = smov [#allocation12]   ;;  %s7070_s28 = smov [#allocation15]  }
  0x32   :  { %s102_s27 = sshll.u32 %s7069_s26, 4  ;;  %s124_s29 = sshll.u32 %s7070_s28, 4  ;;  %s103_s27 = int_to_ptr.vmem [resolvable:$true] %s102_s27  ;;  %s7216_s29 = int_to_ptr.vmem [resolvable:$true] %s124_s29 }
  0x33   :  { %s6855_s20 = scalar_lea.hbm %s8365_s9, 1024 }
  0x34   :  { %p6856_p2 = scmp.ne.s32.totalorder %s8365_s9, %s6855_s20  ;;  %p6859_p3 = scmp.lt.u32.totalorder %s6855_s20, %s8365_s9 }
  0x36   :  { %p6861_p4 = pnand %p6859_p3, %p6856_p2 }
  0x38   :  { %6864 = shalt.err (!%p6861_p4)
}
  0x39   :  { %s6865_s5 = scalar_lea.vmem %s103_s27, 1024  ;;  %p6870_p6 = scmp.lt.s32.totalorder %s103_s27, %s103_s27 }
  0x3a   :  { %p6866_p5 = scmp.ne.s32.totalorder %s103_s27, %s6865_s5  ;;  %p6871_p7 = scmp.lt.s32.totalorder %s6865_s5, %s6865_s5 }
  0x3c   :  { %p6872_p8 = por %p6871_p7, %p6870_p6 }
  0x3e   :  { %p6873_p9 = pnand %p6872_p8, %p6866_p5 }
  0x40   :  { %6876 = shalt.err (!%p6873_p9)
}
  0x41   :  { %s7071_s22 = smov 64   ;;  %s7072_s3 = smov 4  }
  0x42   :  { %108 = dma.hbm_to_vmem [thread:$0]  %s8365_s9, 1024, %s103_s27, [#allocation13], %s7071_s22, %s7071_s22, %s7072_s3  }
  0x43   :  { %s6877_s28 = scalar_lea.hbm %s8367_s11, 2048 }
  0x44   :  { %p6878_p10 = scmp.ne.s32.totalorder %s8367_s11, %s6877_s28  ;;  %p6881_p11 = scmp.lt.u32.totalorder %s6877_s28, %s8367_s11 }
  0x46   :  { %p6883_p12 = pnand %p6881_p11, %p6878_p10 }
  0x48   :  { %6886 = shalt.err (!%p6883_p12)
}
  0x49   :  { %s6887_s2 = scalar_lea.vmem %s7216_s29, 2048  ;;  %p6892_p0 = scmp.lt.s32.totalorder %s7216_s29, %s7216_s29 }
  0x4a   :  { %p6888_p13 = scmp.ne.s32.totalorder %s7216_s29, %s6887_s2  ;;  %p6893_p1 = scmp.lt.s32.totalorder %s6887_s2, %s6887_s2 }
  0x4c   :  { %p6894_p2 = por %p6893_p1, %p6892_p0 }
  0x4e   :  { %p6895_p3 = pnand %p6894_p2, %p6888_p13 }
  0x50   :  { %6898 = shalt.err (!%p6895_p3)
}
  0x51   :  { %s7073_s9 = smov 128   ;;  %s7074_s27 = smov 8  }
  0x52   :  { %130 = dma.hbm_to_vmem [thread:$0]  %s8367_s11, 2048, %s7216_s29, [#allocation16], %s7073_s9, %s7073_s9, %s7074_s27  }
  0x53   :  { %s7075_s5 = smov [#allocation3]   ;;  %s8385_s26 = sld [smem:[#allocation30_spill]] }
  0x54   :  { %s42_s18 = sshll.u32 %s7075_s5, 4  ;;  %s43_s18 = int_to_ptr.vmem [resolvable:$true] %s42_s18 }
  0x59   :  { %s6899_s28 = scalar_lea.hbm %s8385_s26, 1024 }
  0x5a   :  { %p6900_p4 = scmp.ne.s32.totalorder %s8385_s26, %s6899_s28  ;;  %p6903_p5 = scmp.lt.u32.totalorder %s6899_s28, %s8385_s26 }
  0x5c   :  { %p6905_p6 = pnand %p6903_p5, %p6900_p4 }
  0x5e   :  { %6908 = shalt.err (!%p6905_p6)
}
  0x5f   :  { %s6909_s2 = scalar_lea.vmem %s43_s18, 1024  ;;  %p6914_p8 = scmp.lt.s32.totalorder %s43_s18, %s43_s18 }
  0x60   :  { %p6910_p7 = scmp.ne.s32.totalorder %s43_s18, %s6909_s2  ;;  %p6915_p9 = scmp.lt.s32.totalorder %s6909_s2, %s6909_s2 }
  0x62   :  { %p6916_p10 = por %p6915_p9, %p6914_p8 }
  0x64   :  { %p6917_p11 = pnand %p6916_p10, %p6910_p7 }
  0x66   :  { %6920 = shalt.err (!%p6917_p11)
}
  0x67   :  { %s7076_s11 = smov 512   ;;  %s7077_s29 = smov 32  }
  0x68   :  { %48 = dma.hbm_to_vmem [thread:$0]  %s8385_s26, 1024, %s43_s18, [#allocation4], %s7076_s11, %s7076_s11, %s7077_s29  }
  0x69   :  { %s7078_s23 = smov [#allocation8]   ;;  %s6921_s24 = scalar_lea.hbm %s8360_s4, 32768 }
  0x6a   :  { %s64_s25 = sshll.u32 %s7078_s23, 4  ;;  %p6922_p12 = scmp.ne.s32.totalorder %s8360_s4, %s6921_s24  ;;  %s65_s25 = int_to_ptr.vmem [resolvable:$true] %s64_s25 }
  0x6b   :  { %p6925_p13 = scmp.lt.u32.totalorder %s6921_s24, %s8360_s4 }
  0x6d   :  { %p6927_p0 = pnand %p6925_p13, %p6922_p12 }
  0x6f   :  { %6930 = shalt.err (!%p6927_p0)
}
  0x70   :  { %s6931_s1 = scalar_lea.vmem %s65_s25, 32768  ;;  %p6936_p2 = scmp.lt.s32.totalorder %s65_s25, %s65_s25 }
  0x71   :  { %p6932_p1 = scmp.ne.s32.totalorder %s65_s25, %s6931_s1  ;;  %p6937_p3 = scmp.lt.s32.totalorder %s6931_s1, %s6931_s1 }
  0x73   :  { %p6938_p4 = por %p6937_p3, %p6936_p2 }
  0x75   :  { %p6939_p5 = pnand %p6938_p4, %p6932_p1 }
  0x77   :  { %6942 = shalt.err (!%p6939_p5)
}
  0x78   :  { %s7079_s18 = smov 256   ;;  %s7080_s26 = smov 16  }
  0x79   :  { %70 = dma.hbm_to_vmem [thread:$0]  %s8360_s4, 32768, %s65_s25, [#allocation7], %s7079_s18, %s7079_s18, %s7080_s26  }
  0x7a   :  { %s7081_s29 = smov [#allocation11]   ;;  %s7082_s27 = smov [#allocation14]  }
  0x7b   :  { %s86_s9 = sshll.u32 %s7081_s29, 4  ;;  %s115_s23 = sshll.u32 %s7082_s27, 4  ;;  %s87_s9 = int_to_ptr.vmem [resolvable:$true] %s86_s9  ;;  %s116_s23 = int_to_ptr.vmem [resolvable:$true] %s115_s23 }
  0x7c   :  { %s6943_s24 = scalar_lea.hbm %s8362_s6, 128 }
  0x7d   :  { %p6944_p6 = scmp.ne.s32.totalorder %s8362_s6, %s6943_s24  ;;  %p6947_p7 = scmp.lt.u32.totalorder %s6943_s24, %s8362_s6 }
  0x7f   :  { %p6949_p8 = pnand %p6947_p7, %p6944_p6 }
  0x81   :  { %6952 = shalt.err (!%p6949_p8)
}
  0x82   :  { %s6953_s4 = scalar_lea.vmem %s87_s9, 128  ;;  %p6958_p10 = scmp.lt.s32.totalorder %s87_s9, %s87_s9 }
  0x83   :  { %p6954_p9 = scmp.ne.s32.totalorder %s87_s9, %s6953_s4  ;;  %p6959_p11 = scmp.lt.s32.totalorder %s6953_s4, %s6953_s4 }
  0x85   :  { %p6960_p12 = por %p6959_p11, %p6958_p10 }
  0x87   :  { %p6961_p13 = pnand %p6960_p12, %p6954_p9 }
  0x89   :  { %6964 = shalt.err (!%p6961_p13)
}
  0x8a   :  { %92 = dma.hbm_to_vmem [thread:$0]  %s8362_s6, 128, %s87_s9, [#allocation10], %s7071_s22, %s7071_s22, %s7072_s3  }
  0x8b   :  { %s6965_s2 = scalar_lea.hbm %s8366_s10, 16 }
  0x8c   :  { %p6966_p0 = scmp.ne.s32.totalorder %s8366_s10, %s6965_s2  ;;  %p6969_p1 = scmp.lt.u32.totalorder %s6965_s2, %s8366_s10 }
  0x8e   :  { %p6971_p2 = pnand %p6969_p1, %p6966_p0 }
  0x90   :  { %6974 = shalt.err (!%p6971_p2)
}
  0x91   :  { %s6975_s21 = scalar_lea.vmem %s116_s23, 16  ;;  %s6979_s24 = scalar_lea.vmem %s116_s23, 32 }
  0x92   :  { %p6976_p3 = scmp.ne.s32.totalorder %s116_s23, %s6975_s21  ;;  %p6980_p4 = scmp.lt.s32.totalorder %s116_s23, %s116_s23 }
  0x93   :  { %p6981_p5 = scmp.lt.s32.totalorder %s6979_s24, %s6975_s21 }
  0x95   :  { %p6982_p6 = por %p6981_p5, %p6980_p4 }
  0x97   :  { %p6983_p7 = pnand %p6982_p6, %p6976_p3 }
  0x99   :  { %6986 = shalt.err (!%p6983_p7)
}
  0x9a   :  { %118 = dma.hbm_to_vmem [thread:$0]  %s8366_s10, 16, %s116_s23, [#allocation13]  }
  0x9b   :  { %s7083_s28 = smov [#allocation17]   ;;  %s7084_s30 = smov [#allocation18]  }
  0x9c   :  { %s137_s0 = sshll.u32 %s7083_s28, 4  ;;  %s146_s20 = sshll.u32 %s7084_s30, 4  ;;  %s138_s0 = int_to_ptr.vmem [resolvable:$true] %s137_s0  ;;  %s7301_s20 = int_to_ptr.vmem [resolvable:$true] %s146_s20 }
  0x9d   :  { %s6987_s1 = scalar_lea.hbm %s8368_s12, 32 }
  0x9e   :  { %p6988_p8 = scmp.ne.s32.totalorder %s8368_s12, %s6987_s1  ;;  %p6991_p9 = scmp.lt.u32.totalorder %s6987_s1, %s8368_s12 }
  0xa0   :  { %p6993_p10 = pnand %p6991_p9, %p6988_p8 }
  0xa2   :  { %6996 = shalt.err (!%p6993_p10)
}
  0xa3   :  { %s6997_s10 = scalar_lea.vmem %s138_s0, 32  ;;  %p7002_p12 = scmp.lt.s32.totalorder %s138_s0, %s138_s0 }
  0xa4   :  { %p6998_p11 = scmp.ne.s32.totalorder %s138_s0, %s6997_s10  ;;  %p7003_p13 = scmp.lt.s32.totalorder %s6997_s10, %s6997_s10 }
  0xa6   :  { %p7004_p0 = por %p7003_p13, %p7002_p12 }
  0xa8   :  { %p7005_p1 = pnand %p7004_p0, %p6998_p11 }
  0xaa   :  { %7008 = shalt.err (!%p7005_p1)
}
  0xab   :  { %140 = dma.hbm_to_vmem [thread:$0]  %s8368_s12, 32, %s138_s0, [#allocation16]  }
  0xac   :  { %s7009_s21 = scalar_lea.hbm %s8369_s13, 2048 }
  0xad   :  { %p7010_p2 = scmp.ne.s32.totalorder %s8369_s13, %s7009_s21  ;;  %p7013_p3 = scmp.lt.u32.totalorder %s7009_s21, %s8369_s13 }
  0xaf   :  { %p7015_p4 = pnand %p7013_p3, %p7010_p2 }
  0xb1   :  { %7018 = shalt.err (!%p7015_p4)
}
  0xb2   :  { %s7019_s30 = scalar_lea.vmem %s7301_s20, 2048  ;;  %p7024_p6 = scmp.lt.s32.totalorder %s7301_s20, %s7301_s20 }
  0xb3   :  { %p7020_p5 = scmp.ne.s32.totalorder %s7301_s20, %s7019_s30  ;;  %p7025_p7 = scmp.lt.s32.totalorder %s7019_s30, %s7019_s30 }
  0xb5   :  { %p7026_p8 = por %p7025_p7, %p7024_p6 }
  0xb7   :  { %p7027_p9 = pnand %p7026_p8, %p7020_p5 }
  0xb9   :  { %7030 = shalt.err (!%p7027_p9)
}
  0xba   :  { %152 = dma.hbm_to_vmem [thread:$0]  %s8369_s13, 2048, %s7301_s20, [#allocation19], %s7071_s22, %s7071_s22, %s7072_s3  }
  0xbb   :  { %7053 = dma.done.wait [#allocation4], 1024  }
  0xbc   :  { %7054 = vsyncadd [#allocation4], 4294966272 }
  0xbd   :  { %7055 = dma.done.wait [#allocation7], 32896  }
  0xbe   :  { %7056 = vsyncadd [#allocation7], 4294934400 }
  0xbf   :  { %7057 = dma.done.wait [#allocation10], 192  }
  0xc0   :  { %7058 = vsyncadd [#allocation10], 4294967104 }
  0xc1   :  { %7059 = dma.done.wait [#allocation13], 1040  }
  0xc2   :  { %7060 = vsyncadd [#allocation13], 4294966256 }
  0xc3   :  { %7061 = dma.done.wait [#allocation16], 2080  }
  0xc4   :  { %7062 = vsyncadd [#allocation16], 4294965216 }
  0xc5   :  { %7063 = dma.done.wait [#allocation19], 2048  }
  0xc6   :  { %7064 = vsyncadd [#allocation19], 4294965248  ;;  %v7085_v1 = vmov 0   ;;  %v226_v2 = vld [vmem:[#allocation3] sm:$0xff]  ;;  %vm373_vm0 = vcmask 1044480   ;;  %s8386_s3 = sld [smem:[#allocation28_spill]] }
  0xc7   :  { %430 = vmatprep.mubr.bf16.mxu0 %v7085_v1  ;;  %500 = vmatprep.mubr.bf16.mxu1 %v7085_v1  ;;  %v230_v3 = vld [vmem:[#allocation3 + $0x20] sm:$0x11]  ;;  %vm348_vm1 = vcmask 80896   ;;  %v227_v9 = vld [vmem:[#allocation3 + $0x8] sm:$0xff]  ;;  %v228_v11 = vld [vmem:[#allocation3 + $0x10] sm:$0xff]  ;;  %s8387_s30 = sld [smem:[#allocation29_spill]] }
  0xc8   :  { %6317 = vset.pattern.permute.xlu0 %v7085_v1  ;;  %v5291_v4 = vcombine.high %v226_v2, %v230_v3  ;;  %v5290_v5 = vcombine.low %v226_v2, %v230_v3  ;;  %v231_v10 = vld [vmem:[#allocation3 + $0x28] sm:$0x11]  ;;  %v232_v12 = vld [vmem:[#allocation3 + $0x30] sm:$0x11]  ;;  %v229_v17 = vld [vmem:[#allocation3 + $0x18] sm:$0xff]  ;;  %vm7087_vm2 = vmmov 0  }
  0xc9   :  { %v5293_v13 = vcombine.high %v227_v9, %v231_v10  ;;  %v5292_v14 = vcombine.low %v227_v9, %v231_v10  ;;  %v5295_v15 = vcombine.high %v228_v11, %v232_v12  ;;  %v5294_v16 = vcombine.low %v228_v11, %v232_v12  ;;  %v233_v18 = vld [vmem:[#allocation3 + $0x38] sm:$0x11]  ;;  %v6331_v26 = vld [vmem:[#allocation8 + $0xc] ss:$16 sps:$4 sm:$0xff]   ;;  %v6329_v42 = vld [vmem:[#allocation8 + $0x8] ss:$16 sps:$4 sm:$0xff]  }
  0xca   :  { %5298 = vmatprep.subr.msk.bf16.mxu0 %vm373_vm0, %v5291_v4  ;;  %v375_v6 = vsel %vm373_vm0, %v5290_v5, 0  ;;  %6036 = vmatprep.subr.msk.bf16.mxu1 %vm373_vm0, %v5291_v4  ;;  %v5297_v20 = vcombine.high %v229_v17, %v233_v18  ;;  %v6328_v21 = vld [vmem:[#allocation8 + $0x4] ss:$16 sps:$4 sm:$0xff]   ;;  %v5296_v24 = vcombine.low %v229_v17, %v233_v18  ;;  %v6326_v32 = vld [vmem:[#allocation8] ss:$16 sps:$4 sm:$0xff]   ;;  %vm5188_vm3 = vcmask 523264  }
  0xcb   :  { %399 = vmatpush1.bf16.msra.mxu0 %v375_v6  ;;  %6037 = vmatpush1.bf16.msra.mxu1 %v375_v6  ;;  %v381_v22 = vsel %vm373_vm0, %v5292_v14, 0  ;;  %v387_v23 = vsel %vm373_vm0, %v5294_v16, 0  ;;  %v6334_v33 = vld [vmem:[#allocation8 + $0x24] ss:$16 sps:$4 sm:$0xff]   ;;  %v6332_v34 = vld [vmem:[#allocation8 + $0x20] ss:$16 sps:$4 sm:$0xff]  }
  0xcc   :  { %v7343_v7 = vld [vmem:[%s8386_s3] sm:$0xff]   ;;  %v7352_v8 = vld [vmem:[%s8386_s3 + $0x38] sm:$0xff]   ;;  %v7359_v19 = vld [vmem:[%s8386_s3 + $0x8] sm:$0xff]   ;;  %5307 = vmatprep.subr.msk.bf16.mxu1 %vm373_vm0, %v5293_v13  ;;  %5316 = vmatprep.subr.msk.bf16.mxu0 %vm373_vm0, %v5295_v15  ;;  %v393_v25 = vsel %vm373_vm0, %v5296_v24, 0  ;;  %s7088_s28 = smov [#allocation20]  }
  0xcd   :  { %v7376_v27 = vld [vmem:[%s8386_s3 + $0x10] sm:$0xff]   ;;  %v7387_v28 = vld [vmem:[%s8386_s3 + $0x18] sm:$0xff]   ;;  %v7398_v29 = vld [vmem:[%s8386_s3 + $0x20] sm:$0xff]   ;;  %s5268_s12 = sshll.u32 %s7088_s28, 4  ;;  %s5269_s12 = int_to_ptr.vmem [resolvable:$true] %s5268_s12 }
  0xce   :  { %5299 = vmatmul.mubr.msk.bf16.vlgmr.msra.gmra.mrb[0].mxu0 %vm348_vm1, %v7343_v7  ;;  %5306 = vmatmul.mubr.msk.bf16.vlgmr.msra.gmra.mrb[0].mxu1 %vm348_vm1, %v7352_v8  ;;  %v7409_v30 = vld [vmem:[%s8386_s3 + $0x28] sm:$0xff]   ;;  %v7418_v31 = vld [vmem:[%s8386_s3 + $0x30] sm:$0xff]   ;;  %p7036_p11 = scmp.lt.s32.totalorder %s5269_s12, %s5269_s12 }
  0xcf   :  { %440 = vmatprep.mubr.bf16.mxu0 %v7085_v1  ;;  %543 = vmatprep.mubr.bf16.mxu1 %v7085_v1  ;;  %v6340_v35 = vld [vmem:[#allocation8 + $0x44] ss:$16 sps:$4 sm:$0xff]   ;;  %v6338_v36 = vld [vmem:[#allocation8 + $0x40] ss:$16 sps:$4 sm:$0xff]   ;;  %v6337_v43 = vld [vmem:[#allocation8 + $0x2c] ss:$16 sps:$4 sm:$0xff]  }
  0xd0   :  { %512 = vmatpush1.bf16.msra.mxu1 %v381_v22  ;;  %625 = vmatpush1.bf16.msra.mxu0 %v387_v23  ;;  %v6346_v37 = vld [vmem:[#allocation8 + $0x64] ss:$16 sps:$4 sm:$0xff]   ;;  %v6344_v38 = vld [vmem:[#allocation8 + $0x60] ss:$16 sps:$4 sm:$0xff]   ;;  %v6335_v46 = vld [vmem:[#allocation8 + $0x28] ss:$16 sps:$4 sm:$0xff]  }
  0xd1   :  { %5325 = vmatprep.subr.msk.bf16.mxu1 %vm373_vm0, %v5297_v20  ;;  %2600 = vmatprep.subr.bf16.mxu0 %v6328_v21  ;;  %v6352_v39 = vld [vmem:[#allocation8 + $0x84] ss:$16 sps:$4 sm:$0xff]   ;;  %v6350_v40 = vld [vmem:[#allocation8 + $0x80] ss:$16 sps:$4 sm:$0xff]   ;;  %v6343_v47 = vld [vmem:[#allocation8 + $0x4c] ss:$16 sps:$4 sm:$0xff]  }
  0xd2   :  { %v6358_v41 = vld [vmem:[#allocation8 + $0xa4] ss:$16 sps:$4 sm:$0xff]   ;;  %v6356_v44 = vld [vmem:[#allocation8 + $0xa0] ss:$16 sps:$4 sm:$0xff]   ;;  %v6341_v50 = vld [vmem:[#allocation8 + $0x48] ss:$16 sps:$4 sm:$0xff]  }
  0xd3   :  { %v6364_v45 = vld [vmem:[#allocation8 + $0xc4] ss:$16 sps:$4 sm:$0xff]   ;;  %v6362_v48 = vld [vmem:[#allocation8 + $0xc0] ss:$16 sps:$4 sm:$0xff]   ;;  %v6349_v51 = vld [vmem:[#allocation8 + $0x6c] ss:$16 sps:$4 sm:$0xff]  }
  0xd4   :  { %v6370_v49 = vld [vmem:[#allocation8 + $0xe4] ss:$16 sps:$4 sm:$0xff]   ;;  %v6368_v52 = vld [vmem:[#allocation8 + $0xe0] ss:$16 sps:$4 sm:$0xff]   ;;  %v6347_v54 = vld [vmem:[#allocation8 + $0x68] ss:$16 sps:$4 sm:$0xff]  }
  0xd5   :  { %v6376_v53 = vld [vmem:[#allocation8 + $0x104] ss:$16 sps:$4 sm:$0xff]   ;;  %v6355_v55 = vld [vmem:[#allocation8 + $0x8c] ss:$16 sps:$4 sm:$0xff]   ;;  %v6374_v56 = vld [vmem:[#allocation8 + $0x100] ss:$16 sps:$4 sm:$0xff]  }
  0xd6   :  { %5300 = vmatmul.mubr.msk.bf16.gmra.mrb[4].mxu0 %vm348_vm1, %v7359_v19  ;;  %5308 = vmatmul.mubr.msk.bf16.vlgmr.msra.gmra.mrb[4].mxu1 %vm348_vm1, %v7343_v7  ;;  %v6382_v57 = vld [vmem:[#allocation8 + $0x124] ss:$16 sps:$4 sm:$0xff]   ;;  %v6353_v58 = vld [vmem:[#allocation8 + $0x88] ss:$16 sps:$4 sm:$0xff]   ;;  %v6361_v59 = vld [vmem:[#allocation8 + $0xac] ss:$16 sps:$4 sm:$0xff]  }
  0xd7   :  { %450 = vmatprep.mubr.bf16.mxu0 %v7085_v1  ;;  %553 = vmatprep.mubr.bf16.mxu1 %v7085_v1  ;;  %v6380_v60 = vld [vmem:[#allocation8 + $0x120] ss:$16 sps:$4 sm:$0xff]   ;;  %v6388_v61 = vld [vmem:[#allocation8 + $0x144] ss:$16 sps:$4 sm:$0xff]   ;;  %v6359_v62 = vld [vmem:[#allocation8 + $0xa8] ss:$16 sps:$4 sm:$0xff]  }
  0xd8   :  { %738 = vmatpush1.bf16.msra.mxu1 %v393_v25  ;;  %v6367_v63 = vld [vmem:[#allocation8 + $0xcc] ss:$16 sps:$4 sm:$0xff]   ;;  %v6386_v0 = vld [vmem:[#allocation8 + $0x140] ss:$16 sps:$4 sm:$0xff]   ;;  %v6394_v2 = vld [vmem:[#allocation8 + $0x164] ss:$16 sps:$4 sm:$0xff]  }
  0xd9   :  { %3052 = vmatprep.subr.bf16.mxu1 %v6331_v26  ;;  %v6365_v3 = vld [vmem:[#allocation8 + $0xc8] ss:$16 sps:$4 sm:$0xff]   ;;  %v6373_v4 = vld [vmem:[#allocation8 + $0xec] ss:$16 sps:$4 sm:$0xff]   ;;  %v6392_v5 = vld [vmem:[#allocation8 + $0x160] ss:$16 sps:$4 sm:$0xff]  }
  0xda   :  { %v6400_v6 = vld [vmem:[#allocation8 + $0x184] ss:$16 sps:$4 sm:$0xff]   ;;  %v6379_v9 = vld [vmem:[#allocation8 + $0x10c] ss:$16 sps:$4 sm:$0xff]   ;;  %v6398_v10 = vld [vmem:[#allocation8 + $0x180] ss:$16 sps:$4 sm:$0xff]  }
  0xdb   :  { %v6406_v11 = vld [vmem:[#allocation8 + $0x1a4] ss:$16 sps:$4 sm:$0xff]   ;;  %v6377_v12 = vld [vmem:[#allocation8 + $0x108] ss:$16 sps:$4 sm:$0xff]   ;;  %v6385_v13 = vld [vmem:[#allocation8 + $0x12c] ss:$16 sps:$4 sm:$0xff]  }
  0xdc   :  { %v6404_v14 = vld [vmem:[#allocation8 + $0x1a0] ss:$16 sps:$4 sm:$0xff]   ;;  %v6412_v15 = vld [vmem:[#allocation8 + $0x1c4] ss:$16 sps:$4 sm:$0xff]   ;;  %v6383_v16 = vld [vmem:[#allocation8 + $0x128] ss:$16 sps:$4 sm:$0xff]  }
  0xdd   :  { %v6391_v17 = vld [vmem:[#allocation8 + $0x14c] ss:$16 sps:$4 sm:$0xff]   ;;  %v6410_v18 = vld [vmem:[#allocation8 + $0x1c0] ss:$16 sps:$4 sm:$0xff]   ;;  %v6389_v20 = vld [vmem:[#allocation8 + $0x148] ss:$16 sps:$4 sm:$0xff]  }
  0xde   :  { %5301 = vmatmul.mubr.msk.bf16.gmra.mrb[8].mxu0 %vm348_vm1, %v7376_v27  ;;  %5309 = vmatmul.mubr.msk.bf16.gmra.mrb[8].mxu1 %vm348_vm1, %v7359_v19  ;;  %v6397_v21 = vld [vmem:[#allocation8 + $0x16c] ss:$16 sps:$4 sm:$0xff]   ;;  %v6416_v22 = vld [vmem:[#allocation8 + $0x1e0] ss:$16 sps:$4 sm:$0xff]   ;;  %v6424_v23 = vld [vmem:[#allocation8 + $0x204] ss:$16 sps:$4 sm:$0xff]  }
  0xdf   :  { %460 = vmatprep.mubr.bf16.mxu0 %v7085_v1  ;;  %563 = vmatprep.mubr.bf16.mxu1 %v7085_v1  ;;  %v6395_v24 = vld [vmem:[#allocation8 + $0x168] ss:$16 sps:$4 sm:$0xff]   ;;  %v6403_v25 = vld [vmem:[#allocation8 + $0x18c] ss:$16 sps:$4 sm:$0xff]  }
  0xe0   :  { %v6401_v26 = vld [vmem:[#allocation8 + $0x188] ss:$16 sps:$4 sm:$0xff]  }
  0xe6   :  { %5302 = vmatmul.mubr.msk.bf16.gmra.mrb[12].mxu0 %vm348_vm1, %v7387_v28  ;;  %5310 = vmatmul.mubr.msk.bf16.gmra.mrb[12].mxu1 %vm348_vm1, %v7376_v27 }
  0xe7   :  { %470 = vmatprep.mubr.bf16.mxu0 %v7085_v1  ;;  %573 = vmatprep.mubr.bf16.mxu1 %v7085_v1 }
  0xee   :  { %5303 = vmatmul.mubr.msk.bf16.gmra.mrb[16].mxu0 %vm348_vm1, %v7398_v29  ;;  %5311 = vmatmul.mubr.msk.bf16.gmra.mrb[16].mxu1 %vm348_vm1, %v7387_v28 }
  0xef   :  { %480 = vmatprep.mubr.bf16.mxu0 %v7085_v1  ;;  %583 = vmatprep.mubr.bf16.mxu1 %v7085_v1 }
  0xf6   :  { %5304 = vmatmul.mubr.msk.bf16.gmra.mrb[20].mxu0 %vm348_vm1, %v7409_v30  ;;  %5312 = vmatmul.mubr.msk.bf16.gmra.mrb[20].mxu1 %vm348_vm1, %v7398_v29 }
  0xf7   :  { %490 = vmatprep.mubr.bf16.mxu0 %v7085_v1  ;;  %593 = vmatprep.mubr.bf16.mxu1 %v7085_v1 }
  0xfe   :  { %5305 = vmatmul.mubr.msk.bf16.gmra.mrb[24].mxu0 %vm348_vm1, %v7418_v31  ;;  %5313 = vmatmul.mubr.msk.bf16.gmra.mrb[24].mxu1 %vm348_vm1, %v7409_v30 }
  0xff   :  { %656 = vmatprep.mubr.bf16.mxu0 %v7085_v1  ;;  %603 = vmatprep.mubr.bf16.mxu1 %v7085_v1 }
 0x106   :  { %5317 = vmatmul.mubr.msk.bf16.vlgmr.msra.gmra.mrb[28].mxu0 %vm348_vm1, %v7343_v7  ;;  %5314 = vmatmul.mubr.msk.bf16.gmra.mrb[28].mxu1 %vm348_vm1, %v7418_v31 }
 0x107   :  { %666 = vmatprep.mubr.bf16.mxu0 %v7085_v1  ;;  %2601 = vmatpush1.bf16.msra.mxu0 %v6326_v32  ;;  %v6421_v32 = vld [vmem:[#allocation8 + $0x1ec] ss:$16 sps:$4 sm:$0xff]  }
 0x108   :  { %2602 = vmatprep.subr.bf16.mxu0 %v6334_v33  ;;  %613 = vmatprep.mubr.bf16.mxu1 %v7085_v1  ;;  %v6419_v33 = vld [vmem:[#allocation8 + $0x1e8] ss:$16 sps:$4 sm:$0xff]  }
 0x10b   :  { %2603 = vmatpush1.bf16.msra.mxu0 %v6332_v34  ;;  %v6427_v34 = vld [vmem:[#allocation8 + $0x20c] ss:$16 sps:$4 sm:$0xff]  }
 0x10c   :  { %2604 = vmatprep.subr.bf16.mxu0 %v6340_v35 }
 0x10e   :  { %5318 = vmatmul.mubr.msk.bf16.gmra.mrb[32].mxu0 %vm348_vm1, %v7359_v19  ;;  %5315 = vmatmul.mubr.msk.bf16.gmra.mrb[32].mxu1 %vm348_vm1, %v7352_v8 }
 0x10f   :  { %676 = vmatprep.mubr.bf16.mxu0 %v7085_v1  ;;  %2605 = vmatpush1.bf16.msra.mxu0 %v6338_v36 }
 0x110   :  { %2606 = vmatprep.subr.bf16.mxu0 %v6346_v37  ;;  %769 = vmatprep.mubr.bf16.mxu1 %v7085_v1  ;;  %v7486_v37 = vld [vmem:[#allocation6] sm:$0xff] }
 0x113   :  { %2607 = vmatpush1.bf16.msra.mxu0 %v6344_v38 }
 0x114   :  { %2608 = vmatprep.subr.bf16.mxu0 %v6352_v39 }
 0x116   :  { %5319 = vmatmul.mubr.msk.bf16.gmra.mrb[36].mxu0 %vm348_vm1, %v7376_v27  ;;  %5326 = vmatmul.mubr.msk.bf16.vlgmr.msra.gmra.mrb[36].mxu1 %vm348_vm1, %v7343_v7  ;;  %v6371_v7 = vld [vmem:[#allocation8 + $0xe8] ss:$16 sps:$4 sm:$0xff]  }
 0x117   :  { %686 = vmatprep.mubr.bf16.mxu0 %v7085_v1  ;;  %2609 = vmatpush1.bf16.msra.mxu0 %v6350_v40 }
 0x118   :  { %2610 = vmatprep.subr.bf16.mxu0 %v6358_v41  ;;  %3053 = vmatpush1.bf16.msra.mxu1 %v6329_v42 }
 0x119   :  { %779 = vmatprep.mubr.bf16.mxu1 %v7085_v1  ;;  %3054 = vmatprep.subr.bf16.mxu1 %v6337_v43 }
 0x11b   :  { %2611 = vmatpush1.bf16.msra.mxu0 %v6356_v44 }
 0x11c   :  { %2612 = vmatprep.subr.bf16.mxu0 %v6364_v45  ;;  %3055 = vmatpush1.bf16.msra.mxu1 %v6335_v46 }
 0x11d   :  { %3056 = vmatprep.subr.bf16.mxu1 %v6343_v47 }
 0x11e   :  { %5320 = vmatmul.mubr.msk.bf16.gmra.mrb[40].mxu0 %vm348_vm1, %v7387_v28  ;;  %5327 = vmatmul.mubr.msk.bf16.gmra.mrb[40].mxu1 %vm348_vm1, %v7359_v19  ;;  %v6418_v19 = vld [vmem:[#allocation8 + $0x1e4] ss:$16 sps:$4 sm:$0xff]  }
 0x11f   :  { %696 = vmatprep.mubr.bf16.mxu0 %v7085_v1  ;;  %2613 = vmatpush1.bf16.msra.mxu0 %v6362_v48 }
 0x120   :  { %2614 = vmatprep.subr.bf16.mxu0 %v6370_v49  ;;  %3057 = vmatpush1.bf16.msra.mxu1 %v6341_v50 }
 0x121   :  { %789 = vmatprep.mubr.bf16.mxu1 %v7085_v1  ;;  %3058 = vmatprep.subr.bf16.mxu1 %v6349_v51 }
 0x123   :  { %2615 = vmatpush1.bf16.msra.mxu0 %v6368_v52 }
 0x124   :  { %2616 = vmatprep.subr.bf16.mxu0 %v6376_v53  ;;  %3059 = vmatpush1.bf16.msra.mxu1 %v6347_v54 }
 0x125   :  { %3060 = vmatprep.subr.bf16.mxu1 %v6355_v55 }
 0x126   :  { %5321 = vmatmul.mubr.msk.bf16.gmra.mrb[44].mxu0 %vm348_vm1, %v7398_v29  ;;  %5328 = vmatmul.mubr.msk.bf16.gmra.mrb[44].mxu1 %vm348_vm1, %v7376_v27  ;;  %v6409_v27 = vld [vmem:[#allocation8 + $0x1ac] ss:$16 sps:$4 sm:$0xff]  }
 0x127   :  { %706 = vmatprep.mubr.bf16.mxu0 %v7085_v1  ;;  %2617 = vmatpush1.bf16.msra.mxu0 %v6374_v56 }
 0x128   :  { %2618 = vmatprep.subr.bf16.mxu0 %v6382_v57  ;;  %3061 = vmatpush1.bf16.msra.mxu1 %v6353_v58 }
 0x129   :  { %799 = vmatprep.mubr.bf16.mxu1 %v7085_v1  ;;  %3062 = vmatprep.subr.bf16.mxu1 %v6361_v59 }
 0x12b   :  { %2619 = vmatpush1.bf16.msra.mxu0 %v6380_v60 }
 0x12c   :  { %2620 = vmatprep.subr.bf16.mxu0 %v6388_v61  ;;  %3063 = vmatpush1.bf16.msra.mxu1 %v6359_v62 }
 0x12d   :  { %3064 = vmatprep.subr.bf16.mxu1 %v6367_v63 }
 0x12e   :  { %5322 = vmatmul.mubr.msk.bf16.gmra.mrb[48].mxu0 %vm348_vm1, %v7409_v30  ;;  %5329 = vmatmul.mubr.msk.bf16.gmra.mrb[48].mxu1 %vm348_vm1, %v7387_v28  ;;  %v6407_v28 = vld [vmem:[#allocation8 + $0x1a8] ss:$16 sps:$4 sm:$0xff]  }
 0x12f   :  { %716 = vmatprep.mubr.bf16.mxu0 %v7085_v1  ;;  %2621 = vmatpush1.bf16.msra.mxu0 %v6386_v0 }
 0x130   :  { %2622 = vmatprep.subr.bf16.mxu0 %v6394_v2  ;;  %3065 = vmatpush1.bf16.msra.mxu1 %v6365_v3 }
 0x131   :  { %809 = vmatprep.mubr.bf16.mxu1 %v7085_v1  ;;  %3066 = vmatprep.subr.bf16.mxu1 %v6373_v4  ;;  %v6422_v4 = vld [vmem:[#allocation8 + $0x200] ss:$16 sps:$4 sm:$0xff]  }
 0x133   :  { %2623 = vmatpush1.bf16.msra.mxu0 %v6392_v5  ;;  %v6425_v5 = vld [vmem:[#allocation8 + $0x208] ss:$16 sps:$4 sm:$0xff]  }
 0x134   :  { %2624 = vmatprep.subr.bf16.mxu0 %v6400_v6  ;;  %3067 = vmatpush1.bf16.msra.mxu1 %v6371_v7 }
 0x135   :  { %3068 = vmatprep.subr.bf16.mxu1 %v6379_v9 }
 0x136   :  { %5323 = vmatmul.mubr.msk.bf16.gmra.mrb[52].mxu0 %vm348_vm1, %v7418_v31  ;;  %5330 = vmatmul.mubr.msk.bf16.gmra.mrb[52].mxu1 %vm348_vm1, %v7398_v29  ;;  %v6415_v29 = vld [vmem:[#allocation8 + $0x1cc] ss:$16 sps:$4 sm:$0xff]  }
 0x137   :  { %726 = vmatprep.mubr.bf16.mxu0 %v7085_v1  ;;  %2625 = vmatpush1.bf16.msra.mxu0 %v6398_v10 }
 0x138   :  { %2626 = vmatprep.subr.bf16.mxu0 %v6406_v11  ;;  %3069 = vmatpush1.bf16.msra.mxu1 %v6377_v12  ;;  %v6430_v11 = vld [vmem:[#allocation8 + $0x224] ss:$16 sps:$4 sm:$0xff]   ;;  %v6433_v12 = vld [vmem:[#allocation8 + $0x22c] ss:$16 sps:$4 sm:$0xff]  }
 0x139   :  { %819 = vmatprep.mubr.bf16.mxu1 %v7085_v1  ;;  %3070 = vmatprep.subr.bf16.mxu1 %v6385_v13 }
 0x13b   :  { %2627 = vmatpush1.bf16.msra.mxu0 %v6404_v14 }
 0x13c   :  { %2628 = vmatprep.subr.bf16.mxu0 %v6412_v15  ;;  %3071 = vmatpush1.bf16.msra.mxu1 %v6383_v16 }
 0x13d   :  { %3072 = vmatprep.subr.bf16.mxu1 %v6391_v17 }
 0x13e   :  { %5324 = vmatmul.mubr.msk.bf16.gmra.mrb[56].mxu0 %vm348_vm1, %v7352_v8  ;;  %5331 = vmatmul.mubr.msk.bf16.gmra.mrb[56].mxu1 %vm348_vm1, %v7409_v30  ;;  %v6413_v30 = vld [vmem:[#allocation8 + $0x1c8] ss:$16 sps:$4 sm:$0xff]  }
 0x13f   :  { %2629 = vmatpush1.bf16.msra.mxu0 %v6410_v18  ;;  %829 = vmatprep.mubr.bf16.mxu1 %v7085_v1 }
 0x140   :  { %2630 = vmatprep.subr.bf16.mxu0 %v6418_v19  ;;  %3073 = vmatpush1.bf16.msra.mxu1 %v6389_v20  ;;  %v6428_v20 = vld [vmem:[#allocation8 + $0x220] ss:$16 sps:$4 sm:$0xff]  }
 0x141   :  { %3074 = vmatprep.subr.bf16.mxu1 %v6397_v21 }
 0x143   :  { %2631 = vmatpush1.bf16.msra.mxu0 %v6416_v22 }
 0x144   :  { %2713 = vmatprep.subr.bf16.mxu0 %v6424_v23  ;;  %3075 = vmatpush1.bf16.msra.mxu1 %v6395_v24  ;;  %v6431_v24 = vld [vmem:[#allocation8 + $0x228] ss:$16 sps:$4 sm:$0xff]  }
 0x145   :  { %3076 = vmatprep.subr.bf16.mxu1 %v6403_v25  ;;  %v6436_v25 = vld [vmem:[#allocation8 + $0x244] ss:$16 sps:$4 sm:$0xff]  }
 0x146   :  { %5332 = vmatmul.mubr.msk.bf16.gmra.mrb[60].mxu1 %vm348_vm1, %v7418_v31  ;;  %v236_v31 = vlaneseq }
 0x147   :  { %839 = vmatprep.mubr.bf16.mxu1 %v7085_v1 }
 0x148   :  { %3077 = vmatpush1.bf16.msra.mxu1 %v6401_v26  ;;  %v7481_v35 = vshrl.u32 %v236_v31, 7 }
 0x149   :  { %3078 = vmatprep.subr.bf16.mxu1 %v6409_v27 }
 0x14a   :  { %v7484_v36 = vsub.s32 0, %v7481_v35  ;;  %v7489_v38 = vsub.s32 1, %v7481_v35  ;;  %v246_v51 = vsub.s32 2, %v7481_v35  ;;  %v250_v56 = vsub.s32 3, %v7481_v35 }
 0x14c   :  { %3079 = vmatpush1.bf16.msra.mxu1 %v6407_v28  ;;  %v7497_v39 = vrot.slane %v7486_v37, %v7489_v38  ;;  %v7512_v7 = vrot.slane %v7486_v37, %v246_v51  ;;  %v7518_v14 = vrot.slane %v7486_v37, %v250_v56 }
 0x14d   :  { %3080 = vmatprep.subr.bf16.mxu1 %v6415_v29 }
 0x14e   :  { %5333 = vmatmul.mubr.msk.bf16.gmra.mrb[64].mxu1 %vm348_vm1, %v7352_v8  ;;  %v7493_v8 = vrot.slane %v7486_v37, %v7484_v36 }
 0x150   :  { %3081 = vmatpush1.bf16.msra.mxu1 %v6413_v30  ;;  %v6439_v30 = vld [vmem:[#allocation8 + $0x24c] ss:$16 sps:$4 sm:$0xff]  }
 0x151   :  { %3082 = vmatprep.subr.bf16.mxu1 %v6421_v32 }
 0x154   :  { %3083 = vmatpush1.bf16.msra.mxu1 %v6419_v33 }
 0x155   :  { %3165 = vmatprep.subr.bf16.mxu1 %v6427_v34 }
 0x1a1   :  { %v432_v40 = vpop.f32.mrb[0].mxu0  ;;  %v502_v47 = vpop.f32.mrb[0].mxu1 }
 0x1a2   :  { %v433_v41 = vadd.f32 %v432_v40, %v7493_v8  ;;  %v434_v42 = vpop.f32.mrb[1].mxu0  ;;  %v503_v49 = vadd.f32 %v502_v47, %v7493_v8  ;;  %v504_v50 = vpop.f32.mrb[1].mxu1 }
 0x1a3   :  { %v435_v43 = vadd.f32 %v434_v42, %v7497_v39  ;;  %v436_v44 = vpop.f32.mrb[2].mxu0  ;;  %v505_v54 = vadd.f32 %v504_v50, %v7497_v39  ;;  %v506_v55 = vpop.f32.mrb[2].mxu1 }
 0x1a4   :  { %v437_v45 = vadd.f32 %v436_v44, %v7493_v8  ;;  %v438_v46 = vpop.f32.mrb[3].mxu0  ;;  %v850_v52 = vmax.f32 %v433_v41, 0.0  ;;  %v962_v59 = vmax.f32 %v503_v49, 0.0  ;;  %v507_v60 = vadd.f32 %v506_v55, %v7493_v8  ;;  %v508_v61 = vpop.f32.mrb[3].mxu1  ;;  %v6437_v49 = vld [vmem:[#allocation8 + $0x248] ss:$16 sps:$4 sm:$0xff]  }
 0x1a5   :  { %v439_v48 = vadd.f32 %v438_v46, %v7497_v39  ;;  %v851_v57 = vmax.f32 %v435_v43, 0.0  ;;  %v963_v63 = vmax.f32 %v505_v54, 0.0  ;;  %v509_v0 = vadd.f32 %v508_v61, %v7497_v39  ;;  %v6442_v54 = vld [vmem:[#allocation8 + $0x264] ss:$16 sps:$4 sm:$0xff]   ;;  %v6445_v55 = vld [vmem:[#allocation8 + $0x26c] ss:$16 sps:$4 sm:$0xff]  }
 0x1a6   :  { %v858_v53 = vmax.f32 %v437_v45, 0.0  ;;  %v970_v6 = vmax.f32 %v507_v60, 0.0 }
 0x1a7   :  { %v859_v58 = vmax.f32 %v439_v48, 0.0  ;;  %v971_v13 = vmax.f32 %v509_v0, 0.0  ;;  %v6434_v48 = vld [vmem:[#allocation8 + $0x240] ss:$16 sps:$4 sm:$0xff]  }
 0x1a8   :  { %v978_v62 = vpack.c.bf16 %v858_v53, %v850_v52  ;;  %v7521_v17 = vpack.c.bf16 %v970_v6, %v962_v59 }
 0x1a9   :  { %v979_v2 = vpack.c.bf16 %v859_v58, %v851_v57  ;;  %v442_v3 = vpop.f32.mrb[4].mxu0  ;;  %v7524_v21 = vpack.c.bf16 %v971_v13, %v963_v63  ;;  %v545_v22 = vpop.f32.mrb[4].mxu1  ;;  %v6440_v63 = vld [vmem:[#allocation8 + $0x260] ss:$16 sps:$4 sm:$0xff]  }
 0x1aa   :  { %v443_v9 = vadd.f32 %v442_v3, %v7493_v8  ;;  %v444_v10 = vpop.f32.mrb[5].mxu0  ;;  %v546_v26 = vadd.f32 %v545_v22, %v7512_v7  ;;  %v547_v27 = vpop.f32.mrb[5].mxu1 }
 0x1ab   :  { %v445_v15 = vadd.f32 %v444_v10, %v7497_v39  ;;  %v446_v16 = vpop.f32.mrb[6].mxu0  ;;  %2632 = vmatprep.mubr.bf16.mxu0 %v979_v2  ;;  %3084 = vmatprep.mubr.bf16.mxu1 %v979_v2  ;;  %v548_v32 = vadd.f32 %v547_v27, %v7518_v14  ;;  %v549_v33 = vpop.f32.mrb[6].mxu1 }
 0x1ac   :  { %v447_v18 = vadd.f32 %v446_v16, %v7493_v8  ;;  %v448_v19 = vpop.f32.mrb[7].mxu0  ;;  %2633 = vmatmul.mubr.bf16.vlgmr.msra.gmra.mrb[60].mxu0 %v978_v62  ;;  %3085 = vmatmul.mubr.bf16.vlgmr.msra.gmra.mrb[68].mxu1 %v978_v62  ;;  %v866_v28 = vmax.f32 %v443_v9, 0.0  ;;  %v852_v40 = vmax.f32 %v546_v26, 0.0  ;;  %v550_v41 = vadd.f32 %v549_v33, %v7512_v7  ;;  %v551_v42 = vpop.f32.mrb[7].mxu1 }
 0x1ad   :  { %v449_v23 = vadd.f32 %v448_v19, %v7497_v39  ;;  %2714 = vmatpush1.bf16.msra.mxu0 %v6422_v4  ;;  %3166 = vmatpush1.bf16.msra.mxu1 %v6425_v5  ;;  %v867_v34 = vmax.f32 %v445_v15, 0.0  ;;  %v853_v44 = vmax.f32 %v548_v32, 0.0  ;;  %v552_v45 = vadd.f32 %v551_v42, %v7518_v14  ;;  %v6443_v4 = vld [vmem:[#allocation8 + $0x268] ss:$16 sps:$4 sm:$0xff]   ;;  %v6448_v5 = vld [vmem:[#allocation8 + $0x284] ss:$16 sps:$4 sm:$0xff]  }
 0x1ae   :  { %v874_v29 = vmax.f32 %v447_v18, 0.0  ;;  %2715 = vmatprep.subr.bf16.mxu0 %v6430_v11  ;;  %3167 = vmatprep.subr.bf16.mxu1 %v6433_v12  ;;  %v860_v50 = vmax.f32 %v550_v41, 0.0  ;;  %v6451_v12 = vld [vmem:[#allocation8 + $0x28c] ss:$16 sps:$4 sm:$0xff]  }
 0x1af   :  { %v875_v31 = vmax.f32 %v449_v23, 0.0  ;;  %v861_v57 = vmax.f32 %v552_v45, 0.0 }
 0x1b0   :  { %v986_v43 = vpack.c.bf16 %v874_v29, %v866_v28  ;;  %v7533_v60 = vpack.c.bf16 %v860_v50, %v852_v40  ;;  %v6446_v28 = vld [vmem:[#allocation8 + $0x280] ss:$16 sps:$4 sm:$0xff]   ;;  %v6449_v29 = vld [vmem:[#allocation8 + $0x288] ss:$16 sps:$4 sm:$0xff]  }
 0x1b1   :  { %v987_v46 = vpack.c.bf16 %v875_v31, %v867_v34  ;;  %v452_v47 = vpop.f32.mrb[8].mxu0  ;;  %2716 = vmatpush1.bf16.msra.mxu0 %v6428_v20  ;;  %3168 = vmatpush1.bf16.msra.mxu1 %v6431_v24  ;;  %v7536_v0 = vpack.c.bf16 %v861_v57, %v853_v44  ;;  %v555_v2 = vpop.f32.mrb[8].mxu1  ;;  %v6454_v34 = vld [vmem:[#allocation8 + $0x2a4] ss:$16 sps:$4 sm:$0xff]   ;;  %v6457_v31 = vld [vmem:[#allocation8 + $0x2ac] ss:$16 sps:$4 sm:$0xff]  }
 0x1b2   :  { %v453_v52 = vadd.f32 %v452_v47, %v7493_v8  ;;  %v454_v53 = vpop.f32.mrb[9].mxu0  ;;  %2717 = vmatprep.subr.bf16.mxu0 %v6436_v25  ;;  %3169 = vmatprep.subr.bf16.mxu1 %v6439_v30  ;;  %v556_v6 = vadd.f32 %v555_v2, %v7512_v7  ;;  %v557_v9 = vpop.f32.mrb[9].mxu1  ;;  %v6455_v50 = vld [vmem:[#allocation8 + $0x2a8] ss:$16 sps:$4 sm:$0xff]  }
 0x1b3   :  { %v455_v58 = vadd.f32 %v454_v53, %v7497_v39  ;;  %v456_v59 = vpop.f32.mrb[10].mxu0  ;;  %2642 = vmatprep.mubr.bf16.mxu0 %v987_v46  ;;  %3094 = vmatprep.mubr.bf16.mxu1 %v987_v46  ;;  %v558_v13 = vadd.f32 %v557_v9, %v7518_v14  ;;  %v559_v15 = vpop.f32.mrb[10].mxu1  ;;  %v6452_v46 = vld [vmem:[#allocation8 + $0x2a0] ss:$16 sps:$4 sm:$0xff]  }
 0x1b4   :  { %v457_v61 = vadd.f32 %v456_v59, %v7493_v8  ;;  %v458_v62 = vpop.f32.mrb[11].mxu0  ;;  %2643 = vmatmul.mubr.bf16.gmra.mrb[64].mxu0 %v986_v43  ;;  %3095 = vmatmul.mubr.bf16.gmra.mrb[72].mxu1 %v986_v43  ;;  %v882_v10 = vmax.f32 %v453_v52, 0.0  ;;  %v868_v19 = vmax.f32 %v556_v6, 0.0  ;;  %v560_v20 = vadd.f32 %v559_v15, %v7512_v7  ;;  %v561_v22 = vpop.f32.mrb[11].mxu1  ;;  %v6460_v52 = vld [vmem:[#allocation8 + $0x2c4] ss:$16 sps:$4 sm:$0xff]  }
 0x1b5   :  { %v459_v3 = vadd.f32 %v458_v62, %v7497_v39  ;;  %2718 = vmatpush1.bf16.msra.mxu0 %v6434_v48  ;;  %3170 = vmatpush1.bf16.msra.mxu1 %v6437_v49  ;;  %v883_v16 = vmax.f32 %v455_v58, 0.0  ;;  %v869_v24 = vmax.f32 %v558_v13, 0.0  ;;  %v562_v25 = vadd.f32 %v561_v22, %v7518_v14  ;;  %v6463_v58 = vld [vmem:[#allocation8 + $0x2cc] ss:$16 sps:$4 sm:$0xff]   ;;  %v6461_v13 = vld [vmem:[#allocation8 + $0x2c8] ss:$16 sps:$4 sm:$0xff]  }
 0x1b6   :  { %v890_v11 = vmax.f32 %v457_v61, 0.0  ;;  %2719 = vmatprep.subr.bf16.mxu0 %v6442_v54  ;;  %3171 = vmatprep.subr.bf16.mxu1 %v6445_v55  ;;  %v876_v30 = vmax.f32 %v560_v20, 0.0  ;;  %v6469_v20 = vld [vmem:[#allocation8 + $0x2ec] ss:$16 sps:$4 sm:$0xff]  }
 0x1b7   :  { %v891_v18 = vmax.f32 %v459_v3, 0.0  ;;  %v877_v40 = vmax.f32 %v562_v25, 0.0 }
 0x1b8   :  { %v994_v23 = vpack.c.bf16 %v890_v11, %v882_v10  ;;  %v7545_v43 = vpack.c.bf16 %v876_v30, %v868_v19  ;;  %v6466_v19 = vld [vmem:[#allocation8 + $0x2e4] ss:$16 sps:$4 sm:$0xff]  }
 0x1b9   :  { %v995_v26 = vpack.c.bf16 %v891_v18, %v883_v16  ;;  %v462_v27 = vpop.f32.mrb[12].mxu0  ;;  %2720 = vmatpush1.bf16.msra.mxu0 %v6440_v63  ;;  %3172 = vmatpush1.bf16.msra.mxu1 %v6443_v4  ;;  %v7548_v47 = vpack.c.bf16 %v877_v40, %v869_v24  ;;  %v565_v48 = vpop.f32.mrb[12].mxu1 }
 0x1ba   :  { %v463_v32 = vadd.f32 %v462_v27, %v7493_v8  ;;  %v464_v33 = vpop.f32.mrb[13].mxu0  ;;  %2721 = vmatprep.subr.bf16.mxu0 %v6448_v5  ;;  %3173 = vmatprep.subr.bf16.mxu1 %v6451_v12  ;;  %v566_v53 = vadd.f32 %v565_v48, %v7512_v7  ;;  %v567_v54 = vpop.f32.mrb[13].mxu1  ;;  %v6458_v12 = vld [vmem:[#allocation8 + $0x2c0] ss:$16 sps:$4 sm:$0xff]  }
 0x1bb   :  { %v465_v41 = vadd.f32 %v464_v33, %v7497_v39  ;;  %v466_v42 = vpop.f32.mrb[14].mxu0  ;;  %2652 = vmatprep.mubr.bf16.mxu0 %v995_v26  ;;  %3104 = vmatprep.mubr.bf16.mxu1 %v995_v26  ;;  %v568_v59 = vadd.f32 %v567_v54, %v7518_v14  ;;  %v569_v61 = vpop.f32.mrb[14].mxu1  ;;  %v6467_v33 = vld [vmem:[#allocation8 + $0x2e8] ss:$16 sps:$4 sm:$0xff]  }
 0x1bc   :  { %v467_v44 = vadd.f32 %v466_v42, %v7493_v8  ;;  %v468_v45 = vpop.f32.mrb[15].mxu0  ;;  %2653 = vmatmul.mubr.bf16.gmra.mrb[68].mxu0 %v994_v23  ;;  %3105 = vmatmul.mubr.bf16.gmra.mrb[76].mxu1 %v994_v23  ;;  %v898_v55 = vmax.f32 %v463_v32, 0.0  ;;  %v884_v2 = vmax.f32 %v566_v53, 0.0  ;;  %v570_v3 = vadd.f32 %v569_v61, %v7512_v7  ;;  %v571_v4 = vpop.f32.mrb[15].mxu1  ;;  %v6470_v61 = vld [vmem:[#allocation8 + $0x300] ss:$16 sps:$4 sm:$0xff]  }
 0x1bd   :  { %v469_v49 = vadd.f32 %v468_v45, %v7497_v39  ;;  %2722 = vmatpush1.bf16.msra.mxu0 %v6446_v28  ;;  %3174 = vmatpush1.bf16.msra.mxu1 %v6449_v29  ;;  %v899_v62 = vmax.f32 %v465_v41, 0.0  ;;  %v885_v6 = vmax.f32 %v568_v59, 0.0  ;;  %v572_v9 = vadd.f32 %v571_v4, %v7518_v14  ;;  %v6464_v28 = vld [vmem:[#allocation8 + $0x2e0] ss:$16 sps:$4 sm:$0xff]   ;;  %v6478_v4 = vld [vmem:[#allocation8 + $0x324] ss:$16 sps:$4 sm:$0xff]  }
 0x1be   :  { %v906_v57 = vmax.f32 %v467_v44, 0.0  ;;  %2723 = vmatprep.subr.bf16.mxu0 %v6454_v34  ;;  %3175 = vmatprep.subr.bf16.mxu1 %v6457_v31  ;;  %v892_v15 = vmax.f32 %v570_v3, 0.0  ;;  %v6472_v34 = vld [vmem:[#allocation8 + $0x304] ss:$16 sps:$4 sm:$0xff]   ;;  %v6475_v44 = vld [vmem:[#allocation8 + $0x30c] ss:$16 sps:$4 sm:$0xff]  }
 0x1bf   :  { %v907_v63 = vmax.f32 %v469_v49, 0.0  ;;  %v893_v22 = vmax.f32 %v572_v9, 0.0 }
 0x1c0   :  { %v1002_v5 = vpack.c.bf16 %v906_v57, %v898_v55  ;;  %v7557_v25 = vpack.c.bf16 %v892_v15, %v884_v2  ;;  %v6476_v15 = vld [vmem:[#allocation8 + $0x320] ss:$16 sps:$4 sm:$0xff]  }
 0x1c1   :  { %v1003_v10 = vpack.c.bf16 %v907_v63, %v899_v62  ;;  %v472_v11 = vpop.f32.mrb[16].mxu0  ;;  %2724 = vmatpush1.bf16.msra.mxu0 %v6452_v46  ;;  %3176 = vmatpush1.bf16.msra.mxu1 %v6455_v50  ;;  %v7560_v29 = vpack.c.bf16 %v893_v22, %v885_v6  ;;  %v575_v30 = vpop.f32.mrb[16].mxu1  ;;  %v6473_v62 = vld [vmem:[#allocation8 + $0x308] ss:$16 sps:$4 sm:$0xff]   ;;  %v6484_v22 = vld [vmem:[#allocation8 + $0x344] ss:$16 sps:$4 sm:$0xff]  }
 0x1c2   :  { %v473_v16 = vadd.f32 %v472_v11, %v7493_v8  ;;  %v474_v18 = vpop.f32.mrb[17].mxu0  ;;  %2725 = vmatprep.subr.bf16.mxu0 %v6460_v52  ;;  %3177 = vmatprep.subr.bf16.mxu1 %v6463_v58  ;;  %v576_v31 = vadd.f32 %v575_v30, %v7512_v7  ;;  %v577_v40 = vpop.f32.mrb[17].mxu1 }
 0x1c3   :  { %v475_v23 = vadd.f32 %v474_v18, %v7497_v39  ;;  %v476_v24 = vpop.f32.mrb[18].mxu0  ;;  %2662 = vmatprep.mubr.bf16.mxu0 %v1003_v10  ;;  %3114 = vmatprep.mubr.bf16.mxu1 %v1003_v10  ;;  %v578_v45 = vadd.f32 %v577_v40, %v7518_v14  ;;  %v579_v46 = vpop.f32.mrb[18].mxu1 }
 0x1c4   :  { %v477_v26 = vadd.f32 %v476_v24, %v7493_v8  ;;  %v478_v27 = vpop.f32.mrb[19].mxu0  ;;  %2663 = vmatmul.mubr.bf16.gmra.mrb[72].mxu0 %v1002_v5  ;;  %3115 = vmatmul.mubr.bf16.gmra.mrb[80].mxu1 %v1002_v5  ;;  %v914_v41 = vmax.f32 %v473_v16, 0.0  ;;  %v900_v50 = vmax.f32 %v576_v31, 0.0  ;;  %v580_v52 = vadd.f32 %v579_v46, %v7512_v7  ;;  %v581_v53 = vpop.f32.mrb[19].mxu1  ;;  %v6481_v5 = vld [vmem:[#allocation8 + $0x32c] ss:$16 sps:$4 sm:$0xff]  }
 0x1c5   :  { %v479_v32 = vadd.f32 %v478_v27, %v7497_v39  ;;  %2726 = vmatpush1.bf16.msra.mxu0 %v6458_v12  ;;  %3178 = vmatpush1.bf16.msra.mxu1 %v6461_v13  ;;  %v915_v48 = vmax.f32 %v475_v23, 0.0  ;;  %v901_v55 = vmax.f32 %v578_v45, 0.0  ;;  %v582_v57 = vadd.f32 %v581_v53, %v7518_v14  ;;  %v6485_v45 = vld [vmem:[#allocation8 + $0x348] ss:$16 sps:$4 sm:$0xff]  }
 0x1c6   :  { %v922_v42 = vmax.f32 %v477_v26, 0.0  ;;  %2727 = vmatprep.subr.bf16.mxu0 %v6466_v19  ;;  %3179 = vmatprep.subr.bf16.mxu1 %v6469_v20  ;;  %v908_v63 = vmax.f32 %v580_v52, 0.0  ;;  %v6479_v20 = vld [vmem:[#allocation8 + $0x328] ss:$16 sps:$4 sm:$0xff]   ;;  %v6490_v52 = vld [vmem:[#allocation8 + $0x364] ss:$16 sps:$4 sm:$0xff]  }
 0x1c7   :  { %v923_v49 = vmax.f32 %v479_v32, 0.0  ;;  %v909_v6 = vmax.f32 %v582_v57, 0.0 }
 0x1c8   :  { %v1010_v54 = vpack.c.bf16 %v922_v42, %v914_v41  ;;  %v7569_v11 = vpack.c.bf16 %v908_v63, %v900_v50 }
 0x1c9   :  { %v1011_v58 = vpack.c.bf16 %v923_v49, %v915_v48  ;;  %v482_v59 = vpop.f32.mrb[20].mxu0  ;;  %2728 = vmatpush1.bf16.msra.mxu0 %v6464_v28  ;;  %3180 = vmatpush1.bf16.msra.mxu1 %v6467_v33  ;;  %v7572_v16 = vpack.c.bf16 %v909_v6, %v901_v55  ;;  %v585_v18 = vpop.f32.mrb[20].mxu1  ;;  %v6487_v28 = vld [vmem:[#allocation8 + $0x34c] ss:$16 sps:$4 sm:$0xff]  }
 0x1ca   :  { %v483_v2 = vadd.f32 %v482_v59, %v7493_v8  ;;  %v484_v3 = vpop.f32.mrb[21].mxu0  ;;  %2729 = vmatprep.subr.bf16.mxu0 %v6472_v34  ;;  %3181 = vmatprep.subr.bf16.mxu1 %v6475_v44  ;;  %v586_v23 = vadd.f32 %v585_v18, %v7512_v7  ;;  %v587_v24 = vpop.f32.mrb[21].mxu1  ;;  %v6482_v44 = vld [vmem:[#allocation8 + $0x340] ss:$16 sps:$4 sm:$0xff]  }
 0x1cb   :  { %v485_v9 = vadd.f32 %v484_v3, %v7497_v39  ;;  %v486_v10 = vpop.f32.mrb[22].mxu0  ;;  %2672 = vmatprep.mubr.bf16.mxu0 %v1011_v58  ;;  %3124 = vmatprep.mubr.bf16.mxu1 %v1011_v58  ;;  %v588_v30 = vadd.f32 %v587_v24, %v7518_v14  ;;  %v589_v32 = vpop.f32.mrb[22].mxu1  ;;  %v6493_v58 = vld [vmem:[#allocation8 + $0x36c] ss:$16 sps:$4 sm:$0xff]  }
 0x1cc   :  { %v487_v12 = vadd.f32 %v486_v10, %v7493_v8  ;;  %v488_v13 = vpop.f32.mrb[23].mxu0  ;;  %2673 = vmatmul.mubr.bf16.gmra.mrb[76].mxu0 %v1010_v54  ;;  %3125 = vmatmul.mubr.bf16.gmra.mrb[84].mxu1 %v1010_v54  ;;  %v930_v26 = vmax.f32 %v483_v2, 0.0  ;;  %v916_v31 = vmax.f32 %v586_v23, 0.0  ;;  %v590_v40 = vadd.f32 %v589_v32, %v7512_v7  ;;  %v591_v41 = vpop.f32.mrb[23].mxu1 }
 0x1cd   :  { %v489_v19 = vadd.f32 %v488_v13, %v7497_v39  ;;  %2730 = vmatpush1.bf16.msra.mxu0 %v6470_v61  ;;  %3182 = vmatpush1.bf16.msra.mxu1 %v6473_v62  ;;  %v931_v33 = vmax.f32 %v485_v9, 0.0  ;;  %v917_v46 = vmax.f32 %v588_v30, 0.0  ;;  %v592_v48 = vadd.f32 %v591_v41, %v7518_v14  ;;  %v6496_v13 = vld [vmem:[#allocation8 + $0x384] ss:$16 sps:$4 sm:$0xff]   ;;  %v6494_v41 = vld [vmem:[#allocation8 + $0x380] ss:$16 sps:$4 sm:$0xff]  }
 0x1ce   :  { %v938_v27 = vmax.f32 %v487_v12, 0.0  ;;  %2731 = vmatprep.subr.bf16.mxu0 %v6478_v4  ;;  %3183 = vmatprep.subr.bf16.mxu1 %v6481_v5  ;;  %v924_v53 = vmax.f32 %v590_v40, 0.0  ;;  %v254_v54 = vsub.s32 4, %v7481_v35  ;;  %v258_v61 = vsub.s32 5, %v7481_v35  ;;  %v6488_v5 = vld [vmem:[#allocation8 + $0x360] ss:$16 sps:$4 sm:$0xff]  }
 0x1cf   :  { %v939_v34 = vmax.f32 %v489_v19, 0.0  ;;  %v925_v59 = vmax.f32 %v592_v48, 0.0  ;;  %v6491_v12 = vld [vmem:[#allocation8 + $0x368] ss:$16 sps:$4 sm:$0xff]  }
 0x1d0   :  { %v1018_v42 = vpack.c.bf16 %v938_v27, %v930_v26  ;;  %v7583_v2 = vpack.c.bf16 %v924_v53, %v916_v31  ;;  %v7591_v19 = vrot.slane %v7486_v37, %v254_v54 }
 0x1d1   :  { %v1019_v49 = vpack.c.bf16 %v939_v34, %v931_v33  ;;  %v492_v50 = vpop.f32.mrb[24].mxu0  ;;  %2732 = vmatpush1.bf16.msra.mxu0 %v6476_v15  ;;  %3184 = vmatpush1.bf16.msra.mxu1 %v6479_v20  ;;  %v7586_v6 = vpack.c.bf16 %v925_v59, %v917_v46  ;;  %v595_v9 = vpop.f32.mrb[24].mxu1  ;;  %v6502_v46 = vld [vmem:[#allocation8 + $0x3a4] ss:$16 sps:$4 sm:$0xff]  }
 0x1d2   :  { %v493_v55 = vadd.f32 %v492_v50, %v7493_v8  ;;  %v494_v57 = vpop.f32.mrb[25].mxu0  ;;  %2733 = vmatprep.subr.bf16.mxu0 %v6484_v22  ;;  %3185 = vmatprep.subr.bf16.mxu1 %v6487_v28  ;;  %v596_v15 = vadd.f32 %v595_v9, %v7512_v7  ;;  %v597_v18 = vpop.f32.mrb[25].mxu1  ;;  %v6499_v22 = vld [vmem:[#allocation8 + $0x38c] ss:$16 sps:$4 sm:$0xff]  }
 0x1d3   :  { %v495_v62 = vadd.f32 %v494_v57, %v7497_v39  ;;  %v496_v63 = vpop.f32.mrb[26].mxu0  ;;  %2682 = vmatprep.mubr.bf16.mxu0 %v1019_v49  ;;  %3134 = vmatprep.mubr.bf16.mxu1 %v1019_v49  ;;  %v598_v23 = vadd.f32 %v597_v18, %v7518_v14  ;;  %v599_v24 = vpop.f32.mrb[26].mxu1 }
 0x1d4   :  { %v497_v3 = vadd.f32 %v496_v63, %v7493_v8  ;;  %v498_v4 = vpop.f32.mrb[27].mxu0  ;;  %2683 = vmatmul.mubr.bf16.gmra.mrb[80].mxu0 %v1018_v42  ;;  %3135 = vmatmul.mubr.bf16.gmra.mrb[88].mxu1 %v1018_v42  ;;  %v946_v8 = vmax.f32 %v493_v55, 0.0  ;;  %v932_v28 = vmax.f32 %v596_v15, 0.0  ;;  %v600_v30 = vadd.f32 %v599_v24, %v7512_v7  ;;  %v601_v32 = vpop.f32.mrb[27].mxu1  ;;  %v6497_v42 = vld [vmem:[#allocation8 + $0x388] ss:$16 sps:$4 sm:$0xff]  }
 0x1d5   :  { %v499_v10 = vadd.f32 %v498_v4, %v7497_v39  ;;  %2734 = vmatpush1.bf16.msra.mxu0 %v6482_v44  ;;  %3186 = vmatpush1.bf16.msra.mxu1 %v6485_v45  ;;  %v7595_v39 = vrot.slane %v7486_v37, %v258_v61  ;;  %v947_v26 = vmax.f32 %v495_v62, 0.0  ;;  %v933_v34 = vmax.f32 %v598_v23, 0.0  ;;  %v6500_v63 = vld [vmem:[#allocation8 + $0x3a0] ss:$16 sps:$4 sm:$0xff]  }
 0x1d6   :  { %v954_v20 = vmax.f32 %v497_v3, 0.0  ;;  %2735 = vmatprep.subr.bf16.mxu0 %v6490_v52  ;;  %3187 = vmatprep.subr.bf16.mxu1 %v6493_v58  ;;  %v602_v31 = vadd.f32 %v601_v32, %v7518_v14  ;;  %v940_v44 = vmax.f32 %v600_v30, 0.0  ;;  %v6505_v52 = vld [vmem:[#allocation8 + $0x3ac] ss:$16 sps:$4 sm:$0xff]   ;;  %v6503_v3 = vld [vmem:[#allocation8 + $0x3a8] ss:$16 sps:$4 sm:$0xff]  }
 0x1d7   :  { %v955_v27 = vmax.f32 %v499_v10, 0.0  ;;  %v6506_v30 = vld [vmem:[#allocation8 + $0x3c0] ss:$16 sps:$4 sm:$0xff]   ;;  %v6509_v32 = vld [vmem:[#allocation8 + $0x3c8] ss:$16 sps:$4 sm:$0xff]  }
 0x1d8   :  { %v1026_v33 = vpack.c.bf16 %v954_v20, %v946_v8  ;;  %v941_v48 = vmax.f32 %v602_v31, 0.0  ;;  %v7600_v53 = vpack.c.bf16 %v940_v44, %v932_v28  ;;  %v6512_v44 = vld [vmem:[#allocation8 + $0x3e0] ss:$16 sps:$4 sm:$0xff]  }
 0x1d9   :  { %v1027_v40 = vpack.c.bf16 %v955_v27, %v947_v26  ;;  %2736 = vmatpush1.bf16.msra.mxu0 %v6488_v5  ;;  %3188 = vmatpush1.bf16.msra.mxu1 %v6491_v12  ;;  %v658_v45 = vpop.f32.mrb[28].mxu0  ;;  %v605_v58 = vpop.f32.mrb[28].mxu1  ;;  %v6508_v12 = vld [vmem:[#allocation8 + $0x3c4] ss:$16 sps:$4 sm:$0xff]  }
 0x1da   :  { %2737 = vmatprep.subr.bf16.mxu0 %v6496_v13  ;;  %3189 = vmatprep.subr.bf16.mxu1 %v6499_v22  ;;  %v659_v49 = vadd.f32 %v658_v45, %v7591_v19  ;;  %v660_v50 = vpop.f32.mrb[29].mxu0  ;;  %v7603_v57 = vpack.c.bf16 %v941_v48, %v933_v34  ;;  %v606_v4 = vadd.f32 %v605_v58, %v7512_v7  ;;  %v607_v5 = vpop.f32.mrb[29].mxu1  ;;  %v6511_v13 = vld [vmem:[#allocation8 + $0x3cc] ss:$16 sps:$4 sm:$0xff]  }
 0x1db   :  { %2692 = vmatprep.mubr.bf16.mxu0 %v1027_v40  ;;  %3144 = vmatprep.mubr.bf16.mxu1 %v1027_v40  ;;  %v661_v54 = vadd.f32 %v660_v50, %v7595_v39  ;;  %v662_v55 = vpop.f32.mrb[30].mxu0  ;;  %v608_v15 = vadd.f32 %v607_v5, %v7518_v14  ;;  %v609_v18 = vpop.f32.mrb[30].mxu1  ;;  %v6517_v45 = vld [vmem:[#allocation8 + $0x3ec] ss:$16 sps:$4 sm:$0xff]   ;;  %v6515_v50 = vld [vmem:[#allocation8 + $0x3e8] ss:$16 sps:$4 sm:$0xff]  }
 0x1dc   :  { %2693 = vmatmul.mubr.bf16.gmra.mrb[84].mxu0 %v1026_v33  ;;  %3145 = vmatmul.mubr.bf16.gmra.mrb[92].mxu1 %v1026_v33  ;;  %v854_v59 = vmax.f32 %v659_v49, 0.0  ;;  %v663_v61 = vadd.f32 %v662_v55, %v7591_v19  ;;  %v664_v62 = vpop.f32.mrb[31].mxu0  ;;  %v948_v20 = vmax.f32 %v606_v4, 0.0  ;;  %v610_v22 = vadd.f32 %v609_v18, %v7512_v7  ;;  %v611_v23 = vpop.f32.mrb[31].mxu1 }
 0x1dd   :  { %2738 = vmatpush1.bf16.msra.mxu0 %v6494_v41  ;;  %3190 = vmatpush1.bf16.msra.mxu1 %v6497_v42  ;;  %v855_v9 = vmax.f32 %v661_v54, 0.0  ;;  %v665_v10 = vadd.f32 %v664_v62, %v7595_v39  ;;  %v949_v26 = vmax.f32 %v608_v15, 0.0  ;;  %v612_v27 = vadd.f32 %v611_v23, %v7518_v14 }
 0x1de   :  { %2702 = vmatprep.mubr.bf16.mxu0 %v7524_v21  ;;  %2739 = vmatprep.subr.bf16.mxu0 %v6502_v46  ;;  %v862_v8 = vmax.f32 %v663_v61, 0.0  ;;  %v956_v33 = vmax.f32 %v610_v22, 0.0  ;;  %v6520_v61 = vld [vmem:[#allocation8 + $0x404] ss:$16 sps:$4 sm:$0xff]   ;;  %v262_v5 = vsub.s32 6, %v7481_v35 }
 0x1df   :  { %3154 = vmatprep.mubr.bf16.mxu1 %v7524_v21  ;;  %3191 = vmatprep.subr.bf16.mxu1 %v6505_v52  ;;  %v863_v24 = vmax.f32 %v665_v10, 0.0  ;;  %v6514_v21 = vld [vmem:[#allocation8 + $0x3e4] ss:$16 sps:$4 sm:$0xff]   ;;  %v957_v40 = vmax.f32 %v612_v27, 0.0  ;;  %v6521_v27 = vld [vmem:[#allocation8 + $0x408] ss:$16 sps:$4 sm:$0xff]  }
 0x1e0   :  { %v7613_v28 = vpack.c.bf16 %v862_v8, %v854_v59  ;;  %v7618_v46 = vpack.c.bf16 %v956_v33, %v948_v20 }
 0x1e1   :  { %2740 = vmatpush1.bf16.msra.mxu0 %v6500_v63  ;;  %3192 = vmatpush1.bf16.msra.mxu1 %v6503_v3  ;;  %v7615_v34 = vpack.c.bf16 %v863_v24, %v855_v9  ;;  %v668_v31 = vpop.f32.mrb[32].mxu0  ;;  %v7623_v52 = vpack.c.bf16 %v957_v40, %v949_v26  ;;  %v615_v54 = vpop.f32.mrb[32].mxu1  ;;  %v6518_v26 = vld [vmem:[#allocation8 + $0x400] ss:$16 sps:$4 sm:$0xff]  }
 0x1e2   :  { %2741 = vmatprep.subr.bf16.mxu0 %v6508_v12  ;;  %3193 = vmatprep.subr.bf16.mxu1 %v6511_v13  ;;  %v669_v41 = vadd.f32 %v668_v31, %v7591_v19  ;;  %v670_v42 = vpop.f32.mrb[33].mxu0  ;;  %v616_v62 = vadd.f32 %v615_v54, %v7512_v7  ;;  %v617_v63 = vpop.f32.mrb[33].mxu1  ;;  %v266_v13 = vsub.s32 7, %v7481_v35 }
 0x1e3   :  { %v671_v48 = vadd.f32 %v670_v42, %v7595_v39  ;;  %v672_v49 = vpop.f32.mrb[34].mxu0  ;;  %v618_v9 = vadd.f32 %v617_v63, %v7518_v14  ;;  %v619_v10 = vpop.f32.mrb[34].mxu1 }
 0x1e4   :  { %2703 = vmatmul.mubr.bf16.gmra.mrb[88].mxu0 %v7521_v17  ;;  %3155 = vmatmul.mubr.bf16.gmra.mrb[96].mxu1 %v7521_v17  ;;  %v870_v55 = vmax.f32 %v669_v41, 0.0  ;;  %v673_v58 = vadd.f32 %v672_v49, %v7591_v19  ;;  %v674_v59 = vpop.f32.mrb[35].mxu0  ;;  %v6523_v17 = vld [vmem:[#allocation8 + $0x40c] ss:$16 sps:$4 sm:$0xff]   ;;  %v964_v15 = vmax.f32 %v616_v62, 0.0  ;;  %v620_v18 = vadd.f32 %v619_v10, %v7512_v7  ;;  %v621_v8 = vpop.f32.mrb[35].mxu1 }
 0x1e5   :  { %2742 = vmatpush1.bf16.msra.mxu0 %v6506_v30  ;;  %3194 = vmatpush1.bf16.msra.mxu1 %v6509_v32  ;;  %v871_v3 = vmax.f32 %v671_v48, 0.0  ;;  %v675_v4 = vadd.f32 %v674_v59, %v7595_v39  ;;  %v965_v22 = vmax.f32 %v618_v9, 0.0  ;;  %v622_v23 = vadd.f32 %v621_v8, %v7518_v14  ;;  %v6526_v7 = vld [vmem:[#allocation8 + $0x424] ss:$16 sps:$4 sm:$0xff]   ;;  %v6529_v41 = vld [vmem:[#allocation8 + $0x42c] ss:$16 sps:$4 sm:$0xff]  }
 0x1e6   :  { %2743 = vmatprep.subr.bf16.mxu0 %v6514_v21  ;;  %2745 = vmatprep.mubr.bf16.mxu0 %v7536_v0  ;;  %v878_v12 = vmax.f32 %v673_v58, 0.0  ;;  %v972_v30 = vmax.f32 %v620_v18, 0.0  ;;  %v7644_v40 = vrot.slane %v7486_v37, %v266_v13  ;;  %v6527_v58 = vld [vmem:[#allocation8 + $0x428] ss:$16 sps:$4 sm:$0xff]  }
 0x1e7   :  { %3195 = vmatprep.subr.bf16.mxu1 %v6517_v45  ;;  %3197 = vmatprep.mubr.bf16.mxu1 %v7536_v0  ;;  %v879_v20 = vmax.f32 %v675_v4, 0.0  ;;  %v7640_v0 = vrot.slane %v7486_v37, %v262_v5  ;;  %v973_v31 = vmax.f32 %v622_v23, 0.0  ;;  %v6524_v37 = vld [vmem:[#allocation8 + $0x420] ss:$16 sps:$4 sm:$0xff]  }
 0x1e8   :  { %v7635_v24 = vpack.c.bf16 %v878_v12, %v870_v55  ;;  %v7646_v42 = vpack.c.bf16 %v972_v30, %v964_v15 }
 0x1e9   :  { %2744 = vmatpush1.bf16.msra.mxu0 %v6512_v44  ;;  %3196 = vmatpush1.bf16.msra.mxu1 %v6515_v50  ;;  %v7637_v32 = vpack.c.bf16 %v879_v20, %v871_v3  ;;  %v678_v33 = vpop.f32.mrb[36].mxu0  ;;  %v7651_v48 = vpack.c.bf16 %v973_v31, %v965_v22  ;;  %v771_v55 = vpop.f32.mrb[36].mxu1  ;;  %v6535_v3 = vld [vmem:[#allocation8 + $0x44c] ss:$16 sps:$4 sm:$0xff]   ;;  %v6530_v20 = vld [vmem:[#allocation8 + $0x440] ss:$16 sps:$4 sm:$0xff]  }
 0x1ea   :  { %2826 = vmatprep.subr.bf16.mxu0 %v6520_v61  ;;  %3278 = vmatprep.subr.bf16.mxu1 %v6523_v17  ;;  %v679_v21 = vadd.f32 %v678_v33, %v7591_v19  ;;  %v680_v14 = vpop.f32.mrb[37].mxu0  ;;  %v772_v62 = vadd.f32 %v771_v55, %v7640_v0  ;;  %v773_v63 = vpop.f32.mrb[37].mxu1  ;;  %v6533_v22 = vld [vmem:[#allocation8 + $0x448] ss:$16 sps:$4 sm:$0xff]   ;;  %v6541_v31 = vld [vmem:[#allocation8 + $0x46c] ss:$16 sps:$4 sm:$0xff]  }
 0x1eb   :  { %v681_v44 = vadd.f32 %v680_v14, %v7595_v39  ;;  %v682_v45 = vpop.f32.mrb[38].mxu0  ;;  %v774_v5 = vadd.f32 %v773_v63, %v7644_v40  ;;  %v775_v17 = vpop.f32.mrb[38].mxu1  ;;  %v6536_v55 = vld [vmem:[#allocation8 + $0x460] ss:$16 sps:$4 sm:$0xff]   ;;  %v6547_v63 = vld [vmem:[#allocation8 + $0x48c] ss:$16 sps:$4 sm:$0xff]  }
 0x1ec   :  { %2746 = vmatmul.mubr.bf16.vlgmr.msra.gmra.mrb[60].mxu0 %v7533_v60  ;;  %3198 = vmatmul.mubr.bf16.vlgmr.msra.gmra.mrb[68].mxu1 %v7533_v60  ;;  %v886_v49 = vmax.f32 %v679_v21, 0.0  ;;  %v683_v50 = vadd.f32 %v682_v45, %v7591_v19  ;;  %v684_v54 = vpop.f32.mrb[39].mxu0  ;;  %v6532_v60 = vld [vmem:[#allocation8 + $0x444] ss:$16 sps:$4 sm:$0xff]   ;;  %v856_v10 = vmax.f32 %v772_v62, 0.0  ;;  %v776_v12 = vadd.f32 %v775_v17, %v7640_v0  ;;  %v777_v13 = vpop.f32.mrb[39].mxu1 }
 0x1ed   :  { %2827 = vmatpush1.bf16.msra.mxu0 %v6518_v26  ;;  %3279 = vmatpush1.bf16.msra.mxu1 %v6521_v27  ;;  %v887_v59 = vmax.f32 %v681_v44, 0.0  ;;  %v685_v61 = vadd.f32 %v684_v54, %v7595_v39  ;;  %v857_v18 = vmax.f32 %v774_v5, 0.0  ;;  %v778_v8 = vadd.f32 %v777_v13, %v7644_v40 }
 0x1ee   :  { %2755 = vmatprep.mubr.bf16.mxu0 %v7548_v47  ;;  %2828 = vmatprep.subr.bf16.mxu0 %v6526_v7  ;;  %v894_v4 = vmax.f32 %v683_v50, 0.0  ;;  %v864_v27 = vmax.f32 %v776_v12, 0.0 }
 0x1ef   :  { %3207 = vmatprep.mubr.bf16.mxu1 %v7548_v47  ;;  %3280 = vmatprep.subr.bf16.mxu1 %v6529_v41  ;;  %v895_v9 = vmax.f32 %v685_v61, 0.0  ;;  %v6538_v47 = vld [vmem:[#allocation8 + $0x464] ss:$16 sps:$4 sm:$0xff]   ;;  %v865_v7 = vmax.f32 %v778_v8, 0.0  ;;  %v6542_v8 = vld [vmem:[#allocation8 + $0x480] ss:$16 sps:$4 sm:$0xff]  }
 0x1f0   :  { %v7660_v15 = vpack.c.bf16 %v894_v4, %v886_v49  ;;  %v7667_v41 = vpack.c.bf16 %v864_v27, %v856_v10 }
 0x1f1   :  { %2829 = vmatpush1.bf16.msra.mxu0 %v6524_v37  ;;  %3281 = vmatpush1.bf16.msra.mxu1 %v6527_v58  ;;  %v7663_v23 = vpack.c.bf16 %v895_v9, %v887_v59  ;;  %v688_v26 = vpop.f32.mrb[40].mxu0  ;;  %v7672_v50 = vpack.c.bf16 %v865_v7, %v857_v18  ;;  %v781_v54 = vpop.f32.mrb[40].mxu1  ;;  %v6539_v37 = vld [vmem:[#allocation8 + $0x468] ss:$16 sps:$4 sm:$0xff]   ;;  %v6553_v7 = vld [vmem:[#allocation8 + $0x4ac] ss:$16 sps:$4 sm:$0xff]  }
 0x1f2   :  { %2830 = vmatprep.subr.bf16.mxu0 %v6532_v60  ;;  %3282 = vmatprep.subr.bf16.mxu1 %v6535_v3  ;;  %v689_v30 = vadd.f32 %v688_v26, %v7591_v19  ;;  %v690_v33 = vpop.f32.mrb[41].mxu0  ;;  %v782_v61 = vadd.f32 %v781_v54, %v7640_v0  ;;  %v783_v62 = vpop.f32.mrb[41].mxu1 }
 0x1f3   :  { %v691_v21 = vadd.f32 %v690_v33, %v7595_v39  ;;  %v692_v14 = vpop.f32.mrb[42].mxu0  ;;  %v784_v3 = vadd.f32 %v783_v62, %v7644_v40  ;;  %v785_v4 = vpop.f32.mrb[42].mxu1 }
 0x1f4   :  { %2756 = vmatmul.mubr.bf16.gmra.mrb[64].mxu0 %v7545_v43  ;;  %3208 = vmatmul.mubr.bf16.gmra.mrb[72].mxu1 %v7545_v43  ;;  %v902_v44 = vmax.f32 %v689_v30, 0.0  ;;  %v693_v45 = vadd.f32 %v692_v14, %v7591_v19  ;;  %v694_v49 = vpop.f32.mrb[43].mxu0  ;;  %v6544_v43 = vld [vmem:[#allocation8 + $0x484] ss:$16 sps:$4 sm:$0xff]   ;;  %v872_v17 = vmax.f32 %v782_v61, 0.0  ;;  %v786_v9 = vadd.f32 %v785_v4, %v7640_v0  ;;  %v787_v10 = vpop.f32.mrb[43].mxu1 }
 0x1f5   :  { %2831 = vmatpush1.bf16.msra.mxu0 %v6530_v20  ;;  %3283 = vmatpush1.bf16.msra.mxu1 %v6533_v22  ;;  %v903_v58 = vmax.f32 %v691_v21, 0.0  ;;  %v695_v59 = vadd.f32 %v694_v49, %v7595_v39  ;;  %v873_v13 = vmax.f32 %v784_v3, 0.0  ;;  %v788_v18 = vadd.f32 %v787_v10, %v7644_v40  ;;  %v6545_v20 = vld [vmem:[#allocation8 + $0x488] ss:$16 sps:$4 sm:$0xff]  }
 0x1f6   :  { %2765 = vmatprep.mubr.bf16.mxu0 %v7560_v29  ;;  %2832 = vmatprep.subr.bf16.mxu0 %v6538_v47  ;;  %v910_v60 = vmax.f32 %v693_v45, 0.0  ;;  %v880_v27 = vmax.f32 %v786_v9, 0.0 }
 0x1f7   :  { %3217 = vmatprep.mubr.bf16.mxu1 %v7560_v29  ;;  %3284 = vmatprep.subr.bf16.mxu1 %v6541_v31  ;;  %v911_v5 = vmax.f32 %v695_v59, 0.0  ;;  %v6550_v29 = vld [vmem:[#allocation8 + $0x4a4] ss:$16 sps:$4 sm:$0xff]   ;;  %v881_v33 = vmax.f32 %v788_v18, 0.0 }
 0x1f8   :  { %v7680_v12 = vpack.c.bf16 %v910_v60, %v902_v44  ;;  %v7687_v14 = vpack.c.bf16 %v880_v27, %v872_v17 }
 0x1f9   :  { %2833 = vmatpush1.bf16.msra.mxu0 %v6536_v55  ;;  %3285 = vmatpush1.bf16.msra.mxu1 %v6539_v37  ;;  %v7683_v22 = vpack.c.bf16 %v911_v5, %v903_v58  ;;  %v698_v26 = vpop.f32.mrb[44].mxu0  ;;  %v7692_v54 = vpack.c.bf16 %v881_v33, %v873_v13  ;;  %v791_v55 = vpop.f32.mrb[44].mxu1  ;;  %v6548_v37 = vld [vmem:[#allocation8 + $0x4a0] ss:$16 sps:$4 sm:$0xff]   ;;  %v6551_v58 = vld [vmem:[#allocation8 + $0x4a8] ss:$16 sps:$4 sm:$0xff]  }
 0x1fa   :  { %2834 = vmatprep.subr.bf16.mxu0 %v6544_v43  ;;  %3286 = vmatprep.subr.bf16.mxu1 %v6547_v63  ;;  %v699_v47 = vadd.f32 %v698_v26, %v7591_v19  ;;  %v700_v30 = vpop.f32.mrb[45].mxu0  ;;  %v792_v62 = vadd.f32 %v791_v55, %v7640_v0  ;;  %v793_v43 = vpop.f32.mrb[45].mxu1  ;;  %v6559_v63 = vld [vmem:[#allocation8 + $0x4cc] ss:$16 sps:$4 sm:$0xff]   ;;  %v6557_v26 = vld [vmem:[#allocation8 + $0x4c8] ss:$16 sps:$4 sm:$0xff]  }
 0x1fb   :  { %v701_v31 = vadd.f32 %v700_v30, %v7595_v39  ;;  %v702_v21 = vpop.f32.mrb[46].mxu0  ;;  %v794_v3 = vadd.f32 %v793_v43, %v7644_v40  ;;  %v795_v4 = vpop.f32.mrb[46].mxu1 }
 0x1fc   :  { %2766 = vmatmul.mubr.bf16.gmra.mrb[68].mxu0 %v7557_v25  ;;  %3218 = vmatmul.mubr.bf16.gmra.mrb[76].mxu1 %v7557_v25  ;;  %v918_v44 = vmax.f32 %v699_v47, 0.0  ;;  %v703_v45 = vadd.f32 %v702_v21, %v7591_v19  ;;  %v704_v49 = vpop.f32.mrb[47].mxu0  ;;  %v6556_v25 = vld [vmem:[#allocation8 + $0x4c4] ss:$16 sps:$4 sm:$0xff]   ;;  %v888_v17 = vmax.f32 %v792_v62, 0.0  ;;  %v796_v9 = vadd.f32 %v795_v4, %v7640_v0  ;;  %v797_v10 = vpop.f32.mrb[47].mxu1 }
 0x1fd   :  { %2835 = vmatpush1.bf16.msra.mxu0 %v6542_v8  ;;  %3287 = vmatpush1.bf16.msra.mxu1 %v6545_v20  ;;  %v919_v59 = vmax.f32 %v701_v31, 0.0  ;;  %v705_v61 = vadd.f32 %v704_v49, %v7595_v39  ;;  %v889_v18 = vmax.f32 %v794_v3, 0.0  ;;  %v798_v8 = vadd.f32 %v797_v10, %v7644_v40  ;;  %v6554_v20 = vld [vmem:[#allocation8 + $0x4c0] ss:$16 sps:$4 sm:$0xff]   ;;  %v6565_v31 = vld [vmem:[#allocation8 + $0x4ec] ss:$16 sps:$4 sm:$0xff]  }
 0x1fe   :  { %2775 = vmatprep.mubr.bf16.mxu0 %v7572_v16  ;;  %2836 = vmatprep.subr.bf16.mxu0 %v6550_v29  ;;  %v926_v60 = vmax.f32 %v703_v45, 0.0  ;;  %v896_v47 = vmax.f32 %v796_v9, 0.0  ;;  %v6563_v62 = vld [vmem:[#allocation8 + $0x4e8] ss:$16 sps:$4 sm:$0xff]   ;;  %v6571_v3 = vld [vmem:[#allocation8 + $0x50c] ss:$16 sps:$4 sm:$0xff]  }
 0x1ff   :  { %3227 = vmatprep.mubr.bf16.mxu1 %v7572_v16  ;;  %3288 = vmatprep.subr.bf16.mxu1 %v6553_v7  ;;  %v927_v5 = vmax.f32 %v705_v61, 0.0  ;;  %v6562_v16 = vld [vmem:[#allocation8 + $0x4e4] ss:$16 sps:$4 sm:$0xff]   ;;  %v897_v7 = vmax.f32 %v798_v8, 0.0  ;;  %v6560_v61 = vld [vmem:[#allocation8 + $0x4e0] ss:$16 sps:$4 sm:$0xff]  }
 0x200   :  { %v7700_v13 = vpack.c.bf16 %v926_v60, %v918_v44  ;;  %v7707_v45 = vpack.c.bf16 %v896_v47, %v888_v17  ;;  %v6566_v47 = vld [vmem:[#allocation8 + $0x500] ss:$16 sps:$4 sm:$0xff]  }
 0x201   :  { %2837 = vmatpush1.bf16.msra.mxu0 %v6548_v37  ;;  %3289 = vmatpush1.bf16.msra.mxu1 %v6551_v58  ;;  %v7703_v27 = vpack.c.bf16 %v927_v5, %v919_v59  ;;  %v708_v29 = vpop.f32.mrb[48].mxu0  ;;  %v7712_v58 = vpack.c.bf16 %v897_v7, %v889_v18  ;;  %v801_v59 = vpop.f32.mrb[48].mxu1 }
 0x202   :  { %2838 = vmatprep.subr.bf16.mxu0 %v6556_v25  ;;  %3290 = vmatprep.subr.bf16.mxu1 %v6559_v63  ;;  %v709_v30 = vadd.f32 %v708_v29, %v7591_v19  ;;  %v710_v33 = vpop.f32.mrb[49].mxu0  ;;  %v802_v63 = vadd.f32 %v801_v59, %v7640_v0  ;;  %v803_v60 = vpop.f32.mrb[49].mxu1 }
 0x203   :  { %v711_v21 = vadd.f32 %v710_v33, %v7595_v39  ;;  %v712_v44 = vpop.f32.mrb[50].mxu0  ;;  %v804_v5 = vadd.f32 %v803_v60, %v7644_v40  ;;  %v805_v17 = vpop.f32.mrb[50].mxu1  ;;  %v6572_v60 = vld [vmem:[#allocation8 + $0x520] ss:$16 sps:$4 sm:$0xff]  }
 0x204   :  { %2776 = vmatmul.mubr.bf16.gmra.mrb[72].mxu0 %v7569_v11  ;;  %3228 = vmatmul.mubr.bf16.gmra.mrb[80].mxu1 %v7569_v11  ;;  %v934_v49 = vmax.f32 %v709_v30, 0.0  ;;  %v713_v55 = vadd.f32 %v712_v44, %v7591_v19  ;;  %v714_v37 = vpop.f32.mrb[51].mxu0  ;;  %v6568_v11 = vld [vmem:[#allocation8 + $0x504] ss:$16 sps:$4 sm:$0xff]   ;;  %v904_v10 = vmax.f32 %v802_v63, 0.0  ;;  %v806_v18 = vadd.f32 %v805_v17, %v7640_v0  ;;  %v807_v8 = vpop.f32.mrb[51].mxu1 }
 0x205   :  { %2839 = vmatpush1.bf16.msra.mxu0 %v6554_v20  ;;  %3291 = vmatpush1.bf16.msra.mxu1 %v6557_v26  ;;  %v935_v43 = vmax.f32 %v711_v21, 0.0  ;;  %v715_v25 = vadd.f32 %v714_v37, %v7595_v39  ;;  %v905_v26 = vmax.f32 %v804_v5, 0.0  ;;  %v808_v29 = vadd.f32 %v807_v8, %v7644_v40 }
 0x206   :  { %2785 = vmatprep.mubr.bf16.mxu0 %v7586_v6  ;;  %2840 = vmatprep.subr.bf16.mxu0 %v6562_v16  ;;  %v942_v4 = vmax.f32 %v713_v55, 0.0  ;;  %v6569_v16 = vld [vmem:[#allocation8 + $0x508] ss:$16 sps:$4 sm:$0xff]   ;;  %v912_v7 = vmax.f32 %v806_v18, 0.0 }
 0x207   :  { %3237 = vmatprep.mubr.bf16.mxu1 %v7586_v6  ;;  %3292 = vmatprep.subr.bf16.mxu1 %v6565_v31  ;;  %v943_v9 = vmax.f32 %v715_v25, 0.0  ;;  %v6574_v6 = vld [vmem:[#allocation8 + $0x524] ss:$16 sps:$4 sm:$0xff]   ;;  %v913_v44 = vmax.f32 %v808_v29, 0.0 }
 0x208   :  { %v7720_v20 = vpack.c.bf16 %v942_v4, %v934_v49  ;;  %v6577_v49 = vld [vmem:[#allocation8 + $0x52c] ss:$16 sps:$4 sm:$0xff]   ;;  %v7727_v59 = vpack.c.bf16 %v912_v7, %v904_v10 }
 0x209   :  { %2841 = vmatpush1.bf16.msra.mxu0 %v6560_v61  ;;  %3293 = vmatpush1.bf16.msra.mxu1 %v6563_v62  ;;  %v7723_v30 = vpack.c.bf16 %v943_v9, %v935_v43  ;;  %v718_v33 = vpop.f32.mrb[52].mxu0  ;;  %v7732_v25 = vpack.c.bf16 %v913_v44, %v905_v26  ;;  %v811_v63 = vpop.f32.mrb[52].mxu1  ;;  %v6583_v9 = vld [vmem:[#allocation8 + $0x54c] ss:$16 sps:$4 sm:$0xff]  }
 0x20a   :  { %2842 = vmatprep.subr.bf16.mxu0 %v6568_v11  ;;  %3294 = vmatprep.subr.bf16.mxu1 %v6571_v3  ;;  %v719_v31 = vadd.f32 %v718_v33, %v7591_v19  ;;  %v720_v21 = vpop.f32.mrb[53].mxu0  ;;  %v6575_v11 = vld [vmem:[#allocation8 + $0x528] ss:$16 sps:$4 sm:$0xff]   ;;  %v812_v5 = vadd.f32 %v811_v63, %v7640_v0  ;;  %v813_v17 = vpop.f32.mrb[53].mxu1 }
 0x20b   :  { %v721_v55 = vadd.f32 %v720_v21, %v7595_v39  ;;  %v722_v37 = vpop.f32.mrb[54].mxu0  ;;  %v814_v18 = vadd.f32 %v813_v17, %v7644_v40  ;;  %v815_v8 = vpop.f32.mrb[54].mxu1  ;;  %v6581_v21 = vld [vmem:[#allocation8 + $0x548] ss:$16 sps:$4 sm:$0xff]  }
 0x20c   :  { %2786 = vmatmul.mubr.bf16.gmra.mrb[76].mxu0 %v7583_v2  ;;  %3238 = vmatmul.mubr.bf16.gmra.mrb[84].mxu1 %v7583_v2  ;;  %v950_v61 = vmax.f32 %v719_v31, 0.0  ;;  %v723_v62 = vadd.f32 %v722_v37, %v7591_v19  ;;  %v724_v43 = vpop.f32.mrb[55].mxu0  ;;  %v6580_v2 = vld [vmem:[#allocation8 + $0x544] ss:$16 sps:$4 sm:$0xff]   ;;  %v920_v29 = vmax.f32 %v812_v5, 0.0 }
 0x20d   :  { %2843 = vmatpush1.bf16.msra.mxu0 %v6566_v47  ;;  %3295 = vmatpush1.bf16.msra.mxu1 %v6569_v16  ;;  %v951_v3 = vmax.f32 %v721_v55, 0.0  ;;  %v725_v4 = vadd.f32 %v724_v43, %v7595_v39  ;;  %v816_v47 = vadd.f32 %v815_v8, %v7640_v0  ;;  %v817_v16 = vpop.f32.mrb[55].mxu1  ;;  %v921_v7 = vmax.f32 %v814_v18, 0.0 }
 0x20e   :  { %2795 = vmatprep.mubr.bf16.mxu0 %v7603_v57  ;;  %2844 = vmatprep.subr.bf16.mxu0 %v6574_v6  ;;  %v958_v10 = vmax.f32 %v723_v62, 0.0  ;;  %v818_v31 = vadd.f32 %v817_v16, %v7644_v40  ;;  %v6578_v6 = vld [vmem:[#allocation8 + $0x540] ss:$16 sps:$4 sm:$0xff]  }
 0x20f   :  { %3247 = vmatprep.mubr.bf16.mxu1 %v7603_v57  ;;  %3296 = vmatprep.subr.bf16.mxu1 %v6577_v49  ;;  %v959_v26 = vmax.f32 %v725_v4, 0.0  ;;  %v928_v37 = vmax.f32 %v816_v47, 0.0  ;;  %v6586_v57 = vld [vmem:[#allocation8 + $0x564] ss:$16 sps:$4 sm:$0xff]   ;;  %v6595_v47 = vld [vmem:[#allocation8 + $0x58c] ss:$16 sps:$4 sm:$0xff]  }
 0x210   :  { %v7740_v33 = vpack.c.bf16 %v958_v10, %v950_v61  ;;  %v929_v43 = vmax.f32 %v818_v31, 0.0  ;;  %v6589_v61 = vld [vmem:[#allocation8 + $0x56c] ss:$16 sps:$4 sm:$0xff]   ;;  %v6587_v10 = vld [vmem:[#allocation8 + $0x568] ss:$16 sps:$4 sm:$0xff]  }
 0x211   :  { %2845 = vmatpush1.bf16.msra.mxu0 %v6572_v60  ;;  %3297 = vmatpush1.bf16.msra.mxu1 %v6575_v11  ;;  %v7743_v44 = vpack.c.bf16 %v959_v26, %v951_v3  ;;  %v728_v55 = vpop.f32.mrb[56].mxu0  ;;  %v7747_v5 = vpack.c.bf16 %v928_v37, %v920_v29 }
 0x212   :  { %2846 = vmatprep.subr.bf16.mxu0 %v6580_v2  ;;  %3298 = vmatprep.subr.bf16.mxu1 %v6583_v9  ;;  %v729_v49 = vadd.f32 %v728_v55, %v7591_v19  ;;  %v730_v62 = vpop.f32.mrb[57].mxu0  ;;  %v7752_v17 = vpack.c.bf16 %v929_v43, %v921_v7  ;;  %v821_v2 = vpop.f32.mrb[56].mxu1  ;;  %v6584_v9 = vld [vmem:[#allocation8 + $0x560] ss:$16 sps:$4 sm:$0xff]  }
 0x213   :  { %v731_v63 = vadd.f32 %v730_v62, %v7595_v39  ;;  %v732_v4 = vpop.f32.mrb[58].mxu0  ;;  %v822_v26 = vadd.f32 %v821_v2, %v7640_v0  ;;  %v823_v29 = vpop.f32.mrb[57].mxu1  ;;  %v6593_v62 = vld [vmem:[#allocation8 + $0x588] ss:$16 sps:$4 sm:$0xff]   ;;  %v6596_v2 = vld [vmem:[#allocation8 + $0x5a0] ss:$16 sps:$4 sm:$0xff]  }
 0x214   :  { %2796 = vmatmul.mubr.bf16.gmra.mrb[80].mxu0 %v7600_v53  ;;  %3248 = vmatmul.mubr.bf16.gmra.mrb[88].mxu1 %v7600_v53  ;;  %v966_v60 = vmax.f32 %v729_v49, 0.0  ;;  %v733_v11 = vadd.f32 %v732_v4, %v7591_v19  ;;  %v734_v3 = vpop.f32.mrb[59].mxu0  ;;  %v6592_v53 = vld [vmem:[#allocation8 + $0x584] ss:$16 sps:$4 sm:$0xff]   ;;  %v824_v16 = vadd.f32 %v823_v29, %v7644_v40  ;;  %v825_v7 = vpop.f32.mrb[58].mxu1 }
 0x215   :  { %2847 = vmatpush1.bf16.msra.mxu0 %v6578_v6  ;;  %3299 = vmatpush1.bf16.msra.mxu1 %v6581_v21  ;;  %v967_v18 = vmax.f32 %v731_v63, 0.0  ;;  %v735_v8 = vadd.f32 %v734_v3, %v7595_v39  ;;  %v936_v6 = vmax.f32 %v822_v26, 0.0  ;;  %v826_v21 = vadd.f32 %v825_v7, %v7640_v0  ;;  %v827_v39 = vpop.f32.mrb[59].mxu1  ;;  %v6601_v4 = vld [vmem:[#allocation8 + $0x5ac] ss:$16 sps:$4 sm:$0xff]  }
 0x216   :  { %2805 = vmatprep.mubr.bf16.mxu0 %v7623_v52  ;;  %2848 = vmatprep.subr.bf16.mxu0 %v6586_v57  ;;  %v974_v19 = vmax.f32 %v733_v11, 0.0  ;;  %v937_v37 = vmax.f32 %v824_v16, 0.0  ;;  %v828_v49 = vadd.f32 %v827_v39, %v7644_v40  ;;  %v6590_v57 = vld [vmem:[#allocation8 + $0x580] ss:$16 sps:$4 sm:$0xff]   ;;  %v6607_v26 = vld [vmem:[#allocation8 + $0x5cc] ss:$16 sps:$4 sm:$0xff]  }
 0x217   :  { %3257 = vmatprep.mubr.bf16.mxu1 %v7623_v52  ;;  %3300 = vmatprep.subr.bf16.mxu1 %v6589_v61  ;;  %v975_v31 = vmax.f32 %v735_v8, 0.0  ;;  %v944_v63 = vmax.f32 %v826_v21, 0.0  ;;  %v6598_v52 = vld [vmem:[#allocation8 + $0x5a4] ss:$16 sps:$4 sm:$0xff]  }
 0x218   :  { %v7760_v55 = vpack.c.bf16 %v974_v19, %v966_v60  ;;  %v945_v61 = vmax.f32 %v828_v49, 0.0  ;;  %v6604_v8 = vld [vmem:[#allocation8 + $0x5c4] ss:$16 sps:$4 sm:$0xff]   ;;  %v6613_v49 = vld [vmem:[#allocation8 + $0x5ec] ss:$16 sps:$4 sm:$0xff]  }
 0x219   :  { %2849 = vmatpush1.bf16.msra.mxu0 %v6584_v9  ;;  %3301 = vmatpush1.bf16.msra.mxu1 %v6587_v10  ;;  %v7763_v43 = vpack.c.bf16 %v975_v31, %v967_v18  ;;  %v7765_v11 = vpack.c.bf16 %v944_v63, %v936_v6  ;;  %v831_v3 = vpop.f32.mrb[60].mxu1  ;;  %v6599_v9 = vld [vmem:[#allocation8 + $0x5a8] ss:$16 sps:$4 sm:$0xff]   ;;  %v6602_v31 = vld [vmem:[#allocation8 + $0x5c0] ss:$16 sps:$4 sm:$0xff]  }
 0x21a   :  { %2850 = vmatprep.subr.bf16.mxu0 %v6592_v53  ;;  %3302 = vmatprep.subr.bf16.mxu1 %v6595_v47  ;;  %v7769_v60 = vpack.c.bf16 %v945_v61, %v937_v37  ;;  %v832_v10 = vadd.f32 %v831_v3, %v7640_v0  ;;  %v833_v18 = vpop.f32.mrb[61].mxu1  ;;  %v6605_v6 = vld [vmem:[#allocation8 + $0x5c8] ss:$16 sps:$4 sm:$0xff]   ;;  %v6610_v39 = vld [vmem:[#allocation8 + $0x5e4] ss:$16 sps:$4 sm:$0xff]  }
 0x21b   :  { %v834_v29 = vadd.f32 %v833_v18, %v7644_v40  ;;  %v835_v53 = vpop.f32.mrb[62].mxu1  ;;  %v6608_v63 = vld [vmem:[#allocation8 + $0x5e0] ss:$16 sps:$4 sm:$0xff]   ;;  %v6616_v3 = vld [vmem:[#allocation8 + $0x604] ss:$16 sps:$4 sm:$0xff]  }
 0x21c   :  { %2806 = vmatmul.mubr.bf16.gmra.mrb[84].mxu0 %v7618_v46  ;;  %3258 = vmatmul.mubr.bf16.gmra.mrb[92].mxu1 %v7618_v46  ;;  %v952_v46 = vmax.f32 %v832_v10, 0.0  ;;  %v836_v47 = vadd.f32 %v835_v53, %v7640_v0  ;;  %v837_v19 = vpop.f32.mrb[63].mxu1  ;;  %v6614_v53 = vld [vmem:[#allocation8 + $0x600] ss:$16 sps:$4 sm:$0xff]  }
 0x21d   :  { %2851 = vmatpush1.bf16.msra.mxu0 %v6590_v57  ;;  %3303 = vmatpush1.bf16.msra.mxu1 %v6593_v62  ;;  %v953_v16 = vmax.f32 %v834_v29, 0.0  ;;  %v838_v7 = vadd.f32 %v837_v19, %v7644_v40  ;;  %v6622_v19 = vld [vmem:[#allocation8 + $0x624] ss:$16 sps:$4 sm:$0xff]  }
 0x21e   :  { %2815 = vmatprep.mubr.bf16.mxu0 %v7651_v48  ;;  %2852 = vmatprep.subr.bf16.mxu0 %v6598_v52  ;;  %v960_v21 = vmax.f32 %v836_v47, 0.0  ;;  %v6611_v52 = vld [vmem:[#allocation8 + $0x5e8] ss:$16 sps:$4 sm:$0xff]  }
 0x21f   :  { %3267 = vmatprep.mubr.bf16.mxu1 %v7651_v48  ;;  %3304 = vmatprep.subr.bf16.mxu1 %v6601_v4  ;;  %v961_v37 = vmax.f32 %v838_v7, 0.0  ;;  %v6625_v7 = vld [vmem:[#allocation8 + $0x62c] ss:$16 sps:$4 sm:$0xff]  }
 0x220   :  { %v7777_v57 = vpack.c.bf16 %v960_v21, %v952_v46  ;;  %v6617_v46 = vld [vmem:[#allocation8 + $0x608] ss:$16 sps:$4 sm:$0xff]   ;;  %v6631_v21 = vld [vmem:[#allocation8 + $0x64c] ss:$16 sps:$4 sm:$0xff]  }
 0x221   :  { %2853 = vmatpush1.bf16.msra.mxu0 %v6596_v2  ;;  %3305 = vmatpush1.bf16.msra.mxu1 %v6599_v9  ;;  %v7781_v48 = vpack.c.bf16 %v961_v37, %v953_v16  ;;  %v841_v62 = vpop.f32.mrb[64].mxu1  ;;  %v6619_v2 = vld [vmem:[#allocation8 + $0x60c] ss:$16 sps:$4 sm:$0xff]   ;;  %v6629_v37 = vld [vmem:[#allocation8 + $0x648] ss:$16 sps:$4 sm:$0xff]  }
 0x222   :  { %2854 = vmatprep.subr.bf16.mxu0 %v6604_v8  ;;  %3306 = vmatprep.subr.bf16.mxu1 %v6607_v26  ;;  %v842_v61 = vadd.f32 %v841_v62, %v7640_v0  ;;  %v843_v4 = vpop.f32.mrb[65].mxu1  ;;  %v6632_v62 = vld [vmem:[#allocation8 + $0x660] ss:$16 sps:$4 sm:$0xff]  }
 0x223   :  { %v844_v9 = vadd.f32 %v843_v4, %v7644_v40  ;;  %v845_v10 = vpop.f32.mrb[66].mxu1  ;;  %v6641_v4 = vld [vmem:[#allocation8 + $0x688] ss:$16 sps:$4 sm:$0xff]  }
 0x224   :  { %2816 = vmatmul.mubr.bf16.gmra.mrb[88].mxu0 %v7646_v42  ;;  %3268 = vmatmul.mubr.bf16.gmra.mrb[96].mxu1 %v7646_v42  ;;  %v968_v42 = vmax.f32 %v842_v61, 0.0  ;;  %v846_v18 = vadd.f32 %v845_v10, %v7640_v0  ;;  %v847_v8 = vpop.f32.mrb[67].mxu1  ;;  %v6620_v0 = vld [vmem:[#allocation8 + $0x620] ss:$16 sps:$4 sm:$0xff]   ;;  %v6655_v10 = vld [vmem:[#allocation8 + $0x6cc] ss:$16 sps:$4 sm:$0xff]  }
 0x225   :  { %2855 = vmatpush1.bf16.msra.mxu0 %v6602_v31  ;;  %3307 = vmatpush1.bf16.msra.mxu1 %v6605_v6  ;;  %v969_v26 = vmax.f32 %v844_v9, 0.0  ;;  %v848_v29 = vadd.f32 %v847_v8, %v7644_v40  ;;  %v6623_v40 = vld [vmem:[#allocation8 + $0x628] ss:$16 sps:$4 sm:$0xff]   ;;  %v6628_v6 = vld [vmem:[#allocation8 + $0x644] ss:$16 sps:$4 sm:$0xff]  }
 0x226   :  { %2856 = vmatprep.subr.bf16.mxu0 %v6610_v39  ;;  %2858 = vmatprep.mubr.bf16.mxu0 %v7615_v34  ;;  %v976_v47 = vmax.f32 %v846_v18, 0.0  ;;  %v6626_v39 = vld [vmem:[#allocation8 + $0x640] ss:$16 sps:$4 sm:$0xff]   ;;  %v6647_v9 = vld [vmem:[#allocation8 + $0x6a8] ss:$16 sps:$4 sm:$0xff]  }
 0x227   :  { %3308 = vmatprep.subr.bf16.mxu1 %v6613_v49  ;;  %3310 = vmatprep.mubr.bf16.mxu1 %v7615_v34  ;;  %v977_v16 = vmax.f32 %v848_v29, 0.0  ;;  %v6637_v49 = vld [vmem:[#allocation8 + $0x66c] ss:$16 sps:$4 sm:$0xff]   ;;  %v6638_v61 = vld [vmem:[#allocation8 + $0x680] ss:$16 sps:$4 sm:$0xff]  }
 0x228   :  { %v7789_v31 = vpack.c.bf16 %v976_v47, %v968_v42  ;;  %v6650_v42 = vld [vmem:[#allocation8 + $0x6c0] ss:$16 sps:$4 sm:$0xff]   ;;  %v6653_v18 = vld [vmem:[#allocation8 + $0x6c8] ss:$16 sps:$4 sm:$0xff]   ;;  %v6658_v8 = vld [vmem:[#allocation8 + $0x6e4] ss:$16 sps:$4 sm:$0xff]  }
 0x229   :  { %2857 = vmatpush1.bf16.msra.mxu0 %v6608_v63  ;;  %3309 = vmatpush1.bf16.msra.mxu1 %v6611_v52  ;;  %v7793_v34 = vpack.c.bf16 %v977_v16, %v969_v26  ;;  %v6635_v63 = vld [vmem:[#allocation8 + $0x668] ss:$16 sps:$4 sm:$0xff]   ;;  %v6643_v52 = vld [vmem:[#allocation8 + $0x68c] ss:$16 sps:$4 sm:$0xff]   ;;  %v6656_v26 = vld [vmem:[#allocation8 + $0x6e0] ss:$16 sps:$4 sm:$0xff]  }
 0x22a   :  { %2939 = vmatprep.subr.bf16.mxu0 %v6616_v3  ;;  %3391 = vmatprep.subr.bf16.mxu1 %v6619_v2  ;;  %v6646_v3 = vld [vmem:[#allocation8 + $0x6a4] ss:$16 sps:$4 sm:$0xff]   ;;  %v6644_v2 = vld [vmem:[#allocation8 + $0x6a0] ss:$16 sps:$4 sm:$0xff]   ;;  %v6659_v29 = vld [vmem:[#allocation8 + $0x6e8] ss:$16 sps:$4 sm:$0xff]  }
 0x22b   :  { %v6665_v47 = vld [vmem:[#allocation8 + $0x708] ss:$16 sps:$4 sm:$0xff]   ;;  %v6668_v16 = vld [vmem:[#allocation8 + $0x720] ss:$16 sps:$4 sm:$0xff]  }
 0x22c   :  { %2859 = vmatmul.mubr.bf16.vlgmr.msra.gmra.mrb[60].mxu0 %v7613_v28  ;;  %3311 = vmatmul.mubr.bf16.vlgmr.msra.gmra.mrb[68].mxu1 %v7613_v28  ;;  %v6634_v28 = vld [vmem:[#allocation8 + $0x664] ss:$16 sps:$4 sm:$0xff]  }
 0x22d   :  { %2940 = vmatpush1.bf16.msra.mxu0 %v6614_v53  ;;  %3392 = vmatpush1.bf16.msra.mxu1 %v6617_v46  ;;  %v6667_v53 = vld [vmem:[#allocation8 + $0x70c] ss:$16 sps:$4 sm:$0xff]   ;;  %v6662_v46 = vld [vmem:[#allocation8 + $0x700] ss:$16 sps:$4 sm:$0xff]  }
 0x22e   :  { %2868 = vmatprep.mubr.bf16.mxu0 %v7637_v32  ;;  %2941 = vmatprep.subr.bf16.mxu0 %v6622_v19  ;;  %v6670_v19 = vld [vmem:[#allocation8 + $0x724] ss:$16 sps:$4 sm:$0xff]  }
 0x22f   :  { %3320 = vmatprep.mubr.bf16.mxu1 %v7637_v32  ;;  %3393 = vmatprep.subr.bf16.mxu1 %v6625_v7  ;;  %v6640_v32 = vld [vmem:[#allocation8 + $0x684] ss:$16 sps:$4 sm:$0xff]   ;;  %v6671_v7 = vld [vmem:[#allocation8 + $0x728] ss:$16 sps:$4 sm:$0xff]  }
 0x231   :  { %2942 = vmatpush1.bf16.msra.mxu0 %v6620_v0  ;;  %3394 = vmatpush1.bf16.msra.mxu1 %v6623_v40  ;;  %v6679_v0 = vld [vmem:[#allocation8 + $0x74c] ss:$16 sps:$4 sm:$0xff]   ;;  %v6674_v40 = vld [vmem:[#allocation8 + $0x740] ss:$16 sps:$4 sm:$0xff]  }
 0x232   :  { %2943 = vmatprep.subr.bf16.mxu0 %v6628_v6  ;;  %3395 = vmatprep.subr.bf16.mxu1 %v6631_v21  ;;  %v6677_v6 = vld [vmem:[#allocation8 + $0x748] ss:$16 sps:$4 sm:$0xff]   ;;  %v6682_v21 = vld [vmem:[#allocation8 + $0x764] ss:$16 sps:$4 sm:$0xff]  }
 0x234   :  { %2869 = vmatmul.mubr.bf16.gmra.mrb[64].mxu0 %v7635_v24  ;;  %3321 = vmatmul.mubr.bf16.gmra.mrb[72].mxu1 %v7635_v24  ;;  %v6649_v24 = vld [vmem:[#allocation8 + $0x6ac] ss:$16 sps:$4 sm:$0xff]  }
 0x235   :  { %2944 = vmatpush1.bf16.msra.mxu0 %v6626_v39  ;;  %3396 = vmatpush1.bf16.msra.mxu1 %v6629_v37  ;;  %v6680_v39 = vld [vmem:[#allocation8 + $0x760] ss:$16 sps:$4 sm:$0xff]   ;;  %v6683_v37 = vld [vmem:[#allocation8 + $0x768] ss:$16 sps:$4 sm:$0xff]  }
 0x236   :  { %2878 = vmatprep.mubr.bf16.mxu0 %v7663_v23  ;;  %2945 = vmatprep.subr.bf16.mxu0 %v6634_v28  ;;  %v6691_v28 = vld [vmem:[#allocation8 + $0x78c] ss:$16 sps:$4 sm:$0xff]  }
 0x237   :  { %3330 = vmatprep.mubr.bf16.mxu1 %v7663_v23  ;;  %3397 = vmatprep.subr.bf16.mxu1 %v6637_v49  ;;  %v6652_v23 = vld [vmem:[#allocation8 + $0x6c4] ss:$16 sps:$4 sm:$0xff]   ;;  %v6686_v49 = vld [vmem:[#allocation8 + $0x780] ss:$16 sps:$4 sm:$0xff]  }
 0x239   :  { %2946 = vmatpush1.bf16.msra.mxu0 %v6632_v62  ;;  %3398 = vmatpush1.bf16.msra.mxu1 %v6635_v63  ;;  %v6689_v62 = vld [vmem:[#allocation8 + $0x788] ss:$16 sps:$4 sm:$0xff]   ;;  %v6694_v63 = vld [vmem:[#allocation8 + $0x7a4] ss:$16 sps:$4 sm:$0xff]  }
 0x23a   :  { %2947 = vmatprep.subr.bf16.mxu0 %v6640_v32  ;;  %3399 = vmatprep.subr.bf16.mxu1 %v6643_v52  ;;  %v6692_v32 = vld [vmem:[#allocation8 + $0x7a0] ss:$16 sps:$4 sm:$0xff]   ;;  %v6695_v52 = vld [vmem:[#allocation8 + $0x7a8] ss:$16 sps:$4 sm:$0xff]  }
 0x23c   :  { %2879 = vmatmul.mubr.bf16.gmra.mrb[68].mxu0 %v7660_v15  ;;  %3331 = vmatmul.mubr.bf16.gmra.mrb[76].mxu1 %v7660_v15  ;;  %v6661_v15 = vld [vmem:[#allocation8 + $0x6ec] ss:$16 sps:$4 sm:$0xff]  }
 0x23d   :  { %2948 = vmatpush1.bf16.msra.mxu0 %v6638_v61  ;;  %3400 = vmatpush1.bf16.msra.mxu1 %v6641_v4  ;;  %v6703_v61 = vld [vmem:[#allocation8 + $0x7cc] ss:$16 sps:$4 sm:$0xff]   ;;  %v6698_v4 = vld [vmem:[#allocation8 + $0x7c0] ss:$16 sps:$4 sm:$0xff]  }
 0x23e   :  { %2888 = vmatprep.mubr.bf16.mxu0 %v7683_v22  ;;  %2949 = vmatprep.subr.bf16.mxu0 %v6646_v3  ;;  %v6701_v3 = vld [vmem:[#allocation8 + $0x7c8] ss:$16 sps:$4 sm:$0xff]  }
 0x23f   :  { %3340 = vmatprep.mubr.bf16.mxu1 %v7683_v22  ;;  %3401 = vmatprep.subr.bf16.mxu1 %v6649_v24  ;;  %v6664_v22 = vld [vmem:[#allocation8 + $0x704] ss:$16 sps:$4 sm:$0xff]  }
 0x240   :  { %v6706_v24 = vld [vmem:[#allocation8 + $0x7e4] ss:$16 sps:$4 sm:$0xff]  }
 0x241   :  { %2950 = vmatpush1.bf16.msra.mxu0 %v6644_v2  ;;  %3402 = vmatpush1.bf16.msra.mxu1 %v6647_v9  ;;  %v6704_v2 = vld [vmem:[#allocation8 + $0x7e0] ss:$16 sps:$4 sm:$0xff]   ;;  %v6707_v9 = vld [vmem:[#allocation8 + $0x7e8] ss:$16 sps:$4 sm:$0xff]  }
 0x242   :  { %2951 = vmatprep.subr.bf16.mxu0 %v6652_v23  ;;  %3403 = vmatprep.subr.bf16.mxu1 %v6655_v10  ;;  %v6729_v10 = vld [vmem:[%s8364_s8 + $0x68] sm:$0xff]  }
 0x244   :  { %2889 = vmatmul.mubr.bf16.gmra.mrb[72].mxu0 %v7680_v12  ;;  %3341 = vmatmul.mubr.bf16.gmra.mrb[80].mxu1 %v7680_v12  ;;  %v6673_v12 = vld [vmem:[#allocation8 + $0x72c] ss:$16 sps:$4 sm:$0xff]  }
 0x245   :  { %2952 = vmatpush1.bf16.msra.mxu0 %v6650_v42  ;;  %3404 = vmatpush1.bf16.msra.mxu1 %v6653_v18  ;;  %v6730_v42 = vld [vmem:[%s8364_s8 + $0x28] sm:$0xff]   ;;  %v6718_v18 = vld [vmem:[%s8387_s30 + $0x38] sm:$0xff]  }
 0x246   :  { %2898 = vmatprep.mubr.bf16.mxu0 %v7703_v27  ;;  %2953 = vmatprep.subr.bf16.mxu0 %v6658_v8  ;;  %v6731_v8 = vld [vmem:[%s8364_s8 + $0x70] sm:$0xff]  }
 0x247   :  { %3350 = vmatprep.mubr.bf16.mxu1 %v7703_v27  ;;  %3405 = vmatprep.subr.bf16.mxu1 %v6661_v15  ;;  %v6676_v27 = vld [vmem:[#allocation8 + $0x744] ss:$16 sps:$4 sm:$0xff]  }
 0x248   :  { %v6732_v15 = vld [vmem:[%s8364_s8 + $0x30] sm:$0xff]  }
 0x249   :  { %2954 = vmatpush1.bf16.msra.mxu0 %v6656_v26  ;;  %3406 = vmatpush1.bf16.msra.mxu1 %v6659_v29  ;;  %v6733_v26 = vld [vmem:[%s8364_s8 + $0x78] sm:$0xff]  }
 0x24a   :  { %2955 = vmatprep.subr.bf16.mxu0 %v6664_v22  ;;  %3407 = vmatprep.subr.bf16.mxu1 %v6667_v53  ;;  %v6734_v29 = vld [vmem:[%s8364_s8 + $0x38] sm:$0xff]  }
 0x24b   :  { %v6735_v22 = vld [vmem:[#allocation12] sm:$0xff]   ;;  %v6736_v53 = vld [vmem:[#allocation12 + $0x8] sm:$0xff]  }
 0x24c   :  { %2899 = vmatmul.mubr.bf16.gmra.mrb[76].mxu0 %v7700_v13  ;;  %3351 = vmatmul.mubr.bf16.gmra.mrb[84].mxu1 %v7700_v13  ;;  %v6685_v13 = vld [vmem:[#allocation8 + $0x76c] ss:$16 sps:$4 sm:$0xff]  }
 0x24d   :  { %2956 = vmatpush1.bf16.msra.mxu0 %v6662_v46  ;;  %3408 = vmatpush1.bf16.msra.mxu1 %v6665_v47  ;;  %v6737_v46 = vld [vmem:[#allocation12 + $0x10] sm:$0xff]   ;;  %v6738_v47 = vld [vmem:[#allocation12 + $0x18] sm:$0xff]  }
 0x24e   :  { %2908 = vmatprep.mubr.bf16.mxu0 %v7723_v30  ;;  %2957 = vmatprep.subr.bf16.mxu0 %v6670_v19  ;;  %v6739_v19 = vld [vmem:[#allocation12 + $0x20] sm:$0xff]  }
 0x24f   :  { %3360 = vmatprep.mubr.bf16.mxu1 %v7723_v30  ;;  %3409 = vmatprep.subr.bf16.mxu1 %v6673_v12  ;;  %v6688_v30 = vld [vmem:[#allocation8 + $0x784] ss:$16 sps:$4 sm:$0xff]  }
 0x250   :  { %v6740_v12 = vld [vmem:[#allocation12 + $0x28] sm:$0xff]  }
 0x251   :  { %2958 = vmatpush1.bf16.msra.mxu0 %v6668_v16  ;;  %3410 = vmatpush1.bf16.msra.mxu1 %v6671_v7  ;;  %v6741_v16 = vld [vmem:[#allocation12 + $0x30] sm:$0xff]   ;;  %v6742_v7 = vld [vmem:[#allocation12 + $0x38] sm:$0xff]  }
 0x252   :  { %2959 = vmatprep.subr.bf16.mxu0 %v6676_v27  ;;  %3411 = vmatprep.subr.bf16.mxu1 %v6679_v0  ;;  %v6743_v27 = vld [vmem:[%s8364_s8 + $0xc0] sm:$0xff]   ;;  %v1298_v0 = vld [vmem:[#allocation9] sm:$0xf] }
 0x254   :  { %2909 = vmatmul.mubr.bf16.gmra.mrb[80].mxu0 %v7720_v20  ;;  %3361 = vmatmul.mubr.bf16.gmra.mrb[88].mxu1 %v7720_v20  ;;  %v6697_v20 = vld [vmem:[#allocation8 + $0x7ac] ss:$16 sps:$4 sm:$0xff]  }
 0x255   :  { %2960 = vmatpush1.bf16.msra.mxu0 %v6674_v40  ;;  %3412 = vmatpush1.bf16.msra.mxu1 %v6677_v6  ;;  %v7941_v40 = vrot.slane %v1298_v0, %v7484_v36  ;;  %v7945_v6 = vrot.slane %v1298_v0, %v246_v51 }
 0x256   :  { %2918 = vmatprep.mubr.bf16.mxu0 %v7743_v44  ;;  %2961 = vmatprep.subr.bf16.mxu0 %v6682_v21  ;;  %v7948_v21 = vrot.slane %v1298_v0, %v7489_v38 }
 0x257   :  { %3370 = vmatprep.mubr.bf16.mxu1 %v7743_v44  ;;  %3413 = vmatprep.subr.bf16.mxu1 %v6685_v13  ;;  %v6700_v44 = vld [vmem:[#allocation8 + $0x7c4] ss:$16 sps:$4 sm:$0xff]   ;;  %v7952_v13 = vrot.slane %v1298_v0, %v250_v56 }
 0x259   :  { %2962 = vmatpush1.bf16.msra.mxu0 %v6680_v39  ;;  %3414 = vmatpush1.bf16.msra.mxu1 %v6683_v37 }
 0x25a   :  { %2963 = vmatprep.subr.bf16.mxu0 %v6688_v30  ;;  %3415 = vmatprep.subr.bf16.mxu1 %v6691_v28 }
 0x25c   :  { %2919 = vmatmul.mubr.bf16.gmra.mrb[84].mxu0 %v7740_v33  ;;  %3371 = vmatmul.mubr.bf16.gmra.mrb[92].mxu1 %v7740_v33  ;;  %v6709_v33 = vld [vmem:[#allocation8 + $0x7ec] ss:$16 sps:$4 sm:$0xff]  }
 0x25d   :  { %2964 = vmatpush1.bf16.msra.mxu0 %v6686_v49  ;;  %3416 = vmatpush1.bf16.msra.mxu1 %v6689_v62 }
 0x25e   :  { %2928 = vmatprep.mubr.bf16.mxu0 %v7763_v43  ;;  %2965 = vmatprep.subr.bf16.mxu0 %v6694_v63 }
 0x25f   :  { %3380 = vmatprep.mubr.bf16.mxu1 %v7763_v43  ;;  %3417 = vmatprep.subr.bf16.mxu1 %v6697_v20  ;;  %v6710_v43 = vld [vmem:[#allocation11] sm:$0x1f]  }
 0x260   :  { %v3679_v23 = vsel %vm373_vm0, %v6710_v43, 0 }
 0x261   :  { %2966 = vmatpush1.bf16.msra.mxu0 %v6692_v32  ;;  %3418 = vmatpush1.bf16.msra.mxu1 %v6695_v52 }
 0x262   :  { %2967 = vmatprep.subr.bf16.mxu0 %v6700_v44  ;;  %3419 = vmatprep.subr.bf16.mxu1 %v6703_v61 }
 0x264   :  { %2929 = vmatmul.mubr.bf16.gmra.mrb[88].mxu0 %v7760_v55  ;;  %3381 = vmatmul.mubr.bf16.gmra.mrb[96].mxu1 %v7760_v55  ;;  %v6719_v55 = vld [vmem:[%s8364_s8 + $0x40] sm:$0xff]  }
 0x265   :  { %2968 = vmatpush1.bf16.msra.mxu0 %v6698_v4  ;;  %3420 = vmatpush1.bf16.msra.mxu1 %v6701_v3 }
 0x266   :  { %2969 = vmatprep.subr.bf16.mxu0 %v6706_v24  ;;  %2971 = vmatprep.mubr.bf16.mxu0 %v7672_v50 }
 0x267   :  { %3421 = vmatprep.subr.bf16.mxu1 %v6709_v33  ;;  %3423 = vmatprep.mubr.bf16.mxu1 %v7672_v50  ;;  %v6712_v50 = vld [vmem:[%s8387_s30 + $0x8] sm:$0xff]  }
 0x269   :  { %2970 = vmatpush1.bf16.msra.mxu0 %v6704_v2  ;;  %3422 = vmatpush1.bf16.msra.mxu1 %v6707_v9 }
 0x26a   :  { %6294 = vmatprep.subr.msk.bf16.mxu0 %vm373_vm0, %v6710_v43  ;;  %5952 = vmatprep.subr.bf16.mxu1 %v6735_v22 }
 0x26c   :  { %2972 = vmatmul.mubr.bf16.vlgmr.msra.gmra.mrb[60].mxu0 %v7667_v41  ;;  %3424 = vmatmul.mubr.bf16.vlgmr.msra.gmra.mrb[68].mxu1 %v7667_v41  ;;  %v6711_v41 = vld [vmem:[%s8387_s30] sm:$0xff]  }
 0x26d   :  { %5935 = vmatpush3.bf16.msra.mxu0 %v3679_v23  ;;  %2981 = vmatprep.mubr.bf16.mxu0 %v7692_v54 }
 0x26e   :  { %3433 = vmatprep.mubr.bf16.mxu1 %v7692_v54  ;;  %5717 = vmatprep.subr.bf16.mxu0 %v6719_v55  ;;  %v6720_v54 = vld [vmem:[%s8364_s8] sm:$0xff]  }
 0x26f   :  { %5953 = vmatpush3.bf16.msra.mxu1 %v6735_v22 }
 0x270   :  { %5954 = vmatprep.subr.bf16.mxu1 %v6736_v53 }
 0x273   :  { %5955 = vmatpush3.bf16.msra.mxu1 %v6736_v53 }
 0x274   :  { %2982 = vmatmul.mubr.bf16.gmra.mrb[64].mxu0 %v7687_v14  ;;  %3434 = vmatmul.mubr.bf16.gmra.mrb[72].mxu1 %v7687_v14  ;;  %v6713_v14 = vld [vmem:[%s8387_s30 + $0x10] sm:$0xff]  }
 0x275   :  { %2991 = vmatprep.mubr.bf16.mxu0 %v7712_v58  ;;  %3443 = vmatprep.mubr.bf16.mxu1 %v7712_v58  ;;  %v6722_v58 = vld [vmem:[%s8364_s8 + $0x8] sm:$0xff]  }
 0x276   :  { %5956 = vmatprep.subr.bf16.mxu1 %v6737_v46 }
 0x277   :  { %5957 = vmatpush3.bf16.msra.mxu1 %v6737_v46 }
 0x278   :  { %5958 = vmatprep.subr.bf16.mxu1 %v6738_v47 }
 0x27b   :  { %5959 = vmatpush3.bf16.msra.mxu1 %v6738_v47 }
 0x27c   :  { %2992 = vmatmul.mubr.bf16.gmra.mrb[68].mxu0 %v7707_v45  ;;  %3444 = vmatmul.mubr.bf16.gmra.mrb[76].mxu1 %v7707_v45  ;;  %v6721_v45 = vld [vmem:[%s8364_s8 + $0x48] sm:$0xff]  }
 0x27d   :  { %3001 = vmatprep.mubr.bf16.mxu0 %v7732_v25  ;;  %3453 = vmatprep.mubr.bf16.mxu1 %v7732_v25  ;;  %v6714_v25 = vld [vmem:[%s8387_s30 + $0x18] sm:$0xff]  }
 0x27e   :  { %5960 = vmatprep.subr.bf16.mxu1 %v6739_v19 }
 0x27f   :  { %5961 = vmatpush3.bf16.msra.mxu1 %v6739_v19 }
 0x280   :  { %5962 = vmatprep.subr.bf16.mxu1 %v6740_v12 }
 0x283   :  { %5963 = vmatpush3.bf16.msra.mxu1 %v6740_v12 }
 0x284   :  { %3002 = vmatmul.mubr.bf16.gmra.mrb[72].mxu0 %v7727_v59  ;;  %3454 = vmatmul.mubr.bf16.gmra.mrb[80].mxu1 %v7727_v59  ;;  %v6723_v59 = vld [vmem:[%s8364_s8 + $0x50] sm:$0xff]  }
 0x285   :  { %3011 = vmatprep.mubr.bf16.mxu0 %v7752_v17  ;;  %3463 = vmatprep.mubr.bf16.mxu1 %v7752_v17  ;;  %v6724_v17 = vld [vmem:[%s8364_s8 + $0x10] sm:$0xff]  }
 0x286   :  { %5964 = vmatprep.subr.bf16.mxu1 %v6741_v16 }
 0x287   :  { %5965 = vmatpush3.bf16.msra.mxu1 %v6741_v16 }
 0x288   :  { %5966 = vmatprep.subr.bf16.mxu1 %v6742_v7 }
 0x28b   :  { %5967 = vmatpush3.bf16.msra.mxu1 %v6742_v7 }
 0x28c   :  { %3012 = vmatmul.mubr.bf16.gmra.mrb[76].mxu0 %v7747_v5  ;;  %3464 = vmatmul.mubr.bf16.gmra.mrb[84].mxu1 %v7747_v5  ;;  %v6715_v5 = vld [vmem:[%s8387_s30 + $0x20] sm:$0xff]  }
 0x28d   :  { %3021 = vmatprep.mubr.bf16.mxu0 %v7769_v60  ;;  %3473 = vmatprep.mubr.bf16.mxu1 %v7769_v60  ;;  %v6726_v60 = vld [vmem:[%s8364_s8 + $0x18] sm:$0xff]  }
 0x28e   :  { %5781 = vmatprep.subr.bf16.mxu1 %v6743_v27 }
 0x294   :  { %3022 = vmatmul.mubr.bf16.gmra.mrb[80].mxu0 %v7765_v11  ;;  %3474 = vmatmul.mubr.bf16.gmra.mrb[88].mxu1 %v7765_v11  ;;  %v6725_v11 = vld [vmem:[%s8364_s8 + $0x58] sm:$0xff]  }
 0x295   :  { %3031 = vmatprep.mubr.bf16.mxu0 %v7781_v48  ;;  %3483 = vmatprep.mubr.bf16.mxu1 %v7781_v48  ;;  %v6716_v48 = vld [vmem:[%s8387_s30 + $0x28] sm:$0xff]  }
 0x29c   :  { %3032 = vmatmul.mubr.bf16.gmra.mrb[84].mxu0 %v7777_v57  ;;  %3484 = vmatmul.mubr.bf16.gmra.mrb[92].mxu1 %v7777_v57  ;;  %v6727_v57 = vld [vmem:[%s8364_s8 + $0x60] sm:$0xff]  }
 0x29d   :  { %3041 = vmatprep.mubr.bf16.mxu0 %v7793_v34  ;;  %3493 = vmatprep.mubr.bf16.mxu1 %v7793_v34  ;;  %v6728_v34 = vld [vmem:[%s8364_s8 + $0x20] sm:$0xff]  }
 0x2a4   :  { %3042 = vmatmul.mubr.bf16.gmra.mrb[88].mxu0 %v7789_v31  ;;  %3494 = vmatmul.mubr.bf16.gmra.mrb[96].mxu1 %v7789_v31  ;;  %v6717_v31 = vld [vmem:[%s8387_s30 + $0x30] sm:$0xff]  }
 0x2a5   :  { %5936 = vmatprep.mubr.msk.bf16.mxu0 %vm348_vm1, %v6711_v41 }
 0x2ac   :  { %5937 = vmatmul.mubr.msk.bf16.vlgmr.msra.gmra.mrb[92].mxu0 %vm348_vm1, %v6712_v50 }
 0x2ad   :  { %5940 = vmatprep.mubr.msk.bf16.mxu0 %vm348_vm1, %v6713_v14  ;;  %5718 = vmatpush3.bf16.msra.mxu0 %v6720_v54 }
 0x2ae   :  { %5719 = vmatprep.subr.bf16.mxu0 %v6721_v45 }
 0x2b1   :  { %5720 = vmatpush3.bf16.msra.mxu0 %v6722_v58 }
 0x2b2   :  { %5721 = vmatprep.subr.bf16.mxu0 %v6723_v59 }
 0x2b4   :  { %5941 = vmatmul.mubr.msk.bf16.gmra.mrb[96].mxu0 %vm348_vm1, %v6714_v25 }
 0x2b5   :  { %5944 = vmatprep.mubr.msk.bf16.mxu0 %vm348_vm1, %v6715_v5  ;;  %5722 = vmatpush3.bf16.msra.mxu0 %v6724_v17 }
 0x2b6   :  { %5723 = vmatprep.subr.bf16.mxu0 %v6725_v11 }
 0x2b9   :  { %5724 = vmatpush3.bf16.msra.mxu0 %v6726_v60 }
 0x2ba   :  { %5725 = vmatprep.subr.bf16.mxu0 %v6727_v57 }
 0x2bc   :  { %5945 = vmatmul.mubr.msk.bf16.gmra.mrb[100].mxu0 %vm348_vm1, %v6716_v48 }
 0x2bd   :  { %5948 = vmatprep.mubr.msk.bf16.mxu0 %vm348_vm1, %v6717_v31  ;;  %5726 = vmatpush3.bf16.msra.mxu0 %v6728_v34 }
 0x2be   :  { %5727 = vmatprep.subr.bf16.mxu0 %v6729_v10 }
 0x2c1   :  { %5728 = vmatpush3.bf16.msra.mxu0 %v6730_v42 }
 0x2c2   :  { %5729 = vmatprep.subr.bf16.mxu0 %v6731_v8 }
 0x2c4   :  { %5949 = vmatmul.mubr.msk.bf16.gmra.mrb[104].mxu0 %vm348_vm1, %v6718_v18 }
 0x2c5   :  { %5730 = vmatpush3.bf16.msra.mxu0 %v6732_v15 }
 0x2c6   :  { %5731 = vmatprep.subr.bf16.mxu0 %v6733_v26 }
 0x2c9   :  { %5732 = vmatpush3.bf16.msra.mxu0 %v6734_v29 }
 0x33f   :  { %v2973_v39 = vpop.f32.mrb[60].mxu0  ;;  %v3425_v37 = vpop.f32.mrb[68].mxu1 }
 0x340   :  { %v6038_v30 = vadd.f32 %v2973_v39, %v7941_v40  ;;  %v6070_v28 = vadd.f32 %v3425_v37, %v7945_v6  ;;  %v2975_v49 = vpop.f32.mrb[61].mxu0  ;;  %v3427_v62 = vpop.f32.mrb[69].mxu1 }
 0x341   :  { %v6039_v63 = vadd.f32 %v2975_v49, %v7948_v21  ;;  %v6071_v51 = vadd.f32 %v3427_v62, %v7952_v13  ;;  %v2977_v20 = vpop.f32.mrb[62].mxu0  ;;  %v3429_v32 = vpop.f32.mrb[70].mxu1 }
 0x342   :  { %v6040_v52 = vadd.f32 %v2977_v20, %v7941_v40  ;;  %v6072_v35 = vadd.f32 %v3429_v32, %v7945_v6  ;;  %v2979_v56 = vpop.f32.mrb[63].mxu0  ;;  %v3431_v44 = vpop.f32.mrb[71].mxu1  ;;  %v3504_v3 = vmax.f32 %v6038_v30, 0.0  ;;  %v3506_v24 = vmax.f32 %v6070_v28, 0.0 }
 0x343   :  { %v6041_v61 = vadd.f32 %v2979_v56, %v7948_v21  ;;  %v6073_v4 = vadd.f32 %v3431_v44, %v7952_v13  ;;  %v3505_v9 = vmax.f32 %v6039_v63, 0.0  ;;  %v3507_v43 = vmax.f32 %v6071_v51, 0.0 }
 0x344   :  { %v3508_v33 = vmax.f32 %v6040_v52, 0.0  ;;  %v3510_v2 = vmax.f32 %v6072_v35, 0.0 }
 0x345   :  { %v3509_v23 = vmax.f32 %v6041_v61, 0.0  ;;  %v3511_v55 = vmax.f32 %v6073_v4, 0.0 }
 0x346   :  { %v3568_v41 = vpack.c.bf16 %v3508_v33, %v3504_v3  ;;  %v7962_v50 = vpack.c.bf16 %v3510_v2, %v3506_v24 }
 0x347   :  { %v3569_v14 = vpack.c.bf16 %v3509_v23, %v3505_v9  ;;  %v7964_v54 = vpack.c.bf16 %v3511_v55, %v3507_v43  ;;  %v2983_v45 = vpop.f32.mrb[64].mxu0  ;;  %v3435_v58 = vpop.f32.mrb[72].mxu1 }
 0x348   :  { %v6042_v59 = vadd.f32 %v2983_v45, %v7941_v40  ;;  %v6074_v25 = vadd.f32 %v3435_v58, %v7945_v6  ;;  %v2985_v5 = vpop.f32.mrb[65].mxu0  ;;  %v3437_v17 = vpop.f32.mrb[73].mxu1 }
 0x349   :  { %v6043_v11 = vadd.f32 %v2985_v5, %v7948_v21  ;;  %v6075_v60 = vadd.f32 %v3437_v17, %v7952_v13  ;;  %v2987_v57 = vpop.f32.mrb[66].mxu0  ;;  %v3439_v48 = vpop.f32.mrb[74].mxu1  ;;  %4251 = vmatprep.mubr.bf16.mxu0 %v3569_v14 }
 0x34a   :  { %v6044_v31 = vadd.f32 %v2987_v57, %v7941_v40  ;;  %v6076_v34 = vadd.f32 %v3439_v48, %v7945_v6  ;;  %v2989_v10 = vpop.f32.mrb[67].mxu0  ;;  %v3441_v42 = vpop.f32.mrb[75].mxu1  ;;  %4252 = vmatmul.mubr.bf16.vlgmr.msra.gmra.mrb[108].mxu0 %v3568_v41  ;;  %v3512_v15 = vmax.f32 %v6042_v59, 0.0  ;;  %v3514_v26 = vmax.f32 %v6074_v25, 0.0 }
 0x34b   :  { %v6045_v18 = vadd.f32 %v2989_v10, %v7948_v21  ;;  %v6077_v8 = vadd.f32 %v3441_v42, %v7952_v13  ;;  %v3513_v53 = vmax.f32 %v6043_v11, 0.0  ;;  %v3515_v46 = vmax.f32 %v6075_v60, 0.0 }
 0x34c   :  { %v3516_v29 = vmax.f32 %v6044_v31, 0.0  ;;  %v3518_v22 = vmax.f32 %v6076_v34, 0.0 }
 0x34d   :  { %v3517_v47 = vmax.f32 %v6045_v18, 0.0  ;;  %v3519_v19 = vmax.f32 %v6077_v8, 0.0 }
 0x34e   :  { %v3572_v12 = vpack.c.bf16 %v3516_v29, %v3512_v15  ;;  %v7974_v16 = vpack.c.bf16 %v3518_v22, %v3514_v26 }
 0x34f   :  { %v3573_v7 = vpack.c.bf16 %v3517_v47, %v3513_v53  ;;  %v7976_v27 = vpack.c.bf16 %v3519_v19, %v3515_v46  ;;  %v2993_v0 = vpop.f32.mrb[68].mxu0  ;;  %v3445_v39 = vpop.f32.mrb[76].mxu1 }
 0x350   :  { %v6046_v37 = vadd.f32 %v2993_v0, %v7941_v40  ;;  %v6078_v30 = vadd.f32 %v3445_v39, %v7945_v6  ;;  %v2995_v28 = vpop.f32.mrb[69].mxu0  ;;  %v3447_v49 = vpop.f32.mrb[77].mxu1 }
 0x351   :  { %v6047_v62 = vadd.f32 %v2995_v28, %v7948_v21  ;;  %v6079_v63 = vadd.f32 %v3447_v49, %v7952_v13  ;;  %v2997_v51 = vpop.f32.mrb[70].mxu0  ;;  %v3449_v20 = vpop.f32.mrb[78].mxu1  ;;  %4259 = vmatprep.mubr.bf16.mxu0 %v3573_v7 }
 0x352   :  { %v6048_v32 = vadd.f32 %v2997_v51, %v7941_v40  ;;  %v6080_v52 = vadd.f32 %v3449_v20, %v7945_v6  ;;  %v2999_v35 = vpop.f32.mrb[71].mxu0  ;;  %v3451_v56 = vpop.f32.mrb[79].mxu1  ;;  %4260 = vmatmul.mubr.bf16.gmra.mrb[112].mxu0 %v3572_v12  ;;  %v3520_v4 = vmax.f32 %v6046_v37, 0.0  ;;  %v3522_v3 = vmax.f32 %v6078_v30, 0.0 }
 0x353   :  { %v6049_v44 = vadd.f32 %v2999_v35, %v7948_v21  ;;  %v6081_v61 = vadd.f32 %v3451_v56, %v7952_v13  ;;  %v3521_v2 = vmax.f32 %v6047_v62, 0.0  ;;  %v3523_v9 = vmax.f32 %v6079_v63, 0.0 }
 0x354   :  { %v3524_v24 = vmax.f32 %v6048_v32, 0.0  ;;  %v3526_v33 = vmax.f32 %v6080_v52, 0.0 }
 0x355   :  { %v3525_v43 = vmax.f32 %v6049_v44, 0.0  ;;  %v3527_v23 = vmax.f32 %v6081_v61, 0.0 }
 0x356   :  { %v3576_v55 = vpack.c.bf16 %v3524_v24, %v3520_v4  ;;  %v7986_v41 = vpack.c.bf16 %v3526_v33, %v3522_v3 }
 0x357   :  { %v3577_v14 = vpack.c.bf16 %v3525_v43, %v3521_v2  ;;  %v7988_v45 = vpack.c.bf16 %v3527_v23, %v3523_v9  ;;  %v3003_v58 = vpop.f32.mrb[72].mxu0  ;;  %v3455_v59 = vpop.f32.mrb[80].mxu1 }
 0x358   :  { %v6050_v25 = vadd.f32 %v3003_v58, %v7941_v40  ;;  %v6082_v5 = vadd.f32 %v3455_v59, %v7945_v6  ;;  %v3005_v17 = vpop.f32.mrb[73].mxu0  ;;  %v3457_v11 = vpop.f32.mrb[81].mxu1 }
 0x359   :  { %v6051_v60 = vadd.f32 %v3005_v17, %v7948_v21  ;;  %v6083_v57 = vadd.f32 %v3457_v11, %v7952_v13  ;;  %v3007_v48 = vpop.f32.mrb[74].mxu0  ;;  %v3459_v31 = vpop.f32.mrb[82].mxu1  ;;  %4267 = vmatprep.mubr.bf16.mxu0 %v3577_v14 }
 0x35a   :  { %v6052_v34 = vadd.f32 %v3007_v48, %v7941_v40  ;;  %v6084_v10 = vadd.f32 %v3459_v31, %v7945_v6  ;;  %v3009_v42 = vpop.f32.mrb[75].mxu0  ;;  %v3461_v18 = vpop.f32.mrb[83].mxu1  ;;  %4268 = vmatmul.mubr.bf16.gmra.mrb[116].mxu0 %v3576_v55  ;;  %v3528_v26 = vmax.f32 %v6050_v25, 0.0  ;;  %v3530_v29 = vmax.f32 %v6082_v5, 0.0 }
 0x35b   :  { %v6053_v8 = vadd.f32 %v3009_v42, %v7948_v21  ;;  %v6085_v15 = vadd.f32 %v3461_v18, %v7952_v13  ;;  %v3529_v46 = vmax.f32 %v6051_v60, 0.0  ;;  %v3531_v47 = vmax.f32 %v6083_v57, 0.0 }
 0x35c   :  { %v3532_v22 = vmax.f32 %v6052_v34, 0.0  ;;  %v3534_v53 = vmax.f32 %v6084_v10, 0.0 }
 0x35d   :  { %v3533_v19 = vmax.f32 %v6053_v8, 0.0  ;;  %v3535_v12 = vmax.f32 %v6085_v15, 0.0 }
 0x35e   :  { %v3580_v7 = vpack.c.bf16 %v3532_v22, %v3528_v26  ;;  %v7998_v0 = vpack.c.bf16 %v3534_v53, %v3530_v29 }
 0x35f   :  { %v3581_v39 = vpack.c.bf16 %v3533_v19, %v3529_v46  ;;  %v8000_v37 = vpack.c.bf16 %v3535_v12, %v3531_v47  ;;  %v3013_v30 = vpop.f32.mrb[76].mxu0  ;;  %v3465_v28 = vpop.f32.mrb[84].mxu1 }
 0x360   :  { %v6054_v49 = vadd.f32 %v3013_v30, %v7941_v40  ;;  %v6086_v62 = vadd.f32 %v3465_v28, %v7945_v6  ;;  %v3015_v63 = vpop.f32.mrb[77].mxu0  ;;  %v3467_v51 = vpop.f32.mrb[85].mxu1 }
 0x361   :  { %v6055_v20 = vadd.f32 %v3015_v63, %v7948_v21  ;;  %v6087_v32 = vadd.f32 %v3467_v51, %v7952_v13  ;;  %v3017_v52 = vpop.f32.mrb[78].mxu0  ;;  %v3469_v35 = vpop.f32.mrb[86].mxu1  ;;  %4275 = vmatprep.mubr.bf16.mxu0 %v3581_v39 }
 0x362   :  { %v6056_v56 = vadd.f32 %v3017_v52, %v7941_v40  ;;  %v6088_v44 = vadd.f32 %v3469_v35, %v7945_v6  ;;  %v3019_v61 = vpop.f32.mrb[79].mxu0  ;;  %v3471_v4 = vpop.f32.mrb[87].mxu1  ;;  %4276 = vmatmul.mubr.bf16.gmra.mrb[120].mxu0 %v3580_v7  ;;  %v3536_v33 = vmax.f32 %v6054_v49, 0.0  ;;  %v3538_v2 = vmax.f32 %v6086_v62, 0.0 }
 0x363   :  { %v6057_v3 = vadd.f32 %v3019_v61, %v7948_v21  ;;  %v6089_v24 = vadd.f32 %v3471_v4, %v7952_v13  ;;  %v3537_v23 = vmax.f32 %v6055_v20, 0.0  ;;  %v3539_v55 = vmax.f32 %v6087_v32, 0.0 }
 0x364   :  { %v3540_v9 = vmax.f32 %v6056_v56, 0.0  ;;  %v3542_v43 = vmax.f32 %v6088_v44, 0.0 }
 0x365   :  { %v3541_v14 = vmax.f32 %v6057_v3, 0.0  ;;  %v3543_v58 = vmax.f32 %v6089_v24, 0.0 }
 0x366   :  { %v3584_v59 = vpack.c.bf16 %v3540_v9, %v3536_v33  ;;  %v8010_v25 = vpack.c.bf16 %v3542_v43, %v3538_v2 }
 0x367   :  { %v3585_v5 = vpack.c.bf16 %v3541_v14, %v3537_v23  ;;  %v8012_v17 = vpack.c.bf16 %v3543_v58, %v3539_v55  ;;  %v3023_v11 = vpop.f32.mrb[80].mxu0  ;;  %v3475_v60 = vpop.f32.mrb[88].mxu1 }
 0x368   :  { %v6058_v57 = vadd.f32 %v3023_v11, %v7941_v40  ;;  %v6090_v48 = vadd.f32 %v3475_v60, %v7945_v6  ;;  %v3025_v31 = vpop.f32.mrb[81].mxu0  ;;  %v3477_v34 = vpop.f32.mrb[89].mxu1 }
 0x369   :  { %v6059_v10 = vadd.f32 %v3025_v31, %v7948_v21  ;;  %v6091_v42 = vadd.f32 %v3477_v34, %v7952_v13  ;;  %v3027_v18 = vpop.f32.mrb[82].mxu0  ;;  %v3479_v8 = vpop.f32.mrb[90].mxu1  ;;  %4283 = vmatprep.mubr.bf16.mxu0 %v3585_v5 }
 0x36a   :  { %v6060_v15 = vadd.f32 %v3027_v18, %v7941_v40  ;;  %v6092_v26 = vadd.f32 %v3479_v8, %v7945_v6  ;;  %v3029_v29 = vpop.f32.mrb[83].mxu0  ;;  %v3481_v22 = vpop.f32.mrb[91].mxu1  ;;  %4284 = vmatmul.mubr.bf16.gmra.mrb[124].mxu0 %v3584_v59  ;;  %v3544_v47 = vmax.f32 %v6058_v57, 0.0  ;;  %v3546_v19 = vmax.f32 %v6090_v48, 0.0 }
 0x36b   :  { %v6061_v53 = vadd.f32 %v3029_v29, %v7948_v21  ;;  %v6093_v46 = vadd.f32 %v3481_v22, %v7952_v13  ;;  %v3545_v39 = vmax.f32 %v6059_v10, 0.0  ;;  %v3547_v30 = vmax.f32 %v6091_v42, 0.0 }
 0x36c   :  { %v3548_v12 = vmax.f32 %v6060_v15, 0.0  ;;  %v3550_v7 = vmax.f32 %v6092_v26, 0.0 }
 0x36d   :  { %v3549_v28 = vmax.f32 %v6061_v53, 0.0  ;;  %v3551_v49 = vmax.f32 %v6093_v46, 0.0 }
 0x36e   :  { %v3588_v62 = vpack.c.bf16 %v3548_v12, %v3544_v47  ;;  %v8022_v63 = vpack.c.bf16 %v3550_v7, %v3546_v19 }
 0x36f   :  { %v3589_v51 = vpack.c.bf16 %v3549_v28, %v3545_v39  ;;  %v8024_v20 = vpack.c.bf16 %v3551_v49, %v3547_v30  ;;  %v3033_v32 = vpop.f32.mrb[84].mxu0  ;;  %v3485_v52 = vpop.f32.mrb[92].mxu1 }
 0x370   :  { %v6062_v35 = vadd.f32 %v3033_v32, %v7941_v40  ;;  %v6094_v56 = vadd.f32 %v3485_v52, %v7945_v6  ;;  %v3035_v44 = vpop.f32.mrb[85].mxu0  ;;  %v3487_v61 = vpop.f32.mrb[93].mxu1 }
 0x371   :  { %v6063_v4 = vadd.f32 %v3035_v44, %v7948_v21  ;;  %v6095_v3 = vadd.f32 %v3487_v61, %v7952_v13  ;;  %v3037_v24 = vpop.f32.mrb[86].mxu0  ;;  %v3489_v33 = vpop.f32.mrb[94].mxu1  ;;  %4291 = vmatprep.mubr.bf16.mxu0 %v3589_v51 }
 0x372   :  { %v6064_v2 = vadd.f32 %v3037_v24, %v7941_v40  ;;  %v6096_v9 = vadd.f32 %v3489_v33, %v7945_v6  ;;  %v3039_v43 = vpop.f32.mrb[87].mxu0  ;;  %v3491_v23 = vpop.f32.mrb[95].mxu1  ;;  %4292 = vmatmul.mubr.bf16.gmra.mrb[128].mxu0 %v3588_v62  ;;  %v3552_v58 = vmax.f32 %v6062_v35, 0.0  ;;  %v3554_v59 = vmax.f32 %v6094_v56, 0.0 }
 0x373   :  { %v6065_v55 = vadd.f32 %v3039_v43, %v7948_v21  ;;  %v6097_v14 = vadd.f32 %v3491_v23, %v7952_v13  ;;  %v3553_v60 = vmax.f32 %v6063_v4, 0.0  ;;  %v3555_v57 = vmax.f32 %v6095_v3, 0.0 }
 0x374   :  { %v3556_v5 = vmax.f32 %v6064_v2, 0.0  ;;  %v3558_v11 = vmax.f32 %v6096_v9, 0.0 }
 0x375   :  { %v3557_v48 = vmax.f32 %v6065_v55, 0.0  ;;  %v3559_v31 = vmax.f32 %v6097_v14, 0.0 }
 0x376   :  { %v3592_v34 = vpack.c.bf16 %v3556_v5, %v3552_v58  ;;  %v8034_v10 = vpack.c.bf16 %v3558_v11, %v3554_v59 }
 0x377   :  { %v3593_v42 = vpack.c.bf16 %v3557_v48, %v3553_v60  ;;  %v8036_v18 = vpack.c.bf16 %v3559_v31, %v3555_v57  ;;  %v3043_v8 = vpop.f32.mrb[88].mxu0  ;;  %v3495_v15 = vpop.f32.mrb[96].mxu1  ;;  %v6744_v31 = vld [vmem:[%s8364_s8 + $0x80] sm:$0xff]  }
 0x378   :  { %v6066_v26 = vadd.f32 %v3043_v8, %v7941_v40  ;;  %v6098_v29 = vadd.f32 %v3495_v15, %v7945_v6  ;;  %v3045_v22 = vpop.f32.mrb[89].mxu0  ;;  %v3497_v53 = vpop.f32.mrb[97].mxu1  ;;  %v6745_v8 = vld [vmem:[%s8364_s8 + $0xc8] sm:$0xff]  }
 0x379   :  { %v6067_v46 = vadd.f32 %v3045_v22, %v7948_v21  ;;  %v6099_v47 = vadd.f32 %v3497_v53, %v7952_v13  ;;  %v3047_v19 = vpop.f32.mrb[90].mxu0  ;;  %v3499_v12 = vpop.f32.mrb[98].mxu1  ;;  %4299 = vmatprep.mubr.bf16.mxu0 %v3593_v42 }
 0x37a   :  { %v6068_v7 = vadd.f32 %v3047_v19, %v7941_v40  ;;  %v6100_v39 = vadd.f32 %v3499_v12, %v7945_v6  ;;  %v3049_v30 = vpop.f32.mrb[91].mxu0  ;;  %v3501_v28 = vpop.f32.mrb[99].mxu1  ;;  %4300 = vmatmul.mubr.bf16.gmra.mrb[132].mxu0 %v3592_v34  ;;  %v3560_v51 = vmax.f32 %v6066_v26, 0.0  ;;  %v3562_v32 = vmax.f32 %v6098_v29, 0.0  ;;  %v8049_v40 = vld [vmem:[%s8363_s7] ss:$0 sm:$0xff] }
 0x37b   :  { %v6069_v49 = vadd.f32 %v3049_v30, %v7948_v21  ;;  %v6101_v62 = vadd.f32 %v3501_v28, %v7952_v13  ;;  %v3561_v56 = vmax.f32 %v6067_v46, 0.0  ;;  %v3563_v44 = vmax.f32 %v6099_v47, 0.0  ;;  %v6746_v46 = vld [vmem:[%s8364_s8 + $0x88] sm:$0xff]   ;;  %v6747_v12 = vld [vmem:[%s8364_s8 + $0xd0] sm:$0xff]   ;;  %s7035_s7 = scalar_lea.vmem %s5269_s12, 32 }
 0x37c   :  { %v3564_v52 = vmax.f32 %v6068_v7, 0.0  ;;  %v3566_v35 = vmax.f32 %v6100_v39, 0.0 }
 0x37d   :  { %v3565_v61 = vmax.f32 %v6069_v49, 0.0  ;;  %v3567_v4 = vmax.f32 %v6101_v62, 0.0  ;;  %v6748_v62 = vld [vmem:[%s8364_s8 + $0x90] sm:$0xff]  }
 0x37e   :  { %v3596_v6 = vpack.c.bf16 %v3564_v52, %v3560_v51  ;;  %v8051_v3 = vpack.c.bf16 %v3566_v35, %v3562_v32  ;;  %v6749_v52 = vld [vmem:[%s8364_s8 + $0xd8] sm:$0xff]  }
 0x37f   :  { %v3597_v24 = vpack.c.bf16 %v3565_v61, %v3561_v56  ;;  %v8053_v21 = vpack.c.bf16 %v3567_v4, %v3563_v44  ;;  %v5938_v13 = vpop.f32.mrb[92].mxu0 }
 0x380   :  { %v3724_v33 = vadd.f32 %v5938_v13, %v8049_v40  ;;  %v3715_v2 = vpop.f32.mrb[93].mxu0 }
 0x381   :  { %v3716_v9 = vadd.f32 %v8049_v40, %v3715_v2  ;;  %v5939_v43 = vpop.f32.mrb[94].mxu0  ;;  %4307 = vmatprep.mubr.bf16.mxu0 %v3597_v24 }
 0x382   :  { %v3727_v23 = vadd.f32 %v5939_v43, %v8049_v40  ;;  %v3718_v55 = vpop.f32.mrb[95].mxu0  ;;  %4308 = vmatmul.mubr.bf16.gmra.mrb[136].mxu0 %v3596_v6  ;;  %v3780_v58 = vmax.f32 %v3724_v33, 0.0  ;;  %v6750_v6 = vld [vmem:[%s8364_s8 + $0x98] sm:$0xff]   ;;  %v6751_v33 = vld [vmem:[%s8364_s8 + $0xe0] sm:$0xff]  }
 0x383   :  { %v3719_v14 = vadd.f32 %v8049_v40, %v3718_v55  ;;  %4600 = vmatprep.mubr.bf16.mxu0 %v7085_v1  ;;  %v3778_v5 = vmax.f32 %v3716_v9, 0.0 }
 0x384   :  { %v3781_v59 = vmax.f32 %v3727_v23, 0.0 }
 0x385   :  { %v3779_v11 = vmax.f32 %v3719_v14, 0.0  ;;  %v6752_v14 = vld [vmem:[%s8364_s8 + $0xa0] sm:$0xff]  }
 0x386   :  { %v3795_v60 = vpack.c.bf16 %v3781_v59, %v3780_v58 }
 0x387   :  { %v3794_v57 = vpack.c.bf16 %v3779_v11, %v3778_v5  ;;  %v5942_v48 = vpop.f32.mrb[96].mxu0  ;;  %v6753_v5 = vld [vmem:[%s8364_s8 + $0xe8] sm:$0xff]  }
 0x388   :  { %v3740_v34 = vadd.f32 %v5942_v48, %v8049_v40  ;;  %v3731_v42 = vpop.f32.mrb[97].mxu0 }
 0x389   :  { %v3732_v15 = vadd.f32 %v8049_v40, %v3731_v42  ;;  %v5943_v26 = vpop.f32.mrb[98].mxu0  ;;  %5968 = vmatprep.mubr.bf16.mxu1 %v3794_v57 }
 0x38a   :  { %v3743_v29 = vadd.f32 %v5943_v26, %v8049_v40  ;;  %v3734_v22 = vpop.f32.mrb[99].mxu0  ;;  %5969 = vmatmul.mubr.bf16.vlgmr.msra.gmra.mrb[100].mxu1 %v3795_v60  ;;  %v3784_v47 = vmax.f32 %v3740_v34, 0.0  ;;  %v6754_v34 = vld [vmem:[%s8364_s8 + $0xa8] sm:$0xff]  }
 0x38b   :  { %v3735_v53 = vadd.f32 %v8049_v40, %v3734_v22  ;;  %5782 = vmatpush3.bf16.msra.mxu1 %v6744_v31  ;;  %v3782_v7 = vmax.f32 %v3732_v15, 0.0  ;;  %v6755_v15 = vld [vmem:[%s8364_s8 + $0xf0] sm:$0xff]  }
 0x38c   :  { %v3785_v19 = vmax.f32 %v3743_v29, 0.0  ;;  %5783 = vmatprep.subr.bf16.mxu1 %v6745_v8 }
 0x38d   :  { %v3783_v39 = vmax.f32 %v3735_v53, 0.0 }
 0x38e   :  { %v3797_v30 = vpack.c.bf16 %v3785_v19, %v3784_v47  ;;  %v6758_v47 = vld [vmem:[%s8364_s8 + $0xb8] sm:$0xff]  }
 0x38f   :  { %v3796_v28 = vpack.c.bf16 %v3783_v39, %v3782_v7  ;;  %v5946_v49 = vpop.f32.mrb[100].mxu0  ;;  %5784 = vmatpush3.bf16.msra.mxu1 %v6746_v46  ;;  %v6757_v46 = vld [vmem:[%s8364_s8 + $0xf8] sm:$0xff]  }
 0x390   :  { %v3756_v51 = vadd.f32 %v5946_v49, %v8049_v40  ;;  %v3747_v32 = vpop.f32.mrb[101].mxu0  ;;  %5785 = vmatprep.subr.bf16.mxu1 %v6747_v12  ;;  %v6761_v19 = vld [vmem:[#allocation15 + $0x4] ss:$8 sps:$4 sm:$0xff]  }
 0x391   :  { %v3748_v35 = vadd.f32 %v8049_v40, %v3747_v32  ;;  %v5947_v56 = vpop.f32.mrb[102].mxu0  ;;  %5972 = vmatprep.mubr.bf16.mxu1 %v3796_v28  ;;  %4568 = vmatprep.subr.bf16.mxu0 %v6761_v19 }
 0x392   :  { %v3759_v44 = vadd.f32 %v5947_v56, %v8049_v40  ;;  %v3750_v61 = vpop.f32.mrb[103].mxu0  ;;  %5973 = vmatmul.mubr.bf16.gmra.mrb[104].mxu1 %v3797_v30  ;;  %v3788_v24 = vmax.f32 %v3756_v51, 0.0 }
 0x393   :  { %v3751_v4 = vadd.f32 %v8049_v40, %v3750_v61  ;;  %5786 = vmatpush3.bf16.msra.mxu1 %v6748_v62  ;;  %v3786_v2 = vmax.f32 %v3748_v35, 0.0 }
 0x394   :  { %v3789_v13 = vmax.f32 %v3759_v44, 0.0  ;;  %5787 = vmatprep.subr.bf16.mxu1 %v6749_v52 }
 0x395   :  { %v3787_v9 = vmax.f32 %v3751_v4, 0.0 }
 0x396   :  { %v3799_v43 = vpack.c.bf16 %v3789_v13, %v3788_v24 }
 0x397   :  { %v3798_v23 = vpack.c.bf16 %v3787_v9, %v3786_v2  ;;  %v5950_v55 = vpop.f32.mrb[104].mxu0  ;;  %5788 = vmatpush3.bf16.msra.mxu1 %v6750_v6 }
 0x398   :  { %v3772_v58 = vadd.f32 %v5950_v55, %v8049_v40  ;;  %v3763_v59 = vpop.f32.mrb[105].mxu0  ;;  %5789 = vmatprep.subr.bf16.mxu1 %v6751_v33 }
 0x399   :  { %v3764_v11 = vadd.f32 %v8049_v40, %v3763_v59  ;;  %v5951_v60 = vpop.f32.mrb[106].mxu0  ;;  %5976 = vmatprep.mubr.bf16.mxu1 %v3798_v23 }
 0x39a   :  { %v3775_v57 = vadd.f32 %v5951_v60, %v8049_v40  ;;  %v3766_v48 = vpop.f32.mrb[107].mxu0  ;;  %5977 = vmatmul.mubr.bf16.gmra.mrb[108].mxu1 %v3799_v43  ;;  %v3792_v42 = vmax.f32 %v3772_v58, 0.0  ;;  %v6783_v60 = vld [vmem:[#allocation18 + $0x40] sm:$0xff]  }
 0x39b   :  { %v3767_v31 = vadd.f32 %v8049_v40, %v3766_v48  ;;  %5790 = vmatpush3.bf16.msra.mxu1 %v6752_v14  ;;  %v3790_v26 = vmax.f32 %v3764_v11, 0.0  ;;  %v6756_v40 = vld [vmem:[%s8364_s8 + $0xb0] sm:$0xff]   ;;  %v6785_v48 = vld [vmem:[#allocation18 + $0x48] sm:$0xff]  }
 0x39c   :  { %v3793_v8 = vmax.f32 %v3775_v57, 0.0  ;;  %5791 = vmatprep.subr.bf16.mxu1 %v6753_v5  ;;  %v6784_v57 = vld [vmem:[#allocation18] sm:$0xff]  }
 0x39d   :  { %v3791_v29 = vmax.f32 %v3767_v31, 0.0 }
 0x39e   :  { %v3801_v22 = vpack.c.bf16 %v3793_v8, %v3792_v42  ;;  %v6786_v42 = vld [vmem:[#allocation18 + $0x8] sm:$0xff]  }
 0x39f   :  { %v3800_v53 = vpack.c.bf16 %v3791_v29, %v3790_v26  ;;  %5792 = vmatpush3.bf16.msra.mxu1 %v6754_v34  ;;  %v6787_v26 = vld [vmem:[#allocation18 + $0x50] sm:$0xff]  }
 0x3a0   :  { %5793 = vmatprep.subr.bf16.mxu1 %v6755_v15 }
 0x3a1   :  { %5980 = vmatprep.mubr.bf16.mxu1 %v3800_v53  ;;  %v6788_v53 = vld [vmem:[#allocation18 + $0x10] sm:$0xff]  }
 0x3a2   :  { %5981 = vmatmul.mubr.bf16.gmra.mrb[112].mxu1 %v3801_v22 }
 0x3a3   :  { %5794 = vmatpush3.bf16.msra.mxu1 %v6756_v40  ;;  %4348 = vmatprep.mubr.bf16.mxu1 %v7964_v54  ;;  %v6759_v54 = vld [vmem:[#allocation15] ss:$8 sps:$4 sm:$0xff]  }
 0x3a4   :  { %5795 = vmatprep.subr.bf16.mxu1 %v6757_v46  ;;  %4569 = vmatpush1.bf16.msra.mxu0 %v6759_v54  ;;  %v6789_v40 = vld [vmem:[#allocation18 + $0x58] sm:$0xff]  }
 0x3a5   :  { %v6790_v54 = vld [vmem:[#allocation18 + $0x18] sm:$0xff]  }
 0x3a7   :  { %5796 = vmatpush3.bf16.msra.mxu1 %v6758_v47 }
 0x3a8   :  { %5845 = vmatprep.subr.bf16.mxu1 %v6783_v60 }
 0x3aa   :  { %4349 = vmatmul.mubr.bf16.vlgmr.msra.gmra.mrb[116].mxu1 %v7962_v50  ;;  %v6762_v50 = vld [vmem:[#allocation15 + $0x10] ss:$8 sps:$4 sm:$0xff]  }
 0x3ab   :  { %4356 = vmatprep.mubr.bf16.mxu1 %v7976_v27  ;;  %v6765_v27 = vld [vmem:[#allocation15 + $0x20] ss:$8 sps:$4 sm:$0xff]   ;;  %5846 = vmatpush3.bf16.msra.mxu1 %v6784_v57 }
 0x3ac   :  { %5847 = vmatprep.subr.bf16.mxu1 %v6785_v48 }
 0x3af   :  { %5848 = vmatpush3.bf16.msra.mxu1 %v6786_v42 }
 0x3b0   :  { %5849 = vmatprep.subr.bf16.mxu1 %v6787_v26  ;;  %v8183_v26 = vld [vmem:[#allocation14] ss:$0 sm:$0xff] }
 0x3b2   :  { %4357 = vmatmul.mubr.bf16.gmra.mrb[120].mxu1 %v7974_v16  ;;  %v6764_v16 = vld [vmem:[#allocation15 + $0x14] ss:$8 sps:$4 sm:$0xff]  }
 0x3b3   :  { %4364 = vmatprep.mubr.bf16.mxu1 %v7988_v45  ;;  %4570 = vmatprep.subr.bf16.mxu0 %v6764_v16  ;;  %v6768_v45 = vld [vmem:[#allocation15 + $0x30] ss:$8 sps:$4 sm:$0xff]   ;;  %v6791_v16 = vld [vmem:[#allocation18 + $0x60] sm:$0xff]  }
 0x3b4   :  { %4571 = vmatpush1.bf16.msra.mxu0 %v6762_v50  ;;  %5850 = vmatpush3.bf16.msra.mxu1 %v6788_v53 }
 0x3b5   :  { %5851 = vmatprep.subr.bf16.mxu1 %v6789_v40 }
 0x3b8   :  { %5852 = vmatpush3.bf16.msra.mxu1 %v6790_v54 }
 0x3b9   :  { %5853 = vmatprep.subr.bf16.mxu1 %v6791_v16 }
 0x3ba   :  { %4365 = vmatmul.mubr.bf16.gmra.mrb[124].mxu1 %v7986_v41  ;;  %v6767_v41 = vld [vmem:[#allocation15 + $0x24] ss:$8 sps:$4 sm:$0xff]  }
 0x3bb   :  { %4372 = vmatprep.mubr.bf16.mxu1 %v8000_v37  ;;  %4572 = vmatprep.subr.bf16.mxu0 %v6767_v41  ;;  %v6771_v37 = vld [vmem:[#allocation15 + $0x40] ss:$8 sps:$4 sm:$0xff]  }
 0x3bc   :  { %4573 = vmatpush1.bf16.msra.mxu0 %v6765_v27 }
 0x3c2   :  { %4373 = vmatmul.mubr.bf16.gmra.mrb[128].mxu1 %v7998_v0  ;;  %v6770_v0 = vld [vmem:[#allocation15 + $0x34] ss:$8 sps:$4 sm:$0xff]  }
 0x3c3   :  { %4380 = vmatprep.mubr.bf16.mxu1 %v8012_v17  ;;  %4574 = vmatprep.subr.bf16.mxu0 %v6770_v0  ;;  %v6774_v17 = vld [vmem:[#allocation15 + $0x50] ss:$8 sps:$4 sm:$0xff]  }
 0x3c4   :  { %4575 = vmatpush1.bf16.msra.mxu0 %v6768_v45  ;;  %v6792_v45 = vld [vmem:[#allocation18 + $0x20] sm:$0xff]   ;;  %v6793_v0 = vld [vmem:[#allocation18 + $0x68] sm:$0xff]  }
 0x3c5   :  { %5854 = vmatpush3.bf16.msra.mxu1 %v6792_v45 }
 0x3c6   :  { %5855 = vmatprep.subr.bf16.mxu1 %v6793_v0 }
 0x3ca   :  { %4381 = vmatmul.mubr.bf16.gmra.mrb[132].mxu1 %v8010_v25  ;;  %v6773_v25 = vld [vmem:[#allocation15 + $0x44] ss:$8 sps:$4 sm:$0xff]  }
 0x3cb   :  { %4388 = vmatprep.mubr.bf16.mxu1 %v8024_v20  ;;  %4576 = vmatprep.subr.bf16.mxu0 %v6773_v25  ;;  %v6777_v20 = vld [vmem:[#allocation15 + $0x60] ss:$8 sps:$4 sm:$0xff]  }
 0x3cc   :  { %4577 = vmatpush1.bf16.msra.mxu0 %v6771_v37 }
 0x3d2   :  { %4389 = vmatmul.mubr.bf16.gmra.mrb[136].mxu1 %v8022_v63  ;;  %v6776_v63 = vld [vmem:[#allocation15 + $0x54] ss:$8 sps:$4 sm:$0xff]  }
 0x3d3   :  { %4396 = vmatprep.mubr.bf16.mxu1 %v8036_v18  ;;  %4578 = vmatprep.subr.bf16.mxu0 %v6776_v63  ;;  %v6782_v18 = vld [vmem:[#allocation15 + $0x74] ss:$8 sps:$4 sm:$0xff]  }
 0x3d4   :  { %4579 = vmatpush1.bf16.msra.mxu0 %v6774_v17  ;;  %v6794_v17 = vld [vmem:[#allocation18 + $0x28] sm:$0xff]  }
 0x3d5   :  { %5856 = vmatpush3.bf16.msra.mxu1 %v6794_v17 }
 0x3da   :  { %4397 = vmatmul.mubr.bf16.gmra.mrb[140].mxu1 %v8034_v10  ;;  %v6779_v10 = vld [vmem:[#allocation15 + $0x64] ss:$8 sps:$4 sm:$0xff]  }
 0x3db   :  { %4404 = vmatprep.mubr.bf16.mxu1 %v8053_v21  ;;  %4580 = vmatprep.subr.bf16.mxu0 %v6779_v10  ;;  %v6780_v21 = vld [vmem:[#allocation15 + $0x70] ss:$8 sps:$4 sm:$0xff]  }
 0x3dc   :  { %4581 = vmatpush1.bf16.msra.mxu0 %v6777_v20  ;;  %v6795_v10 = vld [vmem:[#allocation18 + $0x70] sm:$0xff]  }
 0x3dd   :  { %4582 = vmatprep.subr.bf16.mxu0 %v6782_v18  ;;  %5857 = vmatprep.subr.bf16.mxu1 %v6795_v10 }
 0x3e0   :  { %4583 = vmatpush1.bf16.msra.mxu0 %v6780_v21 }
 0x3e2   :  { %4405 = vmatmul.mubr.bf16.gmra.mrb[144].mxu1 %v8051_v3 }
 0x41d   :  { %v5733_v12 = vpop.f32.mrb[108].mxu0 }
 0x41e   :  { %v5734_v3 = vpop.f32.mrb[109].mxu0 }
 0x41f   :  { %v8133_v7 = vadd.f32 %v5734_v3, %v5733_v12  ;;  %v5736_v39 = vpop.f32.mrb[110].mxu0  ;;  %v6796_v12 = vld [vmem:[#allocation18 + $0x30] sm:$0xff]  }
 0x420   :  { %v5737_v30 = vpop.f32.mrb[111].mxu0  ;;  %5858 = vmatpush3.bf16.msra.mxu1 %v6796_v12 }
 0x421   :  { %v8135_v28 = vadd.f32 %v5737_v30, %v5736_v39 }
 0x425   :  { %v5739_v49 = vpop.f32.mrb[112].mxu0 }
 0x426   :  { %v5740_v62 = vpop.f32.mrb[113].mxu0 }
 0x427   :  { %v8137_v51 = vadd.f32 %v5740_v62, %v5739_v49  ;;  %v5742_v32 = vpop.f32.mrb[114].mxu0 }
 0x428   :  { %v5743_v52 = vpop.f32.mrb[115].mxu0 }
 0x429   :  { %v8139_v35 = vadd.f32 %v5743_v52, %v5742_v32 }
 0x42d   :  { %v5745_v56 = vpop.f32.mrb[116].mxu0 }
 0x42e   :  { %v5746_v44 = vpop.f32.mrb[117].mxu0 }
 0x42f   :  { %v8141_v61 = vadd.f32 %v5746_v44, %v5745_v56  ;;  %v5748_v4 = vpop.f32.mrb[118].mxu0 }
 0x430   :  { %v5749_v6 = vpop.f32.mrb[119].mxu0 }
 0x431   :  { %v8143_v24 = vadd.f32 %v5749_v6, %v5748_v4 }
 0x435   :  { %v5751_v13 = vpop.f32.mrb[120].mxu0 }
 0x436   :  { %v5752_v33 = vpop.f32.mrb[121].mxu0 }
 0x437   :  { %v8145_v2 = vadd.f32 %v5752_v33, %v5751_v13  ;;  %v5754_v9 = vpop.f32.mrb[122].mxu0 }
 0x438   :  { %v5755_v43 = vpop.f32.mrb[123].mxu0 }
 0x439   :  { %v8147_v23 = vadd.f32 %v5755_v43, %v5754_v9 }
 0x43d   :  { %v5757_v55 = vpop.f32.mrb[124].mxu0 }
 0x43e   :  { %v5758_v14 = vpop.f32.mrb[125].mxu0 }
 0x43f   :  { %v8149_v58 = vadd.f32 %v5758_v14, %v5757_v55  ;;  %v5760_v59 = vpop.f32.mrb[126].mxu0 }
 0x440   :  { %v5761_v5 = vpop.f32.mrb[127].mxu0 }
 0x441   :  { %v8151_v11 = vadd.f32 %v5761_v5, %v5760_v59 }
 0x445   :  { %v5763_v31 = vpop.f32.mrb[128].mxu0 }
 0x446   :  { %v5764_v34 = vpop.f32.mrb[129].mxu0 }
 0x447   :  { %v5765_v8 = vadd.f32 %v5764_v34, %v5763_v31  ;;  %v5766_v15 = vpop.f32.mrb[130].mxu0 }
 0x448   :  { %v5767_v29 = vpop.f32.mrb[131].mxu0 }
 0x449   :  { %v5768_v22 = vadd.f32 %v5767_v29, %v5766_v15 }
 0x44d   :  { %v5769_v46 = vpop.f32.mrb[132].mxu0 }
 0x44e   :  { %v5770_v47 = vpop.f32.mrb[133].mxu0 }
 0x44f   :  { %v5771_v19 = vadd.f32 %v5770_v47, %v5769_v46  ;;  %v5772_v50 = vpop.f32.mrb[134].mxu0 }
 0x450   :  { %v5773_v27 = vpop.f32.mrb[135].mxu0 }
 0x451   :  { %v5774_v41 = vadd.f32 %v5773_v27, %v5772_v50 }
 0x455   :  { %v5775_v37 = vpop.f32.mrb[136].mxu0 }
 0x456   :  { %v5776_v25 = vpop.f32.mrb[137].mxu0 }
 0x457   :  { %v5777_v63 = vadd.f32 %v5776_v25, %v5775_v37  ;;  %v5778_v20 = vpop.f32.mrb[138].mxu0 }
 0x458   :  { %v5779_v18 = vpop.f32.mrb[139].mxu0 }
 0x459   :  { %v5780_v21 = vadd.f32 %v5779_v18, %v5778_v20 }
 0x45d   :  { %v5970_v3 = vpop.f32.mrb[100].mxu1 }
 0x45e   :  { %v4262_v39 = vadd.f32 %v5970_v3, %v8137_v51  ;;  %v3964_v30 = vpop.f32.mrb[101].mxu1 }
 0x45f   :  { %v4254_v49 = vadd.f32 %v8133_v7, %v3964_v30  ;;  %v5971_v62 = vpop.f32.mrb[102].mxu1 }
 0x460   :  { %v4265_v32 = vadd.f32 %v5971_v62, %v8139_v35  ;;  %v3967_v52 = vpop.f32.mrb[103].mxu1 }
 0x461   :  { %v4257_v56 = vadd.f32 %v8135_v28, %v3967_v52 }
 0x465   :  { %v5974_v44 = vpop.f32.mrb[104].mxu1 }
 0x466   :  { %v8158_v4 = vadd.f32 %v5974_v44, %v8145_v2  ;;  %v3980_v6 = vpop.f32.mrb[105].mxu1 }
 0x467   :  { %v4270_v13 = vadd.f32 %v8141_v61, %v3980_v6  ;;  %v5975_v33 = vpop.f32.mrb[106].mxu1 }
 0x468   :  { %v8162_v51 = vadd.f32 %v5975_v33, %v8147_v23  ;;  %v3983_v9 = vpop.f32.mrb[107].mxu1 }
 0x469   :  { %v4273_v7 = vadd.f32 %v8143_v24, %v3983_v9 }
 0x46d   :  { %v5978_v43 = vpop.f32.mrb[108].mxu1 }
 0x46e   :  { %v8165_v55 = vadd.f32 %v5978_v43, %v5765_v8  ;;  %v3996_v35 = vpop.f32.mrb[109].mxu1 }
 0x46f   :  { %v8168_v28 = vadd.f32 %v8149_v58, %v3996_v35  ;;  %v5979_v14 = vpop.f32.mrb[110].mxu1 }
 0x470   :  { %v8170_v2 = vadd.f32 %v5979_v14, %v5768_v22  ;;  %v3999_v59 = vpop.f32.mrb[111].mxu1 }
 0x471   :  { %v8173_v61 = vadd.f32 %v8151_v11, %v3999_v59 }
 0x475   :  { %v5982_v5 = vpop.f32.mrb[112].mxu1 }
 0x476   :  { %v8175_v23 = vadd.f32 %v5982_v5, %v5777_v63  ;;  %v4012_v60 = vpop.f32.mrb[113].mxu1 }
 0x477   :  { %v8177_v57 = vadd.f32 %v5771_v19, %v4012_v60  ;;  %v5983_v24 = vpop.f32.mrb[114].mxu1 }
 0x478   :  { %v8179_v48 = vadd.f32 %v5983_v24, %v5780_v21  ;;  %v4015_v31 = vpop.f32.mrb[115].mxu1 }
 0x479   :  { %v8181_v34 = vadd.f32 %v5774_v41, %v4015_v31 }
 0x47d   :  { %v5797_v58 = vpop.f32.mrb[116].mxu1 }
 0x47e   :  { %v5798_v42 = vpop.f32.mrb[117].mxu1 }
 0x47f   :  { %v5799_v8 = vadd.f32 %v5798_v42, %v5797_v58  ;;  %v5800_v15 = vpop.f32.mrb[118].mxu1 }
 0x480   :  { %v5801_v11 = vpop.f32.mrb[119].mxu1 }
 0x481   :  { %v4351_v29 = vadd.f32 %v5799_v8, %v4254_v49  ;;  %v5802_v22 = vadd.f32 %v5801_v11, %v5800_v15 }
 0x483   :  { %v4420_v53 = vadd.f32 %v8183_v26, %v4351_v29  ;;  %v4354_v40 = vadd.f32 %v5802_v22, %v4257_v56 }
 0x485   :  { %v4421_v46 = vadd.f32 %v8183_v26, %v4354_v40  ;;  %v5803_v47 = vpop.f32.mrb[120].mxu1  ;;  %v4436_v19 = vmax.f32 %v4420_v53, 0.0 }
 0x486   :  { %v5804_v54 = vpop.f32.mrb[121].mxu1 }
 0x487   :  { %v4437_v50 = vmax.f32 %v4421_v46, 0.0  ;;  %v5805_v16 = vadd.f32 %v5804_v54, %v5803_v47  ;;  %v5806_v27 = vpop.f32.mrb[122].mxu1 }
 0x488   :  { %v5807_v41 = vpop.f32.mrb[123].mxu1 }
 0x489   :  { %v4452_v45 = vpack.c.bf16 %v4437_v50, %v4436_v19  ;;  %v4359_v0 = vadd.f32 %v5805_v16, %v4262_v39  ;;  %v5808_v37 = vadd.f32 %v5807_v41, %v5806_v27 }
 0x48b   :  { %v4422_v25 = vadd.f32 %v8183_v26, %v4359_v0  ;;  %v4362_v17 = vadd.f32 %v5808_v37, %v4265_v32  ;;  %4601 = vmatmul.mubr.bf16.vlgmr.msra.gmra.mrb[140].mxu0 %v4452_v45 }
 0x48c   :  { %4610 = vmatprep.mubr.bf16.mxu0 %v7085_v1 }
 0x48d   :  { %v4423_v63 = vadd.f32 %v8183_v26, %v4362_v17  ;;  %v5809_v20 = vpop.f32.mrb[124].mxu1  ;;  %v4438_v18 = vmax.f32 %v4422_v25, 0.0 }
 0x48e   :  { %v5810_v10 = vpop.f32.mrb[125].mxu1 }
 0x48f   :  { %v4439_v21 = vmax.f32 %v4423_v63, 0.0  ;;  %v5811_v12 = vadd.f32 %v5810_v10, %v5809_v20  ;;  %v5812_v3 = vpop.f32.mrb[126].mxu1 }
 0x490   :  { %v5813_v30 = vpop.f32.mrb[127].mxu1 }
 0x491   :  { %v4367_v49 = vadd.f32 %v5811_v12, %v4270_v13  ;;  %v5814_v62 = vadd.f32 %v5813_v30, %v5812_v3  ;;  %v4453_v52 = vpack.c.bf16 %v4439_v21, %v4438_v18 }
 0x493   :  { %v4424_v39 = vadd.f32 %v8183_v26, %v4367_v49  ;;  %v4370_v56 = vadd.f32 %v5814_v62, %v4273_v7  ;;  %4611 = vmatmul.mubr.bf16.gmra.mrb[144].mxu0 %v4453_v52 }
 0x494   :  { %4620 = vmatprep.mubr.bf16.mxu0 %v7085_v1 }
 0x495   :  { %v4425_v32 = vadd.f32 %v8183_v26, %v4370_v56  ;;  %v5815_v44 = vpop.f32.mrb[128].mxu1  ;;  %v4440_v33 = vmax.f32 %v4424_v39, 0.0 }
 0x496   :  { %v5816_v6 = vpop.f32.mrb[129].mxu1 }
 0x497   :  { %v4441_v9 = vmax.f32 %v4425_v32, 0.0  ;;  %v5817_v43 = vadd.f32 %v5816_v6, %v5815_v44  ;;  %v5818_v35 = vpop.f32.mrb[130].mxu1 }
 0x498   :  { %v5819_v14 = vpop.f32.mrb[131].mxu1 }
 0x499   :  { %v4375_v59 = vadd.f32 %v5817_v43, %v8158_v4  ;;  %v5820_v13 = vadd.f32 %v5819_v14, %v5818_v35  ;;  %v4454_v5 = vpack.c.bf16 %v4441_v9, %v4440_v33 }
 0x49b   :  { %v4426_v60 = vadd.f32 %v8183_v26, %v4375_v59  ;;  %v4378_v7 = vadd.f32 %v5820_v13, %v8162_v51  ;;  %4621 = vmatmul.mubr.bf16.gmra.mrb[148].mxu0 %v4454_v5 }
 0x49c   :  { %4630 = vmatprep.mubr.bf16.mxu0 %v7085_v1 }
 0x49d   :  { %v4427_v24 = vadd.f32 %v8183_v26, %v4378_v7  ;;  %v5821_v31 = vpop.f32.mrb[132].mxu1  ;;  %v4442_v42 = vmax.f32 %v4426_v60, 0.0  ;;  %v6797_v60 = vld [vmem:[#allocation18 + $0x78] sm:$0xff]  }
 0x49e   :  { %v5822_v58 = vpop.f32.mrb[133].mxu1  ;;  %v6798_v7 = vld [vmem:[#allocation18 + $0x38] sm:$0xff]   ;;  %5859 = vmatprep.subr.bf16.mxu1 %v6797_v60 }
 0x49f   :  { %v4443_v8 = vmax.f32 %v4427_v24, 0.0  ;;  %v5823_v15 = vadd.f32 %v5822_v58, %v5821_v31  ;;  %v5824_v11 = vpop.f32.mrb[134].mxu1  ;;  %5860 = vmatpush3.bf16.msra.mxu1 %v6798_v7  ;;  %v6803_v24 = vld [vmem:[%s8371_s15 + $0x20] sm:$0xff]   ;;  %v6804_v31 = vld [vmem:[%s8371_s15 + $0x28] sm:$0xff]   ;;  %v4476_v58 = vld [vmem:[#allocation17] sm:$0x3] }
 0x4a0   :  { %v5825_v29 = vpop.f32.mrb[135].mxu1 }
 0x4a1   :  { %v4383_v4 = vadd.f32 %v5823_v15, %v8168_v28  ;;  %v5826_v22 = vadd.f32 %v5825_v29, %v5824_v11  ;;  %v4455_v53 = vpack.c.bf16 %v4443_v8, %v4442_v42  ;;  %v8237_v42 = vrot.slane %v4476_v58, %v7484_v36 }
 0x4a2   :  { %v8240_v8 = vrot.slane %v4476_v58, %v7489_v38 }
 0x4a3   :  { %v4428_v40 = vadd.f32 %v8183_v26, %v4383_v4  ;;  %v4386_v51 = vadd.f32 %v5826_v22, %v8173_v61  ;;  %4631 = vmatmul.mubr.bf16.gmra.mrb[152].mxu0 %v4455_v53 }
 0x4a4   :  { %4640 = vmatprep.mubr.bf16.mxu0 %v7085_v1 }
 0x4a5   :  { %v4429_v46 = vadd.f32 %v8183_v26, %v4386_v51  ;;  %v5827_v47 = vpop.f32.mrb[136].mxu1  ;;  %v4444_v19 = vmax.f32 %v4428_v40, 0.0 }
 0x4a6   :  { %v5828_v54 = vpop.f32.mrb[137].mxu1 }
 0x4a7   :  { %v4445_v50 = vmax.f32 %v4429_v46, 0.0  ;;  %v5829_v16 = vadd.f32 %v5828_v54, %v5827_v47  ;;  %v5830_v27 = vpop.f32.mrb[138].mxu1 }
 0x4a8   :  { %v5831_v41 = vpop.f32.mrb[139].mxu1 }
 0x4a9   :  { %v4391_v28 = vadd.f32 %v5829_v16, %v8165_v55  ;;  %v5832_v45 = vadd.f32 %v5831_v41, %v5830_v27  ;;  %v4456_v0 = vpack.c.bf16 %v4445_v50, %v4444_v19 }
 0x4ab   :  { %v4430_v37 = vadd.f32 %v8183_v26, %v4391_v28  ;;  %v4394_v61 = vadd.f32 %v5832_v45, %v8170_v2  ;;  %4641 = vmatmul.mubr.bf16.gmra.mrb[156].mxu0 %v4456_v0 }
 0x4ac   :  { %4650 = vmatprep.mubr.bf16.mxu0 %v7085_v1 }
 0x4ad   :  { %v4431_v25 = vadd.f32 %v8183_v26, %v4394_v61  ;;  %v5833_v17 = vpop.f32.mrb[140].mxu1  ;;  %v4446_v20 = vmax.f32 %v4430_v37, 0.0 }
 0x4ae   :  { %v5834_v63 = vpop.f32.mrb[141].mxu1 }
 0x4af   :  { %v4447_v10 = vmax.f32 %v4431_v25, 0.0  ;;  %v5835_v18 = vadd.f32 %v5834_v63, %v5833_v17  ;;  %v5836_v21 = vpop.f32.mrb[142].mxu1 }
 0x4b0   :  { %v5837_v12 = vpop.f32.mrb[143].mxu1 }
 0x4b1   :  { %v4399_v55 = vadd.f32 %v5835_v18, %v8177_v57  ;;  %v5838_v3 = vadd.f32 %v5837_v12, %v5836_v21  ;;  %v4457_v30 = vpack.c.bf16 %v4447_v10, %v4446_v20 }
 0x4b3   :  { %v4432_v49 = vadd.f32 %v8183_v26, %v4399_v55  ;;  %v4402_v2 = vadd.f32 %v5838_v3, %v8181_v34  ;;  %4651 = vmatmul.mubr.bf16.gmra.mrb[160].mxu0 %v4457_v30 }
 0x4b4   :  { %4660 = vmatprep.mubr.bf16.mxu0 %v7085_v1 }
 0x4b5   :  { %v4433_v62 = vadd.f32 %v8183_v26, %v4402_v2  ;;  %v5839_v52 = vpop.f32.mrb[144].mxu1  ;;  %v4448_v56 = vmax.f32 %v4432_v49, 0.0 }
 0x4b6   :  { %v5840_v39 = vpop.f32.mrb[145].mxu1 }
 0x4b7   :  { %v4449_v32 = vmax.f32 %v4433_v62, 0.0  ;;  %v5841_v44 = vadd.f32 %v5840_v39, %v5839_v52  ;;  %v5842_v6 = vpop.f32.mrb[146].mxu1 }
 0x4b8   :  { %v5843_v33 = vpop.f32.mrb[147].mxu1 }
 0x4b9   :  { %v4407_v57 = vadd.f32 %v5841_v44, %v8175_v23  ;;  %v5844_v9 = vadd.f32 %v5843_v33, %v5842_v6  ;;  %v4458_v43 = vpack.c.bf16 %v4449_v32, %v4448_v56  ;;  %v6799_v23 = vld [vmem:[%s8371_s15] sm:$0xff]  }
 0x4ba   :  { %5984 = vmatprep.subr.bf16.mxu0 %v6799_v23 }
 0x4bb   :  { %v4434_v35 = vadd.f32 %v8183_v26, %v4407_v57  ;;  %v4410_v34 = vadd.f32 %v5844_v9, %v8179_v48  ;;  %4661 = vmatmul.mubr.bf16.gmra.mrb[164].mxu0 %v4458_v43  ;;  %v6800_v48 = vld [vmem:[%s8371_s15 + $0x8] sm:$0xff]  }
 0x4bc   :  { %4670 = vmatprep.mubr.bf16.mxu0 %v7085_v1  ;;  %5985 = vmatpush3.bf16.msra.mxu0 %v6799_v23  ;;  %v6801_v1 = vld [vmem:[%s8371_s15 + $0x10] sm:$0xff]  }
 0x4bd   :  { %v4435_v14 = vadd.f32 %v8183_v26, %v4410_v34  ;;  %v4450_v59 = vmax.f32 %v4434_v35, 0.0  ;;  %5986 = vmatprep.subr.bf16.mxu0 %v6800_v48  ;;  %v6802_v26 = vld [vmem:[%s8371_s15 + $0x18] sm:$0xff]  }
 0x4bf   :  { %v4451_v13 = vmax.f32 %v4435_v14, 0.0 }
 0x4c0   :  { %5987 = vmatpush3.bf16.msra.mxu0 %v6800_v48 }
 0x4c1   :  { %v4459_v5 = vpack.c.bf16 %v4451_v13, %v4450_v59  ;;  %5988 = vmatprep.subr.bf16.mxu0 %v6801_v1 }
 0x4c3   :  { %4671 = vmatmul.mubr.bf16.gmra.mrb[168].mxu0 %v4459_v5 }
 0x4c4   :  { %5989 = vmatpush3.bf16.msra.mxu0 %v6801_v1 }
 0x4c5   :  { %5990 = vmatprep.subr.bf16.mxu0 %v6802_v26 }
 0x4c8   :  { %5991 = vmatpush3.bf16.msra.mxu0 %v6802_v26 }
 0x4c9   :  { %5992 = vmatprep.subr.bf16.mxu0 %v6803_v24 }
 0x4cc   :  { %5993 = vmatpush3.bf16.msra.mxu0 %v6803_v24 }
 0x4cd   :  { %5994 = vmatprep.subr.bf16.mxu0 %v6804_v31 }
 0x4d0   :  { %5995 = vmatpush3.bf16.msra.mxu0 %v6804_v31 }
 0x55e   :  { %v4602_v15 = vpop.f32.mrb[140].mxu0 }
 0x55f   :  { %v4603_v11 = vadd.f32 %v4602_v15, %v8237_v42  ;;  %v4604_v29 = vpop.f32.mrb[141].mxu0 }
 0x560   :  { %v4605_v4 = vadd.f32 %v4604_v29, %v8240_v8  ;;  %v4606_v22 = vpop.f32.mrb[142].mxu0 }
 0x561   :  { %v4607_v53 = vadd.f32 %v4606_v22, %v8237_v42  ;;  %v4608_v40 = vpop.f32.mrb[143].mxu0  ;;  %v4681_v46 = vmax.f32 %v4603_v11, 0.0 }
 0x562   :  { %v4609_v51 = vadd.f32 %v4608_v40, %v8240_v8  ;;  %v4682_v54 = vmax.f32 %v4605_v4, 0.0 }
 0x563   :  { %v4683_v47 = vmax.f32 %v4607_v53, 0.0 }
 0x564   :  { %v4684_v19 = vmax.f32 %v4609_v51, 0.0 }
 0x565   :  { %v4713_v50 = vpack.c.bf16 %v4683_v47, %v4681_v46 }
 0x566   :  { %v4714_v16 = vpack.c.bf16 %v4684_v19, %v4682_v54  ;;  %v4612_v38 = vpop.f32.mrb[144].mxu0 }
 0x567   :  { %v4613_v27 = vadd.f32 %v4612_v38, %v8237_v42  ;;  %v4614_v41 = vpop.f32.mrb[145].mxu0 }
 0x568   :  { %v4615_v28 = vadd.f32 %v4614_v41, %v8240_v8  ;;  %v4616_v45 = vpop.f32.mrb[146].mxu0  ;;  %4896 = vmatprep.mubr.bf16.mxu1 %v4714_v16 }
 0x569   :  { %v4617_v0 = vadd.f32 %v4616_v45, %v8237_v42  ;;  %v4618_v37 = vpop.f32.mrb[147].mxu0  ;;  %4897 = vmatmul.mubr.bf16.vlgmr.msra.gmra.mrb[148].mxu1 %v4713_v50  ;;  %v4685_v25 = vmax.f32 %v4613_v27, 0.0 }
 0x56a   :  { %v4619_v61 = vadd.f32 %v4618_v37, %v8240_v8  ;;  %v4686_v63 = vmax.f32 %v4615_v28, 0.0 }
 0x56b   :  { %v4687_v17 = vmax.f32 %v4617_v0, 0.0 }
 0x56c   :  { %v4688_v20 = vmax.f32 %v4619_v61, 0.0 }
 0x56d   :  { %v4715_v10 = vpack.c.bf16 %v4687_v17, %v4685_v25 }
 0x56e   :  { %v4716_v18 = vpack.c.bf16 %v4688_v20, %v4686_v63  ;;  %v4622_v21 = vpop.f32.mrb[148].mxu0 }
 0x56f   :  { %v4623_v12 = vadd.f32 %v4622_v21, %v8237_v42  ;;  %v4624_v55 = vpop.f32.mrb[149].mxu0 }
 0x570   :  { %v4625_v3 = vadd.f32 %v4624_v55, %v8240_v8  ;;  %v4626_v30 = vpop.f32.mrb[150].mxu0  ;;  %4904 = vmatprep.mubr.bf16.mxu1 %v4716_v18 }
 0x571   :  { %v4627_v49 = vadd.f32 %v4626_v30, %v8237_v42  ;;  %v4628_v2 = vpop.f32.mrb[151].mxu0  ;;  %4905 = vmatmul.mubr.bf16.gmra.mrb[152].mxu1 %v4715_v10  ;;  %v4689_v52 = vmax.f32 %v4623_v12, 0.0 }
 0x572   :  { %v4629_v62 = vadd.f32 %v4628_v2, %v8240_v8  ;;  %v4690_v56 = vmax.f32 %v4625_v3, 0.0 }
 0x573   :  { %v4691_v39 = vmax.f32 %v4627_v49, 0.0 }
 0x574   :  { %v4692_v32 = vmax.f32 %v4629_v62, 0.0 }
 0x575   :  { %v4717_v44 = vpack.c.bf16 %v4691_v39, %v4689_v52 }
 0x576   :  { %v4718_v6 = vpack.c.bf16 %v4692_v32, %v4690_v56  ;;  %v4632_v33 = vpop.f32.mrb[152].mxu0 }
 0x577   :  { %v4633_v57 = vadd.f32 %v4632_v33, %v8237_v42  ;;  %v4634_v9 = vpop.f32.mrb[153].mxu0 }
 0x578   :  { %v4635_v43 = vadd.f32 %v4634_v9, %v8240_v8  ;;  %v4636_v35 = vpop.f32.mrb[154].mxu0  ;;  %4912 = vmatprep.mubr.bf16.mxu1 %v4718_v6 }
 0x579   :  { %v4637_v34 = vadd.f32 %v4636_v35, %v8237_v42  ;;  %v4638_v14 = vpop.f32.mrb[155].mxu0  ;;  %4913 = vmatmul.mubr.bf16.gmra.mrb[156].mxu1 %v4717_v44  ;;  %v4693_v13 = vmax.f32 %v4633_v57, 0.0 }
 0x57a   :  { %v4639_v59 = vadd.f32 %v4638_v14, %v8240_v8  ;;  %v4694_v60 = vmax.f32 %v4635_v43, 0.0 }
 0x57b   :  { %v4695_v5 = vmax.f32 %v4637_v34, 0.0 }
 0x57c   :  { %v4696_v7 = vmax.f32 %v4639_v59, 0.0 }
 0x57d   :  { %v4719_v23 = vpack.c.bf16 %v4695_v5, %v4693_v13  ;;  %v6805_v5 = vld [vmem:[%s8371_s15 + $0x30] sm:$0xff]  }
 0x57e   :  { %v4720_v48 = vpack.c.bf16 %v4696_v7, %v4694_v60  ;;  %v4642_v1 = vpop.f32.mrb[156].mxu0  ;;  %5996 = vmatprep.subr.bf16.mxu0 %v6805_v5  ;;  %v8283_v60 = vld [vmem:[%s8370_s14] ss:$0 sm:$0xff] }
 0x57f   :  { %v4643_v26 = vadd.f32 %v4642_v1, %v8237_v42  ;;  %v4644_v24 = vpop.f32.mrb[157].mxu0  ;;  %5997 = vmatpush3.bf16.msra.mxu0 %v6805_v5 }
 0x580   :  { %v4645_v31 = vadd.f32 %v4644_v24, %v8240_v8  ;;  %v4646_v58 = vpop.f32.mrb[158].mxu0  ;;  %4920 = vmatprep.mubr.bf16.mxu1 %v4720_v48 }
 0x581   :  { %v4647_v15 = vadd.f32 %v4646_v58, %v8237_v42  ;;  %v4648_v11 = vpop.f32.mrb[159].mxu0  ;;  %4921 = vmatmul.mubr.bf16.gmra.mrb[160].mxu1 %v4719_v23  ;;  %v4697_v4 = vmax.f32 %v4643_v26, 0.0 }
 0x582   :  { %v4649_v29 = vadd.f32 %v4648_v11, %v8240_v8  ;;  %v4698_v53 = vmax.f32 %v4645_v31, 0.0 }
 0x583   :  { %v4699_v22 = vmax.f32 %v4647_v15, 0.0 }
 0x584   :  { %v4700_v40 = vmax.f32 %v4649_v29, 0.0 }
 0x585   :  { %v4721_v51 = vpack.c.bf16 %v4699_v22, %v4697_v4 }
 0x586   :  { %v4722_v46 = vpack.c.bf16 %v4700_v40, %v4698_v53  ;;  %v4652_v47 = vpop.f32.mrb[160].mxu0 }
 0x587   :  { %v4653_v54 = vadd.f32 %v4652_v47, %v8237_v42  ;;  %v4654_v19 = vpop.f32.mrb[161].mxu0 }
 0x588   :  { %v4655_v50 = vadd.f32 %v4654_v19, %v8240_v8  ;;  %v4656_v16 = vpop.f32.mrb[162].mxu0  ;;  %4928 = vmatprep.mubr.bf16.mxu1 %v4722_v46 }
 0x589   :  { %v4657_v38 = vadd.f32 %v4656_v16, %v8237_v42  ;;  %v4658_v27 = vpop.f32.mrb[163].mxu0  ;;  %4929 = vmatmul.mubr.bf16.gmra.mrb[164].mxu1 %v4721_v51  ;;  %v4701_v28 = vmax.f32 %v4653_v54, 0.0 }
 0x58a   :  { %v4659_v41 = vadd.f32 %v4658_v27, %v8240_v8  ;;  %v4702_v0 = vmax.f32 %v4655_v50, 0.0 }
 0x58b   :  { %v4703_v45 = vmax.f32 %v4657_v38, 0.0 }
 0x58c   :  { %v4704_v37 = vmax.f32 %v4659_v41, 0.0 }
 0x58d   :  { %v4723_v61 = vpack.c.bf16 %v4703_v45, %v4701_v28 }
 0x58e   :  { %v4724_v25 = vpack.c.bf16 %v4704_v37, %v4702_v0  ;;  %v4662_v17 = vpop.f32.mrb[164].mxu0 }
 0x58f   :  { %v4663_v63 = vadd.f32 %v4662_v17, %v8237_v42  ;;  %v4664_v20 = vpop.f32.mrb[165].mxu0 }
 0x590   :  { %v4665_v10 = vadd.f32 %v4664_v20, %v8240_v8  ;;  %v4666_v18 = vpop.f32.mrb[166].mxu0  ;;  %4936 = vmatprep.mubr.bf16.mxu1 %v4724_v25 }
 0x591   :  { %v4667_v21 = vadd.f32 %v4666_v18, %v8237_v42  ;;  %v4668_v12 = vpop.f32.mrb[167].mxu0  ;;  %4937 = vmatmul.mubr.bf16.gmra.mrb[168].mxu1 %v4723_v61  ;;  %v4705_v3 = vmax.f32 %v4663_v63, 0.0 }
 0x592   :  { %v4669_v55 = vadd.f32 %v4668_v12, %v8240_v8  ;;  %v4706_v49 = vmax.f32 %v4665_v10, 0.0 }
 0x593   :  { %v4707_v30 = vmax.f32 %v4667_v21, 0.0 }
 0x594   :  { %v4708_v2 = vmax.f32 %v4669_v55, 0.0 }
 0x595   :  { %v4725_v62 = vpack.c.bf16 %v4707_v30, %v4705_v3 }
 0x596   :  { %v4726_v52 = vpack.c.bf16 %v4708_v2, %v4706_v49  ;;  %v4672_v39 = vpop.f32.mrb[168].mxu0 }
 0x597   :  { %v4673_v56 = vadd.f32 %v4672_v39, %v8237_v42  ;;  %v4674_v32 = vpop.f32.mrb[169].mxu0 }
 0x598   :  { %v4675_v44 = vadd.f32 %v4674_v32, %v8240_v8  ;;  %v4676_v6 = vpop.f32.mrb[170].mxu0  ;;  %4944 = vmatprep.mubr.bf16.mxu1 %v4726_v52 }
 0x599   :  { %v4677_v33 = vadd.f32 %v4676_v6, %v8237_v42  ;;  %v4678_v57 = vpop.f32.mrb[171].mxu0  ;;  %4945 = vmatmul.mubr.bf16.gmra.mrb[172].mxu1 %v4725_v62  ;;  %v4709_v43 = vmax.f32 %v4673_v56, 0.0  ;;  %v6806_v42 = vld [vmem:[%s8371_s15 + $0x38] sm:$0xff]  }
 0x59a   :  { %v4679_v9 = vadd.f32 %v4678_v57, %v8240_v8  ;;  %v4710_v34 = vmax.f32 %v4675_v44, 0.0  ;;  %5998 = vmatprep.subr.bf16.mxu0 %v6806_v42 }
 0x59b   :  { %v4711_v35 = vmax.f32 %v4677_v33, 0.0  ;;  %5999 = vmatpush3.bf16.msra.mxu0 %v6806_v42 }
 0x59c   :  { %v4712_v14 = vmax.f32 %v4679_v9, 0.0 }
 0x59d   :  { %v4727_v59 = vpack.c.bf16 %v4711_v35, %v4709_v43 }
 0x59e   :  { %v4728_v13 = vpack.c.bf16 %v4712_v14, %v4710_v34 }
 0x5a0   :  { %4952 = vmatprep.mubr.bf16.mxu1 %v4728_v13 }
 0x5a1   :  { %4953 = vmatmul.mubr.bf16.gmra.mrb[176].mxu1 %v4727_v59 }
 0x63c   :  { %v5861_v8 = vpop.f32.mrb[148].mxu1 }
 0x63d   :  { %v5862_v7 = vpop.f32.mrb[149].mxu1 }
 0x63e   :  { %v5863_v23 = vadd.f32 %v5862_v7, %v5861_v8  ;;  %v5864_v48 = vpop.f32.mrb[150].mxu1 }
 0x63f   :  { %v5865_v1 = vpop.f32.mrb[151].mxu1 }
 0x640   :  { %v4899_v26 = vadd.f32 %v5863_v23, %v8283_v60  ;;  %v5866_v24 = vadd.f32 %v5865_v1, %v5864_v48 }
 0x642   :  { %v4902_v31 = vadd.f32 %v5866_v24, %v8283_v60  ;;  %v4961_v58 = vmax.f32 %v4899_v26, 0.0 }
 0x644   :  { %v4962_v15 = vmax.f32 %v4902_v31, 0.0  ;;  %v5867_v11 = vpop.f32.mrb[152].mxu1 }
 0x645   :  { %v5868_v29 = vpop.f32.mrb[153].mxu1 }
 0x646   :  { %v5869_v4 = vadd.f32 %v5868_v29, %v5867_v11  ;;  %v5870_v22 = vpop.f32.mrb[154].mxu1  ;;  %v4977_v53 = vpack.c.bf16 %v4962_v15, %v4961_v58 }
 0x647   :  { %v5871_v40 = vpop.f32.mrb[155].mxu1 }
 0x648   :  { %v4907_v51 = vadd.f32 %v5869_v4, %v8283_v60  ;;  %v5872_v46 = vadd.f32 %v5871_v40, %v5870_v22  ;;  %6000 = vmatprep.mubr.bf16.mxu0 %v4977_v53 }
 0x64a   :  { %v4910_v47 = vadd.f32 %v5872_v46, %v8283_v60  ;;  %v4963_v54 = vmax.f32 %v4907_v51, 0.0 }
 0x64c   :  { %v4964_v19 = vmax.f32 %v4910_v47, 0.0  ;;  %v5873_v50 = vpop.f32.mrb[156].mxu1 }
 0x64d   :  { %v5874_v16 = vpop.f32.mrb[157].mxu1 }
 0x64e   :  { %v4978_v38 = vpack.c.bf16 %v4964_v19, %v4963_v54  ;;  %v5875_v27 = vadd.f32 %v5874_v16, %v5873_v50  ;;  %v5876_v41 = vpop.f32.mrb[158].mxu1 }
 0x64f   :  { %v5877_v28 = vpop.f32.mrb[159].mxu1 }
 0x650   :  { %v4915_v45 = vadd.f32 %v5875_v27, %v8283_v60  ;;  %v5878_v0 = vadd.f32 %v5877_v28, %v5876_v41  ;;  %6001 = vmatmul.mubr.bf16.vlgmr.msra.gmra.mrb[172].mxu0 %v4978_v38  ;;  %v7086_v28 = vmov 0.0  }
 0x651   :  { %6016 = vmatprep.subr.bf16.mxu1 %v7086_v28  ;;  %6032 = vmatprep.mubr.msk.bf16.mxu1 %vm7087_vm2, %v7086_v28 }
 0x652   :  { %v4918_v37 = vadd.f32 %v5878_v0, %v8283_v60  ;;  %v4965_v61 = vmax.f32 %v4915_v45, 0.0  ;;  %v5178_v45 = vld [vmem:[#allocation2] sm:$0x1] }
 0x653   :  { %5181 = vperm.xlu0 %6317, %v5178_v45   ;;  %v8306_v0 = vld [vmem:[%s8372_s16] ss:$0 sm:$0xff] }
 0x654   :  { %v4966_v25 = vmax.f32 %v4918_v37, 0.0  ;;  %v5879_v17 = vpop.f32.mrb[160].mxu1 }
 0x655   :  { %v5880_v63 = vpop.f32.mrb[161].mxu1 }
 0x656   :  { %v5881_v20 = vadd.f32 %v5880_v63, %v5879_v17  ;;  %v5882_v10 = vpop.f32.mrb[162].mxu1  ;;  %v4979_v18 = vpack.c.bf16 %v4966_v25, %v4965_v61 }
 0x657   :  { %v5883_v21 = vpop.f32.mrb[163].mxu1 }
 0x658   :  { %v4923_v12 = vadd.f32 %v5881_v20, %v8283_v60  ;;  %v5884_v55 = vadd.f32 %v5883_v21, %v5882_v10  ;;  %6004 = vmatprep.mubr.bf16.mxu0 %v4979_v18 }
 0x65a   :  { %v4926_v3 = vadd.f32 %v5884_v55, %v8283_v60  ;;  %v4967_v30 = vmax.f32 %v4923_v12, 0.0 }
 0x65c   :  { %v4968_v49 = vmax.f32 %v4926_v3, 0.0  ;;  %v5885_v2 = vpop.f32.mrb[164].mxu1 }
 0x65d   :  { %v5886_v62 = vpop.f32.mrb[165].mxu1 }
 0x65e   :  { %v5887_v52 = vadd.f32 %v5886_v62, %v5885_v2  ;;  %v5888_v39 = vpop.f32.mrb[166].mxu1  ;;  %v4980_v56 = vpack.c.bf16 %v4968_v49, %v4967_v30 }
 0x65f   :  { %v5889_v32 = vpop.f32.mrb[167].mxu1 }
 0x660   :  { %v4931_v44 = vadd.f32 %v5887_v52, %v8283_v60  ;;  %v5890_v6 = vadd.f32 %v5889_v32, %v5888_v39  ;;  %6005 = vmatmul.mubr.bf16.gmra.mrb[176].mxu0 %v4980_v56 }
 0x662   :  { %v4934_v33 = vadd.f32 %v5890_v6, %v8283_v60  ;;  %v4969_v57 = vmax.f32 %v4931_v44, 0.0 }
 0x664   :  { %v4970_v9 = vmax.f32 %v4934_v33, 0.0  ;;  %v5891_v43 = vpop.f32.mrb[168].mxu1 }
 0x665   :  { %v5892_v35 = vpop.f32.mrb[169].mxu1 }
 0x666   :  { %v5893_v34 = vadd.f32 %v5892_v35, %v5891_v43  ;;  %v5894_v14 = vpop.f32.mrb[170].mxu1  ;;  %v4981_v59 = vpack.c.bf16 %v4970_v9, %v4969_v57 }
 0x667   :  { %v5895_v13 = vpop.f32.mrb[171].mxu1 }
 0x668   :  { %v4939_v5 = vadd.f32 %v5893_v34, %v8283_v60  ;;  %v5896_v42 = vadd.f32 %v5895_v13, %v5894_v14  ;;  %6008 = vmatprep.mubr.bf16.mxu0 %v4981_v59 }
 0x66a   :  { %v4942_v8 = vadd.f32 %v5896_v42, %v8283_v60  ;;  %v4971_v7 = vmax.f32 %v4939_v5, 0.0 }
 0x66c   :  { %v4972_v23 = vmax.f32 %v4942_v8, 0.0  ;;  %v5897_v48 = vpop.f32.mrb[172].mxu1 }
 0x66d   :  { %v5898_v1 = vpop.f32.mrb[173].mxu1 }
 0x66e   :  { %v5899_v26 = vadd.f32 %v5898_v1, %v5897_v48  ;;  %v5900_v24 = vpop.f32.mrb[174].mxu1  ;;  %v4982_v31 = vpack.c.bf16 %v4972_v23, %v4971_v7 }
 0x66f   :  { %v5901_v58 = vpop.f32.mrb[175].mxu1 }
 0x670   :  { %v4947_v15 = vadd.f32 %v5899_v26, %v8283_v60  ;;  %v5902_v11 = vadd.f32 %v5901_v58, %v5900_v24  ;;  %6009 = vmatmul.mubr.bf16.gmra.mrb[180].mxu0 %v4982_v31 }
 0x672   :  { %v4950_v29 = vadd.f32 %v5902_v11, %v8283_v60  ;;  %v4973_v4 = vmax.f32 %v4947_v15, 0.0 }
 0x674   :  { %v4974_v22 = vmax.f32 %v4950_v29, 0.0  ;;  %v5903_v53 = vpop.f32.mrb[176].mxu1 }
 0x675   :  { %v5904_v40 = vpop.f32.mrb[177].mxu1 }
 0x676   :  { %v5905_v51 = vadd.f32 %v5904_v40, %v5903_v53  ;;  %v5906_v46 = vpop.f32.mrb[178].mxu1  ;;  %v4983_v47 = vpack.c.bf16 %v4974_v22, %v4973_v4 }
 0x677   :  { %v5907_v54 = vpop.f32.mrb[179].mxu1 }
 0x678   :  { %v4955_v19 = vadd.f32 %v5905_v51, %v8283_v60  ;;  %v5908_v50 = vadd.f32 %v5907_v54, %v5906_v46  ;;  %6012 = vmatprep.mubr.bf16.mxu0 %v4983_v47 }
 0x67a   :  { %v4958_v16 = vadd.f32 %v5908_v50, %v8283_v60  ;;  %v4975_v38 = vmax.f32 %v4955_v19, 0.0 }
 0x67c   :  { %v4976_v27 = vmax.f32 %v4958_v16, 0.0 }
 0x67e   :  { %v4984_v41 = vpack.c.bf16 %v4976_v27, %v4975_v38 }
 0x680   :  { %6013 = vmatmul.mubr.bf16.gmra.mrb[184].mxu0 %v4984_v41 }
 0x723   :  { %v6002_v37 = vpop.f32.mrb[172].mxu0 }
 0x724   :  { %v5099_v60 = vadd.f32 %v6002_v37, %v8306_v0  ;;  %v5090_v61 = vpop.f32.mrb[173].mxu0 }
 0x725   :  { %v5091_v25 = vadd.f32 %v8306_v0, %v5090_v61  ;;  %v6003_v17 = vpop.f32.mrb[174].mxu0 }
 0x726   :  { %v5102_v63 = vadd.f32 %v6003_v17, %v8306_v0  ;;  %v5093_v20 = vpop.f32.mrb[175].mxu0  ;;  %v5155_v18 = vmax.f32 %v5099_v60, 0.0 }
 0x727   :  { %v5094_v10 = vadd.f32 %v8306_v0, %v5093_v20  ;;  %v5153_v12 = vmax.f32 %v5091_v25, 0.0  ;;  %v5182_v25 = vpop.permute.xlu0 %5181 }
 0x728   :  { %v5156_v21 = vmax.f32 %v5102_v63, 0.0  ;;  %v5187_v17 = vrot.slane %v5182_v25, %v7484_v36 }
 0x729   :  { %v5154_v55 = vmax.f32 %v5094_v10, 0.0 }
 0x72a   :  { %v5170_v3 = vpack.c.bf16 %v5156_v21, %v5155_v18 }
 0x72b   :  { %v5169_v30 = vpack.c.bf16 %v5154_v55, %v5153_v12 }
 0x72c   :  { %v5196_v32 = vsel %vm5188_vm3, %v5170_v3, 0 }
 0x72d   :  { %v5193_v49 = vsel %vm5188_vm3, %v5169_v30, 0 }
 0x72e   :  { %6017 = vmatpush3.bf16.xpose.msra.mxu1 %v5193_v49 }
 0x72f   :  { %6018 = vmatprep.subr.bf16.mxu1 %v7086_v28 }
 0x733   :  { %v6006_v2 = vpop.f32.mrb[176].mxu0 }
 0x734   :  { %v5115_v62 = vadd.f32 %v6006_v2, %v8306_v0  ;;  %v5106_v52 = vpop.f32.mrb[177].mxu0 }
 0x735   :  { %v5107_v39 = vadd.f32 %v8306_v0, %v5106_v52  ;;  %v6007_v56 = vpop.f32.mrb[178].mxu0 }
 0x736   :  { %v5118_v44 = vadd.f32 %v6007_v56, %v8306_v0  ;;  %v5109_v6 = vpop.f32.mrb[179].mxu0  ;;  %6019 = vmatpush3.bf16.xpose.msra.mxu1 %v5196_v32  ;;  %v5159_v57 = vmax.f32 %v5115_v62, 0.0 }
 0x737   :  { %v5110_v33 = vadd.f32 %v8306_v0, %v5109_v6  ;;  %6020 = vmatprep.subr.bf16.mxu1 %v7086_v28  ;;  %v5157_v43 = vmax.f32 %v5107_v39, 0.0 }
 0x738   :  { %v5160_v9 = vmax.f32 %v5118_v44, 0.0 }
 0x739   :  { %v5158_v35 = vmax.f32 %v5110_v33, 0.0 }
 0x73a   :  { %v5172_v34 = vpack.c.bf16 %v5160_v9, %v5159_v57 }
 0x73b   :  { %v5171_v14 = vpack.c.bf16 %v5158_v35, %v5157_v43 }
 0x73c   :  { %v5202_v23 = vsel %vm5188_vm3, %v5172_v34, 0 }
 0x73d   :  { %v5199_v59 = vsel %vm5188_vm3, %v5171_v14, 0 }
 0x73e   :  { %6021 = vmatpush3.bf16.xpose.msra.mxu1 %v5199_v59 }
 0x73f   :  { %6022 = vmatprep.subr.bf16.mxu1 %v7086_v28 }
 0x743   :  { %v6010_v13 = vpop.f32.mrb[180].mxu0 }
 0x744   :  { %v5131_v5 = vadd.f32 %v6010_v13, %v8306_v0  ;;  %v5122_v42 = vpop.f32.mrb[181].mxu0 }
 0x745   :  { %v5123_v8 = vadd.f32 %v8306_v0, %v5122_v42  ;;  %v6011_v7 = vpop.f32.mrb[182].mxu0 }
 0x746   :  { %v5134_v48 = vadd.f32 %v6011_v7, %v8306_v0  ;;  %v5125_v1 = vpop.f32.mrb[183].mxu0  ;;  %6023 = vmatpush3.bf16.xpose.msra.mxu1 %v5202_v23  ;;  %v5163_v24 = vmax.f32 %v5131_v5, 0.0 }
 0x747   :  { %v5126_v26 = vadd.f32 %v8306_v0, %v5125_v1  ;;  %6024 = vmatprep.subr.bf16.mxu1 %v7086_v28  ;;  %v5161_v58 = vmax.f32 %v5123_v8, 0.0 }
 0x748   :  { %v5164_v31 = vmax.f32 %v5134_v48, 0.0 }
 0x749   :  { %v5162_v15 = vmax.f32 %v5126_v26, 0.0 }
 0x74a   :  { %v5174_v11 = vpack.c.bf16 %v5164_v31, %v5163_v24 }
 0x74b   :  { %v5173_v29 = vpack.c.bf16 %v5162_v15, %v5161_v58 }
 0x74c   :  { %v5208_v47 = vsel %vm5188_vm3, %v5174_v11, 0 }
 0x74d   :  { %v5205_v4 = vsel %vm5188_vm3, %v5173_v29, 0 }
 0x74e   :  { %6025 = vmatpush3.bf16.xpose.msra.mxu1 %v5205_v4 }
 0x74f   :  { %6026 = vmatprep.subr.bf16.mxu1 %v7086_v28 }
 0x753   :  { %v6014_v22 = vpop.f32.mrb[184].mxu0 }
 0x754   :  { %v5147_v53 = vadd.f32 %v6014_v22, %v8306_v0  ;;  %v5138_v40 = vpop.f32.mrb[185].mxu0 }
 0x755   :  { %v5139_v51 = vadd.f32 %v8306_v0, %v5138_v40  ;;  %v6015_v46 = vpop.f32.mrb[186].mxu0 }
 0x756   :  { %v5150_v54 = vadd.f32 %v6015_v46, %v8306_v0  ;;  %v5141_v19 = vpop.f32.mrb[187].mxu0  ;;  %6027 = vmatpush3.bf16.xpose.msra.mxu1 %v5208_v47  ;;  %v5167_v16 = vmax.f32 %v5147_v53, 0.0 }
 0x757   :  { %v5142_v50 = vadd.f32 %v8306_v0, %v5141_v19  ;;  %6028 = vmatprep.subr.bf16.mxu1 %v7086_v28  ;;  %v5165_v27 = vmax.f32 %v5139_v51, 0.0  ;;  %v5177_v0 = vld [vmem:[%s8373_s17] sm:$0x1]  ;;  %s7031_s17 = scalar_lea.vmem %s5269_s12, 16 }
 0x758   :  { %v5168_v38 = vmax.f32 %v5150_v54, 0.0  ;;  %p7032_p10 = scmp.ne.s32.totalorder %s5269_s12, %s7031_s17  ;;  %p7037_p12 = scmp.lt.s32.totalorder %s7035_s7, %s7031_s17 }
 0x759   :  { %v5166_v41 = vmax.f32 %v5142_v50, 0.0 }
 0x75a   :  { %v5176_v45 = vpack.c.bf16 %v5168_v38, %v5167_v16  ;;  %p7038_p13 = por %p7037_p12, %p7036_p11 }
 0x75b   :  { %v5175_v37 = vpack.c.bf16 %v5166_v41, %v5165_v27 }
 0x75c   :  { %v5214_v61 = vsel %vm5188_vm3, %v5176_v45, 0  ;;  %p7039_p0 = pnand %p7038_p13, %p7032_p10 }
 0x75d   :  { %v5211_v60 = vsel %vm5188_vm3, %v5175_v37, 0 }
 0x75e   :  { %6029 = vmatpush3.bf16.xpose.msra.mxu1 %v5211_v60 }
 0x75f   :  { %6030 = vmatprep.subr.bf16.mxu1 %v7086_v28 }
 0x766   :  { %6031 = vmatpush3.bf16.xpose.msra.mxu1 %v5214_v61 }
 0x76d   :  { %6033 = vmatmul.mubr.msk.bf16.vlgmr.msra.gmra.mrb[180].mxu1 %vm5188_vm3, %v5177_v0 }
 0x840   :  { %v5250_v63 = vpop.f32.mrb[180].mxu1 }
 0x841   :  { %v5251_v20 = vadd.f32 %v5250_v63, %v5187_v17  ;;  %v6034_v10 = vpop.f32.mrb[181].mxu1 }
 0x842   :  { %v5253_v18 = vpop.f32.mrb[182].mxu1 }
 0x843   :  { %v5256_v21 = vsub.f32 0.0, %v5251_v20  ;;  %v6035_v12 = vpop.f32.mrb[183].mxu1 }
 0x845   :  { %v5257_v55 = vmul.f32 1.442695, %v5256_v21 }
 0x847   :  { %6807 = vpow2.f32 %v5257_v55 }
 0x851   :  { %v6808_v28 = vpop.eup %6807 }
 0x852   :  { %v5259_v3 = vadd.f32 1.0, %v6808_v28 }
 0x854   :  { %6809 = vrcp.f32 %v5259_v3 }
 0x85e   :  { %v6810_v30 = vpop.eup %6809 }
 0x85f   :  { %5261 = vst [vmem:[#allocation20] sm:$0x1] %v6810_v30 }
 0x860   :  { %7042 = shalt.err (!%p7039_p0)
}
 0x861   :  { %s7043_s22 = scalar_lea.hbm %s8375_s19, 16 }
 0x862   :  { %p7044_p1 = scmp.ne.s32.totalorder %s8375_s19, %s7043_s22  ;;  %p7047_p2 = scmp.lt.u32.totalorder %s7043_s22, %s8375_s19 }
 0x864   :  { %p7049_p3 = pnand %p7047_p2, %p7044_p1 }
 0x866   :  { %7052 = shalt.err (!%p7049_p3)
}
 0x867   :  { %5271 = dma.vmem_to_hbm [thread:$0]  %s5269_s12, 16, %s8375_s19, [#allocation5]  }
 0x868   :  { %7065 = dma.done.wait [#allocation5], 16  }
 0x869   :  { %7066 = vsyncadd [#allocation5], 4294967280 }
 0x86a   :  { %5275 = vsyncpa [#allocation4], 1 }
 0x86b   :  { %5276 = vsyncpa [#allocation7], 1 }
 0x86c   :  { %5277 = vsyncpa [#allocation10], 1 }
 0x86d   :  { %5278 = vsyncpa [#allocation13], 1 }
 0x86e   :  { %5279 = vsyncpa [#allocation16], 1 }
 0x86f   :  { %5280 = vsyncpa [#allocation19], 1 }
 0x870   :  { %5281 = vsyncpa [#allocation5], 1 }

</bundles_post_ra>
